<compile_context>
chip_gen: v5e
topology: v5e:2x2
jax: 0.10.0
libtpu: 0.0.40
codegen_flags: <defaults>
</compile_context>

<pallas_src>
import jax
import jax.numpy as jnp
from jax import lax
from jax.experimental import pallas as pl
from jax.experimental.pallas import tpu as pltpu

# Model hyper-parameters (from the PyTorch module)
NINP = 12      # len(FEATURE_COLUMNS)
NHID = 20
NLEN = 20      # window_size
CLASSES = 1    # kernel's fused VPU classifier assumes classes == 1
BI = True
NDIR = 1 + int(BI)
GW = 128       # lane-aligned per-gate block width (holds [fwd H | bwd H | pad])


def timeseries_kernel(x_ref,      # (T*B, 2I)   row t*B+b = [x[b,t,:], x[b,T-1-t,:]]
                      wih_ref,    # (2I, 4*GW)  combined input weights (lane-padded blocks)
                      whh_ref,    # (GW, 4*GW)  block-diagonal recurrence weights
                      b_ref,      # (1, 4*GW)   combined gate biases (b_ih + b_hh per dir)
                      wc_ref,     # (T, 1, GW)  classifier weights aligned to loop step
                      bc_ref,     # (1,)        classifier bias (SMEM)
                      out_ref,    # (B, 1)
                      xp_ref):    # (T*B, 4*GW) VMEM scratch: hoisted input projection
    TB = x_ref.shape[0]
    T = wc_ref.shape[0]
    B = TB // T
    gw = wc_ref.shape[2]          # padded per-gate / state width (128)

    # (1) Hoisted input projection: one MXU matmul covers both directions and
    #     all T time steps; removes x@W_ih from the serial recurrence chain.
    xp_ref[...] = (
        jnp.dot(x_ref[...], wih_ref[...], preferred_element_type=jnp.float32)
        + b_ref[...])

    whh = whh_ref[...]            # hoisted (GW, 4*GW) recurrence-weight load

    h = jnp.zeros((B, gw), jnp.float32)     # [h_fwd | h_bwd | 0-pad]
    c = jnp.zeros((B, gw), jnp.float32)
    acc = jnp.zeros((B, gw), jnp.float32)   # fused-classifier accumulator

    # (2) Fused fwd+bwd recurrence, fully unrolled: static trip count and
    #     lane-aligned static slice offsets everywhere.
    # TODO(synk): if the bundle dump shows a per-step RHS push, switch to
    # pltpu.matmul_push_rhs / matmul_acc_lhs / matmul_pop to keep whh resident
    # in the MXU across all 20 steps.
    for t in range(T):
        xp_t = xp_ref[t * B:(t + 1) * B, :]                       # (B, 4*GW) static slice
        gates = jnp.dot(h, whh, preferred_element_type=jnp.float32) + xp_t
        # (3) EUP work restricted to the gates that need it:
        #     sigmoid over the contiguous [i|f|o] range, tanh over g only.
        sig = jax.nn.sigmoid(gates[:, :3 * gw])
        g = jnp.tanh(gates[:, 3 * gw:])
        i = sig[:, 0 * gw:1 * gw]
        f = sig[:, 1 * gw:2 * gw]
        o = sig[:, 2 * gw:3 * gw]
        c = f * c + i * g
        h = o * jnp.tanh(c)
        # (4) Classifier fused as a VPU multiply-accumulate (no N=1 MXU matmul).
        acc = acc + h * wc_ref[t]                                 # (B,GW) * (1,GW)

    # Single lane-reduce at the end; scalar classifier bias read from SMEM.
    out_ref[...] = jnp.sum(acc, axis=-1, keepdims=True) + bc_ref[0]


def timeseries_forward(x, params):
    """x: (B, T, NINP) float32 (batch_first, like the PyTorch module)."""
    B0, T, I = x.shape
    H = NHID
    assert CLASSES == 1, "fused VPU classifier path assumes classes == 1"
    assert 2 * H <= GW

    x = x.astype(jnp.float32)
    # Pad batch to a multiple of 8 sublanes (>=8): same per-step latency, full vregs.
    B = max(8, ((B0 + 7) // 8) * 8)
    if B != B0:
        x = jnp.pad(x, ((0, B - B0), (0, 0), (0, 0)))

    x_tm = jnp.transpose(x, (1, 0, 2))                       # (T, B, I)
    x_comb = jnp.concatenate([x_tm, x_tm[::-1]], axis=-1)    # (T, B, 2I): [x[t] | x[T-1-t]]
    x_flat = x_comb.reshape(T * B, 2 * I)

    # Gate axis layout: 4 lane-aligned blocks of width GW=128, gate order
    # [i, f, o, g]; inside each block cols 0:H are forward, H:2H backward,
    # 2H:GW zero padding (so padded gate pre-activations are exactly 0).
    gate_perm = jnp.array([0, 1, 3, 2])   # PyTorch [i,f,g,o] -> [i,f,o,g]
    padg = GW - 2 * H

    def pack_ih(w):                        # (4H, I) -> (I, 4, H), gates reordered
        return w.T.reshape(I, 4, H)[:, gate_perm, :]

    wihf, wihb = pack_ih(params["w_ih_f"]), pack_ih(params["w_ih_b"])
    zI_h = jnp.zeros((I, 4, H), jnp.float32)
    zI_p = jnp.zeros((I, 4, padg), jnp.float32)
    wih_comb = jnp.concatenate([
        jnp.concatenate([wihf, zI_h, zI_p], axis=-1).reshape(I, 4 * GW),   # rows act on x[t]
        jnp.concatenate([zI_h, wihb, zI_p], axis=-1).reshape(I, 4 * GW)],  # rows act on x[T-1-t]
        axis=0)                                                            # (2I, 4*GW)

    def pack_hh(w):                        # (4H, H) -> (H, 4, H), gates reordered
        return w.T.reshape(H, 4, H)[:, gate_perm, :]

    whhf, whhb = pack_hh(params["w_hh_f"]), pack_hh(params["w_hh_b"])
    zH_h = jnp.zeros((H, 4, H), jnp.float32)
    zH_p = jnp.zeros((H, 4, padg), jnp.float32)
    whh_comb = jnp.concatenate([
        jnp.concatenate([whhf, zH_h, zH_p], axis=-1).reshape(H, 4 * GW),   # rows 0:H   <- h_fwd
        jnp.concatenate([zH_h, whhb, zH_p], axis=-1).reshape(H, 4 * GW),   # rows H:2H  <- h_bwd
        jnp.zeros((padg, 4 * GW), jnp.float32)], axis=0)                   # pad rows
    # (GW, 4*GW)

    bf = (params["b_ih_f"] + params["b_hh_f"]).reshape(4, H)[gate_perm, :]
    bb = (params["b_ih_b"] + params["b_hh_b"]).reshape(4, H)[gate_perm, :]
    b_comb = jnp.concatenate([bf, bb, jnp.zeros((4, padg), jnp.float32)],
                             axis=-1).reshape(1, 4 * GW)                   # (1, 4*GW)

    # classify.weight (1, T*2H) acts on reshape((B,T,2H) -> (B,T*2H)):
    # feature index = t*2H + dir*H + k.  Re-align so loop step s pairs
    # h_fwd(time s) with wc[s, fwd] and h_bwd(time T-1-s) with wc[T-1-s, bwd].
    wc = params["w_c"].reshape(T, 2, H)                                    # (t, dir, k)
    wc_comb = jnp.concatenate([wc[:, 0, :], wc[::-1, 1, :],
                               jnp.zeros((T, padg), jnp.float32)], axis=-1)
    wc_comb = wc_comb.reshape(T, 1, GW)
    bc = params["b_c"].reshape(1).astype(jnp.float32)

    vmem = pl.BlockSpec(memory_space=pltpu.MemorySpace.VMEM)
    smem = pl.BlockSpec(memory_space=pltpu.MemorySpace.SMEM)
    out = pl.pallas_call(
        timeseries_kernel,
        out_shape=jax.ShapeDtypeStruct((B, CLASSES), jnp.float32),
        in_specs=[vmem, vmem, vmem, vmem, vmem, smem],
        out_specs=vmem,
        scratch_shapes=[pltpu.VMEM((T * B, 4 * GW), jnp.float32)],
    )(x_flat, wih_comb, whh_comb, b_comb, wc_comb, bc)
    # TODO(synk): at serving batch sizes (>=16 rows) on v7x, add a batch grid
    # axis with dimension_semantics=("parallel",) and per-tile BlockSpecs so
    # both TensorCores run independent recurrences on half the batch.
    return out[:B0]


def reference_forward(x, p):
    """Pure-JAX reference matching PyTorch nn.LSTM(bidirectional) + Linear (eval)."""
    B, T, _ = x.shape
    H = NHID

    def run_dir(xs, w_ih, w_hh, b):
        def step(carry, x_t):
            h, c = carry
            gates = x_t @ w_ih.T + h @ w_hh.T + b
            i = jax.nn.sigmoid(gates[:, :H])
            f = jax.nn.sigmoid(gates[:, H:2 * H])
            g = jnp.tanh(gates[:, 2 * H:3 * H])
            o = jax.nn.sigmoid(gates[:, 3 * H:])
            c = f * c + i * g
            h = o * jnp.tanh(c)
            return (h, c), h
        init = (jnp.zeros((B, H), jnp.float32), jnp.zeros((B, H), jnp.float32))
        _, hs = lax.scan(step, init, xs)
        return hs                                                    # (T, B, H)

    xs = jnp.transpose(x, (1, 0, 2))
    hf = run_dir(xs, p["w_ih_f"], p["w_hh_f"], p["b_ih_f"] + p["b_hh_f"])
    hb = run_dir(xs[::-1], p["w_ih_b"], p["w_hh_b"], p["b_ih_b"] + p["b_hh_b"])[::-1]
    out = jnp.concatenate([hf, hb], axis=-1)                         # (T, B, 2H)
    feat = jnp.transpose(out, (1, 0, 2)).reshape(B, T * 2 * H)
    return feat @ p["w_c"].T + p["b_c"]


def init_params(key):
    """Deterministic init matching PyTorch shapes (uniform(-1/sqrt(H), 1/sqrt(H)) style)."""
    H, I, T, C = NHID, NINP, NLEN, CLASSES
    k_lstm = 1.0 / jnp.sqrt(jnp.float32(H))
    k_lin = 1.0 / jnp.sqrt(jnp.float32(NDIR * H * T))
    keys = jax.random.split(key, 10)

    def u(k, shape, bound):
        return jax.random.uniform(k, shape, jnp.float32, -bound, bound)

    return {
        "w_ih_f": u(keys[0], (4 * H, I), k_lstm),
        "w_hh_f": u(keys[1], (4 * H, H), k_lstm),
        "b_ih_f": u(keys[2], (4 * H,), k_lstm),
        "b_hh_f": u(keys[3], (4 * H,), k_lstm),
        "w_ih_b": u(keys[4], (4 * H, I), k_lstm),
        "w_hh_b": u(keys[5], (4 * H, H), k_lstm),
        "b_ih_b": u(keys[6], (4 * H,), k_lstm),
        "b_hh_b": u(keys[7], (4 * H,), k_lstm),
        "w_c": u(keys[8], (C, NDIR * H * T), k_lin),
        "b_c": u(keys[9], (C,), k_lin),
    }


if __name__ == "__main__":
    key = jax.random.PRNGKey(0)
    k_param, k_x = jax.random.split(key)

    params = init_params(k_param)
    B = 2
    x = jax.random.normal(k_x, (B, NLEN, NINP), jnp.float32)         # (batch, seq, feat)

    out = timeseries_forward(x, params)
    out = jax.block_until_ready(out)

    ref = reference_forward(x, params)
    assert out.shape == (B, CLASSES)
    assert jnp.allclose(out, ref, atol=1e-4, rtol=1e-4), (out, ref)

    print("KERNEL_OK")
</pallas_src>

<mosaic_0001>
module attributes {stable_mosaic.version = 11 : i64} {
  func.func @timeseries_kernel(%arg0: memref<160x24xf32, #tpu.memory_space<vmem>>, %arg1: memref<24x512xf32, #tpu.memory_space<vmem>>, %arg2: memref<128x512xf32, #tpu.memory_space<vmem>>, %arg3: memref<1x512xf32, #tpu.memory_space<vmem>>, %arg4: memref<20x1x128xf32, #tpu.memory_space<vmem>>, %arg5: memref<1xf32, #tpu.memory_space<smem>>, %arg6: memref<8x1xf32, #tpu.memory_space<vmem>>, %arg7: memref<160x512xf32, #tpu.memory_space<vmem>>) attributes {dimension_semantics = [], scalar_prefetch = 0 : i64, scratch_operands = 1 : i64, tpu.core_type = #tpu.core_type<tc>} {
    %c0 = arith.constant 0 : index
    %c0_0 = arith.constant 0 : index
    %0 = vector.load %arg0[%c0, %c0_0] : memref<160x24xf32, #tpu.memory_space<vmem>>, vector<160x24xf32>
    %c0_1 = arith.constant 0 : index
    %c0_2 = arith.constant 0 : index
    %1 = vector.load %arg1[%c0_1, %c0_2] : memref<24x512xf32, #tpu.memory_space<vmem>>, vector<24x512xf32>
    %cst = arith.constant dense<0.000000e+00> : vector<160x512xf32>
    %2 = tpu.matmul %0, %1, %cst {dimension_numbers = #tpu.dot_dimension_numbers<[1], [0], [0], [1], [0, 0, 1, 1], [], []>} : vector<160x24xf32>, vector<24x512xf32>, vector<160x512xf32> -> vector<160x512xf32>
    %c0_3 = arith.constant 0 : index
    %c0_4 = arith.constant 0 : index
    %3 = vector.load %arg3[%c0_3, %c0_4] : memref<1x512xf32, #tpu.memory_space<vmem>>, vector<1x512xf32>
    %4 = vector.broadcast %3 : vector<1x512xf32> to vector<160x512xf32>
    %5 = arith.addf %2, %4 : vector<160x512xf32>
    %c0_5 = arith.constant 0 : index
    %c0_6 = arith.constant 0 : index
    %6 = vector.load %arg7[%c0_5, %c0_6] : memref<160x512xf32, #tpu.memory_space<vmem>>, vector<160x512xf32>
    tpu.vector_store %arg7[%c0_5, %c0_6], %5 {strides = array<i32>} : memref<160x512xf32, #tpu.memory_space<vmem>>, vector<160x512xf32>,
    %c0_7 = arith.constant 0 : index
    %c0_8 = arith.constant 0 : index
    %7 = vector.load %arg2[%c0_7, %c0_8] : memref<128x512xf32, #tpu.memory_space<vmem>>, vector<128x512xf32>
    %cst_9 = arith.constant 0.000000e+00 : f32
    %8 = vector.broadcast %cst_9 : f32 to vector<8x128xf32>
    %cst_10 = arith.constant 0.000000e+00 : f32
    %9 = vector.broadcast %cst_10 : f32 to vector<8x128xf32>
    %cst_11 = arith.constant 0.000000e+00 : f32
    %10 = vector.broadcast %cst_11 : f32 to vector<8x128xf32>
    %c0_12 = arith.constant 0 : index
    %c0_13 = arith.constant 0 : index
    %11 = vector.load %arg7[%c0_12, %c0_13] : memref<160x512xf32, #tpu.memory_space<vmem>>, vector<8x512xf32>
    %cst_14 = arith.constant dense<0.000000e+00> : vector<8x512xf32>
    %12 = tpu.matmul %8, %7, %cst_14 {dimension_numbers = #tpu.dot_dimension_numbers<[1], [0], [0], [1], [0, 0, 1, 1], [], []>} : vector<8x128xf32>, vector<128x512xf32>, vector<8x512xf32> -> vector<8x512xf32>
    %13 = arith.addf %12, %11 : vector<8x512xf32>
    %14 = vector.extract_strided_slice %13 {offsets = [0, 0], sizes = [8, 384], strides = [1, 1]} : vector<8x512xf32> to vector<8x384xf32>
    %15 = arith.negf %14 : vector<8x384xf32>
    %16 = math.exp %15 : vector<8x384xf32>
    %cst_15 = arith.constant 1.000000e+00 : f32
    %17 = vector.broadcast %cst_15 : f32 to vector<8x384xf32>
    %18 = arith.addf %17, %16 : vector<8x384xf32>
    %19 = arith.divf %17, %18 : vector<8x384xf32>
    %20 = vector.extract_strided_slice %13 {offsets = [0, 384], sizes = [8, 128], strides = [1, 1]} : vector<8x512xf32> to vector<8x128xf32>
    %21 = math.tanh %20 : vector<8x128xf32>
    %22 = vector.extract_strided_slice %19 {offsets = [0, 0], sizes = [8, 128], strides = [1, 1]} : vector<8x384xf32> to vector<8x128xf32>
    %23 = vector.extract_strided_slice %19 {offsets = [0, 128], sizes = [8, 128], strides = [1, 1]} : vector<8x384xf32> to vector<8x128xf32>
    %24 = vector.extract_strided_slice %19 {offsets = [0, 256], sizes = [8, 128], strides = [1, 1]} : vector<8x384xf32> to vector<8x128xf32>
    %25 = arith.mulf %23, %9 : vector<8x128xf32>
    %26 = arith.mulf %22, %21 : vector<8x128xf32>
    %27 = arith.addf %25, %26 : vector<8x128xf32>
    %28 = math.tanh %27 : vector<8x128xf32>
    %29 = arith.mulf %24, %28 : vector<8x128xf32>
    %c0_16 = arith.constant 0 : index
    %c0_17 = arith.constant 0 : index
    %c0_18 = arith.constant 0 : index
    %30 = vector.load %arg4[%c0_16, %c0_17, %c0_18] : memref<20x1x128xf32, #tpu.memory_space<vmem>>, vector<1x1x128xf32>
    %31 = vector.shape_cast %30 : vector<1x1x128xf32> to vector<1x128xf32>
    %32 = vector.broadcast %31 : vector<1x128xf32> to vector<8x128xf32>
    %33 = arith.mulf %29, %32 : vector<8x128xf32>
    %34 = arith.addf %10, %33 : vector<8x128xf32>
    %c8 = arith.constant 8 : index
    %c0_19 = arith.constant 0 : index
    %35 = vector.load %arg7[%c8, %c0_19] : memref<160x512xf32, #tpu.memory_space<vmem>>, vector<8x512xf32>
    %cst_20 = arith.constant dense<0.000000e+00> : vector<8x512xf32>
    %36 = tpu.matmul %29, %7, %cst_20 {dimension_numbers = #tpu.dot_dimension_numbers<[1], [0], [0], [1], [0, 0, 1, 1], [], []>} : vector<8x128xf32>, vector<128x512xf32>, vector<8x512xf32> -> vector<8x512xf32>
    %37 = arith.addf %36, %35 : vector<8x512xf32>
    %38 = vector.extract_strided_slice %37 {offsets = [0, 0], sizes = [8, 384], strides = [1, 1]} : vector<8x512xf32> to vector<8x384xf32>
    %39 = arith.negf %38 : vector<8x384xf32>
    %40 = math.exp %39 : vector<8x384xf32>
    %cst_21 = arith.constant 1.000000e+00 : f32
    %41 = vector.broadcast %cst_21 : f32 to vector<8x384xf32>
    %42 = arith.addf %41, %40 : vector<8x384xf32>
    %43 = arith.divf %41, %42 : vector<8x384xf32>
    %44 = vector.extract_strided_slice %37 {offsets = [0, 384], sizes = [8, 128], strides = [1, 1]} : vector<8x512xf32> to vector<8x128xf32>
    %45 = math.tanh %44 : vector<8x128xf32>
    %46 = vector.extract_strided_slice %43 {offsets = [0, 0], sizes = [8, 128], strides = [1, 1]} : vector<8x384xf32> to vector<8x128xf32>
    %47 = vector.extract_strided_slice %43 {offsets = [0, 128], sizes = [8, 128], strides = [1, 1]} : vector<8x384xf32> to vector<8x128xf32>
    %48 = vector.extract_strided_slice %43 {offsets = [0, 256], sizes = [8, 128], strides = [1, 1]} : vector<8x384xf32> to vector<8x128xf32>
    %49 = arith.mulf %47, %27 : vector<8x128xf32>
    %50 = arith.mulf %46, %45 : vector<8x128xf32>
    %51 = arith.addf %49, %50 : vector<8x128xf32>
    %52 = math.tanh %51 : vector<8x128xf32>
    %53 = arith.mulf %48, %52 : vector<8x128xf32>
    %c1 = arith.constant 1 : index
    %c0_22 = arith.constant 0 : index
    %c0_23 = arith.constant 0 : index
    %54 = vector.load %arg4[%c1, %c0_22, %c0_23] : memref<20x1x128xf32, #tpu.memory_space<vmem>>, vector<1x1x128xf32>
    %55 = vector.shape_cast %54 : vector<1x1x128xf32> to vector<1x128xf32>
    %56 = vector.broadcast %55 : vector<1x128xf32> to vector<8x128xf32>
    %57 = arith.mulf %53, %56 : vector<8x128xf32>
    %58 = arith.addf %34, %57 : vector<8x128xf32>
    %c16 = arith.constant 16 : index
    %c0_24 = arith.constant 0 : index
    %59 = vector.load %arg7[%c16, %c0_24] : memref<160x512xf32, #tpu.memory_space<vmem>>, vector<8x512xf32>
    %cst_25 = arith.constant dense<0.000000e+00> : vector<8x512xf32>
    %60 = tpu.matmul %53, %7, %cst_25 {dimension_numbers = #tpu.dot_dimension_numbers<[1], [0], [0], [1], [0, 0, 1, 1], [], []>} : vector<8x128xf32>, vector<128x512xf32>, vector<8x512xf32> -> vector<8x512xf32>
    %61 = arith.addf %60, %59 : vector<8x512xf32>
    %62 = vector.extract_strided_slice %61 {offsets = [0, 0], sizes = [8, 384], strides = [1, 1]} : vector<8x512xf32> to vector<8x384xf32>
    %63 = arith.negf %62 : vector<8x384xf32>
    %64 = math.exp %63 : vector<8x384xf32>
    %cst_26 = arith.constant 1.000000e+00 : f32
    %65 = vector.broadcast %cst_26 : f32 to vector<8x384xf32>
    %66 = arith.addf %65, %64 : vector<8x384xf32>
    %67 = arith.divf %65, %66 : vector<8x384xf32>
    %68 = vector.extract_strided_slice %61 {offsets = [0, 384], sizes = [8, 128], strides = [1, 1]} : vector<8x512xf32> to vector<8x128xf32>
    %69 = math.tanh %68 : vector<8x128xf32>
    %70 = vector.extract_strided_slice %67 {offsets = [0, 0], sizes = [8, 128], strides = [1, 1]} : vector<8x384xf32> to vector<8x128xf32>
    %71 = vector.extract_strided_slice %67 {offsets = [0, 128], sizes = [8, 128], strides = [1, 1]} : vector<8x384xf32> to vector<8x128xf32>
    %72 = vector.extract_strided_slice %67 {offsets = [0, 256], sizes = [8, 128], strides = [1, 1]} : vector<8x384xf32> to vector<8x128xf32>
    %73 = arith.mulf %71, %51 : vector<8x128xf32>
    %74 = arith.mulf %70, %69 : vector<8x128xf32>
    %75 = arith.addf %73, %74 : vector<8x128xf32>
    %76 = math.tanh %75 : vector<8x128xf32>
    %77 = arith.mulf %72, %76 : vector<8x128xf32>
    %c2 = arith.constant 2 : index
    %c0_27 = arith.constant 0 : index
    %c0_28 = arith.constant 0 : index
    %78 = vector.load %arg4[%c2, %c0_27, %c0_28] : memref<20x1x128xf32, #tpu.memory_space<vmem>>, vector<1x1x128xf32>
    %79 = vector.shape_cast %78 : vector<1x1x128xf32> to vector<1x128xf32>
    %80 = vector.broadcast %79 : vector<1x128xf32> to vector<8x128xf32>
    %81 = arith.mulf %77, %80 : vector<8x128xf32>
    %82 = arith.addf %58, %81 : vector<8x128xf32>
    %c24 = arith.constant 24 : index
    %c0_29 = arith.constant 0 : index
    %83 = vector.load %arg7[%c24, %c0_29] : memref<160x512xf32, #tpu.memory_space<vmem>>, vector<8x512xf32>
    %cst_30 = arith.constant dense<0.000000e+00> : vector<8x512xf32>
    %84 = tpu.matmul %77, %7, %cst_30 {dimension_numbers = #tpu.dot_dimension_numbers<[1], [0], [0], [1], [0, 0, 1, 1], [], []>} : vector<8x128xf32>, vector<128x512xf32>, vector<8x512xf32> -> vector<8x512xf32>
    %85 = arith.addf %84, %83 : vector<8x512xf32>
    %86 = vector.extract_strided_slice %85 {offsets = [0, 0], sizes = [8, 384], strides = [1, 1]} : vector<8x512xf32> to vector<8x384xf32>
    %87 = arith.negf %86 : vector<8x384xf32>
    %88 = math.exp %87 : vector<8x384xf32>
    %cst_31 = arith.constant 1.000000e+00 : f32
    %89 = vector.broadcast %cst_31 : f32 to vector<8x384xf32>
    %90 = arith.addf %89, %88 : vector<8x384xf32>
    %91 = arith.divf %89, %90 : vector<8x384xf32>
    %92 = vector.extract_strided_slice %85 {offsets = [0, 384], sizes = [8, 128], strides = [1, 1]} : vector<8x512xf32> to vector<8x128xf32>
    %93 = math.tanh %92 : vector<8x128xf32>
    %94 = vector.extract_strided_slice %91 {offsets = [0, 0], sizes = [8, 128], strides = [1, 1]} : vector<8x384xf32> to vector<8x128xf32>
    %95 = vector.extract_strided_slice %91 {offsets = [0, 128], sizes = [8, 128], strides = [1, 1]} : vector<8x384xf32> to vector<8x128xf32>
    %96 = vector.extract_strided_slice %91 {offsets = [0, 256], sizes = [8, 128], strides = [1, 1]} : vector<8x384xf32> to vector<8x128xf32>
    %97 = arith.mulf %95, %75 : vector<8x128xf32>
    %98 = arith.mulf %94, %93 : vector<8x128xf32>
    %99 = arith.addf %97, %98 : vector<8x128xf32>
    %100 = math.tanh %99 : vector<8x128xf32>
    %101 = arith.mulf %96, %100 : vector<8x128xf32>
    %c3 = arith.constant 3 : index
    %c0_32 = arith.constant 0 : index
    %c0_33 = arith.constant 0 : index
    %102 = vector.load %arg4[%c3, %c0_32, %c0_33] : memref<20x1x128xf32, #tpu.memory_space<vmem>>, vector<1x1x128xf32>
    %103 = vector.shape_cast %102 : vector<1x1x128xf32> to vector<1x128xf32>
    %104 = vector.broadcast %103 : vector<1x128xf32> to vector<8x128xf32>
    %105 = arith.mulf %101, %104 : vector<8x128xf32>
    %106 = arith.addf %82, %105 : vector<8x128xf32>
    %c32 = arith.constant 32 : index
    %c0_34 = arith.constant 0 : index
    %107 = vector.load %arg7[%c32, %c0_34] : memref<160x512xf32, #tpu.memory_space<vmem>>, vector<8x512xf32>
    %cst_35 = arith.constant dense<0.000000e+00> : vector<8x512xf32>
    %108 = tpu.matmul %101, %7, %cst_35 {dimension_numbers = #tpu.dot_dimension_numbers<[1], [0], [0], [1], [0, 0, 1, 1], [], []>} : vector<8x128xf32>, vector<128x512xf32>, vector<8x512xf32> -> vector<8x512xf32>
    %109 = arith.addf %108, %107 : vector<8x512xf32>
    %110 = vector.extract_strided_slice %109 {offsets = [0, 0], sizes = [8, 384], strides = [1, 1]} : vector<8x512xf32> to vector<8x384xf32>
    %111 = arith.negf %110 : vector<8x384xf32>
    %112 = math.exp %111 : vector<8x384xf32>
    %cst_36 = arith.constant 1.000000e+00 : f32
    %113 = vector.broadcast %cst_36 : f32 to vector<8x384xf32>
    %114 = arith.addf %113, %112 : vector<8x384xf32>
    %115 = arith.divf %113, %114 : vector<8x384xf32>
    %116 = vector.extract_strided_slice %109 {offsets = [0, 384], sizes = [8, 128], strides = [1, 1]} : vector<8x512xf32> to vector<8x128xf32>
    %117 = math.tanh %116 : vector<8x128xf32>
    %118 = vector.extract_strided_slice %115 {offsets = [0, 0], sizes = [8, 128], strides = [1, 1]} : vector<8x384xf32> to vector<8x128xf32>
    %119 = vector.extract_strided_slice %115 {offsets = [0, 128], sizes = [8, 128], strides = [1, 1]} : vector<8x384xf32> to vector<8x128xf32>
    %120 = vector.extract_strided_slice %115 {offsets = [0, 256], sizes = [8, 128], strides = [1, 1]} : vector<8x384xf32> to vector<8x128xf32>
    %121 = arith.mulf %119, %99 : vector<8x128xf32>
    %122 = arith.mulf %118, %117 : vector<8x128xf32>
    %123 = arith.addf %121, %122 : vector<8x128xf32>
    %124 = math.tanh %123 : vector<8x128xf32>
    %125 = arith.mulf %120, %124 : vector<8x128xf32>
    %c4 = arith.constant 4 : index
    %c0_37 = arith.constant 0 : index
    %c0_38 = arith.constant 0 : index
    %126 = vector.load %arg4[%c4, %c0_37, %c0_38] : memref<20x1x128xf32, #tpu.memory_space<vmem>>, vector<1x1x128xf32>
    %127 = vector.shape_cast %126 : vector<1x1x128xf32> to vector<1x128xf32>
    %128 = vector.broadcast %127 : vector<1x128xf32> to vector<8x128xf32>
    %129 = arith.mulf %125, %128 : vector<8x128xf32>
    %130 = arith.addf %106, %129 : vector<8x128xf32>
    %c40 = arith.constant 40 : index
    %c0_39 = arith.constant 0 : index
    %131 = vector.load %arg7[%c40, %c0_39] : memref<160x512xf32, #tpu.memory_space<vmem>>, vector<8x512xf32>
    %cst_40 = arith.constant dense<0.000000e+00> : vector<8x512xf32>
    %132 = tpu.matmul %125, %7, %cst_40 {dimension_numbers = #tpu.dot_dimension_numbers<[1], [0], [0], [1], [0, 0, 1, 1], [], []>} : vector<8x128xf32>, vector<128x512xf32>, vector<8x512xf32> -> vector<8x512xf32>
    %133 = arith.addf %132, %131 : vector<8x512xf32>
    %134 = vector.extract_strided_slice %133 {offsets = [0, 0], sizes = [8, 384], strides = [1, 1]} : vector<8x512xf32> to vector<8x384xf32>
    %135 = arith.negf %134 : vector<8x384xf32>
    %136 = math.exp %135 : vector<8x384xf32>
    %cst_41 = arith.constant 1.000000e+00 : f32
    %137 = vector.broadcast %cst_41 : f32 to vector<8x384xf32>
    %138 = arith.addf %137, %136 : vector<8x384xf32>
    %139 = arith.divf %137, %138 : vector<8x384xf32>
    %140 = vector.extract_strided_slice %133 {offsets = [0, 384], sizes = [8, 128], strides = [1, 1]} : vector<8x512xf32> to vector<8x128xf32>
    %141 = math.tanh %140 : vector<8x128xf32>
    %142 = vector.extract_strided_slice %139 {offsets = [0, 0], sizes = [8, 128], strides = [1, 1]} : vector<8x384xf32> to vector<8x128xf32>
    %143 = vector.extract_strided_slice %139 {offsets = [0, 128], sizes = [8, 128], strides = [1, 1]} : vector<8x384xf32> to vector<8x128xf32>
    %144 = vector.extract_strided_slice %139 {offsets = [0, 256], sizes = [8, 128], strides = [1, 1]} : vector<8x384xf32> to vector<8x128xf32>
    %145 = arith.mulf %143, %123 : vector<8x128xf32>
    %146 = arith.mulf %142, %141 : vector<8x128xf32>
    %147 = arith.addf %145, %146 : vector<8x128xf32>
    %148 = math.tanh %147 : vector<8x128xf32>
    %149 = arith.mulf %144, %148 : vector<8x128xf32>
    %c5 = arith.constant 5 : index
    %c0_42 = arith.constant 0 : index
    %c0_43 = arith.constant 0 : index
    %150 = vector.load %arg4[%c5, %c0_42, %c0_43] : memref<20x1x128xf32, #tpu.memory_space<vmem>>, vector<1x1x128xf32>
    %151 = vector.shape_cast %150 : vector<1x1x128xf32> to vector<1x128xf32>
    %152 = vector.broadcast %151 : vector<1x128xf32> to vector<8x128xf32>
    %153 = arith.mulf %149, %152 : vector<8x128xf32>
    %154 = arith.addf %130, %153 : vector<8x128xf32>
    %c48 = arith.constant 48 : index
    %c0_44 = arith.constant 0 : index
    %155 = vector.load %arg7[%c48, %c0_44] : memref<160x512xf32, #tpu.memory_space<vmem>>, vector<8x512xf32>
    %cst_45 = arith.constant dense<0.000000e+00> : vector<8x512xf32>
    %156 = tpu.matmul %149, %7, %cst_45 {dimension_numbers = #tpu.dot_dimension_numbers<[1], [0], [0], [1], [0, 0, 1, 1], [], []>} : vector<8x128xf32>, vector<128x512xf32>, vector<8x512xf32> -> vector<8x512xf32>
    %157 = arith.addf %156, %155 : vector<8x512xf32>
    %158 = vector.extract_strided_slice %157 {offsets = [0, 0], sizes = [8, 384], strides = [1, 1]} : vector<8x512xf32> to vector<8x384xf32>
    %159 = arith.negf %158 : vector<8x384xf32>
    %160 = math.exp %159 : vector<8x384xf32>
    %cst_46 = arith.constant 1.000000e+00 : f32
    %161 = vector.broadcast %cst_46 : f32 to vector<8x384xf32>
    %162 = arith.addf %161, %160 : vector<8x384xf32>
    %163 = arith.divf %161, %162 : vector<8x384xf32>
    %164 = vector.extract_strided_slice %157 {offsets = [0, 384], sizes = [8, 128], strides = [1, 1]} : vector<8x512xf32> to vector<8x128xf32>
    %165 = math.tanh %164 : vector<8x128xf32>
    %166 = vector.extract_strided_slice %163 {offsets = [0, 0], sizes = [8, 128], strides = [1, 1]} : vector<8x384xf32> to vector<8x128xf32>
    %167 = vector.extract_strided_slice %163 {offsets = [0, 128], sizes = [8, 128], strides = [1, 1]} : vector<8x384xf32> to vector<8x128xf32>
    %168 = vector.extract_strided_slice %163 {offsets = [0, 256], sizes = [8, 128], strides = [1, 1]} : vector<8x384xf32> to vector<8x128xf32>
    %169 = arith.mulf %167, %147 : vector<8x128xf32>
    %170 = arith.mulf %166, %165 : vector<8x128xf32>
    %171 = arith.addf %169, %170 : vector<8x128xf32>
    %172 = math.tanh %171 : vector<8x128xf32>
    %173 = arith.mulf %168, %172 : vector<8x128xf32>
    %c6 = arith.constant 6 : index
    %c0_47 = arith.constant 0 : index
    %c0_48 = arith.constant 0 : index
    %174 = vector.load %arg4[%c6, %c0_47, %c0_48] : memref<20x1x128xf32, #tpu.memory_space<vmem>>, vector<1x1x128xf32>
    %175 = vector.shape_cast %174 : vector<1x1x128xf32> to vector<1x128xf32>
    %176 = vector.broadcast %175 : vector<1x128xf32> to vector<8x128xf32>
    %177 = arith.mulf %173, %176 : vector<8x128xf32>
    %178 = arith.addf %154, %177 : vector<8x128xf32>
    %c56 = arith.constant 56 : index
    %c0_49 = arith.constant 0 : index
    %179 = vector.load %arg7[%c56, %c0_49] : memref<160x512xf32, #tpu.memory_space<vmem>>, vector<8x512xf32>
    %cst_50 = arith.constant dense<0.000000e+00> : vector<8x512xf32>
    %180 = tpu.matmul %173, %7, %cst_50 {dimension_numbers = #tpu.dot_dimension_numbers<[1], [0], [0], [1], [0, 0, 1, 1], [], []>} : vector<8x128xf32>, vector<128x512xf32>, vector<8x512xf32> -> vector<8x512xf32>
    %181 = arith.addf %180, %179 : vector<8x512xf32>
    %182 = vector.extract_strided_slice %181 {offsets = [0, 0], sizes = [8, 384], strides = [1, 1]} : vector<8x512xf32> to vector<8x384xf32>
    %183 = arith.negf %182 : vector<8x384xf32>
    %184 = math.exp %183 : vector<8x384xf32>
    %cst_51 = arith.constant 1.000000e+00 : f32
    %185 = vector.broadcast %cst_51 : f32 to vector<8x384xf32>
    %186 = arith.addf %185, %184 : vector<8x384xf32>
    %187 = arith.divf %185, %186 : vector<8x384xf32>
    %188 = vector.extract_strided_slice %181 {offsets = [0, 384], sizes = [8, 128], strides = [1, 1]} : vector<8x512xf32> to vector<8x128xf32>
    %189 = math.tanh %188 : vector<8x128xf32>
    %190 = vector.extract_strided_slice %187 {offsets = [0, 0], sizes = [8, 128], strides = [1, 1]} : vector<8x384xf32> to vector<8x128xf32>
    %191 = vector.extract_strided_slice %187 {offsets = [0, 128], sizes = [8, 128], strides = [1, 1]} : vector<8x384xf32> to vector<8x128xf32>
    %192 = vector.extract_strided_slice %187 {offsets = [0, 256], sizes = [8, 128], strides = [1, 1]} : vector<8x384xf32> to vector<8x128xf32>
    %193 = arith.mulf %191, %171 : vector<8x128xf32>
    %194 = arith.mulf %190, %189 : vector<8x128xf32>
    %195 = arith.addf %193, %194 : vector<8x128xf32>
    %196 = math.tanh %195 : vector<8x128xf32>
    %197 = arith.mulf %192, %196 : vector<8x128xf32>
    %c7 = arith.constant 7 : index
    %c0_52 = arith.constant 0 : index
    %c0_53 = arith.constant 0 : index
    %198 = vector.load %arg4[%c7, %c0_52, %c0_53] : memref<20x1x128xf32, #tpu.memory_space<vmem>>, vector<1x1x128xf32>
    %199 = vector.shape_cast %198 : vector<1x1x128xf32> to vector<1x128xf32>
    %200 = vector.broadcast %199 : vector<1x128xf32> to vector<8x128xf32>
    %201 = arith.mulf %197, %200 : vector<8x128xf32>
    %202 = arith.addf %178, %201 : vector<8x128xf32>
    %c64 = arith.constant 64 : index
    %c0_54 = arith.constant 0 : index
    %203 = vector.load %arg7[%c64, %c0_54] : memref<160x512xf32, #tpu.memory_space<vmem>>, vector<8x512xf32>
    %cst_55 = arith.constant dense<0.000000e+00> : vector<8x512xf32>
    %204 = tpu.matmul %197, %7, %cst_55 {dimension_numbers = #tpu.dot_dimension_numbers<[1], [0], [0], [1], [0, 0, 1, 1], [], []>} : vector<8x128xf32>, vector<128x512xf32>, vector<8x512xf32> -> vector<8x512xf32>
    %205 = arith.addf %204, %203 : vector<8x512xf32>
    %206 = vector.extract_strided_slice %205 {offsets = [0, 0], sizes = [8, 384], strides = [1, 1]} : vector<8x512xf32> to vector<8x384xf32>
    %207 = arith.negf %206 : vector<8x384xf32>
    %208 = math.exp %207 : vector<8x384xf32>
    %cst_56 = arith.constant 1.000000e+00 : f32
    %209 = vector.broadcast %cst_56 : f32 to vector<8x384xf32>
    %210 = arith.addf %209, %208 : vector<8x384xf32>
    %211 = arith.divf %209, %210 : vector<8x384xf32>
    %212 = vector.extract_strided_slice %205 {offsets = [0, 384], sizes = [8, 128], strides = [1, 1]} : vector<8x512xf32> to vector<8x128xf32>
    %213 = math.tanh %212 : vector<8x128xf32>
    %214 = vector.extract_strided_slice %211 {offsets = [0, 0], sizes = [8, 128], strides = [1, 1]} : vector<8x384xf32> to vector<8x128xf32>
    %215 = vector.extract_strided_slice %211 {offsets = [0, 128], sizes = [8, 128], strides = [1, 1]} : vector<8x384xf32> to vector<8x128xf32>
    %216 = vector.extract_strided_slice %211 {offsets = [0, 256], sizes = [8, 128], strides = [1, 1]} : vector<8x384xf32> to vector<8x128xf32>
    %217 = arith.mulf %215, %195 : vector<8x128xf32>
    %218 = arith.mulf %214, %213 : vector<8x128xf32>
    %219 = arith.addf %217, %218 : vector<8x128xf32>
    %220 = math.tanh %219 : vector<8x128xf32>
    %221 = arith.mulf %216, %220 : vector<8x128xf32>
    %c8_57 = arith.constant 8 : index
    %c0_58 = arith.constant 0 : index
    %c0_59 = arith.constant 0 : index
    %222 = vector.load %arg4[%c8_57, %c0_58, %c0_59] : memref<20x1x128xf32, #tpu.memory_space<vmem>>, vector<1x1x128xf32>
    %223 = vector.shape_cast %222 : vector<1x1x128xf32> to vector<1x128xf32>
    %224 = vector.broadcast %223 : vector<1x128xf32> to vector<8x128xf32>
    %225 = arith.mulf %221, %224 : vector<8x128xf32>
    %226 = arith.addf %202, %225 : vector<8x128xf32>
    %c72 = arith.constant 72 : index
    %c0_60 = arith.constant 0 : index
    %227 = vector.load %arg7[%c72, %c0_60] : memref<160x512xf32, #tpu.memory_space<vmem>>, vector<8x512xf32>
    %cst_61 = arith.constant dense<0.000000e+00> : vector<8x512xf32>
    %228 = tpu.matmul %221, %7, %cst_61 {dimension_numbers = #tpu.dot_dimension_numbers<[1], [0], [0], [1], [0, 0, 1, 1], [], []>} : vector<8x128xf32>, vector<128x512xf32>, vector<8x512xf32> -> vector<8x512xf32>
    %229 = arith.addf %228, %227 : vector<8x512xf32>
    %230 = vector.extract_strided_slice %229 {offsets = [0, 0], sizes = [8, 384], strides = [1, 1]} : vector<8x512xf32> to vector<8x384xf32>
    %231 = arith.negf %230 : vector<8x384xf32>
    %232 = math.exp %231 : vector<8x384xf32>
    %cst_62 = arith.constant 1.000000e+00 : f32
    %233 = vector.broadcast %cst_62 : f32 to vector<8x384xf32>
    %234 = arith.addf %233, %232 : vector<8x384xf32>
    %235 = arith.divf %233, %234 : vector<8x384xf32>
    %236 = vector.extract_strided_slice %229 {offsets = [0, 384], sizes = [8, 128], strides = [1, 1]} : vector<8x512xf32> to vector<8x128xf32>
    %237 = math.tanh %236 : vector<8x128xf32>
    %238 = vector.extract_strided_slice %235 {offsets = [0, 0], sizes = [8, 128], strides = [1, 1]} : vector<8x384xf32> to vector<8x128xf32>
    %239 = vector.extract_strided_slice %235 {offsets = [0, 128], sizes = [8, 128], strides = [1, 1]} : vector<8x384xf32> to vector<8x128xf32>
    %240 = vector.extract_strided_slice %235 {offsets = [0, 256], sizes = [8, 128], strides = [1, 1]} : vector<8x384xf32> to vector<8x128xf32>
    %241 = arith.mulf %239, %219 : vector<8x128xf32>
    %242 = arith.mulf %238, %237 : vector<8x128xf32>
    %243 = arith.addf %241, %242 : vector<8x128xf32>
    %244 = math.tanh %243 : vector<8x128xf32>
    %245 = arith.mulf %240, %244 : vector<8x128xf32>
    %c9 = arith.constant 9 : index
    %c0_63 = arith.constant 0 : index
    %c0_64 = arith.constant 0 : index
    %246 = vector.load %arg4[%c9, %c0_63, %c0_64] : memref<20x1x128xf32, #tpu.memory_space<vmem>>, vector<1x1x128xf32>
    %247 = vector.shape_cast %246 : vector<1x1x128xf32> to vector<1x128xf32>
    %248 = vector.broadcast %247 : vector<1x128xf32> to vector<8x128xf32>
    %249 = arith.mulf %245, %248 : vector<8x128xf32>
    %250 = arith.addf %226, %249 : vector<8x128xf32>
    %c80 = arith.constant 80 : index
    %c0_65 = arith.constant 0 : index
    %251 = vector.load %arg7[%c80, %c0_65] : memref<160x512xf32, #tpu.memory_space<vmem>>, vector<8x512xf32>
    %cst_66 = arith.constant dense<0.000000e+00> : vector<8x512xf32>
    %252 = tpu.matmul %245, %7, %cst_66 {dimension_numbers = #tpu.dot_dimension_numbers<[1], [0], [0], [1], [0, 0, 1, 1], [], []>} : vector<8x128xf32>, vector<128x512xf32>, vector<8x512xf32> -> vector<8x512xf32>
    %253 = arith.addf %252, %251 : vector<8x512xf32>
    %254 = vector.extract_strided_slice %253 {offsets = [0, 0], sizes = [8, 384], strides = [1, 1]} : vector<8x512xf32> to vector<8x384xf32>
    %255 = arith.negf %254 : vector<8x384xf32>
    %256 = math.exp %255 : vector<8x384xf32>
    %cst_67 = arith.constant 1.000000e+00 : f32
    %257 = vector.broadcast %cst_67 : f32 to vector<8x384xf32>
    %258 = arith.addf %257, %256 : vector<8x384xf32>
    %259 = arith.divf %257, %258 : vector<8x384xf32>
    %260 = vector.extract_strided_slice %253 {offsets = [0, 384], sizes = [8, 128], strides = [1, 1]} : vector<8x512xf32> to vector<8x128xf32>
    %261 = math.tanh %260 : vector<8x128xf32>
    %262 = vector.extract_strided_slice %259 {offsets = [0, 0], sizes = [8, 128], strides = [1, 1]} : vector<8x384xf32> to vector<8x128xf32>
    %263 = vector.extract_strided_slice %259 {offsets = [0, 128], sizes = [8, 128], strides = [1, 1]} : vector<8x384xf32> to vector<8x128xf32>
    %264 = vector.extract_strided_slice %259 {offsets = [0, 256], sizes = [8, 128], strides = [1, 1]} : vector<8x384xf32> to vector<8x128xf32>
    %265 = arith.mulf %263, %243 : vector<8x128xf32>
    %266 = arith.mulf %262, %261 : vector<8x128xf32>
    %267 = arith.addf %265, %266 : vector<8x128xf32>
    %268 = math.tanh %267 : vector<8x128xf32>
    %269 = arith.mulf %264, %268 : vector<8x128xf32>
    %c10 = arith.constant 10 : index
    %c0_68 = arith.constant 0 : index
    %c0_69 = arith.constant 0 : index
    %270 = vector.load %arg4[%c10, %c0_68, %c0_69] : memref<20x1x128xf32, #tpu.memory_space<vmem>>, vector<1x1x128xf32>
    %271 = vector.shape_cast %270 : vector<1x1x128xf32> to vector<1x128xf32>
    %272 = vector.broadcast %271 : vector<1x128xf32> to vector<8x128xf32>
    %273 = arith.mulf %269, %272 : vector<8x128xf32>
    %274 = arith.addf %250, %273 : vector<8x128xf32>
    %c88 = arith.constant 88 : index
    %c0_70 = arith.constant 0 : index
    %275 = vector.load %arg7[%c88, %c0_70] : memref<160x512xf32, #tpu.memory_space<vmem>>, vector<8x512xf32>
    %cst_71 = arith.constant dense<0.000000e+00> : vector<8x512xf32>
    %276 = tpu.matmul %269, %7, %cst_71 {dimension_numbers = #tpu.dot_dimension_numbers<[1], [0], [0], [1], [0, 0, 1, 1], [], []>} : vector<8x128xf32>, vector<128x512xf32>, vector<8x512xf32> -> vector<8x512xf32>
    %277 = arith.addf %276, %275 : vector<8x512xf32>
    %278 = vector.extract_strided_slice %277 {offsets = [0, 0], sizes = [8, 384], strides = [1, 1]} : vector<8x512xf32> to vector<8x384xf32>
    %279 = arith.negf %278 : vector<8x384xf32>
    %280 = math.exp %279 : vector<8x384xf32>
    %cst_72 = arith.constant 1.000000e+00 : f32
    %281 = vector.broadcast %cst_72 : f32 to vector<8x384xf32>
    %282 = arith.addf %281, %280 : vector<8x384xf32>
    %283 = arith.divf %281, %282 : vector<8x384xf32>
    %284 = vector.extract_strided_slice %277 {offsets = [0, 384], sizes = [8, 128], strides = [1, 1]} : vector<8x512xf32> to vector<8x128xf32>
    %285 = math.tanh %284 : vector<8x128xf32>
    %286 = vector.extract_strided_slice %283 {offsets = [0, 0], sizes = [8, 128], strides = [1, 1]} : vector<8x384xf32> to vector<8x128xf32>
    %287 = vector.extract_strided_slice %283 {offsets = [0, 128], sizes = [8, 128], strides = [1, 1]} : vector<8x384xf32> to vector<8x128xf32>
    %288 = vector.extract_strided_slice %283 {offsets = [0, 256], sizes = [8, 128], strides = [1, 1]} : vector<8x384xf32> to vector<8x128xf32>
    %289 = arith.mulf %287, %267 : vector<8x128xf32>
    %290 = arith.mulf %286, %285 : vector<8x128xf32>
    %291 = arith.addf %289, %290 : vector<8x128xf32>
    %292 = math.tanh %291 : vector<8x128xf32>
    %293 = arith.mulf %288, %292 : vector<8x128xf32>
    %c11 = arith.constant 11 : index
    %c0_73 = arith.constant 0 : index
    %c0_74 = arith.constant 0 : index
    %294 = vector.load %arg4[%c11, %c0_73, %c0_74] : memref<20x1x128xf32, #tpu.memory_space<vmem>>, vector<1x1x128xf32>
    %295 = vector.shape_cast %294 : vector<1x1x128xf32> to vector<1x128xf32>
    %296 = vector.broadcast %295 : vector<1x128xf32> to vector<8x128xf32>
    %297 = arith.mulf %293, %296 : vector<8x128xf32>
    %298 = arith.addf %274, %297 : vector<8x128xf32>
    %c96 = arith.constant 96 : index
    %c0_75 = arith.constant 0 : index
    %299 = vector.load %arg7[%c96, %c0_75] : memref<160x512xf32, #tpu.memory_space<vmem>>, vector<8x512xf32>
    %cst_76 = arith.constant dense<0.000000e+00> : vector<8x512xf32>
    %300 = tpu.matmul %293, %7, %cst_76 {dimension_numbers = #tpu.dot_dimension_numbers<[1], [0], [0], [1], [0, 0, 1, 1], [], []>} : vector<8x128xf32>, vector<128x512xf32>, vector<8x512xf32> -> vector<8x512xf32>
    %301 = arith.addf %300, %299 : vector<8x512xf32>
    %302 = vector.extract_strided_slice %301 {offsets = [0, 0], sizes = [8, 384], strides = [1, 1]} : vector<8x512xf32> to vector<8x384xf32>
    %303 = arith.negf %302 : vector<8x384xf32>
    %304 = math.exp %303 : vector<8x384xf32>
    %cst_77 = arith.constant 1.000000e+00 : f32
    %305 = vector.broadcast %cst_77 : f32 to vector<8x384xf32>
    %306 = arith.addf %305, %304 : vector<8x384xf32>
    %307 = arith.divf %305, %306 : vector<8x384xf32>
    %308 = vector.extract_strided_slice %301 {offsets = [0, 384], sizes = [8, 128], strides = [1, 1]} : vector<8x512xf32> to vector<8x128xf32>
    %309 = math.tanh %308 : vector<8x128xf32>
    %310 = vector.extract_strided_slice %307 {offsets = [0, 0], sizes = [8, 128], strides = [1, 1]} : vector<8x384xf32> to vector<8x128xf32>
    %311 = vector.extract_strided_slice %307 {offsets = [0, 128], sizes = [8, 128], strides = [1, 1]} : vector<8x384xf32> to vector<8x128xf32>
    %312 = vector.extract_strided_slice %307 {offsets = [0, 256], sizes = [8, 128], strides = [1, 1]} : vector<8x384xf32> to vector<8x128xf32>
    %313 = arith.mulf %311, %291 : vector<8x128xf32>
    %314 = arith.mulf %310, %309 : vector<8x128xf32>
    %315 = arith.addf %313, %314 : vector<8x128xf32>
    %316 = math.tanh %315 : vector<8x128xf32>
    %317 = arith.mulf %312, %316 : vector<8x128xf32>
    %c12 = arith.constant 12 : index
    %c0_78 = arith.constant 0 : index
    %c0_79 = arith.constant 0 : index
    %318 = vector.load %arg4[%c12, %c0_78, %c0_79] : memref<20x1x128xf32, #tpu.memory_space<vmem>>, vector<1x1x128xf32>
    %319 = vector.shape_cast %318 : vector<1x1x128xf32> to vector<1x128xf32>
    %320 = vector.broadcast %319 : vector<1x128xf32> to vector<8x128xf32>
    %321 = arith.mulf %317, %320 : vector<8x128xf32>
    %322 = arith.addf %298, %321 : vector<8x128xf32>
    %c104 = arith.constant 104 : index
    %c0_80 = arith.constant 0 : index
    %323 = vector.load %arg7[%c104, %c0_80] : memref<160x512xf32, #tpu.memory_space<vmem>>, vector<8x512xf32>
    %cst_81 = arith.constant dense<0.000000e+00> : vector<8x512xf32>
    %324 = tpu.matmul %317, %7, %cst_81 {dimension_numbers = #tpu.dot_dimension_numbers<[1], [0], [0], [1], [0, 0, 1, 1], [], []>} : vector<8x128xf32>, vector<128x512xf32>, vector<8x512xf32> -> vector<8x512xf32>
    %325 = arith.addf %324, %323 : vector<8x512xf32>
    %326 = vector.extract_strided_slice %325 {offsets = [0, 0], sizes = [8, 384], strides = [1, 1]} : vector<8x512xf32> to vector<8x384xf32>
    %327 = arith.negf %326 : vector<8x384xf32>
    %328 = math.exp %327 : vector<8x384xf32>
    %cst_82 = arith.constant 1.000000e+00 : f32
    %329 = vector.broadcast %cst_82 : f32 to vector<8x384xf32>
    %330 = arith.addf %329, %328 : vector<8x384xf32>
    %331 = arith.divf %329, %330 : vector<8x384xf32>
    %332 = vector.extract_strided_slice %325 {offsets = [0, 384], sizes = [8, 128], strides = [1, 1]} : vector<8x512xf32> to vector<8x128xf32>
    %333 = math.tanh %332 : vector<8x128xf32>
    %334 = vector.extract_strided_slice %331 {offsets = [0, 0], sizes = [8, 128], strides = [1, 1]} : vector<8x384xf32> to vector<8x128xf32>
    %335 = vector.extract_strided_slice %331 {offsets = [0, 128], sizes = [8, 128], strides = [1, 1]} : vector<8x384xf32> to vector<8x128xf32>
    %336 = vector.extract_strided_slice %331 {offsets = [0, 256], sizes = [8, 128], strides = [1, 1]} : vector<8x384xf32> to vector<8x128xf32>
    %337 = arith.mulf %335, %315 : vector<8x128xf32>
    %338 = arith.mulf %334, %333 : vector<8x128xf32>
    %339 = arith.addf %337, %338 : vector<8x128xf32>
    %340 = math.tanh %339 : vector<8x128xf32>
    %341 = arith.mulf %336, %340 : vector<8x128xf32>
    %c13 = arith.constant 13 : index
    %c0_83 = arith.constant 0 : index
    %c0_84 = arith.constant 0 : index
    %342 = vector.load %arg4[%c13, %c0_83, %c0_84] : memref<20x1x128xf32, #tpu.memory_space<vmem>>, vector<1x1x128xf32>
    %343 = vector.shape_cast %342 : vector<1x1x128xf32> to vector<1x128xf32>
    %344 = vector.broadcast %343 : vector<1x128xf32> to vector<8x128xf32>
    %345 = arith.mulf %341, %344 : vector<8x128xf32>
    %346 = arith.addf %322, %345 : vector<8x128xf32>
    %c112 = arith.constant 112 : index
    %c0_85 = arith.constant 0 : index
    %347 = vector.load %arg7[%c112, %c0_85] : memref<160x512xf32, #tpu.memory_space<vmem>>, vector<8x512xf32>
    %cst_86 = arith.constant dense<0.000000e+00> : vector<8x512xf32>
    %348 = tpu.matmul %341, %7, %cst_86 {dimension_numbers = #tpu.dot_dimension_numbers<[1], [0], [0], [1], [0, 0, 1, 1], [], []>} : vector<8x128xf32>, vector<128x512xf32>, vector<8x512xf32> -> vector<8x512xf32>
    %349 = arith.addf %348, %347 : vector<8x512xf32>
    %350 = vector.extract_strided_slice %349 {offsets = [0, 0], sizes = [8, 384], strides = [1, 1]} : vector<8x512xf32> to vector<8x384xf32>
    %351 = arith.negf %350 : vector<8x384xf32>
    %352 = math.exp %351 : vector<8x384xf32>
    %cst_87 = arith.constant 1.000000e+00 : f32
    %353 = vector.broadcast %cst_87 : f32 to vector<8x384xf32>
    %354 = arith.addf %353, %352 : vector<8x384xf32>
    %355 = arith.divf %353, %354 : vector<8x384xf32>
    %356 = vector.extract_strided_slice %349 {offsets = [0, 384], sizes = [8, 128], strides = [1, 1]} : vector<8x512xf32> to vector<8x128xf32>
    %357 = math.tanh %356 : vector<8x128xf32>
    %358 = vector.extract_strided_slice %355 {offsets = [0, 0], sizes = [8, 128], strides = [1, 1]} : vector<8x384xf32> to vector<8x128xf32>
    %359 = vector.extract_strided_slice %355 {offsets = [0, 128], sizes = [8, 128], strides = [1, 1]} : vector<8x384xf32> to vector<8x128xf32>
    %360 = vector.extract_strided_slice %355 {offsets = [0, 256], sizes = [8, 128], strides = [1, 1]} : vector<8x384xf32> to vector<8x128xf32>
    %361 = arith.mulf %359, %339 : vector<8x128xf32>
    %362 = arith.mulf %358, %357 : vector<8x128xf32>
    %363 = arith.addf %361, %362 : vector<8x128xf32>
    %364 = math.tanh %363 : vector<8x128xf32>
    %365 = arith.mulf %360, %364 : vector<8x128xf32>
    %c14 = arith.constant 14 : index
    %c0_88 = arith.constant 0 : index
    %c0_89 = arith.constant 0 : index
    %366 = vector.load %arg4[%c14, %c0_88, %c0_89] : memref<20x1x128xf32, #tpu.memory_space<vmem>>, vector<1x1x128xf32>
    %367 = vector.shape_cast %366 : vector<1x1x128xf32> to vector<1x128xf32>
    %368 = vector.broadcast %367 : vector<1x128xf32> to vector<8x128xf32>
    %369 = arith.mulf %365, %368 : vector<8x128xf32>
    %370 = arith.addf %346, %369 : vector<8x128xf32>
    %c120 = arith.constant 120 : index
    %c0_90 = arith.constant 0 : index
    %371 = vector.load %arg7[%c120, %c0_90] : memref<160x512xf32, #tpu.memory_space<vmem>>, vector<8x512xf32>
    %cst_91 = arith.constant dense<0.000000e+00> : vector<8x512xf32>
    %372 = tpu.matmul %365, %7, %cst_91 {dimension_numbers = #tpu.dot_dimension_numbers<[1], [0], [0], [1], [0, 0, 1, 1], [], []>} : vector<8x128xf32>, vector<128x512xf32>, vector<8x512xf32> -> vector<8x512xf32>
    %373 = arith.addf %372, %371 : vector<8x512xf32>
    %374 = vector.extract_strided_slice %373 {offsets = [0, 0], sizes = [8, 384], strides = [1, 1]} : vector<8x512xf32> to vector<8x384xf32>
    %375 = arith.negf %374 : vector<8x384xf32>
    %376 = math.exp %375 : vector<8x384xf32>
    %cst_92 = arith.constant 1.000000e+00 : f32
    %377 = vector.broadcast %cst_92 : f32 to vector<8x384xf32>
    %378 = arith.addf %377, %376 : vector<8x384xf32>
    %379 = arith.divf %377, %378 : vector<8x384xf32>
    %380 = vector.extract_strided_slice %373 {offsets = [0, 384], sizes = [8, 128], strides = [1, 1]} : vector<8x512xf32> to vector<8x128xf32>
    %381 = math.tanh %380 : vector<8x128xf32>
    %382 = vector.extract_strided_slice %379 {offsets = [0, 0], sizes = [8, 128], strides = [1, 1]} : vector<8x384xf32> to vector<8x128xf32>
    %383 = vector.extract_strided_slice %379 {offsets = [0, 128], sizes = [8, 128], strides = [1, 1]} : vector<8x384xf32> to vector<8x128xf32>
    %384 = vector.extract_strided_slice %379 {offsets = [0, 256], sizes = [8, 128], strides = [1, 1]} : vector<8x384xf32> to vector<8x128xf32>
    %385 = arith.mulf %383, %363 : vector<8x128xf32>
    %386 = arith.mulf %382, %381 : vector<8x128xf32>
    %387 = arith.addf %385, %386 : vector<8x128xf32>
    %388 = math.tanh %387 : vector<8x128xf32>
    %389 = arith.mulf %384, %388 : vector<8x128xf32>
    %c15 = arith.constant 15 : index
    %c0_93 = arith.constant 0 : index
    %c0_94 = arith.constant 0 : index
    %390 = vector.load %arg4[%c15, %c0_93, %c0_94] : memref<20x1x128xf32, #tpu.memory_space<vmem>>, vector<1x1x128xf32>
    %391 = vector.shape_cast %390 : vector<1x1x128xf32> to vector<1x128xf32>
    %392 = vector.broadcast %391 : vector<1x128xf32> to vector<8x128xf32>
    %393 = arith.mulf %389, %392 : vector<8x128xf32>
    %394 = arith.addf %370, %393 : vector<8x128xf32>
    %c128 = arith.constant 128 : index
    %c0_95 = arith.constant 0 : index
    %395 = vector.load %arg7[%c128, %c0_95] : memref<160x512xf32, #tpu.memory_space<vmem>>, vector<8x512xf32>
    %cst_96 = arith.constant dense<0.000000e+00> : vector<8x512xf32>
    %396 = tpu.matmul %389, %7, %cst_96 {dimension_numbers = #tpu.dot_dimension_numbers<[1], [0], [0], [1], [0, 0, 1, 1], [], []>} : vector<8x128xf32>, vector<128x512xf32>, vector<8x512xf32> -> vector<8x512xf32>
    %397 = arith.addf %396, %395 : vector<8x512xf32>
    %398 = vector.extract_strided_slice %397 {offsets = [0, 0], sizes = [8, 384], strides = [1, 1]} : vector<8x512xf32> to vector<8x384xf32>
    %399 = arith.negf %398 : vector<8x384xf32>
    %400 = math.exp %399 : vector<8x384xf32>
    %cst_97 = arith.constant 1.000000e+00 : f32
    %401 = vector.broadcast %cst_97 : f32 to vector<8x384xf32>
    %402 = arith.addf %401, %400 : vector<8x384xf32>
    %403 = arith.divf %401, %402 : vector<8x384xf32>
    %404 = vector.extract_strided_slice %397 {offsets = [0, 384], sizes = [8, 128], strides = [1, 1]} : vector<8x512xf32> to vector<8x128xf32>
    %405 = math.tanh %404 : vector<8x128xf32>
    %406 = vector.extract_strided_slice %403 {offsets = [0, 0], sizes = [8, 128], strides = [1, 1]} : vector<8x384xf32> to vector<8x128xf32>
    %407 = vector.extract_strided_slice %403 {offsets = [0, 128], sizes = [8, 128], strides = [1, 1]} : vector<8x384xf32> to vector<8x128xf32>
    %408 = vector.extract_strided_slice %403 {offsets = [0, 256], sizes = [8, 128], strides = [1, 1]} : vector<8x384xf32> to vector<8x128xf32>
    %409 = arith.mulf %407, %387 : vector<8x128xf32>
    %410 = arith.mulf %406, %405 : vector<8x128xf32>
    %411 = arith.addf %409, %410 : vector<8x128xf32>
    %412 = math.tanh %411 : vector<8x128xf32>
    %413 = arith.mulf %408, %412 : vector<8x128xf32>
    %c16_98 = arith.constant 16 : index
    %c0_99 = arith.constant 0 : index
    %c0_100 = arith.constant 0 : index
    %414 = vector.load %arg4[%c16_98, %c0_99, %c0_100] : memref<20x1x128xf32, #tpu.memory_space<vmem>>, vector<1x1x128xf32>
    %415 = vector.shape_cast %414 : vector<1x1x128xf32> to vector<1x128xf32>
    %416 = vector.broadcast %415 : vector<1x128xf32> to vector<8x128xf32>
    %417 = arith.mulf %413, %416 : vector<8x128xf32>
    %418 = arith.addf %394, %417 : vector<8x128xf32>
    %c136 = arith.constant 136 : index
    %c0_101 = arith.constant 0 : index
    %419 = vector.load %arg7[%c136, %c0_101] : memref<160x512xf32, #tpu.memory_space<vmem>>, vector<8x512xf32>
    %cst_102 = arith.constant dense<0.000000e+00> : vector<8x512xf32>
    %420 = tpu.matmul %413, %7, %cst_102 {dimension_numbers = #tpu.dot_dimension_numbers<[1], [0], [0], [1], [0, 0, 1, 1], [], []>} : vector<8x128xf32>, vector<128x512xf32>, vector<8x512xf32> -> vector<8x512xf32>
    %421 = arith.addf %420, %419 : vector<8x512xf32>
    %422 = vector.extract_strided_slice %421 {offsets = [0, 0], sizes = [8, 384], strides = [1, 1]} : vector<8x512xf32> to vector<8x384xf32>
    %423 = arith.negf %422 : vector<8x384xf32>
    %424 = math.exp %423 : vector<8x384xf32>
    %cst_103 = arith.constant 1.000000e+00 : f32
    %425 = vector.broadcast %cst_103 : f32 to vector<8x384xf32>
    %426 = arith.addf %425, %424 : vector<8x384xf32>
    %427 = arith.divf %425, %426 : vector<8x384xf32>
    %428 = vector.extract_strided_slice %421 {offsets = [0, 384], sizes = [8, 128], strides = [1, 1]} : vector<8x512xf32> to vector<8x128xf32>
    %429 = math.tanh %428 : vector<8x128xf32>
    %430 = vector.extract_strided_slice %427 {offsets = [0, 0], sizes = [8, 128], strides = [1, 1]} : vector<8x384xf32> to vector<8x128xf32>
    %431 = vector.extract_strided_slice %427 {offsets = [0, 128], sizes = [8, 128], strides = [1, 1]} : vector<8x384xf32> to vector<8x128xf32>
    %432 = vector.extract_strided_slice %427 {offsets = [0, 256], sizes = [8, 128], strides = [1, 1]} : vector<8x384xf32> to vector<8x128xf32>
    %433 = arith.mulf %431, %411 : vector<8x128xf32>
    %434 = arith.mulf %430, %429 : vector<8x128xf32>
    %435 = arith.addf %433, %434 : vector<8x128xf32>
    %436 = math.tanh %435 : vector<8x128xf32>
    %437 = arith.mulf %432, %436 : vector<8x128xf32>
    %c17 = arith.constant 17 : index
    %c0_104 = arith.constant 0 : index
    %c0_105 = arith.constant 0 : index
    %438 = vector.load %arg4[%c17, %c0_104, %c0_105] : memref<20x1x128xf32, #tpu.memory_space<vmem>>, vector<1x1x128xf32>
    %439 = vector.shape_cast %438 : vector<1x1x128xf32> to vector<1x128xf32>
    %440 = vector.broadcast %439 : vector<1x128xf32> to vector<8x128xf32>
    %441 = arith.mulf %437, %440 : vector<8x128xf32>
    %442 = arith.addf %418, %441 : vector<8x128xf32>
    %c144 = arith.constant 144 : index
    %c0_106 = arith.constant 0 : index
    %443 = vector.load %arg7[%c144, %c0_106] : memref<160x512xf32, #tpu.memory_space<vmem>>, vector<8x512xf32>
    %cst_107 = arith.constant dense<0.000000e+00> : vector<8x512xf32>
    %444 = tpu.matmul %437, %7, %cst_107 {dimension_numbers = #tpu.dot_dimension_numbers<[1], [0], [0], [1], [0, 0, 1, 1], [], []>} : vector<8x128xf32>, vector<128x512xf32>, vector<8x512xf32> -> vector<8x512xf32>
    %445 = arith.addf %444, %443 : vector<8x512xf32>
    %446 = vector.extract_strided_slice %445 {offsets = [0, 0], sizes = [8, 384], strides = [1, 1]} : vector<8x512xf32> to vector<8x384xf32>
    %447 = arith.negf %446 : vector<8x384xf32>
    %448 = math.exp %447 : vector<8x384xf32>
    %cst_108 = arith.constant 1.000000e+00 : f32
    %449 = vector.broadcast %cst_108 : f32 to vector<8x384xf32>
    %450 = arith.addf %449, %448 : vector<8x384xf32>
    %451 = arith.divf %449, %450 : vector<8x384xf32>
    %452 = vector.extract_strided_slice %445 {offsets = [0, 384], sizes = [8, 128], strides = [1, 1]} : vector<8x512xf32> to vector<8x128xf32>
    %453 = math.tanh %452 : vector<8x128xf32>
    %454 = vector.extract_strided_slice %451 {offsets = [0, 0], sizes = [8, 128], strides = [1, 1]} : vector<8x384xf32> to vector<8x128xf32>
    %455 = vector.extract_strided_slice %451 {offsets = [0, 128], sizes = [8, 128], strides = [1, 1]} : vector<8x384xf32> to vector<8x128xf32>
    %456 = vector.extract_strided_slice %451 {offsets = [0, 256], sizes = [8, 128], strides = [1, 1]} : vector<8x384xf32> to vector<8x128xf32>
    %457 = arith.mulf %455, %435 : vector<8x128xf32>
    %458 = arith.mulf %454, %453 : vector<8x128xf32>
    %459 = arith.addf %457, %458 : vector<8x128xf32>
    %460 = math.tanh %459 : vector<8x128xf32>
    %461 = arith.mulf %456, %460 : vector<8x128xf32>
    %c18 = arith.constant 18 : index
    %c0_109 = arith.constant 0 : index
    %c0_110 = arith.constant 0 : index
    %462 = vector.load %arg4[%c18, %c0_109, %c0_110] : memref<20x1x128xf32, #tpu.memory_space<vmem>>, vector<1x1x128xf32>
    %463 = vector.shape_cast %462 : vector<1x1x128xf32> to vector<1x128xf32>
    %464 = vector.broadcast %463 : vector<1x128xf32> to vector<8x128xf32>
    %465 = arith.mulf %461, %464 : vector<8x128xf32>
    %466 = arith.addf %442, %465 : vector<8x128xf32>
    %c152 = arith.constant 152 : index
    %c0_111 = arith.constant 0 : index
    %467 = vector.load %arg7[%c152, %c0_111] : memref<160x512xf32, #tpu.memory_space<vmem>>, vector<8x512xf32>
    %cst_112 = arith.constant dense<0.000000e+00> : vector<8x512xf32>
    %468 = tpu.matmul %461, %7, %cst_112 {dimension_numbers = #tpu.dot_dimension_numbers<[1], [0], [0], [1], [0, 0, 1, 1], [], []>} : vector<8x128xf32>, vector<128x512xf32>, vector<8x512xf32> -> vector<8x512xf32>
    %469 = arith.addf %468, %467 : vector<8x512xf32>
    %470 = vector.extract_strided_slice %469 {offsets = [0, 0], sizes = [8, 384], strides = [1, 1]} : vector<8x512xf32> to vector<8x384xf32>
    %471 = arith.negf %470 : vector<8x384xf32>
    %472 = math.exp %471 : vector<8x384xf32>
    %cst_113 = arith.constant 1.000000e+00 : f32
    %473 = vector.broadcast %cst_113 : f32 to vector<8x384xf32>
    %474 = arith.addf %473, %472 : vector<8x384xf32>
    %475 = arith.divf %473, %474 : vector<8x384xf32>
    %476 = vector.extract_strided_slice %469 {offsets = [0, 384], sizes = [8, 128], strides = [1, 1]} : vector<8x512xf32> to vector<8x128xf32>
    %477 = math.tanh %476 : vector<8x128xf32>
    %478 = vector.extract_strided_slice %475 {offsets = [0, 0], sizes = [8, 128], strides = [1, 1]} : vector<8x384xf32> to vector<8x128xf32>
    %479 = vector.extract_strided_slice %475 {offsets = [0, 128], sizes = [8, 128], strides = [1, 1]} : vector<8x384xf32> to vector<8x128xf32>
    %480 = vector.extract_strided_slice %475 {offsets = [0, 256], sizes = [8, 128], strides = [1, 1]} : vector<8x384xf32> to vector<8x128xf32>
    %481 = arith.mulf %479, %459 : vector<8x128xf32>
    %482 = arith.mulf %478, %477 : vector<8x128xf32>
    %483 = arith.addf %481, %482 : vector<8x128xf32>
    %484 = math.tanh %483 : vector<8x128xf32>
    %485 = arith.mulf %480, %484 : vector<8x128xf32>
    %c19 = arith.constant 19 : index
    %c0_114 = arith.constant 0 : index
    %c0_115 = arith.constant 0 : index
    %486 = vector.load %arg4[%c19, %c0_114, %c0_115] : memref<20x1x128xf32, #tpu.memory_space<vmem>>, vector<1x1x128xf32>
    %487 = vector.shape_cast %486 : vector<1x1x128xf32> to vector<1x128xf32>
    %488 = vector.broadcast %487 : vector<1x128xf32> to vector<8x128xf32>
    %489 = arith.mulf %485, %488 : vector<8x128xf32>
    %490 = arith.addf %466, %489 : vector<8x128xf32>
    %cst_116 = arith.constant dense<0.000000e+00> : vector<8xf32>
    %491 = vector.multi_reduction <add>, %490, %cst_116 [1] : vector<8x128xf32> to vector<8xf32>
    %492 = vector.shape_cast %491 : vector<8xf32> to vector<8x1xf32>
    %c0_117 = arith.constant 0 : index
    %493 = memref.load %arg5[%c0_117] : memref<1xf32, #tpu.memory_space<smem>>
    %494 = vector.broadcast %493 : f32 to vector<8x1xf32>
    %495 = arith.addf %492, %494 : vector<8x1xf32>
    %c0_118 = arith.constant 0 : index
    %c0_119 = arith.constant 0 : index
    %496 = vector.load %arg6[%c0_118, %c0_119] : memref<8x1xf32, #tpu.memory_space<vmem>>, vector<8x1xf32>
    tpu.vector_store %arg6[%c0_118, %c0_119], %495 {strides = array<i32>} : memref<8x1xf32, #tpu.memory_space<vmem>>, vector<8x1xf32>,
    return
  }
}

</mosaic_0001>

<bundles_post_ra>
// kernel: tpu_custom_call.1
= control target key start
LH: loop header
LB: loop body
LE: loop exit
PB: predicated region body
PF: predicated region fallthrough
CT: control target
= control target key end

     0   :  { %12 = vsyncpa [#allocation5], 0  ;;  %s4486_s24 = smov [#allocation4]   ;;  %s4487_s26 = smov 512   ;;  %s7143_s0 = inlined_call_operand.vmem [shape: f32[160,24], index: 0, kind: input, shape index: {}]   ;;  %s7144_s1 = inlined_call_operand.vmem [shape: f32[24,512], index: 1, kind: input, shape index: {}]   ;;  %s7145_s2 = inlined_call_operand.hbm [shape: f32[128,512], index: 2, kind: input, shape index: {}]   ;;  %s7146_s3 = inlined_call_operand.vmem [shape: f32[1,512], index: 3, kind: input, shape index: {}]   ;;  %s7147_s4 = inlined_call_operand.vmem [shape: f32[20,1,128], index: 4, kind: input, shape index: {}]   ;;  %s7148_s5 = inlined_call_operand.<no memory space> [shape: f32[1], index: 5, kind: input, shape index: {}]   ;;  %s7149_s6 = inlined_call_operand.vmem [shape: f32[8,1], index: 6, kind: output, shape index: {}]  }
   0x1   :  { %s21_s23 = sshll.u32 %s7145_s2, 4  ;;  %s23_s25 = sshll.u32 %s4486_s24, 4  ;;  %s22_s23 = int_to_ptr.hbm [resolvable:$true] %s21_s23  ;;  %s24_s25 = int_to_ptr.vmem [resolvable:$true] %s23_s25 }
   0x2   :  { %s4488_s27 = smov 32  }
   0x3   :  { %29 = dma.hbm_to_vmem [thread:$0]  %s22_s23, 8192, %s24_s25, [#allocation5], %s4487_s26, %s4487_s26, %s4488_s27  }
   0x4   :  { %4484 = dma.done.wait [#allocation5], 8192  }
   0x5   :  { %4485 = vsyncadd [#allocation5], 4294959104  ;;  %v68_v0 = vld [vmem:[%s7144_s1 + $0x40] sm:$0xff]  ;;  %v69_v1 = vld [vmem:[%s7144_s1 + $0x48] sm:$0xff]  ;;  %vm82_vm0 = vcmask 195584  }
   0x6   :  { %v70_v2 = vld [vmem:[%s7144_s1 + $0x50] sm:$0xff]  ;;  %156 = vmatpush.msra.mxu0 %v68_v0  ;;  %233 = vmatpush.msra.mxu1 %v69_v1  ;;  %v71_v3 = vld [vmem:[%s7144_s1 + $0x58] sm:$0xff]  ;;  %v64_v4 = vld [vmem:[%s7144_s1 + $0x20] sm:$0xff] }
   0x7   :  { %v65_v5 = vld [vmem:[%s7144_s1 + $0x28] sm:$0xff]  ;;  %310 = vmatpush.msra.mxu2 %v70_v2  ;;  %387 = vmatpush.msra.mxu3 %v71_v3  ;;  %v66_v6 = vld [vmem:[%s7144_s1 + $0x30] sm:$0xff]  ;;  %v67_v7 = vld [vmem:[%s7144_s1 + $0x38] sm:$0xff] }
   0x8   :  { %v60_v8 = vld [vmem:[%s7144_s1] sm:$0xff]  ;;  %157 = vmatpush.msra.mxu0 %v64_v4  ;;  %234 = vmatpush.msra.mxu1 %v65_v5  ;;  %v61_v9 = vld [vmem:[%s7144_s1 + $0x8] sm:$0xff]  ;;  %v62_v10 = vld [vmem:[%s7144_s1 + $0x10] sm:$0xff] }
   0x9   :  { %v63_v11 = vld [vmem:[%s7144_s1 + $0x18] sm:$0xff]  ;;  %311 = vmatpush.msra.mxu2 %v66_v6  ;;  %388 = vmatpush.msra.mxu3 %v67_v7  ;;  %v40_v12 = vld [vmem:[%s7143_s0] sm:$0xff]  ;;  %v4569_v14 = vld [vmem:[#allocation4 + $0x1e8] sm:$0xff] }
   0xa   :  { %158 = vmatpush.msra.mxu0 %v60_v8  ;;  %235 = vmatpush.msra.mxu1 %v61_v9  ;;  %v4567_v13 = vld [vmem:[#allocation4 + $0x1e0] sm:$0xff]  ;;  %v4573_v15 = vld [vmem:[#allocation4 + $0x1f0] sm:$0xff]  ;;  %v4575_v16 = vld [vmem:[#allocation4 + $0x1f8] sm:$0xff] }
   0xb   :  { %312 = vmatpush.msra.mxu2 %v62_v10  ;;  %389 = vmatpush.msra.mxu3 %v63_v11  ;;  %v4579_v17 = vld [vmem:[#allocation4 + $0x1c0] sm:$0xff]  ;;  %v4581_v18 = vld [vmem:[#allocation4 + $0x1c8] sm:$0xff]  ;;  %v4585_v19 = vld [vmem:[#allocation4 + $0x1d0] sm:$0xff] }
   0xc   :  { %3686 = vmatmul.msk.f32.vlgmr.msra.gmra.mxu0 %vm82_vm0, %v40_v12  ;;  %3706 = vmatmul.msk.f32.vlgmr.msra.gmra.mxu1 %vm82_vm0, %v40_v12  ;;  %7412 = vst [vmem:[#allocation7_spill] sm:$0xff] %v4581_v18  ;;  %v4587_v20 = vld [vmem:[#allocation4 + $0x1a0] sm:$0xff]  ;;  %v4589_v21 = vld [vmem:[#allocation4 + $0x1d8] sm:$0xff]  ;;  %v41_v22 = vld [vmem:[%s7143_s0 + $0x8] sm:$0xff] }
   0xd   :  { %3726 = vmatmul.msk.f32.vlgmr.msra.gmra.mxu2 %vm82_vm0, %v40_v12  ;;  %3746 = vmatmul.msk.f32.vlgmr.msra.gmra.mxu3 %vm82_vm0, %v40_v12  ;;  %7413 = vst [vmem:[#allocation8_spill] sm:$0xff] %v4587_v20  ;;  %v4596_v23 = vld [vmem:[#allocation4 + $0x1a8] sm:$0xff]  ;;  %v4598_v24 = vld [vmem:[#allocation4 + $0x1b0] sm:$0xff]  ;;  %v4600_v25 = vld [vmem:[#allocation4 + $0x1b8] sm:$0xff] }
   0xe   :  { %599 = vmatpush.msrb.mxu0 %v4567_v13  ;;  %619 = vmatpush.msrb.mxu1 %v4569_v14  ;;  %v4606_v26 = vld [vmem:[#allocation4 + $0x180] sm:$0xff]  ;;  %v4608_v27 = vld [vmem:[#allocation4 + $0x188] sm:$0xff]  ;;  %v4612_v28 = vld [vmem:[#allocation4 + $0x190] sm:$0xff] }
   0xf   :  { %639 = vmatpush.msrb.mxu2 %v4573_v15  ;;  %659 = vmatpush.msrb.mxu3 %v4575_v16  ;;  %v4620_v29 = vld [vmem:[#allocation4 + $0x160] sm:$0xff]  ;;  %v4622_v30 = vld [vmem:[#allocation4 + $0x168] sm:$0xff]  ;;  %v4626_v31 = vld [vmem:[#allocation4 + $0x170] sm:$0xff] }
  0x10   :  { %600 = vmatpush.msrb.mxu0 %v4579_v17  ;;  %620 = vmatpush.msrb.mxu1 %v4581_v18  ;;  %v4628_v32 = vld [vmem:[#allocation4 + $0x198] sm:$0xff]  ;;  %v42_v33 = vld [vmem:[%s7143_s0 + $0x10] sm:$0xff]  ;;  %v4642_v34 = vld [vmem:[#allocation4 + $0x140] sm:$0xff] }
  0x11   :  { %640 = vmatpush.msrb.mxu2 %v4585_v19  ;;  %660 = vmatpush.msrb.mxu3 %v4589_v21  ;;  %v4644_v35 = vld [vmem:[#allocation4 + $0x148] sm:$0xff]  ;;  %v4646_v36 = vld [vmem:[#allocation4 + $0x150] sm:$0xff]  ;;  %v4650_v37 = vld [vmem:[#allocation4 + $0x178] sm:$0xff] }
  0x12   :  { %601 = vmatpush.msrb.mxu0 %v4587_v20  ;;  %621 = vmatpush.msrb.mxu1 %v4596_v23  ;;  %v43_v38 = vld [vmem:[%s7143_s0 + $0x18] sm:$0xff]  ;;  %v4661_v39 = vld [vmem:[#allocation4 + $0x120] sm:$0xff]  ;;  %v4663_v40 = vld [vmem:[#allocation4 + $0x128] sm:$0xff] }
  0x13   :  { %641 = vmatpush.msrb.mxu2 %v4598_v24  ;;  %661 = vmatpush.msrb.mxu3 %v4600_v25  ;;  %v44_v41 = vld [vmem:[%s7143_s0 + $0x20] sm:$0xff]  ;;  %v4674_v42 = vld [vmem:[#allocation4 + $0x130] sm:$0xff]  ;;  %v4676_v43 = vld [vmem:[#allocation4 + $0x158] sm:$0xff] }
  0x14   :  { %3687 = vmatmul.msk.f32.gmra.mxu0 %vm82_vm0, %v41_v22  ;;  %3707 = vmatmul.msk.f32.gmra.mxu1 %vm82_vm0, %v41_v22  ;;  %v4678_v44 = vld [vmem:[#allocation4 + $0x100] sm:$0xff]  ;;  %v4682_v45 = vld [vmem:[#allocation4 + $0x108] sm:$0xff]  ;;  %v4693_v47 = vld [vmem:[#allocation4 + $0x110] sm:$0xff] }
  0x15   :  { %3727 = vmatmul.msk.f32.gmra.mxu2 %vm82_vm0, %v41_v22  ;;  %3747 = vmatmul.msk.f32.gmra.mxu3 %vm82_vm0, %v41_v22  ;;  %v45_v46 = vld [vmem:[%s7143_s0 + $0x28] sm:$0xff]  ;;  %v4695_v48 = vld [vmem:[#allocation4 + $0x138] sm:$0xff]  ;;  %v46_v49 = vld [vmem:[%s7143_s0 + $0x30] sm:$0xff] }
  0x16   :  { %602 = vmatpush.msrb.mxu0 %v4606_v26  ;;  %622 = vmatpush.msrb.mxu1 %v4608_v27  ;;  %v4706_v50 = vld [vmem:[#allocation4 + $0xe0] sm:$0xff]  ;;  %v4708_v51 = vld [vmem:[#allocation4 + $0xe8] sm:$0xff]  ;;  %v4710_v52 = vld [vmem:[#allocation4 + $0xf0] sm:$0xff] }
  0x17   :  { %642 = vmatpush.msrb.mxu2 %v4612_v28  ;;  %662 = vmatpush.msrb.mxu3 %v4628_v32  ;;  %v4714_v53 = vld [vmem:[#allocation4 + $0x118] sm:$0xff]  ;;  %v4725_v55 = vld [vmem:[#allocation4 + $0xc0] sm:$0xff]  ;;  %v4727_v56 = vld [vmem:[#allocation4 + $0xc8] sm:$0xff] }
  0x18   :  { %603 = vmatpush.msrb.mxu0 %v4620_v29  ;;  %623 = vmatpush.msrb.mxu1 %v4622_v30  ;;  %v47_v54 = vld [vmem:[%s7143_s0 + $0x38] sm:$0xff]  ;;  %v4729_v57 = vld [vmem:[#allocation4 + $0xd0] sm:$0xff]  ;;  %v48_v59 = vld [vmem:[%s7143_s0 + $0x40] sm:$0xff] }
  0x19   :  { %643 = vmatpush.msrb.mxu2 %v4626_v31  ;;  %663 = vmatpush.msrb.mxu3 %v4650_v37  ;;  %v4733_v58 = vld [vmem:[#allocation4 + $0xf8] sm:$0xff]  ;;  %v4744_v60 = vld [vmem:[#allocation4 + $0xa0] sm:$0xff]  ;;  %v4746_v61 = vld [vmem:[#allocation4 + $0xa8] sm:$0xff] }
  0x1a   :  { %604 = vmatpush.msrb.mxu0 %v4642_v34  ;;  %624 = vmatpush.msrb.mxu1 %v4644_v35  ;;  %v49_v62 = vld [vmem:[%s7143_s0 + $0x48] sm:$0xff]  ;;  %v4757_v63 = vld [vmem:[#allocation4 + $0xb0] sm:$0xff]  ;;  %v4759_v0 = vld [vmem:[#allocation4 + $0xd8] sm:$0xff] }
  0x1b   :  { %644 = vmatpush.msrb.mxu2 %v4646_v36  ;;  %664 = vmatpush.msrb.mxu3 %v4676_v43  ;;  %v4761_v1 = vld [vmem:[#allocation4 + $0x80] sm:$0xff]  ;;  %v4765_v2 = vld [vmem:[#allocation4 + $0x88] sm:$0xff]  ;;  %v50_v3 = vld [vmem:[%s7143_s0 + $0x50] sm:$0xff] }
  0x1c   :  { %3688 = vmatmul.msk.f32.gmra.mxu0 %vm82_vm0, %v42_v33  ;;  %3708 = vmatmul.msk.f32.gmra.mxu1 %vm82_vm0, %v42_v33  ;;  %v4776_v4 = vld [vmem:[#allocation4 + $0x90] sm:$0xff]  ;;  %v4778_v5 = vld [vmem:[#allocation4 + $0xb8] sm:$0xff]  ;;  %v4789_v7 = vld [vmem:[#allocation4 + $0x60] sm:$0xff] }
  0x1d   :  { %3728 = vmatmul.msk.f32.gmra.mxu2 %vm82_vm0, %v42_v33  ;;  %3748 = vmatmul.msk.f32.gmra.mxu3 %vm82_vm0, %v42_v33  ;;  %v51_v6 = vld [vmem:[%s7143_s0 + $0x58] sm:$0xff]  ;;  %v4791_v8 = vld [vmem:[#allocation4 + $0x68] sm:$0xff]  ;;  %v52_v9 = vld [vmem:[%s7143_s0 + $0x60] sm:$0xff] }
  0x1e   :  { %605 = vmatpush.msrb.mxu0 %v4661_v39  ;;  %625 = vmatpush.msrb.mxu1 %v4663_v40  ;;  %v4798_v10 = vld [vmem:[#allocation4 + $0x70] sm:$0xff]  ;;  %v4800_v11 = vld [vmem:[#allocation4 + $0x98] sm:$0xff]  ;;  %v4808_v12 = vld [vmem:[#allocation4 + $0x40] sm:$0xff] }
  0x1f   :  { %645 = vmatpush.msrb.mxu2 %v4674_v42  ;;  %665 = vmatpush.msrb.mxu3 %v4695_v48  ;;  %7414 = vst [vmem:[#allocation9_spill] sm:$0xff] %v4808_v12  ;;  %v4810_v22 = vld [vmem:[#allocation4 + $0x48] sm:$0xff] }
  0x20   :  { %606 = vmatpush.msrb.mxu0 %v4678_v44  ;;  %626 = vmatpush.msrb.mxu1 %v4682_v45  ;;  %7415 = vst [vmem:[#allocation10_spill] sm:$0xff] %v4810_v22  ;;  %v53_v33 = vld [vmem:[%s7143_s0 + $0x68] sm:$0xff] }
  0x21   :  { %646 = vmatpush.msrb.mxu2 %v4693_v47  ;;  %666 = vmatpush.msrb.mxu3 %v4714_v53 }
  0x22   :  { %607 = vmatpush.msrb.mxu0 %v4706_v50  ;;  %627 = vmatpush.msrb.mxu1 %v4708_v51 }
  0x23   :  { %647 = vmatpush.msrb.mxu2 %v4710_v52  ;;  %667 = vmatpush.msrb.mxu3 %v4733_v58 }
  0x24   :  { %3689 = vmatmul.msk.f32.gmra.mxu0 %vm82_vm0, %v43_v38  ;;  %3709 = vmatmul.msk.f32.gmra.mxu1 %vm82_vm0, %v43_v38 }
  0x25   :  { %3729 = vmatmul.msk.f32.gmra.mxu2 %vm82_vm0, %v43_v38  ;;  %3749 = vmatmul.msk.f32.gmra.mxu3 %vm82_vm0, %v43_v38  ;;  %v4817_v38 = vld [vmem:[#allocation4 + $0x50] sm:$0xff] }
  0x26   :  { %608 = vmatpush.msrb.mxu0 %v4725_v55  ;;  %628 = vmatpush.msrb.mxu1 %v4727_v56  ;;  %7416 = vst [vmem:[#allocation11_spill] sm:$0xff] %v4817_v38 }
  0x27   :  { %648 = vmatpush.msrb.mxu2 %v4729_v57  ;;  %668 = vmatpush.msrb.mxu3 %v4759_v0 }
  0x28   :  { %609 = vmatpush.msrb.mxu0 %v4744_v60  ;;  %629 = vmatpush.msrb.mxu1 %v4746_v61 }
  0x29   :  { %649 = vmatpush.msrb.mxu2 %v4757_v63  ;;  %669 = vmatpush.msrb.mxu3 %v4778_v5 }
  0x2a   :  { %610 = vmatpush.msrb.mxu0 %v4761_v1  ;;  %630 = vmatpush.msrb.mxu1 %v4765_v2 }
  0x2b   :  { %650 = vmatpush.msrb.mxu2 %v4776_v4  ;;  %670 = vmatpush.msrb.mxu3 %v4800_v11 }
  0x2c   :  { %3690 = vmatmul.msk.f32.gmra.mxu0 %vm82_vm0, %v44_v41  ;;  %3710 = vmatmul.msk.f32.gmra.mxu1 %vm82_vm0, %v44_v41 }
  0x2d   :  { %3730 = vmatmul.msk.f32.gmra.mxu2 %vm82_vm0, %v44_v41  ;;  %3750 = vmatmul.msk.f32.gmra.mxu3 %vm82_vm0, %v44_v41  ;;  %v4819_v41 = vld [vmem:[#allocation4 + $0x78] sm:$0xff] }
  0x2e   :  { %611 = vmatpush.msrb.mxu0 %v4789_v7  ;;  %631 = vmatpush.msrb.mxu1 %v4791_v8 }
  0x2f   :  { %651 = vmatpush.msrb.mxu2 %v4798_v10  ;;  %671 = vmatpush.msrb.mxu3 %v4819_v41 }
  0x30   :  { %612 = vmatpush.msrb.mxu0 %v4808_v12  ;;  %632 = vmatpush.msrb.mxu1 %v4810_v22 }
  0x31   :  { %652 = vmatpush.msrb.mxu2 %v4817_v38 }
  0x34   :  { %3691 = vmatmul.msk.f32.gmra.mxu0 %vm82_vm0, %v45_v46  ;;  %3711 = vmatmul.msk.f32.gmra.mxu1 %vm82_vm0, %v45_v46 }
  0x35   :  { %3731 = vmatmul.msk.f32.gmra.mxu2 %vm82_vm0, %v45_v46  ;;  %3751 = vmatmul.msk.f32.gmra.mxu3 %vm82_vm0, %v45_v46  ;;  %v54_v46 = vld [vmem:[%s7143_s0 + $0x70] sm:$0xff] }
  0x3c   :  { %3692 = vmatmul.msk.f32.gmra.mxu0 %vm82_vm0, %v46_v49  ;;  %3712 = vmatmul.msk.f32.gmra.mxu1 %vm82_vm0, %v46_v49 }
  0x3d   :  { %3732 = vmatmul.msk.f32.gmra.mxu2 %vm82_vm0, %v46_v49  ;;  %3752 = vmatmul.msk.f32.gmra.mxu3 %vm82_vm0, %v46_v49  ;;  %v4830_v49 = vld [vmem:[#allocation4 + $0x20] sm:$0xff] }
  0x3e   :  { %7417 = vst [vmem:[#allocation12_spill] sm:$0xff] %v4830_v49  ;;  %613 = vmatpush.msrb.mxu0 %v4830_v49 }
  0x44   :  { %3693 = vmatmul.msk.f32.gmra.mxu0 %vm82_vm0, %v47_v54  ;;  %3713 = vmatmul.msk.f32.gmra.mxu1 %vm82_vm0, %v47_v54 }
  0x45   :  { %3733 = vmatmul.msk.f32.gmra.mxu2 %vm82_vm0, %v47_v54  ;;  %3753 = vmatmul.msk.f32.gmra.mxu3 %vm82_vm0, %v47_v54  ;;  %v4832_v54 = vld [vmem:[#allocation4 + $0x28] sm:$0xff] }
  0x46   :  { %7418 = vst [vmem:[#allocation13_spill] sm:$0xff] %v4832_v54  ;;  %633 = vmatpush.msrb.mxu1 %v4832_v54 }
  0x4c   :  { %3694 = vmatmul.msk.f32.gmra.mxu0 %vm82_vm0, %v48_v59  ;;  %3714 = vmatmul.msk.f32.gmra.mxu1 %vm82_vm0, %v48_v59 }
  0x4d   :  { %3734 = vmatmul.msk.f32.gmra.mxu2 %vm82_vm0, %v48_v59  ;;  %3754 = vmatmul.msk.f32.gmra.mxu3 %vm82_vm0, %v48_v59  ;;  %v4840_v59 = vld [vmem:[#allocation4 + $0x30] sm:$0xff] }
  0x4e   :  { %7419 = vst [vmem:[#allocation14_spill] sm:$0xff] %v4840_v59  ;;  %653 = vmatpush.msrb.mxu2 %v4840_v59  ;;  %v4872_v59 = vld [vmem:[#allocation4 + $0x38] sm:$0xff] }
  0x4f   :  { %7426 = vst [vmem:[#allocation21_spill] sm:$0xff] %v4872_v59 }
  0x54   :  { %3695 = vmatmul.msk.f32.gmra.mxu0 %vm82_vm0, %v49_v62  ;;  %3715 = vmatmul.msk.f32.gmra.mxu1 %vm82_vm0, %v49_v62 }
  0x55   :  { %3735 = vmatmul.msk.f32.gmra.mxu2 %vm82_vm0, %v49_v62  ;;  %3755 = vmatmul.msk.f32.gmra.mxu3 %vm82_vm0, %v49_v62  ;;  %v4842_v62 = vld [vmem:[#allocation4 + $0x58] sm:$0xff] }
  0x56   :  { %7420 = vst [vmem:[#allocation15_spill] sm:$0xff] %v4842_v62  ;;  %672 = vmatpush.msrb.mxu3 %v4842_v62 }
  0x58   :  { %673 = vmatpush.msrb.mxu3 %v4872_v59 }
  0x5c   :  { %3696 = vmatmul.msk.f32.gmra.mxu0 %vm82_vm0, %v50_v3  ;;  %3716 = vmatmul.msk.f32.gmra.mxu1 %vm82_vm0, %v50_v3 }
  0x5d   :  { %3736 = vmatmul.msk.f32.gmra.mxu2 %vm82_vm0, %v50_v3  ;;  %3756 = vmatmul.msk.f32.gmra.mxu3 %vm82_vm0, %v50_v3  ;;  %v55_v3 = vld [vmem:[%s7143_s0 + $0x78] sm:$0xff] }
  0x64   :  { %3697 = vmatmul.msk.f32.gmra.mxu0 %vm82_vm0, %v51_v6  ;;  %3717 = vmatmul.msk.f32.gmra.mxu1 %vm82_vm0, %v51_v6 }
  0x65   :  { %3737 = vmatmul.msk.f32.gmra.mxu2 %vm82_vm0, %v51_v6  ;;  %3757 = vmatmul.msk.f32.gmra.mxu3 %vm82_vm0, %v51_v6  ;;  %v4849_v6 = vld [vmem:[#allocation4] sm:$0xff] }
  0x66   :  { %7421 = vst [vmem:[#allocation16_spill] sm:$0xff] %v4849_v6  ;;  %614 = vmatpush.msrb.mxu0 %v4849_v6  ;;  %v4870_v6 = vld [vmem:[#allocation4 + $0x10] sm:$0xff] }
  0x67   :  { %7425 = vst [vmem:[#allocation20_spill] sm:$0xff] %v4870_v6  ;;  %654 = vmatpush.msrb.mxu2 %v4870_v6 }
  0x68   :  { %752 = vmatpush.msra.mxu0 %v4567_v13 }
  0x69   :  { %792 = vmatpush.msra.mxu2 %v4573_v15 }
  0x6a   :  { %753 = vmatpush.msra.mxu0 %v4579_v17 }
  0x6b   :  { %793 = vmatpush.msra.mxu2 %v4585_v19 }
  0x6c   :  { %3698 = vmatmul.msk.f32.gmra.mxu0 %vm82_vm0, %v52_v9  ;;  %3718 = vmatmul.msk.f32.gmra.mxu1 %vm82_vm0, %v52_v9 }
  0x6d   :  { %3738 = vmatmul.msk.f32.gmra.mxu2 %vm82_vm0, %v52_v9  ;;  %3758 = vmatmul.msk.f32.gmra.mxu3 %vm82_vm0, %v52_v9  ;;  %v4851_v9 = vld [vmem:[#allocation4 + $0x8] sm:$0xff] }
  0x6e   :  { %7422 = vst [vmem:[#allocation17_spill] sm:$0xff] %v4851_v9  ;;  %634 = vmatpush.msrb.mxu1 %v4851_v9  ;;  %v56_v9 = vld [vmem:[%s7143_s0 + $0x80] sm:$0xff]  ;;  %754 = vmatpush.msra.mxu0 %v4587_v20 }
  0x6f   :  { %794 = vmatpush.msra.mxu2 %v4598_v24 }
  0x70   :  { %772 = vmatpush.msra.mxu1 %v4569_v14  ;;  %755 = vmatpush.msra.mxu0 %v4606_v26 }
  0x71   :  { %795 = vmatpush.msra.mxu2 %v4612_v28 }
  0x72   :  { %773 = vmatpush.msra.mxu1 %v4581_v18  ;;  %756 = vmatpush.msra.mxu0 %v4620_v29 }
  0x73   :  { %796 = vmatpush.msra.mxu2 %v4626_v31 }
  0x74   :  { %3699 = vmatmul.msk.f32.gmra.mxu0 %vm82_vm0, %v53_v33  ;;  %3719 = vmatmul.msk.f32.gmra.mxu1 %vm82_vm0, %v53_v33 }
  0x75   :  { %3739 = vmatmul.msk.f32.gmra.mxu2 %vm82_vm0, %v53_v33  ;;  %3759 = vmatmul.msk.f32.gmra.mxu3 %vm82_vm0, %v53_v33 }
  0x76   :  { %774 = vmatpush.msra.mxu1 %v4596_v23  ;;  %757 = vmatpush.msra.mxu0 %v4642_v34 }
  0x77   :  { %797 = vmatpush.msra.mxu2 %v4646_v36 }
  0x78   :  { %775 = vmatpush.msra.mxu1 %v4608_v27  ;;  %758 = vmatpush.msra.mxu0 %v4661_v39 }
  0x79   :  { %798 = vmatpush.msra.mxu2 %v4674_v42 }
  0x7a   :  { %776 = vmatpush.msra.mxu1 %v4622_v30  ;;  %759 = vmatpush.msra.mxu0 %v4678_v44 }
  0x7b   :  { %799 = vmatpush.msra.mxu2 %v4693_v47 }
  0x7c   :  { %3700 = vmatmul.msk.f32.gmra.mxu0 %vm82_vm0, %v54_v46  ;;  %3720 = vmatmul.msk.f32.gmra.mxu1 %vm82_vm0, %v54_v46 }
  0x7d   :  { %3740 = vmatmul.msk.f32.gmra.mxu2 %vm82_vm0, %v54_v46  ;;  %3760 = vmatmul.msk.f32.gmra.mxu3 %vm82_vm0, %v54_v46 }
  0x7e   :  { %777 = vmatpush.msra.mxu1 %v4644_v35  ;;  %760 = vmatpush.msra.mxu0 %v4706_v50 }
  0x7f   :  { %800 = vmatpush.msra.mxu2 %v4710_v52 }
  0x80   :  { %778 = vmatpush.msra.mxu1 %v4663_v40  ;;  %761 = vmatpush.msra.mxu0 %v4725_v55 }
  0x81   :  { %801 = vmatpush.msra.mxu2 %v4729_v57 }
  0x82   :  { %779 = vmatpush.msra.mxu1 %v4682_v45  ;;  %762 = vmatpush.msra.mxu0 %v4744_v60 }
  0x83   :  { %802 = vmatpush.msra.mxu2 %v4757_v63 }
  0x84   :  { %3701 = vmatmul.msk.f32.gmra.mxu0 %vm82_vm0, %v55_v3  ;;  %3721 = vmatmul.msk.f32.gmra.mxu1 %vm82_vm0, %v55_v3 }
  0x85   :  { %3741 = vmatmul.msk.f32.gmra.mxu2 %vm82_vm0, %v55_v3  ;;  %3761 = vmatmul.msk.f32.gmra.mxu3 %vm82_vm0, %v55_v3  ;;  %v4876_v3 = vld [vmem:[#allocation4 + $0x18] sm:$0xff] }
  0x86   :  { %7427 = vst [vmem:[#allocation22_spill] sm:$0xff] %v4876_v3  ;;  %674 = vmatpush.msrb.mxu3 %v4876_v3  ;;  %780 = vmatpush.msra.mxu1 %v4708_v51 }
  0x87   :  { %763 = vmatpush.msra.mxu0 %v4761_v1  ;;  %803 = vmatpush.msra.mxu2 %v4776_v4 }
  0x88   :  { %812 = vmatpush.msra.mxu3 %v4575_v16  ;;  %781 = vmatpush.msra.mxu1 %v4727_v56 }
  0x89   :  { %v4863_v33 = vpop.f32.mrf.mxu0  ;;  %v4865_v46 = vpop.f32.mrf.mxu1  ;;  %764 = vmatpush.msra.mxu0 %v4789_v7  ;;  %804 = vmatpush.msra.mxu2 %v4798_v10 }
  0x8a   :  { %7423 = vst [vmem:[#allocation18_spill] sm:$0xff] %v4863_v33  ;;  %813 = vmatpush.msra.mxu3 %v4589_v21  ;;  %782 = vmatpush.msra.mxu1 %v4746_v61 }
  0x8b   :  { %7424 = vst [vmem:[#allocation19_spill] sm:$0xff] %v4865_v46  ;;  %765 = vmatpush.msra.mxu0 %v4808_v12  ;;  %805 = vmatpush.msra.mxu2 %v4817_v38  ;;  %v7450_v12 = vld [vmem:[#allocation17_spill] sm:$0xff] }
  0x8c   :  { %3702 = vmatmul.msk.f32.gmra.mxu0 %vm82_vm0, %v56_v9  ;;  %3722 = vmatmul.msk.f32.gmra.mxu1 %vm82_vm0, %v56_v9 }
  0x8d   :  { %3742 = vmatmul.msk.f32.gmra.mxu2 %vm82_vm0, %v56_v9  ;;  %3762 = vmatmul.msk.f32.gmra.mxu3 %vm82_vm0, %v56_v9  ;;  %v57_v9 = vld [vmem:[%s7143_s0 + $0x88] sm:$0xff] }
  0x8e   :  { %814 = vmatpush.msra.mxu3 %v4600_v25  ;;  %783 = vmatpush.msra.mxu1 %v4765_v2 }
  0x8f   :  { %766 = vmatpush.msra.mxu0 %v4830_v49 }
  0x90   :  { %v4888_v46 = vpop.f32.mrf.mxu2  ;;  %v4890_v33 = vpop.f32.mrf.mxu3  ;;  %815 = vmatpush.msra.mxu3 %v4628_v32  ;;  %784 = vmatpush.msra.mxu1 %v4791_v8 }
  0x91   :  { %7428 = vst [vmem:[#allocation23_spill] sm:$0xff] %v4888_v46  ;;  %v4894_v20 = vpop.f32.mrf.mxu0  ;;  %v4896_v18 = vpop.f32.mrf.mxu1 }
  0x92   :  { %7429 = vst [vmem:[#allocation24_spill] sm:$0xff] %v4890_v33  ;;  %816 = vmatpush.msra.mxu3 %v4650_v37  ;;  %785 = vmatpush.msra.mxu1 %v4810_v22 }
  0x93   :  { %7430 = vst [vmem:[#allocation25_spill] sm:$0xff] %v4894_v20 }
  0x94   :  { %7431 = vst [vmem:[#allocation26_spill] sm:$0xff] %v4896_v18  ;;  %3703 = vmatmul.msk.f32.gmra.mxu0 %vm82_vm0, %v57_v9  ;;  %3723 = vmatmul.msk.f32.gmra.mxu1 %vm82_vm0, %v57_v9 }
  0x95   :  { %3743 = vmatmul.msk.f32.gmra.mxu2 %vm82_vm0, %v57_v9  ;;  %3763 = vmatmul.msk.f32.gmra.mxu3 %vm82_vm0, %v57_v9  ;;  %v58_v9 = vld [vmem:[%s7143_s0 + $0x90] sm:$0xff] }
  0x96   :  { %817 = vmatpush.msra.mxu3 %v4676_v43  ;;  %786 = vmatpush.msra.mxu1 %v4832_v54 }
  0x98   :  { %v4915_v18 = vpop.f32.mrf.mxu2  ;;  %v4917_v20 = vpop.f32.mrf.mxu3  ;;  %818 = vmatpush.msra.mxu3 %v4695_v48  ;;  %787 = vmatpush.msra.mxu1 %v7450_v12 }
  0x99   :  { %7432 = vst [vmem:[#allocation27_spill] sm:$0xff] %v4915_v18  ;;  %v4921_v33 = vpop.f32.mrf.mxu0  ;;  %v4923_v46 = vpop.f32.mrf.mxu1 }
  0x9a   :  { %7433 = vst [vmem:[#allocation28_spill] sm:$0xff] %v4917_v20  ;;  %819 = vmatpush.msra.mxu3 %v4714_v53 }
  0x9b   :  { %7434 = vst [vmem:[#allocation29_spill] sm:$0xff] %v4921_v33 }
  0x9c   :  { %7435 = vst [vmem:[#allocation30_spill] sm:$0xff] %v4923_v46  ;;  %3704 = vmatmul.msk.f32.gmra.mxu0 %vm82_vm0, %v58_v9  ;;  %3724 = vmatmul.msk.f32.gmra.mxu1 %vm82_vm0, %v58_v9 }
  0x9d   :  { %3744 = vmatmul.msk.f32.gmra.mxu2 %vm82_vm0, %v58_v9  ;;  %3764 = vmatmul.msk.f32.gmra.mxu3 %vm82_vm0, %v58_v9  ;;  %v59_v9 = vld [vmem:[%s7143_s0 + $0x98] sm:$0xff] }
  0x9e   :  { %820 = vmatpush.msra.mxu3 %v4733_v58 }
  0xa0   :  { %v4942_v46 = vpop.f32.mrf.mxu2  ;;  %v4944_v33 = vpop.f32.mrf.mxu3  ;;  %821 = vmatpush.msra.mxu3 %v4759_v0 }
  0xa1   :  { %7436 = vst [vmem:[#allocation31_spill] sm:$0xff] %v4942_v46  ;;  %v4948_v20 = vpop.f32.mrf.mxu0  ;;  %v4950_v18 = vpop.f32.mrf.mxu1 }
  0xa2   :  { %7437 = vst [vmem:[#allocation32_spill] sm:$0xff] %v4944_v33  ;;  %822 = vmatpush.msra.mxu3 %v4778_v5 }
  0xa3   :  { %7438 = vst [vmem:[#allocation33_spill] sm:$0xff] %v4948_v20 }
  0xa4   :  { %7439 = vst [vmem:[#allocation34_spill] sm:$0xff] %v4950_v18  ;;  %3705 = vmatmul.msk.f32.gmra.mxu0 %vm82_vm0, %v59_v9  ;;  %3725 = vmatmul.msk.f32.gmra.mxu1 %vm82_vm0, %v59_v9 }
  0xa5   :  { %3745 = vmatmul.msk.f32.gmra.mxu2 %vm82_vm0, %v59_v9  ;;  %3765 = vmatmul.msk.f32.gmra.mxu3 %vm82_vm0, %v59_v9  ;;  %v4489_v9 = vmov 0.0  }
  0xa6   :  { %823 = vmatpush.msra.mxu3 %v4800_v11 }
  0xa8   :  { %v4969_v18 = vpop.f32.mrf.mxu2  ;;  %v4971_v20 = vpop.f32.mrf.mxu3  ;;  %824 = vmatpush.msra.mxu3 %v4819_v41 }
  0xa9   :  { %7440 = vst [vmem:[#allocation35_spill] sm:$0xff] %v4969_v18  ;;  %v4975_v33 = vpop.f32.mrf.mxu0  ;;  %v4977_v46 = vpop.f32.mrf.mxu1 }
  0xaa   :  { %7441 = vst [vmem:[#allocation36_spill] sm:$0xff] %v4971_v20  ;;  %825 = vmatpush.msra.mxu3 %v4842_v62  ;;  %v7446_v20 = vld [vmem:[#allocation14_spill] sm:$0xff] }
  0xab   :  { %7442 = vst [vmem:[#allocation37_spill] sm:$0xff] %v4975_v33  ;;  %806 = vmatpush.msra.mxu2 %v7446_v20 }
  0xac   :  { %7443 = vst [vmem:[#allocation38_spill] sm:$0xff] %v4977_v46  ;;  %615 = vmatmul.f32.vlgmr.msrb.gmra.mxu0 %v4489_v9  ;;  %635 = vmatmul.f32.vlgmr.msrb.gmra.mxu1 %v4489_v9 }
  0xad   :  { %655 = vmatmul.f32.vlgmr.msrb.gmra.mxu2 %v4489_v9  ;;  %675 = vmatmul.f32.vlgmr.msrb.gmra.mxu3 %v4489_v9  ;;  %v7449_v9 = vld [vmem:[#allocation16_spill] sm:$0xff] }
  0xae   :  { %767 = vmatpush.msra.mxu0 %v7449_v9  ;;  %826 = vmatpush.msra.mxu3 %v4872_v59 }
  0xaf   :  { %807 = vmatpush.msra.mxu2 %v4870_v6  ;;  %926 = vmatpush.msrb.mxu1 %v4569_v14 }
  0xb0   :  { %v4989_v46 = vpop.f32.mrf.mxu2  ;;  %v4991_v33 = vpop.f32.mrf.mxu3  ;;  %906 = vmatpush.msrb.mxu0 %v4567_v13  ;;  %827 = vmatpush.msra.mxu3 %v4876_v3 }
  0xb1   :  { %7444 = vst [vmem:[#allocation39_spill] sm:$0xff] %v4989_v46  ;;  %v4995_v18 = vpop.f32.mrf.mxu0  ;;  %v4997_v22 = vpop.f32.mrf.mxu1  ;;  %946 = vmatpush.msrb.mxu2 %v4573_v15 }
  0xb2   :  { %7445 = vst [vmem:[#allocation40_spill] sm:$0xff] %v4991_v33  ;;  %966 = vmatpush.msrb.mxu3 %v4575_v16  ;;  %907 = vmatpush.msrb.mxu0 %v4579_v17 }
  0xb3   :  { %7447 = vst [vmem:[#allocation41_spill] sm:$0xff] %v4995_v18  ;;  %947 = vmatpush.msrb.mxu2 %v4585_v19  ;;  %v7452_v18 = vld [vmem:[#allocation8_spill] sm:$0xff] }
  0xb4   :  { %7448 = vst [vmem:[#allocation42_spill] sm:$0xff] %v4997_v22  ;;  %v7451_v22 = vld [vmem:[#allocation7_spill] sm:$0xff]  ;;  %967 = vmatpush.msrb.mxu3 %v4589_v21  ;;  %908 = vmatpush.msrb.mxu0 %v7452_v18 }
  0xb5   :  { %927 = vmatpush.msrb.mxu1 %v7451_v22  ;;  %948 = vmatpush.msrb.mxu2 %v4598_v24 }
  0xb6   :  { %968 = vmatpush.msrb.mxu3 %v4600_v25  ;;  %909 = vmatpush.msrb.mxu0 %v4606_v26  ;;  %v7465_v26 = vld [vmem:[#allocation9_spill] sm:$0xff] }
  0xb7   :  { %928 = vmatpush.msrb.mxu1 %v4596_v23  ;;  %949 = vmatpush.msrb.mxu2 %v4612_v28 }
  0xb8   :  { %v5013_v33 = vpop.f32.mrf.mxu2  ;;  %v5015_v13 = vpop.f32.mrf.mxu3  ;;  %969 = vmatpush.msrb.mxu3 %v4628_v32  ;;  %910 = vmatpush.msrb.mxu0 %v4620_v29 }
  0xb9   :  { %7453 = vst [vmem:[#allocation7_spill] sm:$0xff] %v5013_v33  ;;  %v5019_v14 = vpop.f32.mrf.mxu0  ;;  %v5021_v15 = vpop.f32.mrf.mxu1  ;;  %929 = vmatpush.msrb.mxu1 %v4608_v27  ;;  %950 = vmatpush.msrb.mxu2 %v4626_v31  ;;  %v7466_v27 = vld [vmem:[#allocation10_spill] sm:$0xff] }
  0xba   :  { %7454 = vst [vmem:[#allocation8_spill] sm:$0xff] %v5015_v13  ;;  %970 = vmatpush.msrb.mxu3 %v4650_v37  ;;  %911 = vmatpush.msrb.mxu0 %v4642_v34 }
  0xbb   :  { %7455 = vst [vmem:[#allocation43_spill] sm:$0xff] %v5019_v14  ;;  %930 = vmatpush.msrb.mxu1 %v4622_v30  ;;  %951 = vmatpush.msrb.mxu2 %v4646_v36 }
  0xbc   :  { %7456 = vst [vmem:[#allocation44_spill] sm:$0xff] %v5021_v15  ;;  %971 = vmatpush.msrb.mxu3 %v4676_v43  ;;  %912 = vmatpush.msrb.mxu0 %v4661_v39 }
  0xbd   :  { %931 = vmatpush.msrb.mxu1 %v4644_v35  ;;  %952 = vmatpush.msrb.mxu2 %v4674_v42 }
  0xbe   :  { %972 = vmatpush.msrb.mxu3 %v4695_v48  ;;  %913 = vmatpush.msrb.mxu0 %v4678_v44 }
  0xbf   :  { %932 = vmatpush.msrb.mxu1 %v4663_v40  ;;  %953 = vmatpush.msrb.mxu2 %v4693_v47 }
  0xc0   :  { %v5037_v16 = vpop.f32.mrf.mxu2  ;;  %v5039_v17 = vpop.f32.mrf.mxu3  ;;  %973 = vmatpush.msrb.mxu3 %v4714_v53  ;;  %914 = vmatpush.msrb.mxu0 %v4706_v50 }
  0xc1   :  { %7457 = vst [vmem:[#allocation45_spill] sm:$0xff] %v5037_v16  ;;  %v5043_v18 = vpop.f32.mrf.mxu0  ;;  %v5045_v19 = vpop.f32.mrf.mxu1  ;;  %933 = vmatpush.msrb.mxu1 %v4682_v45  ;;  %954 = vmatpush.msrb.mxu2 %v4710_v52 }
  0xc2   :  { %7458 = vst [vmem:[#allocation46_spill] sm:$0xff] %v5039_v17  ;;  %974 = vmatpush.msrb.mxu3 %v4733_v58  ;;  %915 = vmatpush.msrb.mxu0 %v4725_v55 }
  0xc3   :  { %7459 = vst [vmem:[#allocation47_spill] sm:$0xff] %v5043_v18  ;;  %934 = vmatpush.msrb.mxu1 %v4708_v51  ;;  %955 = vmatpush.msrb.mxu2 %v4729_v57 }
  0xc4   :  { %7460 = vst [vmem:[#allocation48_spill] sm:$0xff] %v5045_v19  ;;  %975 = vmatpush.msrb.mxu3 %v4759_v0  ;;  %916 = vmatpush.msrb.mxu0 %v4744_v60 }
  0xc5   :  { %935 = vmatpush.msrb.mxu1 %v4727_v56  ;;  %956 = vmatpush.msrb.mxu2 %v4757_v63 }
  0xc6   :  { %976 = vmatpush.msrb.mxu3 %v4778_v5  ;;  %917 = vmatpush.msrb.mxu0 %v4761_v1 }
  0xc7   :  { %936 = vmatpush.msrb.mxu1 %v4746_v61  ;;  %957 = vmatpush.msrb.mxu2 %v4776_v4 }
  0xc8   :  { %v5061_v21 = vpop.f32.mrf.mxu2  ;;  %v5063_v23 = vpop.f32.mrf.mxu3  ;;  %977 = vmatpush.msrb.mxu3 %v4800_v11  ;;  %918 = vmatpush.msrb.mxu0 %v4789_v7 }
  0xc9   :  { %7461 = vst [vmem:[#allocation49_spill] sm:$0xff] %v5061_v21  ;;  %v5067_v24 = vpop.f32.mrf.mxu0  ;;  %v5069_v25 = vpop.f32.mrf.mxu1  ;;  %937 = vmatpush.msrb.mxu1 %v4765_v2  ;;  %958 = vmatpush.msrb.mxu2 %v4798_v10 }
  0xca   :  { %7462 = vst [vmem:[#allocation50_spill] sm:$0xff] %v5063_v23  ;;  %978 = vmatpush.msrb.mxu3 %v4819_v41  ;;  %919 = vmatpush.msrb.mxu0 %v7465_v26 }
  0xcb   :  { %7463 = vst [vmem:[#allocation51_spill] sm:$0xff] %v5067_v24  ;;  %938 = vmatpush.msrb.mxu1 %v4791_v8  ;;  %959 = vmatpush.msrb.mxu2 %v4817_v38 }
  0xcc   :  { %7464 = vst [vmem:[#allocation52_spill] sm:$0xff] %v5069_v25  ;;  %979 = vmatpush.msrb.mxu3 %v4842_v62  ;;  %920 = vmatpush.msrb.mxu0 %v4830_v49 }
  0xcd   :  { %939 = vmatpush.msrb.mxu1 %v7466_v27  ;;  %960 = vmatpush.msrb.mxu2 %v7446_v20 }
  0xce   :  { %980 = vmatpush.msrb.mxu3 %v4872_v59  ;;  %921 = vmatpush.msrb.mxu0 %v7449_v9 }
  0xcf   :  { %940 = vmatpush.msrb.mxu1 %v4832_v54  ;;  %961 = vmatpush.msrb.mxu2 %v4870_v6  ;;  %v7517_v6 = vld [vmem:[#allocation23_spill] sm:$0xff] }
  0xd0   :  { %v5085_v28 = vpop.f32.mrf.mxu2  ;;  %v5087_v22 = vpop.f32.mrf.mxu3  ;;  %981 = vmatpush.msrb.mxu3 %v4876_v3 }
  0xd1   :  { %7467 = vst [vmem:[#allocation9_spill] sm:$0xff] %v5085_v28  ;;  %v5091_v25 = vpop.f32.mrf.mxu0  ;;  %v5093_v24 = vpop.f32.mrf.mxu1  ;;  %941 = vmatpush.msrb.mxu1 %v7450_v12 }
  0xd2   :  { %7468 = vst [vmem:[#allocation53_spill] sm:$0xff] %v5087_v22 }
  0xd3   :  { %7469 = vst [vmem:[#allocation54_spill] sm:$0xff] %v5091_v25 }
  0xd4   :  { %7470 = vst [vmem:[#allocation55_spill] sm:$0xff] %v5093_v24 }
  0xd8   :  { %v5100_v28 = vpop.f32.mrf.mxu2  ;;  %v5102_v22 = vpop.f32.mrf.mxu3 }
  0xd9   :  { %7471 = vst [vmem:[#allocation56_spill] sm:$0xff] %v5100_v28  ;;  %v5104_v23 = vpop.f32.mrf.mxu0  ;;  %v5106_v21 = vpop.f32.mrf.mxu1 }
  0xda   :  { %7472 = vst [vmem:[#allocation57_spill] sm:$0xff] %v5102_v22 }
  0xdb   :  { %7473 = vst [vmem:[#allocation58_spill] sm:$0xff] %v5104_v23 }
  0xdc   :  { %7474 = vst [vmem:[#allocation59_spill] sm:$0xff] %v5106_v21 }
  0xe0   :  { %v5108_v25 = vpop.f32.mrf.mxu2  ;;  %v5110_v24 = vpop.f32.mrf.mxu3 }
  0xe1   :  { %7475 = vst [vmem:[#allocation60_spill] sm:$0xff] %v5108_v25  ;;  %v5112_v19 = vpop.f32.mrf.mxu0  ;;  %v5114_v18 = vpop.f32.mrf.mxu1 }
  0xe2   :  { %7476 = vst [vmem:[#allocation61_spill] sm:$0xff] %v5110_v24 }
  0xe3   :  { %7477 = vst [vmem:[#allocation62_spill] sm:$0xff] %v5112_v19 }
  0xe4   :  { %7478 = vst [vmem:[#allocation63_spill] sm:$0xff] %v5114_v18 }
  0xe8   :  { %v5116_v17 = vpop.f32.mrf.mxu2  ;;  %v5118_v16 = vpop.f32.mrf.mxu3 }
  0xe9   :  { %7479 = vst [vmem:[#allocation64_spill] sm:$0xff] %v5116_v17  ;;  %v5120_v15 = vpop.f32.mrf.mxu0  ;;  %v5122_v28 = vpop.f32.mrf.mxu1 }
  0xea   :  { %7480 = vst [vmem:[#allocation65_spill] sm:$0xff] %v5118_v16 }
  0xeb   :  { %7481 = vst [vmem:[#allocation66_spill] sm:$0xff] %v5120_v15 }
  0xec   :  { %7482 = vst [vmem:[#allocation67_spill] sm:$0xff] %v5122_v28 }
  0xf0   :  { %v5124_v22 = vpop.f32.mrf.mxu2  ;;  %v5126_v23 = vpop.f32.mrf.mxu3 }
  0xf1   :  { %7483 = vst [vmem:[#allocation68_spill] sm:$0xff] %v5124_v22  ;;  %v5128_v21 = vpop.f32.mrf.mxu0  ;;  %v5130_v25 = vpop.f32.mrf.mxu1 }
  0xf2   :  { %7484 = vst [vmem:[#allocation69_spill] sm:$0xff] %v5126_v23 }
  0xf3   :  { %7485 = vst [vmem:[#allocation70_spill] sm:$0xff] %v5128_v21 }
  0xf4   :  { %7486 = vst [vmem:[#allocation71_spill] sm:$0xff] %v5130_v25 }
  0xf8   :  { %v5132_v24 = vpop.f32.mrf.mxu2  ;;  %v5134_v19 = vpop.f32.mrf.mxu3 }
  0xf9   :  { %7487 = vst [vmem:[#allocation72_spill] sm:$0xff] %v5132_v24  ;;  %v5136_v18 = vpop.f32.mrf.mxu0  ;;  %v5138_v17 = vpop.f32.mrf.mxu1 }
  0xfa   :  { %7488 = vst [vmem:[#allocation73_spill] sm:$0xff] %v5134_v19 }
  0xfb   :  { %7489 = vst [vmem:[#allocation74_spill] sm:$0xff] %v5136_v18 }
  0xfc   :  { %7490 = vst [vmem:[#allocation75_spill] sm:$0xff] %v5138_v17 }
 0x100   :  { %v5140_v16 = vpop.f32.mrf.mxu2  ;;  %v5142_v15 = vpop.f32.mrf.mxu3 }
 0x101   :  { %7491 = vst [vmem:[#allocation76_spill] sm:$0xff] %v5140_v16  ;;  %v5144_v28 = vpop.f32.mrf.mxu0  ;;  %v5146_v22 = vpop.f32.mrf.mxu1 }
 0x102   :  { %7492 = vst [vmem:[#allocation77_spill] sm:$0xff] %v5142_v15 }
 0x103   :  { %7493 = vst [vmem:[#allocation78_spill] sm:$0xff] %v5144_v28 }
 0x104   :  { %7494 = vst [vmem:[#allocation79_spill] sm:$0xff] %v5146_v22 }
 0x108   :  { %v5148_v23 = vpop.f32.mrf.mxu2  ;;  %v5150_v21 = vpop.f32.mrf.mxu3 }
 0x109   :  { %7495 = vst [vmem:[#allocation80_spill] sm:$0xff] %v5148_v23  ;;  %v5152_v25 = vpop.f32.mrf.mxu0  ;;  %v5154_v24 = vpop.f32.mrf.mxu1 }
 0x10a   :  { %7496 = vst [vmem:[#allocation81_spill] sm:$0xff] %v5150_v21 }
 0x10b   :  { %7497 = vst [vmem:[#allocation82_spill] sm:$0xff] %v5152_v25 }
 0x10c   :  { %7498 = vst [vmem:[#allocation83_spill] sm:$0xff] %v5154_v24 }
 0x110   :  { %v5156_v19 = vpop.f32.mrf.mxu2  ;;  %v5162_v16 = vpop.f32.mrf.mxu3 }
 0x111   :  { %7499 = vst [vmem:[#allocation84_spill] sm:$0xff] %v5156_v19  ;;  %v5158_v18 = vpop.f32.mrf.mxu0  ;;  %v5160_v17 = vpop.f32.mrf.mxu1  ;;  %v72_v19 = vld [vmem:[%s7146_s3] sm:$0xf] }
 0x112   :  { %7500 = vst [vmem:[#allocation85_spill] sm:$0xff] %v5158_v18  ;;  %v5193_v46 = vperm.slane %v72_v19, 2 }
 0x113   :  { %7501 = vst [vmem:[#allocation86_spill] sm:$0xff] %v5160_v17  ;;  %v5181_v17 = vperm.slane %v72_v19, 0 }
 0x114   :  { %7502 = vst [vmem:[#allocation87_spill] sm:$0xff] %v5162_v16  ;;  %v5183_v16 = vperm.slane %v72_v19, 1 }
 0x115   :  { %7510 = vst [vmem:[#allocation95_spill] sm:$0xff] %v5181_v17 }
 0x116   :  { %7511 = vst [vmem:[#allocation96_spill] sm:$0xff] %v5183_v16 }
 0x118   :  { %v5164_v15 = vpop.f32.mrf.mxu2  ;;  %v5170_v23 = vpop.f32.mrf.mxu3 }
 0x119   :  { %7503 = vst [vmem:[#allocation88_spill] sm:$0xff] %v5164_v15  ;;  %v5166_v28 = vpop.f32.mrf.mxu0  ;;  %v5168_v22 = vpop.f32.mrf.mxu1 }
 0x11a   :  { %7504 = vst [vmem:[#allocation89_spill] sm:$0xff] %v5166_v28 }
 0x11b   :  { %7505 = vst [vmem:[#allocation90_spill] sm:$0xff] %v5168_v22  ;;  %v7513_v22 = vld [vmem:[#allocation18_spill] sm:$0xff] }
 0x11c   :  { %7506 = vst [vmem:[#allocation91_spill] sm:$0xff] %v5170_v23  ;;  %v161_v28 = vadd.f32 %v7513_v22, %v5181_v17  ;;  %v7514_v23 = vld [vmem:[#allocation19_spill] sm:$0xff] }
 0x11d   :  { %7516 = vst [vmem:[#allocation19_spill] sm:$0xff] %v5193_v46 }
 0x120   :  { %v5172_v21 = vpop.f32.mrf.mxu2  ;;  %v5185_v15 = vpop.f32.mrf.mxu3 }
 0x121   :  { %7507 = vst [vmem:[#allocation92_spill] sm:$0xff] %v5172_v21  ;;  %v5177_v24 = vpop.f32.mrf.mxu0  ;;  %v5179_v18 = vpop.f32.mrf.mxu1  ;;  %v238_v21 = vadd.f32 %v7514_v23, %v5183_v16 }
 0x122   :  { %7508 = vst [vmem:[#allocation93_spill] sm:$0xff] %v5177_v24 }
 0x123   :  { %7509 = vst [vmem:[#allocation94_spill] sm:$0xff] %v5179_v18 }
 0x124   :  { %7512 = vst [vmem:[#allocation97_spill] sm:$0xff] %v5185_v15  ;;  %v315_v15 = vadd.f32 %v7517_v6, %v5193_v46 }
 0x128   :  { %v5191_v25 = vpop.f32.mrf.mxu2  ;;  %v5197_v12 = vpop.f32.mrf.mxu3 }
 0x129   :  { %7515 = vst [vmem:[#allocation18_spill] sm:$0xff] %v5191_v25  ;;  %v616_v14 = vpop.f32.mrf.mxu0  ;;  %v636_v13 = vpop.f32.mrf.mxu1 }
 0x12a   :  { %v617_v33 = vadd.f32 %v616_v14, %v161_v28  ;;  %v637_v24 = vadd.f32 %v636_v13, %v238_v21  ;;  %7518 = vst [vmem:[#allocation23_spill] sm:$0xff] %v5197_v12  ;;  %v5199_v13 = vperm.slane %v72_v19, 3  ;;  %v7520_v21 = vld [vmem:[#allocation24_spill] sm:$0xff] }
 0x12c   :  { %v3766_v18 = vmul.f32 -1.442695, %v617_v33  ;;  %v3767_v3 = vmul.f32 -1.442695, %v637_v24  ;;  %7519 = vst [vmem:[#allocation98_spill] sm:$0xff] %v5199_v13  ;;  %v392_v6 = vadd.f32 %v7520_v21, %v5199_v13 }
 0x12e   :  { %3869 = vpow2.f32 %v3766_v18 }
 0x12f   :  { %3871 = vpow2.f32 %v3767_v3 }
 0x130   :  { %v656_v22 = vpop.f32.mrf.mxu2  ;;  %v676_v33 = vpop.f32.mrf.mxu3 }
 0x131   :  { %v657_v17 = vadd.f32 %v656_v22, %v315_v15  ;;  %v677_v28 = vadd.f32 %v676_v33, %v392_v6 }
 0x133   :  { %v3768_v23 = vmul.f32 -1.442695, %v657_v17 }
 0x134   :  { %v3870_v16 = vpop.eup %3869 }
 0x135   :  { %v3872_v25 = vpop.eup %3871  ;;  %v688_v9 = vadd.f32 1.0, %v3870_v16  ;;  %3873 = vpow2.f32 %v3768_v23 }
 0x136   :  { %v689_v14 = vadd.f32 1.0, %v3872_v25 }
 0x137   :  { %3875 = vrcp.f32 %v688_v9  ;;  %v702_v23 = vand.u32 2147483648, %v688_v9  ;;  %v700_v46 = vand.u32 2147483647, %v688_v9  ;;  %vm696_vm3 = vweird.f32 %v688_v9 }
 0x138   :  { %3877 = vrcp.f32 %v689_v14  ;;  %v717_v19 = vand.u32 2147483648, %v689_v14  ;;  %v715_v20 = vand.u32 2147483647, %v689_v14  ;;  %vm711_vm4 = vweird.f32 %v689_v14 }
 0x139   :  { %vm701_vm6 = vcmp.eq.f32.partialorder %v700_v46, 8.507059e+37 }
 0x13a   :  { %v718_v13 = vor.u32 1.1754944e-38, %v717_v19  ;;  %vm716_vm8 = vcmp.eq.f32.partialorder %v715_v20, 8.507059e+37  ;;  %v5233_v19 = vld [vmem:[#allocation4 + $0x1d8] sm:$0xff] }
 0x13b   :  { %v3874_v18 = vpop.eup %3873 }
 0x13c   :  { %v690_v3 = vadd.f32 1.0, %v3874_v18  ;;  %v703_v18 = vor.u32 1.1754944e-38, %v702_v23 }
 0x13d   :  { %v3876_v24 = vpop.eup %3875 }
 0x13e   :  { %v3878_v12 = vpop.eup %3877  ;;  %v692_v15 = vmul.f32 %v3876_v24, %v688_v9  ;;  %3879 = vrcp.f32 %v690_v3  ;;  %vm697_vm1 = vweird.f32 %v3876_v24  ;;  %vm726_vm10 = vweird.f32 %v690_v3 }
 0x13f   :  { %v707_v17 = vmul.f32 %v3878_v12, %v689_v14  ;;  %3881 = vtanh.f32 %v677_v28  ;;  %vm712_vm2 = vweird.f32 %v3878_v12  ;;  %vm698_vm5 = vmor %vm696_vm3, %vm697_vm1  ;;  %v732_v14 = vand.u32 2147483648, %v690_v3 }
 0x140   :  { %v693_v22 = vsub.f32 1.0, %v692_v15  ;;  %vm713_vm7 = vmor %vm711_vm4, %vm712_vm2 }
 0x141   :  { %v708_v16 = vsub.f32 1.0, %v707_v17 }
 0x142   :  { %v694_v25 = vmul.f32 %v3876_v24, %v693_v22 }
 0x143   :  { %v709_v59 = vmul.f32 %v3878_v12, %v708_v16 }
 0x144   :  { %v3880_v54 = vpop.eup %3879  ;;  %v695_v21 = vadd.f32 %v3876_v24, %v694_v25 }
 0x145   :  { %v722_v33 = vmul.f32 %v3880_v54, %v690_v3  ;;  %v710_v6 = vadd.f32 %v3878_v12, %v709_v59  ;;  %v3882_v28 = vpop.eup %3881  ;;  %vm727_vm9 = vweird.f32 %v3880_v54  ;;  %v730_v59 = vand.u32 2147483647, %v690_v3  ;;  %v5230_v3 = vld [vmem:[#allocation4 + $0x1d0] sm:$0xff] }
 0x146   :  { %v699_v15 = vsel %vm698_vm5, %v3876_v24, %v695_v21  ;;  %vm728_vm11 = vmor %vm726_vm10, %vm727_vm9  ;;  %v733_v24 = vor.u32 1.1754944e-38, %v732_v14  ;;  %v5236_v21 = vld [vmem:[#allocation4 + $0x1a0] sm:$0xff] }
 0x147   :  { %v723_v17 = vsub.f32 1.0, %v722_v33  ;;  %v704_v22 = vsel %vm701_vm6, %v703_v18, %v699_v15  ;;  %v714_v49 = vsel %vm713_vm7, %v3878_v12, %v710_v6  ;;  %vm731_vm12 = vcmp.eq.f32.partialorder %v730_v59, 8.507059e+37  ;;  %v5239_v33 = vld [vmem:[#allocation4 + $0x1a8] sm:$0xff]  ;;  %v5242_v18 = vld [vmem:[#allocation4 + $0x1b0] sm:$0xff]  ;;  %v5245_v6 = vld [vmem:[#allocation4 + $0x1b8] sm:$0xff] }
 0x148   :  { %v719_v16 = vsel %vm716_vm8, %v718_v13, %v714_v49  ;;  %v738_v62 = vmul.f32 %v3882_v28, %v704_v22  ;;  %v5215_v49 = vld [vmem:[#allocation4 + $0x1e8] sm:$0xff]  ;;  %v5248_v15 = vld [vmem:[#allocation4 + $0x180] sm:$0xff] }
 0x149   :  { %v724_v38 = vmul.f32 %v3880_v54, %v723_v17  ;;  %v737_v27 = vmul.f32 0.0, %v719_v16  ;;  %v5227_v13 = vld [vmem:[#allocation4 + $0x1c8] sm:$0xff]  ;;  %v5254_v17 = vld [vmem:[#allocation4 + $0x190] sm:$0xff] }
 0x14a   :  { %v5251_v28 = vld [vmem:[#allocation4 + $0x188] sm:$0xff] }
 0x14b   :  { %v5203_v25 = vadd.f32 %v738_v62, %v737_v27  ;;  %v725_v9 = vadd.f32 %v3880_v54, %v724_v38  ;;  %v5212_v38 = vld [vmem:[#allocation4 + $0x1e0] sm:$0xff]  ;;  %v5221_v62 = vld [vmem:[#allocation4 + $0x1f8] sm:$0xff] }
 0x14c   :  { %v5224_v27 = vld [vmem:[#allocation4 + $0x1c0] sm:$0xff] }
 0x14d   :  { %3883 = vtanh.f32 %v5203_v25  ;;  %v729_v46 = vsel %vm728_vm11, %v3880_v54, %v725_v9  ;;  %v5218_v54 = vld [vmem:[#allocation4 + $0x1f0] sm:$0xff] }
 0x14e   :  { %v734_v12 = vsel %vm731_vm12, %v733_v24, %v729_v46 }
 0x153   :  { %v3884_v23 = vpop.eup %3883 }
 0x154   :  { %v5206_v20 = vmul.f32 %v3884_v23, %v734_v12 }
 0x156   :  { %768 = vmatmul.f32.vlgmr.msra.gmra.mxu0 %v5206_v20  ;;  %788 = vmatmul.f32.vlgmr.msra.gmra.mxu1 %v5206_v20 }
 0x157   :  { %808 = vmatmul.f32.vlgmr.msra.gmra.mxu2 %v5206_v20  ;;  %828 = vmatmul.f32.vlgmr.msra.gmra.mxu3 %v5206_v20 }
 0x158   :  { %1060 = vmatpush.msra.mxu0 %v5212_v38  ;;  %1080 = vmatpush.msra.mxu1 %v5215_v49 }
 0x159   :  { %1100 = vmatpush.msra.mxu2 %v5218_v54  ;;  %1120 = vmatpush.msra.mxu3 %v5221_v62 }
 0x15a   :  { %1061 = vmatpush.msra.mxu0 %v5224_v27  ;;  %1081 = vmatpush.msra.mxu1 %v5227_v13 }
 0x15b   :  { %1101 = vmatpush.msra.mxu2 %v5230_v3  ;;  %1121 = vmatpush.msra.mxu3 %v5233_v19 }
 0x15c   :  { %1062 = vmatpush.msra.mxu0 %v5236_v21  ;;  %1082 = vmatpush.msra.mxu1 %v5239_v33 }
 0x15d   :  { %1102 = vmatpush.msra.mxu2 %v5242_v18  ;;  %1122 = vmatpush.msra.mxu3 %v5245_v6 }
 0x15e   :  { %1063 = vmatpush.msra.mxu0 %v5248_v15  ;;  %1083 = vmatpush.msra.mxu1 %v5251_v28 }
 0x15f   :  { %1103 = vmatpush.msra.mxu2 %v5254_v17  ;;  %1123 = vmatpush.msra.mxu3 %v4628_v32  ;;  %v7524_v32 = vld [vmem:[#allocation12_spill] sm:$0xff] }
 0x160   :  { %1064 = vmatpush.msra.mxu0 %v4620_v29  ;;  %1084 = vmatpush.msra.mxu1 %v4622_v30  ;;  %v7521_v29 = vld [vmem:[#allocation10_spill] sm:$0xff]  ;;  %v7522_v30 = vld [vmem:[#allocation11_spill] sm:$0xff] }
 0x161   :  { %1104 = vmatpush.msra.mxu2 %v4626_v31  ;;  %1124 = vmatpush.msra.mxu3 %v4650_v37  ;;  %v7523_v31 = vld [vmem:[#allocation15_spill] sm:$0xff]  ;;  %v7528_v37 = vld [vmem:[#allocation16_spill] sm:$0xff] }
 0x162   :  { %1065 = vmatpush.msra.mxu0 %v4642_v34  ;;  %1085 = vmatpush.msra.mxu1 %v4644_v35  ;;  %v7525_v34 = vld [vmem:[#allocation13_spill] sm:$0xff]  ;;  %v7526_v35 = vld [vmem:[#allocation14_spill] sm:$0xff] }
 0x163   :  { %1105 = vmatpush.msra.mxu2 %v4646_v36  ;;  %1125 = vmatpush.msra.mxu3 %v4676_v43  ;;  %v7527_v36 = vld [vmem:[#allocation21_spill] sm:$0xff]  ;;  %v7532_v43 = vld [vmem:[#allocation95_spill] sm:$0xff] }
 0x164   :  { %1066 = vmatpush.msra.mxu0 %v4661_v39  ;;  %1086 = vmatpush.msra.mxu1 %v4663_v40  ;;  %v7529_v39 = vld [vmem:[#allocation17_spill] sm:$0xff]  ;;  %v7530_v40 = vld [vmem:[#allocation20_spill] sm:$0xff] }
 0x165   :  { %1106 = vmatpush.msra.mxu2 %v4674_v42  ;;  %1126 = vmatpush.msra.mxu3 %v4695_v48  ;;  %v7531_v42 = vld [vmem:[#allocation22_spill] sm:$0xff] }
 0x166   :  { %1067 = vmatpush.msra.mxu0 %v4678_v44  ;;  %1087 = vmatpush.msra.mxu1 %v4682_v45  ;;  %v7533_v44 = vld [vmem:[#allocation25_spill] sm:$0xff]  ;;  %v7535_v48 = vld [vmem:[#allocation26_spill] sm:$0xff] }
 0x167   :  { %1107 = vmatpush.msra.mxu2 %v4693_v47  ;;  %1127 = vmatpush.msra.mxu3 %v4714_v53  ;;  %v164_v45 = vadd.f32 %v7533_v44, %v7532_v43  ;;  %v7534_v47 = vld [vmem:[#allocation96_spill] sm:$0xff] }
 0x168   :  { %1068 = vmatpush.msra.mxu0 %v4706_v50  ;;  %1088 = vmatpush.msra.mxu1 %v4708_v51  ;;  %v241_v50 = vadd.f32 %v7535_v48, %v7534_v47 }
 0x169   :  { %1108 = vmatpush.msra.mxu2 %v4710_v52  ;;  %1128 = vmatpush.msra.mxu3 %v4733_v58  ;;  %v7536_v58 = vld [vmem:[#allocation19_spill] sm:$0xff] }
 0x16a   :  { %1069 = vmatpush.msra.mxu0 %v4725_v55  ;;  %1089 = vmatpush.msra.mxu1 %v4727_v56 }
 0x16b   :  { %1109 = vmatpush.msra.mxu2 %v4729_v57  ;;  %1129 = vmatpush.msra.mxu3 %v4759_v0 }
 0x16c   :  { %1070 = vmatpush.msra.mxu0 %v4744_v60  ;;  %1090 = vmatpush.msra.mxu1 %v4746_v61  ;;  %v7537_v60 = vld [vmem:[#allocation27_spill] sm:$0xff] }
 0x16d   :  { %1110 = vmatpush.msra.mxu2 %v4757_v63  ;;  %1130 = vmatpush.msra.mxu3 %v4778_v5  ;;  %v318_v61 = vadd.f32 %v7537_v60, %v7536_v58 }
 0x16e   :  { %1071 = vmatpush.msra.mxu0 %v4761_v1  ;;  %1091 = vmatpush.msra.mxu1 %v4765_v2 }
 0x16f   :  { %1111 = vmatpush.msra.mxu2 %v4776_v4  ;;  %1131 = vmatpush.msra.mxu3 %v4800_v11  ;;  %v7538_v11 = vld [vmem:[#allocation98_spill] sm:$0xff] }
 0x170   :  { %1072 = vmatpush.msra.mxu0 %v4789_v7  ;;  %1092 = vmatpush.msra.mxu1 %v4791_v8 }
 0x171   :  { %1112 = vmatpush.msra.mxu2 %v4798_v10  ;;  %1132 = vmatpush.msra.mxu3 %v4819_v41  ;;  %v7539_v41 = vld [vmem:[#allocation28_spill] sm:$0xff] }
 0x172   :  { %1073 = vmatpush.msra.mxu0 %v7465_v26  ;;  %1093 = vmatpush.msra.mxu1 %v7521_v29  ;;  %v395_v26 = vadd.f32 %v7539_v41, %v7538_v11 }
 0x173   :  { %1113 = vmatpush.msra.mxu2 %v7522_v30  ;;  %1133 = vmatpush.msra.mxu3 %v7523_v31 }
 0x174   :  { %1074 = vmatpush.msra.mxu0 %v7524_v32  ;;  %1094 = vmatpush.msra.mxu1 %v7525_v34 }
 0x175   :  { %1114 = vmatpush.msra.mxu2 %v7526_v35  ;;  %1134 = vmatpush.msra.mxu3 %v7527_v36 }
 0x176   :  { %1075 = vmatpush.msra.mxu0 %v7528_v37  ;;  %1095 = vmatpush.msra.mxu1 %v7529_v39 }
 0x177   :  { %1115 = vmatpush.msra.mxu2 %v7530_v40  ;;  %1135 = vmatpush.msra.mxu3 %v7531_v42 }
 0x1d3   :  { %v769_v51 = vpop.f32.mrf.mxu0  ;;  %v789_v52 = vpop.f32.mrf.mxu1 }
 0x1d4   :  { %v770_v53 = vadd.f32 %v769_v51, %v164_v45  ;;  %v790_v55 = vadd.f32 %v789_v52, %v241_v50 }
 0x1d6   :  { %v3769_v56 = vmul.f32 -1.442695, %v770_v53  ;;  %v3770_v57 = vmul.f32 -1.442695, %v790_v55 }
 0x1d8   :  { %3885 = vpow2.f32 %v3769_v56 }
 0x1d9   :  { %3887 = vpow2.f32 %v3770_v57 }
 0x1da   :  { %v809_v63 = vpop.f32.mrf.mxu2  ;;  %v829_v8 = vpop.f32.mrf.mxu3 }
 0x1db   :  { %v810_v0 = vadd.f32 %v809_v63, %v318_v61  ;;  %v830_v9 = vadd.f32 %v829_v8, %v395_v26  ;;  %v5345_v26 = vld [vmem:[#allocation4 + $0x160] sm:$0xff] }
 0x1dd   :  { %v3771_v1 = vmul.f32 -1.442695, %v810_v0 }
 0x1de   :  { %v3886_v2 = vpop.eup %3885 }
 0x1df   :  { %v3888_v4 = vpop.eup %3887  ;;  %v841_v5 = vadd.f32 1.0, %v3886_v2  ;;  %3889 = vpow2.f32 %v3771_v1  ;;  %v3849_v2 = vld [vmem:[%s7147_s4] ss:$0 sm:$0xff] }
 0x1e0   :  { %v842_v7 = vadd.f32 1.0, %v3888_v4  ;;  %v746_v8 = vmul.f32 %v3849_v2, %v5206_v20  ;;  %v5342_v20 = vld [vmem:[#allocation4 + $0x198] sm:$0xff] }
 0x1e1   :  { %3891 = vrcp.f32 %v841_v5  ;;  %v855_v12 = vand.u32 2147483648, %v841_v5  ;;  %v853_v31 = vand.u32 2147483647, %v841_v5  ;;  %vm849_vm15 = vweird.f32 %v841_v5  ;;  %v5450_v2 = vld [vmem:[#allocation4 + $0x78] sm:$0xff] }
 0x1e2   :  { %3893 = vrcp.f32 %v842_v7  ;;  %v870_v29 = vand.u32 2147483648, %v842_v7  ;;  %v868_v34 = vand.u32 2147483647, %v842_v7  ;;  %vm864_vm0 = vweird.f32 %v842_v7  ;;  %7554 = vst [vmem:[#allocation27_spill] sm:$0xff] %v5450_v2 }
 0x1e3   :  { %v856_v39 = vor.u32 1.1754944e-38, %v855_v12  ;;  %vm854_vm3 = vcmp.eq.f32.partialorder %v853_v31, 8.507059e+37  ;;  %v5372_v12 = vld [vmem:[#allocation4 + $0x128] sm:$0xff]  ;;  %v5381_v31 = vld [vmem:[#allocation4 + $0x100] sm:$0xff] }
 0x1e4   :  { %v871_v42 = vor.u32 1.1754944e-38, %v870_v29  ;;  %vm869_vm4 = vcmp.eq.f32.partialorder %v868_v34, 8.507059e+37  ;;  %v5375_v29 = vld [vmem:[#allocation4 + $0x130] sm:$0xff] }
 0x1e5   :  { %v3890_v10 = vpop.eup %3889  ;;  %v5387_v34 = vld [vmem:[#allocation4 + $0x110] sm:$0xff] }
 0x1e6   :  { %v843_v22 = vadd.f32 1.0, %v3890_v10 }
 0x1e7   :  { %v3892_v16 = vpop.eup %3891 }
 0x1e8   :  { %v3894_v14 = vpop.eup %3893  ;;  %v845_v59 = vmul.f32 %v3892_v16, %v841_v5  ;;  %3895 = vrcp.f32 %v843_v22  ;;  %vm850_vm13 = vweird.f32 %v3892_v16  ;;  %v885_v61 = vand.u32 2147483648, %v843_v22 }
 0x1e9   :  { %v860_v46 = vmul.f32 %v3894_v14, %v842_v7  ;;  %3897 = vtanh.f32 %v830_v9  ;;  %vm865_vm14 = vweird.f32 %v3894_v14  ;;  %vm851_vm1 = vmor %vm849_vm15, %vm850_vm13  ;;  %vm879_vm6 = vweird.f32 %v843_v22  ;;  %v5354_v9 = vld [vmem:[#allocation4 + $0x178] sm:$0xff] }
 0x1ea   :  { %v846_v24 = vsub.f32 1.0, %v845_v59  ;;  %vm866_vm2 = vmor %vm864_vm0, %vm865_vm14  ;;  %v883_v63 = vand.u32 2147483647, %v843_v22  ;;  %v886_v1 = vor.u32 1.1754944e-38, %v885_v61  ;;  %v5360_v59 = vld [vmem:[#allocation4 + $0x148] sm:$0xff]  ;;  %v5438_v61 = vld [vmem:[#allocation4 + $0x98] sm:$0xff] }
 0x1eb   :  { %v861_v23 = vsub.f32 1.0, %v860_v46  ;;  %v5363_v46 = vld [vmem:[#allocation4 + $0x150] sm:$0xff]  ;;  %7550 = vst [vmem:[#allocation20_spill] sm:$0xff] %v5438_v61 }
 0x1ec   :  { %v847_v30 = vmul.f32 %v3892_v16, %v846_v24  ;;  %vm884_vm8 = vcmp.eq.f32.partialorder %v883_v63, 8.507059e+37  ;;  %v5366_v24 = vld [vmem:[#allocation4 + $0x158] sm:$0xff]  ;;  %v5441_v63 = vld [vmem:[#allocation4 + $0x60] sm:$0xff] }
 0x1ed   :  { %v862_v32 = vmul.f32 %v3894_v14, %v861_v23  ;;  %v5369_v23 = vld [vmem:[#allocation4 + $0x120] sm:$0xff]  ;;  %7551 = vst [vmem:[#allocation22_spill] sm:$0xff] %v5441_v63 }
 0x1ee   :  { %v3896_v35 = vpop.eup %3895  ;;  %v848_v36 = vadd.f32 %v3892_v16, %v847_v30  ;;  %v5378_v30 = vld [vmem:[#allocation4 + $0x138] sm:$0xff] }
 0x1ef   :  { %v875_v37 = vmul.f32 %v3896_v35, %v843_v22  ;;  %v863_v40 = vadd.f32 %v3894_v14, %v862_v32  ;;  %v3898_v45 = vpop.eup %3897  ;;  %vm880_vm5 = vweird.f32 %v3896_v35  ;;  %v5348_v22 = vld [vmem:[#allocation4 + $0x168] sm:$0xff] }
 0x1f0   :  { %v852_v44 = vsel %vm851_vm1, %v3892_v16, %v848_v36  ;;  %vm881_vm7 = vmor %vm879_vm6, %vm880_vm5  ;;  %v5351_v16 = vld [vmem:[#allocation4 + $0x170] sm:$0xff]  ;;  %v5384_v32 = vld [vmem:[#allocation4 + $0x108] sm:$0xff] }
 0x1f1   :  { %v876_v48 = vsub.f32 1.0, %v875_v37  ;;  %v857_v50 = vsel %vm854_vm3, %v856_v39, %v852_v44  ;;  %v867_v51 = vsel %vm866_vm2, %v3894_v14, %v863_v40  ;;  %v5357_v14 = vld [vmem:[#allocation4 + $0x140] sm:$0xff]  ;;  %v5396_v37 = vld [vmem:[#allocation4 + $0xe8] sm:$0xff]  ;;  %v5399_v39 = vld [vmem:[#allocation4 + $0xf0] sm:$0xff] }
 0x1f2   :  { %v872_v52 = vsel %vm869_vm4, %v871_v42, %v867_v51  ;;  %v891_v53 = vmul.f32 %v3898_v45, %v857_v50  ;;  %v5393_v36 = vld [vmem:[#allocation4 + $0xe0] sm:$0xff]  ;;  %v5402_v40 = vld [vmem:[#allocation4 + $0xf8] sm:$0xff]  ;;  %v5408_v44 = vld [vmem:[#allocation4 + $0xc8] sm:$0xff] }
 0x1f3   :  { %v877_v55 = vmul.f32 %v3896_v35, %v876_v48  ;;  %v890_v56 = vmul.f32 %v872_v52, %v5203_v25  ;;  %v3850_v25 = vld [vmem:[%s7147_s4 + $0x1] ss:$0 sm:$0xff]  ;;  %7540 = vst [vmem:[#allocation24_spill] sm:$0xff] %v5408_v44  ;;  %v5411_v45 = vld [vmem:[#allocation4 + $0xd0] sm:$0xff]  ;;  %v5414_v48 = vld [vmem:[#allocation4 + $0xd8] sm:$0xff] }
 0x1f4   :  { %v5405_v42 = vld [vmem:[#allocation4 + $0xc0] sm:$0xff]  ;;  %7541 = vst [vmem:[#allocation10_spill] sm:$0xff] %v5411_v45  ;;  %v5420_v51 = vld [vmem:[#allocation4 + $0xa8] sm:$0xff]  ;;  %v5423_v52 = vld [vmem:[#allocation4 + $0xb0] sm:$0xff] }
 0x1f5   :  { %v5315_v57 = vadd.f32 %v891_v53, %v890_v56  ;;  %v878_v60 = vadd.f32 %v3896_v35, %v877_v55  ;;  %7542 = vst [vmem:[#allocation11_spill] sm:$0xff] %v5414_v48  ;;  %v5417_v50 = vld [vmem:[#allocation4 + $0xa0] sm:$0xff]  ;;  %v5426_v53 = vld [vmem:[#allocation4 + $0xb8] sm:$0xff]  ;;  %v5432_v56 = vld [vmem:[#allocation4 + $0x88] sm:$0xff] }
 0x1f6   :  { %7543 = vst [vmem:[#allocation15_spill] sm:$0xff] %v5417_v50  ;;  %v5429_v55 = vld [vmem:[#allocation4 + $0x80] sm:$0xff] }
 0x1f7   :  { %3899 = vtanh.f32 %v5315_v57  ;;  %v882_v0 = vsel %vm881_vm7, %v3896_v35, %v878_v60  ;;  %v5390_v35 = vld [vmem:[#allocation4 + $0x118] sm:$0xff]  ;;  %7544 = vst [vmem:[#allocation12_spill] sm:$0xff] %v5420_v51  ;;  %v5435_v60 = vld [vmem:[#allocation4 + $0x90] sm:$0xff] }
 0x1f8   :  { %v887_v5 = vsel %vm884_vm8, %v886_v1, %v882_v0  ;;  %7545 = vst [vmem:[#allocation13_spill] sm:$0xff] %v5423_v52  ;;  %v5444_v0 = vld [vmem:[#allocation4 + $0x68] sm:$0xff]  ;;  %v5447_v1 = vld [vmem:[#allocation4 + $0x70] sm:$0xff] }
 0x1f9   :  { %7546 = vst [vmem:[#allocation14_spill] sm:$0xff] %v5426_v53 }
 0x1fa   :  { %7547 = vst [vmem:[#allocation21_spill] sm:$0xff] %v5429_v55 }
 0x1fb   :  { %7548 = vst [vmem:[#allocation16_spill] sm:$0xff] %v5432_v56 }
 0x1fc   :  { %7549 = vst [vmem:[#allocation17_spill] sm:$0xff] %v5435_v60 }
 0x1fd   :  { %v3900_v4 = vpop.eup %3899  ;;  %7552 = vst [vmem:[#allocation25_spill] sm:$0xff] %v5444_v0 }
 0x1fe   :  { %v894_v7 = vmul.f32 %v3900_v4, %v887_v5  ;;  %7553 = vst [vmem:[#allocation26_spill] sm:$0xff] %v5447_v1  ;;  %v5456_v4 = vld [vmem:[#allocation4 + $0x48] sm:$0xff]  ;;  %v5459_v5 = vld [vmem:[#allocation4 + $0x50] sm:$0xff] }
 0x1ff   :  { %7556 = vst [vmem:[#allocation99_spill] sm:$0xff] %v5456_v4 }
 0x200   :  { %v900_v10 = vmul.f32 %v3850_v25, %v894_v7  ;;  %922 = vmatmul.f32.vlgmr.msrb.gmra.mxu0 %v894_v7  ;;  %942 = vmatmul.f32.vlgmr.msrb.gmra.mxu1 %v894_v7  ;;  %v5453_v25 = vld [vmem:[#allocation4 + $0x40] sm:$0xff]  ;;  %7557 = vst [vmem:[#allocation100_spill] sm:$0xff] %v5459_v5 }
 0x201   :  { %962 = vmatmul.f32.vlgmr.msrb.gmra.mxu2 %v894_v7  ;;  %982 = vmatmul.f32.vlgmr.msrb.gmra.mxu3 %v894_v7  ;;  %7555 = vst [vmem:[#allocation28_spill] sm:$0xff] %v5453_v25  ;;  %v5462_v7 = vld [vmem:[#allocation4 + $0x58] sm:$0xff] }
 0x202   :  { %v5325_v41 = vadd.f32 %v900_v10, %v746_v8  ;;  %1214 = vmatpush.msrb.mxu0 %v5212_v38  ;;  %1234 = vmatpush.msrb.mxu1 %v5215_v49  ;;  %7558 = vst [vmem:[#allocation101_spill] sm:$0xff] %v5462_v7  ;;  %v5465_v8 = vld [vmem:[#allocation4 + $0x20] sm:$0xff]  ;;  %v5468_v10 = vld [vmem:[#allocation4 + $0x28] sm:$0xff] }
 0x203   :  { %1254 = vmatpush.msrb.mxu2 %v5218_v54  ;;  %1274 = vmatpush.msrb.mxu3 %v5221_v62  ;;  %7559 = vst [vmem:[#allocation102_spill] sm:$0xff] %v5465_v8 }
 0x204   :  { %1215 = vmatpush.msrb.mxu0 %v5224_v27  ;;  %1235 = vmatpush.msrb.mxu1 %v5227_v13  ;;  %7560 = vst [vmem:[#allocation103_spill] sm:$0xff] %v5468_v10 }
 0x205   :  { %1255 = vmatpush.msrb.mxu2 %v5230_v3  ;;  %1275 = vmatpush.msrb.mxu3 %v5233_v19 }
 0x206   :  { %1216 = vmatpush.msrb.mxu0 %v5236_v21  ;;  %1236 = vmatpush.msrb.mxu1 %v5239_v33 }
 0x207   :  { %1256 = vmatpush.msrb.mxu2 %v5242_v18  ;;  %1276 = vmatpush.msrb.mxu3 %v5245_v6 }
 0x208   :  { %1217 = vmatpush.msrb.mxu0 %v5248_v15  ;;  %1237 = vmatpush.msrb.mxu1 %v5251_v28 }
 0x209   :  { %1257 = vmatpush.msrb.mxu2 %v5254_v17  ;;  %1277 = vmatpush.msrb.mxu3 %v5342_v20 }
 0x20a   :  { %1218 = vmatpush.msrb.mxu0 %v5345_v26  ;;  %1238 = vmatpush.msrb.mxu1 %v5348_v22 }
 0x20b   :  { %1258 = vmatpush.msrb.mxu2 %v5351_v16  ;;  %1278 = vmatpush.msrb.mxu3 %v5354_v9 }
 0x20c   :  { %1219 = vmatpush.msrb.mxu0 %v5357_v14  ;;  %1239 = vmatpush.msrb.mxu1 %v5360_v59 }
 0x20d   :  { %1259 = vmatpush.msrb.mxu2 %v5363_v46  ;;  %1279 = vmatpush.msrb.mxu3 %v5366_v24 }
 0x20e   :  { %1220 = vmatpush.msrb.mxu0 %v5369_v23  ;;  %1240 = vmatpush.msrb.mxu1 %v5372_v12 }
 0x20f   :  { %1260 = vmatpush.msrb.mxu2 %v5375_v29  ;;  %1280 = vmatpush.msrb.mxu3 %v5378_v30 }
 0x210   :  { %1221 = vmatpush.msrb.mxu0 %v5381_v31  ;;  %1241 = vmatpush.msrb.mxu1 %v5384_v32 }
 0x211   :  { %1261 = vmatpush.msrb.mxu2 %v5387_v34  ;;  %1281 = vmatpush.msrb.mxu3 %v5390_v35 }
 0x212   :  { %1222 = vmatpush.msrb.mxu0 %v5393_v36  ;;  %1242 = vmatpush.msrb.mxu1 %v5396_v37 }
 0x213   :  { %1262 = vmatpush.msrb.mxu2 %v5399_v39  ;;  %1282 = vmatpush.msrb.mxu3 %v5402_v40 }
 0x214   :  { %1223 = vmatpush.msrb.mxu0 %v5405_v42  ;;  %1243 = vmatpush.msrb.mxu1 %v5408_v44 }
 0x215   :  { %1263 = vmatpush.msrb.mxu2 %v5411_v45  ;;  %1283 = vmatpush.msrb.mxu3 %v5414_v48 }
 0x216   :  { %1224 = vmatpush.msrb.mxu0 %v5417_v50  ;;  %1244 = vmatpush.msrb.mxu1 %v5420_v51 }
 0x217   :  { %1264 = vmatpush.msrb.mxu2 %v5423_v52  ;;  %1284 = vmatpush.msrb.mxu3 %v5426_v53 }
 0x218   :  { %1225 = vmatpush.msrb.mxu0 %v5429_v55  ;;  %1245 = vmatpush.msrb.mxu1 %v5432_v56  ;;  %v7569_v56 = vld [vmem:[#allocation31_spill] sm:$0xff] }
 0x219   :  { %1265 = vmatpush.msrb.mxu2 %v5435_v60  ;;  %1285 = vmatpush.msrb.mxu3 %v5438_v61 }
 0x21a   :  { %1226 = vmatpush.msrb.mxu0 %v5441_v63  ;;  %1246 = vmatpush.msrb.mxu1 %v5444_v0 }
 0x21b   :  { %1266 = vmatpush.msrb.mxu2 %v5447_v1  ;;  %1286 = vmatpush.msrb.mxu3 %v5450_v2 }
 0x21c   :  { %1227 = vmatpush.msrb.mxu0 %v5453_v25  ;;  %1247 = vmatpush.msrb.mxu1 %v5456_v4  ;;  %v5471_v25 = vld [vmem:[#allocation4 + $0x30] sm:$0xff]  ;;  %v5474_v4 = vld [vmem:[#allocation4 + $0x38] sm:$0xff] }
 0x21d   :  { %1267 = vmatpush.msrb.mxu2 %v5459_v5  ;;  %1287 = vmatpush.msrb.mxu3 %v5462_v7  ;;  %7561 = vst [vmem:[#allocation104_spill] sm:$0xff] %v5471_v25  ;;  %v5477_v5 = vld [vmem:[#allocation4] sm:$0xff]  ;;  %v5480_v7 = vld [vmem:[#allocation4 + $0x8] sm:$0xff] }
 0x21e   :  { %1228 = vmatpush.msrb.mxu0 %v5465_v8  ;;  %1248 = vmatpush.msrb.mxu1 %v5468_v10  ;;  %7562 = vst [vmem:[#allocation105_spill] sm:$0xff] %v5474_v4  ;;  %v5483_v8 = vld [vmem:[#allocation4 + $0x10] sm:$0xff]  ;;  %v5486_v10 = vld [vmem:[#allocation4 + $0x18] sm:$0xff] }
 0x21f   :  { %1268 = vmatpush.msrb.mxu2 %v5471_v25  ;;  %1288 = vmatpush.msrb.mxu3 %v5474_v4  ;;  %7563 = vst [vmem:[#allocation106_spill] sm:$0xff] %v5477_v5  ;;  %v7567_v25 = vld [vmem:[#allocation29_spill] sm:$0xff]  ;;  %v7568_v4 = vld [vmem:[#allocation30_spill] sm:$0xff] }
 0x220   :  { %1229 = vmatpush.msrb.mxu0 %v5477_v5  ;;  %7564 = vst [vmem:[#allocation107_spill] sm:$0xff] %v5480_v7  ;;  %1249 = vmatpush.msrb.mxu1 %v5480_v7  ;;  %v167_v2 = vadd.f32 %v7567_v25, %v7532_v43  ;;  %v244_v1 = vadd.f32 %v7568_v4, %v7534_v47 }
 0x221   :  { %7565 = vst [vmem:[#allocation108_spill] sm:$0xff] %v5483_v8  ;;  %1269 = vmatpush.msrb.mxu2 %v5483_v8  ;;  %1289 = vmatpush.msrb.mxu3 %v5486_v10  ;;  %v321_v8 = vadd.f32 %v7569_v56, %v7536_v58 }
 0x222   :  { %7566 = vst [vmem:[#allocation109_spill] sm:$0xff] %v5486_v10 }
 0x27d   :  { %v923_v0 = vpop.f32.mrf.mxu0  ;;  %v943_v5 = vpop.f32.mrf.mxu1 }
 0x27e   :  { %v924_v63 = vadd.f32 %v923_v0, %v167_v2  ;;  %v944_v61 = vadd.f32 %v943_v5, %v244_v1 }
 0x280   :  { %v3773_v60 = vmul.f32 -1.442695, %v924_v63  ;;  %v3774_v7 = vmul.f32 -1.442695, %v944_v61  ;;  %v7570_v63 = vld [vmem:[#allocation32_spill] sm:$0xff] }
 0x281   :  { %v398_v61 = vadd.f32 %v7570_v63, %v7538_v11 }
 0x282   :  { %3901 = vpow2.f32 %v3773_v60 }
 0x283   :  { %3903 = vpow2.f32 %v3774_v7 }
 0x284   :  { %v963_v55 = vpop.f32.mrf.mxu2  ;;  %v983_v4 = vpop.f32.mrf.mxu3 }
 0x285   :  { %v964_v53 = vadd.f32 %v963_v55, %v321_v8  ;;  %v984_v2 = vadd.f32 %v983_v4, %v398_v61 }
 0x287   :  { %v3775_v10 = vmul.f32 -1.442695, %v964_v53 }
 0x288   :  { %v3902_v52 = vpop.eup %3901 }
 0x289   :  { %v3904_v51 = vpop.eup %3903  ;;  %v995_v25 = vadd.f32 1.0, %v3902_v52  ;;  %3905 = vpow2.f32 %v3775_v10 }
 0x28a   :  { %v996_v43 = vadd.f32 1.0, %v3904_v51 }
 0x28b   :  { %3907 = vrcp.f32 %v995_v25  ;;  %v1009_v8 = vand.u32 2147483648, %v995_v25  ;;  %v1007_v10 = vand.u32 2147483647, %v995_v25  ;;  %vm1003_vm11 = vweird.f32 %v995_v25 }
 0x28c   :  { %3909 = vrcp.f32 %v996_v43  ;;  %v1024_v52 = vand.u32 2147483648, %v996_v43  ;;  %v1022_v47 = vand.u32 2147483647, %v996_v43  ;;  %vm1018_vm12 = vweird.f32 %v996_v43 }
 0x28d   :  { %vm1008_vm15 = vcmp.eq.f32.partialorder %v1007_v10, 8.507059e+37  ;;  %v7575_v10 = vld [vmem:[#allocation12_spill] sm:$0xff] }
 0x28e   :  { %vm1023_vm0 = vcmp.eq.f32.partialorder %v1022_v47, 8.507059e+37  ;;  %v3851_v47 = vld [vmem:[%s7147_s4 + $0x2] ss:$0 sm:$0xff] }
 0x28f   :  { %v3906_v0 = vpop.eup %3905 }
 0x290   :  { %v997_v60 = vadd.f32 1.0, %v3906_v0  ;;  %v1010_v0 = vor.u32 1.1754944e-38, %v1009_v8 }
 0x291   :  { %v3908_v1 = vpop.eup %3907 }
 0x292   :  { %v3910_v56 = vpop.eup %3909  ;;  %v999_v5 = vmul.f32 %v3908_v1, %v995_v25  ;;  %3911 = vrcp.f32 %v997_v60  ;;  %vm1004_vm9 = vweird.f32 %v3908_v1  ;;  %v1039_v8 = vand.u32 2147483648, %v997_v60 }
 0x293   :  { %v1014_v55 = vmul.f32 %v3910_v56, %v996_v43  ;;  %3913 = vtanh.f32 %v984_v2  ;;  %vm1019_vm10 = vweird.f32 %v3910_v56  ;;  %vm1005_vm13 = vmor %vm1003_vm11, %vm1004_vm9  ;;  %vm1033_vm2 = vweird.f32 %v997_v60 }
 0x294   :  { %v1000_v53 = vsub.f32 1.0, %v999_v5  ;;  %vm1020_vm14 = vmor %vm1018_vm12, %vm1019_vm10  ;;  %v1025_v5 = vor.u32 1.1754944e-38, %v1024_v52  ;;  %v1040_v52 = vor.u32 1.1754944e-38, %v1039_v8  ;;  %v7587_v8 = vld [vmem:[#allocation99_spill] sm:$0xff] }
 0x295   :  { %v1015_v7 = vsub.f32 1.0, %v1014_v55 }
 0x296   :  { %v1001_v51 = vmul.f32 %v3908_v1, %v1000_v53 }
 0x297   :  { %v1016_v58 = vmul.f32 %v3910_v56, %v1015_v7 }
 0x298   :  { %v3912_v50 = vpop.eup %3911  ;;  %v1002_v63 = vadd.f32 %v3908_v1, %v1001_v51 }
 0x299   :  { %v1029_v4 = vmul.f32 %v3912_v50, %v997_v60  ;;  %v1017_v61 = vadd.f32 %v3910_v56, %v1016_v58  ;;  %v3914_v2 = vpop.eup %3913  ;;  %vm1034_vm1 = vweird.f32 %v3912_v50  ;;  %v1037_v58 = vand.u32 2147483647, %v997_v60  ;;  %v7573_v60 = vld [vmem:[#allocation11_spill] sm:$0xff] }
 0x29a   :  { %v1006_v55 = vsel %vm1005_vm13, %v3908_v1, %v1002_v63  ;;  %vm1035_vm3 = vmor %vm1033_vm2, %vm1034_vm1  ;;  %v7576_v63 = vld [vmem:[#allocation13_spill] sm:$0xff] }
 0x29b   :  { %v1030_v11 = vsub.f32 1.0, %v1029_v4  ;;  %v1011_v53 = vsel %vm1008_vm15, %v1010_v0, %v1006_v55  ;;  %v1021_v48 = vsel %vm1020_vm14, %v3910_v56, %v1017_v61  ;;  %vm1038_vm4 = vcmp.eq.f32.partialorder %v1037_v58, 8.507059e+37  ;;  %v7574_v56 = vld [vmem:[#allocation15_spill] sm:$0xff]  ;;  %v7577_v4 = vld [vmem:[#allocation14_spill] sm:$0xff]  ;;  %v7578_v0 = vld [vmem:[#allocation21_spill] sm:$0xff] }
 0x29c   :  { %v1026_v7 = vsel %vm1023_vm0, %v1025_v5, %v1021_v48  ;;  %v1045_v45 = vmul.f32 %v3914_v2, %v1011_v53  ;;  %v7579_v61 = vld [vmem:[#allocation16_spill] sm:$0xff]  ;;  %v7580_v5 = vld [vmem:[#allocation17_spill] sm:$0xff]  ;;  %v7582_v2 = vld [vmem:[#allocation22_spill] sm:$0xff] }
 0x29d   :  { %v1031_v44 = vmul.f32 %v3912_v50, %v1030_v11  ;;  %v1044_v51 = vmul.f32 %v1026_v7, %v5315_v57  ;;  %v7581_v55 = vld [vmem:[#allocation20_spill] sm:$0xff]  ;;  %v7583_v53 = vld [vmem:[#allocation25_spill] sm:$0xff]  ;;  %v7584_v7 = vld [vmem:[#allocation26_spill] sm:$0xff] }
 0x29e   :  { %v7588_v58 = vld [vmem:[#allocation100_spill] sm:$0xff] }
 0x29f   :  { %v5498_v25 = vadd.f32 %v1045_v45, %v1044_v51  ;;  %v1032_v43 = vadd.f32 %v3912_v50, %v1031_v44  ;;  %v7585_v51 = vld [vmem:[#allocation27_spill] sm:$0xff] }
 0x2a1   :  { %3915 = vtanh.f32 %v5498_v25  ;;  %v1036_v1 = vsel %vm1035_vm3, %v3912_v50, %v1032_v43  ;;  %v7572_v50 = vld [vmem:[#allocation10_spill] sm:$0xff]  ;;  %v7586_v43 = vld [vmem:[#allocation28_spill] sm:$0xff] }
 0x2a2   :  { %v1041_v48 = vsel %vm1038_vm4, %v1040_v52, %v1036_v1  ;;  %v7589_v1 = vld [vmem:[#allocation101_spill] sm:$0xff]  ;;  %v7590_v52 = vld [vmem:[#allocation102_spill] sm:$0xff] }
 0x2a7   :  { %v3916_v11 = vpop.eup %3915 }
 0x2a8   :  { %v1048_v57 = vmul.f32 %v3916_v11, %v1041_v48  ;;  %v7592_v11 = vld [vmem:[#allocation104_spill] sm:$0xff]  ;;  %v7593_v48 = vld [vmem:[#allocation105_spill] sm:$0xff] }
 0x2aa   :  { %v1054_v45 = vmul.f32 %v3851_v47, %v1048_v57  ;;  %1076 = vmatmul.f32.vlgmr.msra.gmra.mxu0 %v1048_v57  ;;  %1096 = vmatmul.f32.vlgmr.msra.gmra.mxu1 %v1048_v57  ;;  %v7591_v47 = vld [vmem:[#allocation103_spill] sm:$0xff] }
 0x2ab   :  { %1116 = vmatmul.f32.vlgmr.msra.gmra.mxu2 %v1048_v57  ;;  %1136 = vmatmul.f32.vlgmr.msra.gmra.mxu3 %v1048_v57  ;;  %v7594_v57 = vld [vmem:[#allocation106_spill] sm:$0xff] }
 0x2ac   :  { %v5505_v44 = vadd.f32 %v1054_v45, %v5325_v41  ;;  %1368 = vmatpush.msra.mxu0 %v5212_v38  ;;  %1388 = vmatpush.msra.mxu1 %v5215_v49  ;;  %v7571_v41 = vld [vmem:[#allocation24_spill] sm:$0xff]  ;;  %v7595_v45 = vld [vmem:[#allocation107_spill] sm:$0xff] }
 0x2ad   :  { %1408 = vmatpush.msra.mxu2 %v5218_v54  ;;  %1428 = vmatpush.msra.mxu3 %v5221_v62 }
 0x2ae   :  { %1369 = vmatpush.msra.mxu0 %v5224_v27  ;;  %1389 = vmatpush.msra.mxu1 %v5227_v13 }
 0x2af   :  { %1409 = vmatpush.msra.mxu2 %v5230_v3  ;;  %1429 = vmatpush.msra.mxu3 %v5233_v19 }
 0x2b0   :  { %1370 = vmatpush.msra.mxu0 %v5236_v21  ;;  %1390 = vmatpush.msra.mxu1 %v5239_v33 }
 0x2b1   :  { %1410 = vmatpush.msra.mxu2 %v5242_v18  ;;  %1430 = vmatpush.msra.mxu3 %v5245_v6 }
 0x2b2   :  { %1371 = vmatpush.msra.mxu0 %v5248_v15  ;;  %1391 = vmatpush.msra.mxu1 %v5251_v28 }
 0x2b3   :  { %1411 = vmatpush.msra.mxu2 %v5254_v17  ;;  %1431 = vmatpush.msra.mxu3 %v5342_v20 }
 0x2b4   :  { %1372 = vmatpush.msra.mxu0 %v5345_v26  ;;  %1392 = vmatpush.msra.mxu1 %v5348_v22 }
 0x2b5   :  { %1412 = vmatpush.msra.mxu2 %v5351_v16  ;;  %1432 = vmatpush.msra.mxu3 %v5354_v9 }
 0x2b6   :  { %1373 = vmatpush.msra.mxu0 %v5357_v14  ;;  %1393 = vmatpush.msra.mxu1 %v5360_v59 }
 0x2b7   :  { %1413 = vmatpush.msra.mxu2 %v5363_v46  ;;  %1433 = vmatpush.msra.mxu3 %v5366_v24 }
 0x2b8   :  { %1374 = vmatpush.msra.mxu0 %v5369_v23  ;;  %1394 = vmatpush.msra.mxu1 %v5372_v12 }
 0x2b9   :  { %1414 = vmatpush.msra.mxu2 %v5375_v29  ;;  %1434 = vmatpush.msra.mxu3 %v5378_v30 }
 0x2ba   :  { %1375 = vmatpush.msra.mxu0 %v5381_v31  ;;  %1395 = vmatpush.msra.mxu1 %v5384_v32 }
 0x2bb   :  { %1415 = vmatpush.msra.mxu2 %v5387_v34  ;;  %1435 = vmatpush.msra.mxu3 %v5390_v35 }
 0x2bc   :  { %1376 = vmatpush.msra.mxu0 %v5393_v36  ;;  %1396 = vmatpush.msra.mxu1 %v5396_v37 }
 0x2bd   :  { %1416 = vmatpush.msra.mxu2 %v5399_v39  ;;  %1436 = vmatpush.msra.mxu3 %v5402_v40 }
 0x2be   :  { %1377 = vmatpush.msra.mxu0 %v5405_v42  ;;  %1397 = vmatpush.msra.mxu1 %v7571_v41 }
 0x2bf   :  { %1417 = vmatpush.msra.mxu2 %v7572_v50  ;;  %1437 = vmatpush.msra.mxu3 %v7573_v60 }
 0x2c0   :  { %1378 = vmatpush.msra.mxu0 %v7574_v56  ;;  %1398 = vmatpush.msra.mxu1 %v7575_v10 }
 0x2c1   :  { %1418 = vmatpush.msra.mxu2 %v7576_v63  ;;  %1438 = vmatpush.msra.mxu3 %v7577_v4 }
 0x2c2   :  { %1379 = vmatpush.msra.mxu0 %v7578_v0  ;;  %1399 = vmatpush.msra.mxu1 %v7579_v61  ;;  %v7603_v61 = vld [vmem:[#allocation35_spill] sm:$0xff] }
 0x2c3   :  { %1419 = vmatpush.msra.mxu2 %v7580_v5  ;;  %1439 = vmatpush.msra.mxu3 %v7581_v55 }
 0x2c4   :  { %1380 = vmatpush.msra.mxu0 %v7582_v2  ;;  %1400 = vmatpush.msra.mxu1 %v7583_v53  ;;  %v7601_v53 = vld [vmem:[#allocation34_spill] sm:$0xff] }
 0x2c5   :  { %1420 = vmatpush.msra.mxu2 %v7584_v7  ;;  %1440 = vmatpush.msra.mxu3 %v7585_v51  ;;  %v7596_v51 = vld [vmem:[#allocation108_spill] sm:$0xff] }
 0x2c6   :  { %1381 = vmatpush.msra.mxu0 %v7586_v43  ;;  %1401 = vmatpush.msra.mxu1 %v7587_v8  ;;  %v7597_v43 = vld [vmem:[#allocation109_spill] sm:$0xff]  ;;  %v7598_v8 = vld [vmem:[#allocation95_spill] sm:$0xff] }
 0x2c7   :  { %1421 = vmatpush.msra.mxu2 %v7588_v58  ;;  %1441 = vmatpush.msra.mxu3 %v7589_v1  ;;  %v7599_v58 = vld [vmem:[#allocation33_spill] sm:$0xff]  ;;  %v7600_v1 = vld [vmem:[#allocation96_spill] sm:$0xff] }
 0x2c8   :  { %1382 = vmatpush.msra.mxu0 %v7590_v52  ;;  %1402 = vmatpush.msra.mxu1 %v7591_v47  ;;  %v170_v7 = vadd.f32 %v7599_v58, %v7598_v8  ;;  %v247_v52 = vadd.f32 %v7601_v53, %v7600_v1 }
 0x2c9   :  { %1422 = vmatpush.msra.mxu2 %v7592_v11  ;;  %1442 = vmatpush.msra.mxu3 %v7593_v48 }
 0x2ca   :  { %1383 = vmatpush.msra.mxu0 %v7594_v57  ;;  %1403 = vmatpush.msra.mxu1 %v7595_v45  ;;  %v7602_v57 = vld [vmem:[#allocation19_spill] sm:$0xff] }
 0x2cb   :  { %1423 = vmatpush.msra.mxu2 %v7596_v51  ;;  %1443 = vmatpush.msra.mxu3 %v7597_v43  ;;  %v324_v45 = vadd.f32 %v7603_v61, %v7602_v57 }
 0x327   :  { %v1077_v2 = vpop.f32.mrf.mxu0  ;;  %v1097_v47 = vpop.f32.mrf.mxu1 }
 0x328   :  { %v1078_v55 = vadd.f32 %v1077_v2, %v170_v7  ;;  %v1098_v11 = vadd.f32 %v1097_v47, %v247_v52  ;;  %v7604_v7 = vld [vmem:[#allocation98_spill] sm:$0xff] }
 0x32a   :  { %v3777_v5 = vmul.f32 -1.442695, %v1078_v55  ;;  %v3778_v48 = vmul.f32 -1.442695, %v1098_v11  ;;  %v7605_v55 = vld [vmem:[#allocation36_spill] sm:$0xff] }
 0x32b   :  { %v401_v52 = vadd.f32 %v7605_v55, %v7604_v7 }
 0x32c   :  { %3917 = vpow2.f32 %v3777_v5 }
 0x32d   :  { %3919 = vpow2.f32 %v3778_v48 }
 0x32e   :  { %v1117_v51 = vpop.f32.mrf.mxu2  ;;  %v1137_v53 = vpop.f32.mrf.mxu3 }
 0x32f   :  { %v1118_v0 = vadd.f32 %v1117_v51, %v324_v45  ;;  %v1138_v11 = vadd.f32 %v1137_v53, %v401_v52 }
 0x331   :  { %v3779_v43 = vmul.f32 -1.442695, %v1118_v0 }
 0x332   :  { %v3918_v4 = vpop.eup %3917 }
 0x333   :  { %v3920_v63 = vpop.eup %3919  ;;  %v1149_v58 = vadd.f32 1.0, %v3918_v4  ;;  %3921 = vpow2.f32 %v3779_v43 }
 0x334   :  { %v1150_v8 = vadd.f32 1.0, %v3920_v63 }
 0x335   :  { %3923 = vrcp.f32 %v1149_v58  ;;  %v1163_v57 = vand.u32 2147483648, %v1149_v58  ;;  %v1161_v43 = vand.u32 2147483647, %v1149_v58  ;;  %vm1157_vm7 = vweird.f32 %v1149_v58 }
 0x336   :  { %3925 = vrcp.f32 %v1150_v8  ;;  %v1178_v4 = vand.u32 2147483648, %v1150_v8  ;;  %v1176_v10 = vand.u32 2147483647, %v1150_v8  ;;  %vm1172_vm8 = vweird.f32 %v1150_v8 }
 0x337   :  { %vm1162_vm11 = vcmp.eq.f32.partialorder %v1161_v43, 8.507059e+37  ;;  %v7625_v43 = vld [vmem:[#allocation102_spill] sm:$0xff] }
 0x338   :  { %vm1177_vm12 = vcmp.eq.f32.partialorder %v1176_v10, 8.507059e+37 }
 0x339   :  { %v3922_v2 = vpop.eup %3921 }
 0x33a   :  { %v1151_v5 = vadd.f32 1.0, %v3922_v2  ;;  %v1164_v2 = vor.u32 1.1754944e-38, %v1163_v57 }
 0x33b   :  { %v3924_v47 = vpop.eup %3923 }
 0x33c   :  { %v3926_v61 = vpop.eup %3925  ;;  %v1153_v48 = vmul.f32 %v3924_v47, %v1149_v58  ;;  %3927 = vrcp.f32 %v1151_v5  ;;  %vm1158_vm5 = vweird.f32 %v3924_v47  ;;  %v1193_v57 = vand.u32 2147483648, %v1151_v5 }
 0x33d   :  { %v1168_v51 = vmul.f32 %v3926_v61, %v1150_v8  ;;  %3929 = vtanh.f32 %v1138_v11  ;;  %vm1173_vm6 = vweird.f32 %v3926_v61  ;;  %vm1159_vm9 = vmor %vm1157_vm7, %vm1158_vm5  ;;  %vm1187_vm14 = vweird.f32 %v1151_v5 }
 0x33e   :  { %v1154_v0 = vsub.f32 1.0, %v1153_v48  ;;  %vm1174_vm10 = vmor %vm1172_vm8, %vm1173_vm6  ;;  %v1179_v48 = vor.u32 1.1754944e-38, %v1178_v4  ;;  %v1194_v4 = vor.u32 1.1754944e-38, %v1193_v57  ;;  %v7636_v57 = vld [vmem:[#allocation38_spill] sm:$0xff] }
 0x33f   :  { %v1169_v45 = vsub.f32 1.0, %v1168_v51 }
 0x340   :  { %v1155_v63 = vmul.f32 %v3924_v47, %v1154_v0 }
 0x341   :  { %v1170_v1 = vmul.f32 %v3926_v61, %v1169_v45 }
 0x342   :  { %v3928_v56 = vpop.eup %3927  ;;  %v1156_v55 = vadd.f32 %v3924_v47, %v1155_v63 }
 0x343   :  { %v1183_v53 = vmul.f32 %v3928_v56, %v1151_v5  ;;  %v1171_v52 = vadd.f32 %v3926_v61, %v1170_v1  ;;  %v3930_v11 = vpop.eup %3929  ;;  %vm1188_vm13 = vweird.f32 %v3928_v56  ;;  %v1191_v1 = vand.u32 2147483647, %v1151_v5  ;;  %v7623_v5 = vld [vmem:[#allocation100_spill] sm:$0xff] }
 0x344   :  { %v1160_v51 = vsel %vm1159_vm9, %v3924_v47, %v1156_v55  ;;  %vm1189_vm15 = vmor %vm1187_vm14, %vm1188_vm13  ;;  %v7626_v55 = vld [vmem:[#allocation103_spill] sm:$0xff] }
 0x345   :  { %v1184_v7 = vsub.f32 1.0, %v1183_v53  ;;  %v1165_v0 = vsel %vm1162_vm11, %v1164_v2, %v1160_v51  ;;  %v1175_v60 = vsel %vm1174_vm10, %v3926_v61, %v1171_v52  ;;  %vm1192_vm0 = vcmp.eq.f32.partialorder %v1191_v1, 8.507059e+37  ;;  %v7624_v61 = vld [vmem:[#allocation101_spill] sm:$0xff]  ;;  %v7627_v53 = vld [vmem:[#allocation104_spill] sm:$0xff]  ;;  %v7629_v52 = vld [vmem:[#allocation106_spill] sm:$0xff] }
 0x346   :  { %v1180_v45 = vsel %vm1177_vm12, %v1179_v48, %v1175_v60  ;;  %v1199_v50 = vmul.f32 %v3930_v11, %v1165_v0  ;;  %v3852_v60 = vld [vmem:[%s7147_s4 + $0x3] ss:$0 sm:$0xff]  ;;  %v7628_v2 = vld [vmem:[#allocation105_spill] sm:$0xff]  ;;  %v7631_v51 = vld [vmem:[#allocation108_spill] sm:$0xff] }
 0x347   :  { %v1185_v41 = vmul.f32 %v3928_v56, %v1184_v7  ;;  %v1198_v63 = vmul.f32 %v1180_v45, %v5498_v25  ;;  %v7630_v48 = vld [vmem:[#allocation107_spill] sm:$0xff]  ;;  %v7632_v11 = vld [vmem:[#allocation109_spill] sm:$0xff] }
 0x348   :  { %v7633_v0 = vld [vmem:[#allocation95_spill] sm:$0xff]  ;;  %v7634_v45 = vld [vmem:[#allocation37_spill] sm:$0xff] }
 0x349   :  { %v5580_v58 = vadd.f32 %v1199_v50, %v1198_v63  ;;  %v1186_v8 = vadd.f32 %v3928_v56, %v1185_v41  ;;  %v173_v63 = vadd.f32 %v7634_v45, %v7633_v0 }
 0x34b   :  { %3931 = vtanh.f32 %v5580_v58  ;;  %v1190_v47 = vsel %vm1189_vm15, %v3928_v56, %v1186_v8  ;;  %v7622_v56 = vld [vmem:[#allocation99_spill] sm:$0xff]  ;;  %v7635_v8 = vld [vmem:[#allocation96_spill] sm:$0xff] }
 0x34c   :  { %v1195_v7 = vsel %vm1192_vm0, %v1194_v4, %v1190_v47  ;;  %v250_v1 = vadd.f32 %v7636_v57, %v7635_v8 }
 0x351   :  { %v3932_v10 = vpop.eup %3931 }
 0x352   :  { %v1202_v25 = vmul.f32 %v3932_v10, %v1195_v7 }
 0x354   :  { %v1208_v50 = vmul.f32 %v3852_v60, %v1202_v25  ;;  %1230 = vmatmul.f32.vlgmr.msrb.gmra.mxu0 %v1202_v25  ;;  %1250 = vmatmul.f32.vlgmr.msrb.gmra.mxu1 %v1202_v25 }
 0x355   :  { %1270 = vmatmul.f32.vlgmr.msrb.gmra.mxu2 %v1202_v25  ;;  %1290 = vmatmul.f32.vlgmr.msrb.gmra.mxu3 %v1202_v25 }
 0x356   :  { %v5587_v41 = vadd.f32 %v1208_v50, %v5505_v44  ;;  %1522 = vmatpush.msrb.mxu0 %v5212_v38  ;;  %1542 = vmatpush.msrb.mxu1 %v5215_v49  ;;  %v7606_v38 = vld [vmem:[#allocation24_spill] sm:$0xff]  ;;  %v7607_v49 = vld [vmem:[#allocation10_spill] sm:$0xff]  ;;  %v7637_v50 = vld [vmem:[#allocation19_spill] sm:$0xff] }
 0x357   :  { %1562 = vmatpush.msrb.mxu2 %v5218_v54  ;;  %1582 = vmatpush.msrb.mxu3 %v5221_v62  ;;  %v7608_v54 = vld [vmem:[#allocation11_spill] sm:$0xff]  ;;  %v7621_v44 = vld [vmem:[#allocation28_spill] sm:$0xff] }
 0x358   :  { %1523 = vmatpush.msrb.mxu0 %v5224_v27  ;;  %1543 = vmatpush.msrb.mxu1 %v5227_v13  ;;  %v7609_v62 = vld [vmem:[#allocation15_spill] sm:$0xff]  ;;  %v7610_v27 = vld [vmem:[#allocation12_spill] sm:$0xff]  ;;  %v7611_v13 = vld [vmem:[#allocation13_spill] sm:$0xff] }
 0x359   :  { %1563 = vmatpush.msrb.mxu2 %v5230_v3  ;;  %1583 = vmatpush.msrb.mxu3 %v5233_v19  ;;  %v7612_v3 = vld [vmem:[#allocation14_spill] sm:$0xff]  ;;  %v7613_v19 = vld [vmem:[#allocation21_spill] sm:$0xff] }
 0x35a   :  { %1524 = vmatpush.msrb.mxu0 %v5236_v21  ;;  %1544 = vmatpush.msrb.mxu1 %v5239_v33  ;;  %v7614_v21 = vld [vmem:[#allocation16_spill] sm:$0xff]  ;;  %v7615_v33 = vld [vmem:[#allocation17_spill] sm:$0xff] }
 0x35b   :  { %1564 = vmatpush.msrb.mxu2 %v5242_v18  ;;  %1584 = vmatpush.msrb.mxu3 %v5245_v6  ;;  %v7616_v18 = vld [vmem:[#allocation20_spill] sm:$0xff]  ;;  %v7617_v6 = vld [vmem:[#allocation22_spill] sm:$0xff] }
 0x35c   :  { %1525 = vmatpush.msrb.mxu0 %v5248_v15  ;;  %1545 = vmatpush.msrb.mxu1 %v5251_v28  ;;  %v7618_v15 = vld [vmem:[#allocation25_spill] sm:$0xff]  ;;  %v7619_v28 = vld [vmem:[#allocation26_spill] sm:$0xff] }
 0x35d   :  { %1565 = vmatpush.msrb.mxu2 %v5254_v17  ;;  %1585 = vmatpush.msrb.mxu3 %v5342_v20  ;;  %v7620_v17 = vld [vmem:[#allocation27_spill] sm:$0xff] }
 0x35e   :  { %1526 = vmatpush.msrb.mxu0 %v5345_v26  ;;  %1546 = vmatpush.msrb.mxu1 %v5348_v22 }
 0x35f   :  { %1566 = vmatpush.msrb.mxu2 %v5351_v16  ;;  %1586 = vmatpush.msrb.mxu3 %v5354_v9 }
 0x360   :  { %1527 = vmatpush.msrb.mxu0 %v5357_v14  ;;  %1547 = vmatpush.msrb.mxu1 %v5360_v59 }
 0x361   :  { %1567 = vmatpush.msrb.mxu2 %v5363_v46  ;;  %1587 = vmatpush.msrb.mxu3 %v5366_v24 }
 0x362   :  { %1528 = vmatpush.msrb.mxu0 %v5369_v23  ;;  %1548 = vmatpush.msrb.mxu1 %v5372_v12 }
 0x363   :  { %1568 = vmatpush.msrb.mxu2 %v5375_v29  ;;  %1588 = vmatpush.msrb.mxu3 %v5378_v30 }
 0x364   :  { %1529 = vmatpush.msrb.mxu0 %v5381_v31  ;;  %1549 = vmatpush.msrb.mxu1 %v5384_v32 }
 0x365   :  { %1569 = vmatpush.msrb.mxu2 %v5387_v34  ;;  %1589 = vmatpush.msrb.mxu3 %v5390_v35 }
 0x366   :  { %1530 = vmatpush.msrb.mxu0 %v5393_v36  ;;  %1550 = vmatpush.msrb.mxu1 %v5396_v37 }
 0x367   :  { %1570 = vmatpush.msrb.mxu2 %v5399_v39  ;;  %1590 = vmatpush.msrb.mxu3 %v5402_v40 }
 0x368   :  { %1531 = vmatpush.msrb.mxu0 %v5405_v42  ;;  %1551 = vmatpush.msrb.mxu1 %v7606_v38 }
 0x369   :  { %1571 = vmatpush.msrb.mxu2 %v7607_v49  ;;  %1591 = vmatpush.msrb.mxu3 %v7608_v54 }
 0x36a   :  { %1532 = vmatpush.msrb.mxu0 %v7609_v62  ;;  %1552 = vmatpush.msrb.mxu1 %v7610_v27 }
 0x36b   :  { %1572 = vmatpush.msrb.mxu2 %v7611_v13  ;;  %1592 = vmatpush.msrb.mxu3 %v7612_v3 }
 0x36c   :  { %1533 = vmatpush.msrb.mxu0 %v7613_v19  ;;  %1553 = vmatpush.msrb.mxu1 %v7614_v21 }
 0x36d   :  { %1573 = vmatpush.msrb.mxu2 %v7615_v33  ;;  %1593 = vmatpush.msrb.mxu3 %v7616_v18 }
 0x36e   :  { %1534 = vmatpush.msrb.mxu0 %v7617_v6  ;;  %1554 = vmatpush.msrb.mxu1 %v7618_v15 }
 0x36f   :  { %1574 = vmatpush.msrb.mxu2 %v7619_v28  ;;  %1594 = vmatpush.msrb.mxu3 %v7620_v17 }
 0x370   :  { %1535 = vmatpush.msrb.mxu0 %v7621_v44  ;;  %1555 = vmatpush.msrb.mxu1 %v7622_v56 }
 0x371   :  { %1575 = vmatpush.msrb.mxu2 %v7623_v5  ;;  %1595 = vmatpush.msrb.mxu3 %v7624_v61 }
 0x372   :  { %1536 = vmatpush.msrb.mxu0 %v7625_v43  ;;  %1556 = vmatpush.msrb.mxu1 %v7626_v55 }
 0x373   :  { %1576 = vmatpush.msrb.mxu2 %v7627_v53  ;;  %1596 = vmatpush.msrb.mxu3 %v7628_v2 }
 0x374   :  { %1537 = vmatpush.msrb.mxu0 %v7629_v52  ;;  %1557 = vmatpush.msrb.mxu1 %v7630_v48  ;;  %v7638_v52 = vld [vmem:[#allocation39_spill] sm:$0xff] }
 0x375   :  { %1577 = vmatpush.msrb.mxu2 %v7631_v51  ;;  %1597 = vmatpush.msrb.mxu3 %v7632_v11  ;;  %v327_v48 = vadd.f32 %v7638_v52, %v7637_v50 }
 0x3d1   :  { %v1231_v47 = vpop.f32.mrf.mxu0  ;;  %v1251_v4 = vpop.f32.mrf.mxu1 }
 0x3d2   :  { %v1232_v60 = vadd.f32 %v1231_v47, %v173_v63  ;;  %v1252_v10 = vadd.f32 %v1251_v4, %v250_v1  ;;  %v7639_v1 = vld [vmem:[#allocation98_spill] sm:$0xff]  ;;  %v7640_v47 = vld [vmem:[#allocation40_spill] sm:$0xff] }
 0x3d3   :  { %v404_v4 = vadd.f32 %v7640_v47, %v7639_v1 }
 0x3d4   :  { %v3781_v7 = vmul.f32 -1.442695, %v1232_v60  ;;  %v3782_v25 = vmul.f32 -1.442695, %v1252_v10 }
 0x3d6   :  { %3933 = vpow2.f32 %v3781_v7 }
 0x3d7   :  { %3935 = vpow2.f32 %v3782_v25 }
 0x3d8   :  { %v1271_v51 = vpop.f32.mrf.mxu2  ;;  %v1291_v57 = vpop.f32.mrf.mxu3 }
 0x3d9   :  { %v1272_v2 = vadd.f32 %v1271_v51, %v327_v48  ;;  %v1292_v7 = vadd.f32 %v1291_v57, %v404_v4 }
 0x3db   :  { %v3783_v11 = vmul.f32 -1.442695, %v1272_v2 }
 0x3dc   :  { %v3934_v53 = vpop.eup %3933 }
 0x3dd   :  { %v3936_v55 = vpop.eup %3935  ;;  %v1303_v45 = vadd.f32 1.0, %v3934_v53  ;;  %3937 = vpow2.f32 %v3783_v11 }
 0x3de   :  { %v1304_v0 = vadd.f32 1.0, %v3936_v55 }
 0x3df   :  { %3939 = vrcp.f32 %v1303_v45  ;;  %v1317_v50 = vand.u32 2147483648, %v1303_v45  ;;  %v1315_v11 = vand.u32 2147483647, %v1303_v45  ;;  %vm1311_vm3 = vweird.f32 %v1303_v45 }
 0x3e0   :  { %3941 = vrcp.f32 %v1304_v0  ;;  %v1332_v53 = vand.u32 2147483648, %v1304_v0  ;;  %v1330_v43 = vand.u32 2147483647, %v1304_v0  ;;  %vm1326_vm4 = vweird.f32 %v1304_v0 }
 0x3e1   :  { %vm1316_vm7 = vcmp.eq.f32.partialorder %v1315_v11, 8.507059e+37  ;;  %v5680_v11 = vld [vmem:[#allocation4 + $0x1f8] sm:$0xff] }
 0x3e2   :  { %vm1331_vm8 = vcmp.eq.f32.partialorder %v1330_v43, 8.507059e+37 }
 0x3e3   :  { %v3938_v63 = vpop.eup %3937 }
 0x3e4   :  { %v1305_v60 = vadd.f32 1.0, %v3938_v63  ;;  %v1318_v63 = vor.u32 1.1754944e-38, %v1317_v50 }
 0x3e5   :  { %v3940_v10 = vpop.eup %3939 }
 0x3e6   :  { %v3942_v52 = vpop.eup %3941  ;;  %v1307_v25 = vmul.f32 %v3940_v10, %v1303_v45  ;;  %3943 = vrcp.f32 %v1305_v60  ;;  %vm1312_vm1 = vweird.f32 %v3940_v10  ;;  %v1347_v50 = vand.u32 2147483648, %v1305_v60 }
 0x3e7   :  { %v1322_v48 = vmul.f32 %v3942_v52, %v1304_v0  ;;  %3945 = vtanh.f32 %v1292_v7  ;;  %vm1327_vm2 = vweird.f32 %v3942_v52  ;;  %vm1313_vm5 = vmor %vm1311_vm3, %vm1312_vm1  ;;  %vm1341_vm10 = vweird.f32 %v1305_v60 }
 0x3e8   :  { %v1308_v2 = vsub.f32 1.0, %v1307_v25  ;;  %vm1328_vm6 = vmor %vm1326_vm4, %vm1327_vm2  ;;  %v1333_v25 = vor.u32 1.1754944e-38, %v1332_v53  ;;  %v1348_v53 = vor.u32 1.1754944e-38, %v1347_v50 }
 0x3e9   :  { %v1323_v51 = vsub.f32 1.0, %v1322_v48 }
 0x3ea   :  { %v1309_v55 = vmul.f32 %v3940_v10, %v1308_v2 }
 0x3eb   :  { %v1324_v8 = vmul.f32 %v3942_v52, %v1323_v51 }
 0x3ec   :  { %v3944_v61 = vpop.eup %3943  ;;  %v1310_v47 = vadd.f32 %v3940_v10, %v1309_v55 }
 0x3ed   :  { %v1337_v57 = vmul.f32 %v3944_v61, %v1305_v60  ;;  %v1325_v4 = vadd.f32 %v3942_v52, %v1324_v8  ;;  %v3946_v7 = vpop.eup %3945  ;;  %vm1342_vm9 = vweird.f32 %v3944_v61  ;;  %v1345_v8 = vand.u32 2147483647, %v1305_v60  ;;  %v5671_v60 = vld [vmem:[#allocation4 + $0x1e0] sm:$0xff] }
 0x3ee   :  { %v1314_v48 = vsel %vm1313_vm5, %v3940_v10, %v1310_v47  ;;  %vm1343_vm11 = vmor %vm1341_vm10, %vm1342_vm9  ;;  %v5683_v47 = vld [vmem:[#allocation4 + $0x1c0] sm:$0xff] }
 0x3ef   :  { %v1338_v1 = vsub.f32 1.0, %v1337_v57  ;;  %v1319_v2 = vsel %vm1316_vm7, %v1318_v63, %v1314_v48  ;;  %v1329_v5 = vsel %vm1328_vm6, %v3942_v52, %v1325_v4  ;;  %vm1346_vm12 = vcmp.eq.f32.partialorder %v1345_v8, 8.507059e+37  ;;  %v5677_v52 = vld [vmem:[#allocation4 + $0x1f0] sm:$0xff]  ;;  %v5692_v63 = vld [vmem:[#allocation4 + $0x1d8] sm:$0xff]  ;;  %v5695_v4 = vld [vmem:[#allocation4 + $0x1a0] sm:$0xff] }
 0x3f0   :  { %v1334_v51 = vsel %vm1331_vm8, %v1333_v25, %v1329_v5  ;;  %v1353_v56 = vmul.f32 %v3946_v7, %v1319_v2  ;;  %v3853_v5 = vld [vmem:[%s7147_s4 + $0x4] ss:$0 sm:$0xff]  ;;  %v5689_v57 = vld [vmem:[#allocation4 + $0x1d0] sm:$0xff]  ;;  %v5698_v25 = vld [vmem:[#allocation4 + $0x1a8] sm:$0xff] }
 0x3f1   :  { %v1339_v44 = vmul.f32 %v3944_v61, %v1338_v1  ;;  %v1352_v55 = vmul.f32 %v1334_v51, %v5580_v58  ;;  %v5701_v48 = vld [vmem:[#allocation4 + $0x1b0] sm:$0xff]  ;;  %v5704_v7 = vld [vmem:[#allocation4 + $0x1b8] sm:$0xff]  ;;  %v5707_v2 = vld [vmem:[#allocation4 + $0x180] sm:$0xff] }
 0x3f2   :  { %v5710_v51 = vld [vmem:[#allocation4 + $0x188] sm:$0xff] }
 0x3f3   :  { %v5662_v45 = vadd.f32 %v1353_v56, %v1352_v55  ;;  %v1340_v0 = vadd.f32 %v3944_v61, %v1339_v44  ;;  %v5713_v55 = vld [vmem:[#allocation4 + $0x190] sm:$0xff] }
 0x3f5   :  { %3947 = vtanh.f32 %v5662_v45  ;;  %v1344_v10 = vsel %vm1343_vm11, %v3944_v61, %v1340_v0  ;;  %v5674_v61 = vld [vmem:[#allocation4 + $0x1e8] sm:$0xff] }
 0x3f6   :  { %v1349_v1 = vsel %vm1346_vm12, %v1348_v53, %v1344_v10  ;;  %v7660_v0 = vld [vmem:[#allocation8_spill] sm:$0xff] }
 0x3fb   :  { %v3948_v43 = vpop.eup %3947 }
 0x3fc   :  { %v1356_v58 = vmul.f32 %v3948_v43, %v1349_v1 }
 0x3fe   :  { %v1362_v56 = vmul.f32 %v3853_v5, %v1356_v58  ;;  %1384 = vmatmul.f32.vlgmr.msra.gmra.mxu0 %v1356_v58  ;;  %1404 = vmatmul.f32.vlgmr.msra.gmra.mxu1 %v1356_v58 }
 0x3ff   :  { %1424 = vmatmul.f32.vlgmr.msra.gmra.mxu2 %v1356_v58  ;;  %1444 = vmatmul.f32.vlgmr.msra.gmra.mxu3 %v1356_v58 }
 0x400   :  { %v5669_v44 = vadd.f32 %v1362_v56, %v5587_v41  ;;  %1676 = vmatpush.msra.mxu0 %v5671_v60  ;;  %1696 = vmatpush.msra.mxu1 %v5674_v61  ;;  %v5686_v41 = vld [vmem:[#allocation4 + $0x1c8] sm:$0xff] }
 0x401   :  { %1716 = vmatpush.msra.mxu2 %v5677_v52  ;;  %1736 = vmatpush.msra.mxu3 %v5680_v11 }
 0x402   :  { %1677 = vmatpush.msra.mxu0 %v5683_v47  ;;  %1697 = vmatpush.msra.mxu1 %v5686_v41 }
 0x403   :  { %1717 = vmatpush.msra.mxu2 %v5689_v57  ;;  %1737 = vmatpush.msra.mxu3 %v5692_v63 }
 0x404   :  { %1678 = vmatpush.msra.mxu0 %v5695_v4  ;;  %1698 = vmatpush.msra.mxu1 %v5698_v25 }
 0x405   :  { %1718 = vmatpush.msra.mxu2 %v5701_v48  ;;  %1738 = vmatpush.msra.mxu3 %v5704_v7 }
 0x406   :  { %1679 = vmatpush.msra.mxu0 %v5707_v2  ;;  %1699 = vmatpush.msra.mxu1 %v5710_v51 }
 0x407   :  { %1719 = vmatpush.msra.mxu2 %v5713_v55  ;;  %1739 = vmatpush.msra.mxu3 %v5342_v20  ;;  %v7641_v20 = vld [vmem:[#allocation28_spill] sm:$0xff] }
 0x408   :  { %1680 = vmatpush.msra.mxu0 %v5345_v26  ;;  %1700 = vmatpush.msra.mxu1 %v5348_v22  ;;  %v7642_v26 = vld [vmem:[#allocation99_spill] sm:$0xff]  ;;  %v7643_v22 = vld [vmem:[#allocation100_spill] sm:$0xff] }
 0x409   :  { %1720 = vmatpush.msra.mxu2 %v5351_v16  ;;  %1740 = vmatpush.msra.mxu3 %v5354_v9  ;;  %v7644_v16 = vld [vmem:[#allocation101_spill] sm:$0xff]  ;;  %v7645_v9 = vld [vmem:[#allocation102_spill] sm:$0xff] }
 0x40a   :  { %1681 = vmatpush.msra.mxu0 %v5357_v14  ;;  %1701 = vmatpush.msra.mxu1 %v5360_v59  ;;  %v7646_v14 = vld [vmem:[#allocation103_spill] sm:$0xff]  ;;  %v7647_v59 = vld [vmem:[#allocation104_spill] sm:$0xff] }
 0x40b   :  { %1721 = vmatpush.msra.mxu2 %v5363_v46  ;;  %1741 = vmatpush.msra.mxu3 %v5366_v24  ;;  %v7648_v46 = vld [vmem:[#allocation105_spill] sm:$0xff]  ;;  %v7649_v24 = vld [vmem:[#allocation106_spill] sm:$0xff] }
 0x40c   :  { %1682 = vmatpush.msra.mxu0 %v5369_v23  ;;  %1702 = vmatpush.msra.mxu1 %v5372_v12  ;;  %v7650_v23 = vld [vmem:[#allocation107_spill] sm:$0xff]  ;;  %v7651_v12 = vld [vmem:[#allocation108_spill] sm:$0xff] }
 0x40d   :  { %1722 = vmatpush.msra.mxu2 %v5375_v29  ;;  %1742 = vmatpush.msra.mxu3 %v5378_v30  ;;  %v7652_v29 = vld [vmem:[#allocation109_spill] sm:$0xff]  ;;  %v7653_v30 = vld [vmem:[#allocation95_spill] sm:$0xff] }
 0x40e   :  { %1683 = vmatpush.msra.mxu0 %v5381_v31  ;;  %1703 = vmatpush.msra.mxu1 %v5384_v32  ;;  %v7654_v31 = vld [vmem:[#allocation41_spill] sm:$0xff] }
 0x40f   :  { %1723 = vmatpush.msra.mxu2 %v5387_v34  ;;  %1743 = vmatpush.msra.mxu3 %v5390_v35  ;;  %v176_v32 = vadd.f32 %v7654_v31, %v7653_v30  ;;  %v7655_v34 = vld [vmem:[#allocation96_spill] sm:$0xff]  ;;  %v7656_v35 = vld [vmem:[#allocation42_spill] sm:$0xff] }
 0x410   :  { %1684 = vmatpush.msra.mxu0 %v5393_v36  ;;  %1704 = vmatpush.msra.mxu1 %v5396_v37  ;;  %v253_v36 = vadd.f32 %v7656_v35, %v7655_v34 }
 0x411   :  { %1724 = vmatpush.msra.mxu2 %v5399_v39  ;;  %1744 = vmatpush.msra.mxu3 %v5402_v40 }
 0x412   :  { %1685 = vmatpush.msra.mxu0 %v5405_v42  ;;  %1705 = vmatpush.msra.mxu1 %v7606_v38 }
 0x413   :  { %1725 = vmatpush.msra.mxu2 %v7607_v49  ;;  %1745 = vmatpush.msra.mxu3 %v7608_v54  ;;  %v7657_v54 = vld [vmem:[#allocation19_spill] sm:$0xff] }
 0x414   :  { %1686 = vmatpush.msra.mxu0 %v7609_v62  ;;  %1706 = vmatpush.msra.mxu1 %v7610_v27  ;;  %v7658_v62 = vld [vmem:[#allocation7_spill] sm:$0xff] }
 0x415   :  { %1726 = vmatpush.msra.mxu2 %v7611_v13  ;;  %1746 = vmatpush.msra.mxu3 %v7612_v3  ;;  %v330_v27 = vadd.f32 %v7658_v62, %v7657_v54 }
 0x416   :  { %1687 = vmatpush.msra.mxu0 %v7613_v19  ;;  %1707 = vmatpush.msra.mxu1 %v7614_v21 }
 0x417   :  { %1727 = vmatpush.msra.mxu2 %v7615_v33  ;;  %1747 = vmatpush.msra.mxu3 %v7616_v18 }
 0x418   :  { %1688 = vmatpush.msra.mxu0 %v7617_v6  ;;  %1708 = vmatpush.msra.mxu1 %v7618_v15 }
 0x419   :  { %1728 = vmatpush.msra.mxu2 %v7619_v28  ;;  %1748 = vmatpush.msra.mxu3 %v7620_v17  ;;  %v7659_v17 = vld [vmem:[#allocation98_spill] sm:$0xff] }
 0x41a   :  { %1689 = vmatpush.msra.mxu0 %v7641_v20  ;;  %1709 = vmatpush.msra.mxu1 %v7642_v26  ;;  %v407_v50 = vadd.f32 %v7660_v0, %v7659_v17  ;;  %v5804_v0 = vld [vmem:[#allocation4 + $0x168] sm:$0xff] }
 0x41b   :  { %1729 = vmatpush.msra.mxu2 %v7643_v22  ;;  %1749 = vmatpush.msra.mxu3 %v7644_v16 }
 0x41c   :  { %1690 = vmatpush.msra.mxu0 %v7645_v9  ;;  %1710 = vmatpush.msra.mxu1 %v7646_v14 }
 0x41d   :  { %1730 = vmatpush.msra.mxu2 %v7647_v59  ;;  %1750 = vmatpush.msra.mxu3 %v7648_v46 }
 0x41e   :  { %1691 = vmatpush.msra.mxu0 %v7649_v24  ;;  %1711 = vmatpush.msra.mxu1 %v7650_v23 }
 0x41f   :  { %1731 = vmatpush.msra.mxu2 %v7651_v12  ;;  %1751 = vmatpush.msra.mxu3 %v7652_v29 }
 0x47b   :  { %v1385_v37 = vpop.f32.mrf.mxu0  ;;  %v1405_v39 = vpop.f32.mrf.mxu1 }
 0x47c   :  { %v1386_v40 = vadd.f32 %v1385_v37, %v176_v32  ;;  %v1406_v42 = vadd.f32 %v1405_v39, %v253_v36 }
 0x47e   :  { %v3785_v38 = vmul.f32 -1.442695, %v1386_v40  ;;  %v3786_v49 = vmul.f32 -1.442695, %v1406_v42 }
 0x480   :  { %3949 = vpow2.f32 %v3785_v38 }
 0x481   :  { %3951 = vpow2.f32 %v3786_v49 }
 0x482   :  { %v1425_v13 = vpop.f32.mrf.mxu2  ;;  %v1445_v15 = vpop.f32.mrf.mxu3 }
 0x483   :  { %v1426_v3 = vadd.f32 %v1425_v13, %v330_v27  ;;  %v1446_v53 = vadd.f32 %v1445_v15, %v407_v50  ;;  %v5807_v50 = vld [vmem:[#allocation4 + $0x170] sm:$0xff] }
 0x485   :  { %v3787_v19 = vmul.f32 -1.442695, %v1426_v3 }
 0x486   :  { %v3950_v21 = vpop.eup %3949 }
 0x487   :  { %v3952_v33 = vpop.eup %3951  ;;  %v1457_v18 = vadd.f32 1.0, %v3950_v21  ;;  %3953 = vpow2.f32 %v3787_v19  ;;  %v3854_v21 = vld [vmem:[%s7147_s4 + $0x5] ss:$0 sm:$0xff] }
 0x488   :  { %v1458_v6 = vadd.f32 1.0, %v3952_v33 }
 0x489   :  { %3955 = vrcp.f32 %v1457_v18  ;;  %v1471_v20 = vand.u32 2147483648, %v1457_v18  ;;  %v1469_v16 = vand.u32 2147483647, %v1457_v18  ;;  %vm1465_vm15 = vweird.f32 %v1457_v18 }
 0x48a   :  { %3957 = vrcp.f32 %v1458_v6  ;;  %v1486_v26 = vand.u32 2147483648, %v1458_v6  ;;  %v1484_v14 = vand.u32 2147483647, %v1458_v6  ;;  %vm1480_vm0 = vweird.f32 %v1458_v6 }
 0x48b   :  { %v1472_v23 = vor.u32 1.1754944e-38, %v1471_v20  ;;  %vm1470_vm3 = vcmp.eq.f32.partialorder %v1469_v16, 8.507059e+37  ;;  %v5834_v20 = vld [vmem:[#allocation4 + $0x138] sm:$0xff]  ;;  %v5843_v16 = vld [vmem:[#allocation4 + $0x110] sm:$0xff] }
 0x48c   :  { %v1487_v29 = vor.u32 1.1754944e-38, %v1486_v26  ;;  %vm1485_vm4 = vcmp.eq.f32.partialorder %v1484_v14, 8.507059e+37  ;;  %v5837_v26 = vld [vmem:[#allocation4 + $0x100] sm:$0xff] }
 0x48d   :  { %v3954_v28 = vpop.eup %3953  ;;  %v5849_v14 = vld [vmem:[#allocation4 + $0xe0] sm:$0xff] }
 0x48e   :  { %v1459_v8 = vadd.f32 1.0, %v3954_v28  ;;  %v5801_v28 = vld [vmem:[#allocation4 + $0x160] sm:$0xff] }
 0x48f   :  { %v3956_v10 = vpop.eup %3955 }
 0x490   :  { %v3958_v5 = vpop.eup %3957  ;;  %v1461_v43 = vmul.f32 %v3956_v10, %v1457_v18  ;;  %3959 = vrcp.f32 %v1459_v8  ;;  %vm1466_vm13 = vweird.f32 %v3956_v10  ;;  %v1501_v27 = vand.u32 2147483648, %v1459_v8 }
 0x491   :  { %v1476_v1 = vmul.f32 %v3958_v5, %v1458_v6  ;;  %3961 = vtanh.f32 %v1446_v53  ;;  %vm1481_vm14 = vweird.f32 %v3958_v5  ;;  %vm1467_vm1 = vmor %vm1465_vm15, %vm1466_vm13  ;;  %vm1495_vm6 = vweird.f32 %v1459_v8  ;;  %v5816_v53 = vld [vmem:[#allocation4 + $0x148] sm:$0xff] }
 0x492   :  { %v1462_v58 = vsub.f32 1.0, %v1461_v43  ;;  %vm1482_vm2 = vmor %vm1480_vm0, %vm1481_vm14  ;;  %v1499_v13 = vand.u32 2147483647, %v1459_v8  ;;  %v1502_v19 = vor.u32 1.1754944e-38, %v1501_v27  ;;  %v5822_v43 = vld [vmem:[#allocation4 + $0x158] sm:$0xff]  ;;  %v5900_v27 = vld [vmem:[#allocation4 + $0x68] sm:$0xff] }
 0x493   :  { %v1477_v56 = vsub.f32 1.0, %v1476_v1  ;;  %v5825_v1 = vld [vmem:[#allocation4 + $0x120] sm:$0xff]  ;;  %7673 = vst [vmem:[#allocation12_spill] sm:$0xff] %v5900_v27 }
 0x494   :  { %v1463_v22 = vmul.f32 %v3956_v10, %v1462_v58  ;;  %vm1500_vm8 = vcmp.eq.f32.partialorder %v1499_v13, 8.507059e+37  ;;  %v5828_v58 = vld [vmem:[#allocation4 + $0x128] sm:$0xff]  ;;  %v5903_v13 = vld [vmem:[#allocation4 + $0x70] sm:$0xff] }
 0x495   :  { %v1478_v9 = vmul.f32 %v3958_v5, %v1477_v56  ;;  %v5831_v56 = vld [vmem:[#allocation4 + $0x130] sm:$0xff]  ;;  %7674 = vst [vmem:[#allocation13_spill] sm:$0xff] %v5903_v13 }
 0x496   :  { %v3960_v59 = vpop.eup %3959  ;;  %v1464_v46 = vadd.f32 %v3956_v10, %v1463_v22  ;;  %v5840_v22 = vld [vmem:[#allocation4 + $0x108] sm:$0xff] }
 0x497   :  { %v1491_v24 = vmul.f32 %v3960_v59, %v1459_v8  ;;  %v1479_v12 = vadd.f32 %v3958_v5, %v1478_v9  ;;  %v3962_v32 = vpop.eup %3961  ;;  %vm1496_vm5 = vweird.f32 %v3960_v59  ;;  %v5810_v8 = vld [vmem:[#allocation4 + $0x178] sm:$0xff] }
 0x498   :  { %v1468_v31 = vsel %vm1467_vm1, %v3956_v10, %v1464_v46  ;;  %vm1497_vm7 = vmor %vm1495_vm6, %vm1496_vm5  ;;  %v5813_v10 = vld [vmem:[#allocation4 + $0x140] sm:$0xff]  ;;  %v5846_v9 = vld [vmem:[#allocation4 + $0x118] sm:$0xff] }
 0x499   :  { %v1492_v35 = vsub.f32 1.0, %v1491_v24  ;;  %v1473_v36 = vsel %vm1470_vm3, %v1472_v23, %v1468_v31  ;;  %v1483_v37 = vsel %vm1482_vm2, %v3958_v5, %v1479_v12  ;;  %v5819_v5 = vld [vmem:[#allocation4 + $0x150] sm:$0xff]  ;;  %v5858_v24 = vld [vmem:[#allocation4 + $0xf8] sm:$0xff]  ;;  %v5861_v23 = vld [vmem:[#allocation4 + $0xc0] sm:$0xff] }
 0x49a   :  { %v1488_v39 = vsel %vm1485_vm4, %v1487_v29, %v1483_v37  ;;  %v1507_v40 = vmul.f32 %v3962_v32, %v1473_v36  ;;  %v5855_v46 = vld [vmem:[#allocation4 + $0xf0] sm:$0xff]  ;;  %v5864_v12 = vld [vmem:[#allocation4 + $0xc8] sm:$0xff]  ;;  %v5870_v31 = vld [vmem:[#allocation4 + $0xd8] sm:$0xff] }
 0x49b   :  { %v1493_v42 = vmul.f32 %v3960_v59, %v1492_v35  ;;  %v1506_v38 = vmul.f32 %v1488_v39, %v5662_v45  ;;  %7661 = vst [vmem:[#allocation29_spill] sm:$0xff] %v5864_v12  ;;  %v5867_v29 = vld [vmem:[#allocation4 + $0xd0] sm:$0xff]  ;;  %v5873_v32 = vld [vmem:[#allocation4 + $0xa0] sm:$0xff]  ;;  %v5876_v35 = vld [vmem:[#allocation4 + $0xa8] sm:$0xff] }
 0x49c   :  { %7662 = vst [vmem:[#allocation30_spill] sm:$0xff] %v5867_v29  ;;  %v5879_v36 = vld [vmem:[#allocation4 + $0xb0] sm:$0xff]  ;;  %v5882_v37 = vld [vmem:[#allocation4 + $0xb8] sm:$0xff]  ;;  %v5885_v39 = vld [vmem:[#allocation4 + $0x80] sm:$0xff] }
 0x49d   :  { %v5774_v49 = vadd.f32 %v1507_v40, %v1506_v38  ;;  %v1494_v62 = vadd.f32 %v3960_v59, %v1493_v42  ;;  %7663 = vst [vmem:[#allocation31_spill] sm:$0xff] %v5870_v31  ;;  %v5888_v40 = vld [vmem:[#allocation4 + $0x88] sm:$0xff]  ;;  %v5891_v42 = vld [vmem:[#allocation4 + $0x90] sm:$0xff]  ;;  %v5894_v38 = vld [vmem:[#allocation4 + $0x98] sm:$0xff] }
 0x49e   :  { %7664 = vst [vmem:[#allocation32_spill] sm:$0xff] %v5873_v32 }
 0x49f   :  { %3963 = vtanh.f32 %v5774_v49  ;;  %v1498_v3 = vsel %vm1497_vm7, %v3960_v59, %v1494_v62  ;;  %v5852_v59 = vld [vmem:[#allocation4 + $0xe8] sm:$0xff]  ;;  %7665 = vst [vmem:[#allocation33_spill] sm:$0xff] %v5876_v35  ;;  %v5897_v62 = vld [vmem:[#allocation4 + $0x60] sm:$0xff] }
 0x4a0   :  { %v1503_v18 = vsel %vm1500_vm8, %v1502_v19, %v1498_v3  ;;  %7666 = vst [vmem:[#allocation34_spill] sm:$0xff] %v5879_v36  ;;  %v5906_v3 = vld [vmem:[#allocation4 + $0x78] sm:$0xff]  ;;  %v5909_v19 = vld [vmem:[#allocation4 + $0x40] sm:$0xff] }
 0x4a1   :  { %7667 = vst [vmem:[#allocation35_spill] sm:$0xff] %v5882_v37 }
 0x4a2   :  { %7668 = vst [vmem:[#allocation36_spill] sm:$0xff] %v5885_v39 }
 0x4a3   :  { %7669 = vst [vmem:[#allocation24_spill] sm:$0xff] %v5888_v40 }
 0x4a4   :  { %7670 = vst [vmem:[#allocation10_spill] sm:$0xff] %v5891_v42 }
 0x4a5   :  { %v3964_v33 = vpop.eup %3963  ;;  %7671 = vst [vmem:[#allocation11_spill] sm:$0xff] %v5894_v38 }
 0x4a6   :  { %v1510_v45 = vmul.f32 %v3964_v33, %v1503_v18  ;;  %7672 = vst [vmem:[#allocation15_spill] sm:$0xff] %v5897_v62  ;;  %v5915_v33 = vld [vmem:[#allocation4 + $0x50] sm:$0xff]  ;;  %v5918_v18 = vld [vmem:[#allocation4 + $0x58] sm:$0xff] }
 0x4a7   :  { %7675 = vst [vmem:[#allocation14_spill] sm:$0xff] %v5906_v3 }
 0x4a8   :  { %v1516_v6 = vmul.f32 %v3854_v21, %v1510_v45  ;;  %1538 = vmatmul.f32.vlgmr.msrb.gmra.mxu0 %v1510_v45  ;;  %1558 = vmatmul.f32.vlgmr.msrb.gmra.mxu1 %v1510_v45  ;;  %7676 = vst [vmem:[#allocation21_spill] sm:$0xff] %v5909_v19  ;;  %v5912_v21 = vld [vmem:[#allocation4 + $0x48] sm:$0xff] }
 0x4a9   :  { %1578 = vmatmul.f32.vlgmr.msrb.gmra.mxu2 %v1510_v45  ;;  %1598 = vmatmul.f32.vlgmr.msrb.gmra.mxu3 %v1510_v45  ;;  %7677 = vst [vmem:[#allocation16_spill] sm:$0xff] %v5912_v21  ;;  %v5921_v45 = vld [vmem:[#allocation4 + $0x20] sm:$0xff] }
 0x4aa   :  { %v5781_v15 = vadd.f32 %v1516_v6, %v5669_v44  ;;  %1830 = vmatpush.msrb.mxu0 %v5671_v60  ;;  %1850 = vmatpush.msrb.mxu1 %v5674_v61  ;;  %v5798_v44 = vld [vmem:[#allocation4 + $0x198] sm:$0xff]  ;;  %7678 = vst [vmem:[#allocation17_spill] sm:$0xff] %v5915_v33  ;;  %v5924_v6 = vld [vmem:[#allocation4 + $0x28] sm:$0xff] }
 0x4ab   :  { %1870 = vmatpush.msrb.mxu2 %v5677_v52  ;;  %1890 = vmatpush.msrb.mxu3 %v5680_v11  ;;  %7679 = vst [vmem:[#allocation20_spill] sm:$0xff] %v5918_v18 }
 0x4ac   :  { %1831 = vmatpush.msrb.mxu0 %v5683_v47  ;;  %1851 = vmatpush.msrb.mxu1 %v5686_v41  ;;  %7680 = vst [vmem:[#allocation22_spill] sm:$0xff] %v5921_v45 }
 0x4ad   :  { %1871 = vmatpush.msrb.mxu2 %v5689_v57  ;;  %1891 = vmatpush.msrb.mxu3 %v5692_v63  ;;  %7681 = vst [vmem:[#allocation25_spill] sm:$0xff] %v5924_v6 }
 0x4ae   :  { %1832 = vmatpush.msrb.mxu0 %v5695_v4  ;;  %1852 = vmatpush.msrb.mxu1 %v5698_v25 }
 0x4af   :  { %1872 = vmatpush.msrb.mxu2 %v5701_v48  ;;  %1892 = vmatpush.msrb.mxu3 %v5704_v7 }
 0x4b0   :  { %1833 = vmatpush.msrb.mxu0 %v5707_v2  ;;  %1853 = vmatpush.msrb.mxu1 %v5710_v51 }
 0x4b1   :  { %1873 = vmatpush.msrb.mxu2 %v5713_v55  ;;  %1893 = vmatpush.msrb.mxu3 %v5798_v44 }
 0x4b2   :  { %1834 = vmatpush.msrb.mxu0 %v5801_v28  ;;  %1854 = vmatpush.msrb.mxu1 %v5804_v0 }
 0x4b3   :  { %1874 = vmatpush.msrb.mxu2 %v5807_v50  ;;  %1894 = vmatpush.msrb.mxu3 %v5810_v8 }
 0x4b4   :  { %1835 = vmatpush.msrb.mxu0 %v5813_v10  ;;  %1855 = vmatpush.msrb.mxu1 %v5816_v53 }
 0x4b5   :  { %1875 = vmatpush.msrb.mxu2 %v5819_v5  ;;  %1895 = vmatpush.msrb.mxu3 %v5822_v43 }
 0x4b6   :  { %1836 = vmatpush.msrb.mxu0 %v5825_v1  ;;  %1856 = vmatpush.msrb.mxu1 %v5828_v58 }
 0x4b7   :  { %1876 = vmatpush.msrb.mxu2 %v5831_v56  ;;  %1896 = vmatpush.msrb.mxu3 %v5834_v20 }
 0x4b8   :  { %1837 = vmatpush.msrb.mxu0 %v5837_v26  ;;  %1857 = vmatpush.msrb.mxu1 %v5840_v22 }
 0x4b9   :  { %1877 = vmatpush.msrb.mxu2 %v5843_v16  ;;  %1897 = vmatpush.msrb.mxu3 %v5846_v9 }
 0x4ba   :  { %1838 = vmatpush.msrb.mxu0 %v5849_v14  ;;  %1858 = vmatpush.msrb.mxu1 %v5852_v59 }
 0x4bb   :  { %1878 = vmatpush.msrb.mxu2 %v5855_v46  ;;  %1898 = vmatpush.msrb.mxu3 %v5858_v24 }
 0x4bc   :  { %1839 = vmatpush.msrb.mxu0 %v5861_v23  ;;  %1859 = vmatpush.msrb.mxu1 %v5864_v12 }
 0x4bd   :  { %1879 = vmatpush.msrb.mxu2 %v5867_v29  ;;  %1899 = vmatpush.msrb.mxu3 %v5870_v31 }
 0x4be   :  { %1840 = vmatpush.msrb.mxu0 %v5873_v32  ;;  %1860 = vmatpush.msrb.mxu1 %v5876_v35 }
 0x4bf   :  { %1880 = vmatpush.msrb.mxu2 %v5879_v36  ;;  %1900 = vmatpush.msrb.mxu3 %v5882_v37 }
 0x4c0   :  { %1841 = vmatpush.msrb.mxu0 %v5885_v39  ;;  %1861 = vmatpush.msrb.mxu1 %v5888_v40  ;;  %v7690_v40 = vld [vmem:[#allocation45_spill] sm:$0xff] }
 0x4c1   :  { %1881 = vmatpush.msrb.mxu2 %v5891_v42  ;;  %1901 = vmatpush.msrb.mxu3 %v5894_v38 }
 0x4c2   :  { %1842 = vmatpush.msrb.mxu0 %v5897_v62  ;;  %1862 = vmatpush.msrb.mxu1 %v5900_v27 }
 0x4c3   :  { %1882 = vmatpush.msrb.mxu2 %v5903_v13  ;;  %1902 = vmatpush.msrb.mxu3 %v5906_v3 }
 0x4c4   :  { %1843 = vmatpush.msrb.mxu0 %v5909_v19  ;;  %1863 = vmatpush.msrb.mxu1 %v5912_v21  ;;  %v5927_v19 = vld [vmem:[#allocation4 + $0x30] sm:$0xff]  ;;  %v5930_v21 = vld [vmem:[#allocation4 + $0x38] sm:$0xff] }
 0x4c5   :  { %1883 = vmatpush.msrb.mxu2 %v5915_v33  ;;  %1903 = vmatpush.msrb.mxu3 %v5918_v18  ;;  %7682 = vst [vmem:[#allocation26_spill] sm:$0xff] %v5927_v19  ;;  %v5933_v33 = vld [vmem:[#allocation4] sm:$0xff]  ;;  %v5936_v18 = vld [vmem:[#allocation4 + $0x8] sm:$0xff] }
 0x4c6   :  { %1844 = vmatpush.msrb.mxu0 %v5921_v45  ;;  %1864 = vmatpush.msrb.mxu1 %v5924_v6  ;;  %7683 = vst [vmem:[#allocation27_spill] sm:$0xff] %v5930_v21  ;;  %v5939_v45 = vld [vmem:[#allocation4 + $0x10] sm:$0xff]  ;;  %v5942_v6 = vld [vmem:[#allocation4 + $0x18] sm:$0xff] }
 0x4c7   :  { %1884 = vmatpush.msrb.mxu2 %v5927_v19  ;;  %1904 = vmatpush.msrb.mxu3 %v5930_v21  ;;  %7684 = vst [vmem:[#allocation37_spill] sm:$0xff] %v5933_v33  ;;  %v7688_v19 = vld [vmem:[#allocation43_spill] sm:$0xff]  ;;  %v7689_v21 = vld [vmem:[#allocation44_spill] sm:$0xff] }
 0x4c8   :  { %1845 = vmatpush.msrb.mxu0 %v5933_v33  ;;  %7685 = vst [vmem:[#allocation38_spill] sm:$0xff] %v5936_v18  ;;  %1865 = vmatpush.msrb.mxu1 %v5936_v18  ;;  %v179_v3 = vadd.f32 %v7688_v19, %v7653_v30  ;;  %v256_v13 = vadd.f32 %v7689_v21, %v7655_v34 }
 0x4c9   :  { %7686 = vst [vmem:[#allocation39_spill] sm:$0xff] %v5939_v45  ;;  %1885 = vmatpush.msrb.mxu2 %v5939_v45  ;;  %1905 = vmatpush.msrb.mxu3 %v5942_v6  ;;  %v333_v45 = vadd.f32 %v7690_v40, %v7657_v54 }
 0x4ca   :  { %7687 = vst [vmem:[#allocation40_spill] sm:$0xff] %v5942_v6 }
 0x525   :  { %v1539_v27 = vpop.f32.mrf.mxu0  ;;  %v1559_v33 = vpop.f32.mrf.mxu1 }
 0x526   :  { %v1540_v62 = vadd.f32 %v1539_v27, %v179_v3  ;;  %v1560_v38 = vadd.f32 %v1559_v33, %v256_v13 }
 0x528   :  { %v3789_v42 = vmul.f32 -1.442695, %v1540_v62  ;;  %v3790_v18 = vmul.f32 -1.442695, %v1560_v38  ;;  %v7691_v62 = vld [vmem:[#allocation46_spill] sm:$0xff] }
 0x529   :  { %v410_v38 = vadd.f32 %v7691_v62, %v7659_v17 }
 0x52a   :  { %3965 = vpow2.f32 %v3789_v42 }
 0x52b   :  { %3967 = vpow2.f32 %v3790_v18 }
 0x52c   :  { %v1579_v39 = vpop.f32.mrf.mxu2  ;;  %v1599_v21 = vpop.f32.mrf.mxu3 }
 0x52d   :  { %v1580_v37 = vadd.f32 %v1579_v39, %v333_v45  ;;  %v1600_v3 = vadd.f32 %v1599_v21, %v410_v38 }
 0x52f   :  { %v3791_v6 = vmul.f32 -1.442695, %v1580_v37 }
 0x530   :  { %v3966_v36 = vpop.eup %3965 }
 0x531   :  { %v3968_v35 = vpop.eup %3967  ;;  %v1611_v19 = vadd.f32 1.0, %v3966_v36  ;;  %3969 = vpow2.f32 %v3791_v6 }
 0x532   :  { %v1612_v30 = vadd.f32 1.0, %v3968_v35 }
 0x533   :  { %3971 = vrcp.f32 %v1611_v19  ;;  %v1625_v45 = vand.u32 2147483648, %v1611_v19  ;;  %v1623_v6 = vand.u32 2147483647, %v1611_v19  ;;  %vm1619_vm11 = vweird.f32 %v1611_v19 }
 0x534   :  { %3973 = vrcp.f32 %v1612_v30  ;;  %v1640_v36 = vand.u32 2147483648, %v1612_v30  ;;  %v1638_v34 = vand.u32 2147483647, %v1612_v30  ;;  %vm1634_vm12 = vweird.f32 %v1612_v30 }
 0x535   :  { %vm1624_vm15 = vcmp.eq.f32.partialorder %v1623_v6, 8.507059e+37  ;;  %v7696_v6 = vld [vmem:[#allocation33_spill] sm:$0xff] }
 0x536   :  { %vm1639_vm0 = vcmp.eq.f32.partialorder %v1638_v34, 8.507059e+37  ;;  %v3855_v34 = vld [vmem:[%s7147_s4 + $0x6] ss:$0 sm:$0xff] }
 0x537   :  { %v3970_v27 = vpop.eup %3969 }
 0x538   :  { %v1613_v42 = vadd.f32 1.0, %v3970_v27  ;;  %v1626_v27 = vor.u32 1.1754944e-38, %v1625_v45 }
 0x539   :  { %v3972_v13 = vpop.eup %3971 }
 0x53a   :  { %v3974_v40 = vpop.eup %3973  ;;  %v1615_v33 = vmul.f32 %v3972_v13, %v1611_v19  ;;  %3975 = vrcp.f32 %v1613_v42  ;;  %vm1620_vm9 = vweird.f32 %v3972_v13  ;;  %v1655_v45 = vand.u32 2147483648, %v1613_v42 }
 0x53b   :  { %v1630_v39 = vmul.f32 %v3974_v40, %v1612_v30  ;;  %3977 = vtanh.f32 %v1600_v3  ;;  %vm1635_vm10 = vweird.f32 %v3974_v40  ;;  %vm1621_vm13 = vmor %vm1619_vm11, %vm1620_vm9  ;;  %vm1649_vm2 = vweird.f32 %v1613_v42 }
 0x53c   :  { %v1616_v37 = vsub.f32 1.0, %v1615_v33  ;;  %vm1636_vm14 = vmor %vm1634_vm12, %vm1635_vm10  ;;  %v1641_v33 = vor.u32 1.1754944e-38, %v1640_v36  ;;  %v1656_v36 = vor.u32 1.1754944e-38, %v1655_v45  ;;  %v7708_v45 = vld [vmem:[#allocation16_spill] sm:$0xff] }
 0x53d   :  { %v1631_v18 = vsub.f32 1.0, %v1630_v39 }
 0x53e   :  { %v1617_v35 = vmul.f32 %v3972_v13, %v1616_v37 }
 0x53f   :  { %v1632_v54 = vmul.f32 %v3974_v40, %v1631_v18 }
 0x540   :  { %v3976_v32 = vpop.eup %3975  ;;  %v1618_v62 = vadd.f32 %v3972_v13, %v1617_v35 }
 0x541   :  { %v1645_v21 = vmul.f32 %v3976_v32, %v1613_v42  ;;  %v1633_v38 = vadd.f32 %v3974_v40, %v1632_v54  ;;  %v3978_v3 = vpop.eup %3977  ;;  %vm1650_vm1 = vweird.f32 %v3976_v32  ;;  %v1653_v54 = vand.u32 2147483647, %v1613_v42  ;;  %v7694_v42 = vld [vmem:[#allocation31_spill] sm:$0xff] }
 0x542   :  { %v1622_v39 = vsel %vm1621_vm13, %v3972_v13, %v1618_v62  ;;  %vm1651_vm3 = vmor %vm1649_vm2, %vm1650_vm1  ;;  %v7697_v62 = vld [vmem:[#allocation34_spill] sm:$0xff] }
 0x543   :  { %v1646_v17 = vsub.f32 1.0, %v1645_v21  ;;  %v1627_v37 = vsel %vm1624_vm15, %v1626_v27, %v1622_v39  ;;  %v1637_v31 = vsel %vm1636_vm14, %v3974_v40, %v1633_v38  ;;  %vm1654_vm4 = vcmp.eq.f32.partialorder %v1653_v54, 8.507059e+37  ;;  %v7695_v40 = vld [vmem:[#allocation32_spill] sm:$0xff]  ;;  %v7698_v21 = vld [vmem:[#allocation35_spill] sm:$0xff]  ;;  %v7709_v54 = vld [vmem:[#allocation17_spill] sm:$0xff] }
 0x544   :  { %v1642_v18 = vsel %vm1639_vm0, %v1641_v33, %v1637_v31  ;;  %v1661_v29 = vmul.f32 %v3978_v3, %v1627_v37  ;;  %v7699_v27 = vld [vmem:[#allocation36_spill] sm:$0xff]  ;;  %v7701_v33 = vld [vmem:[#allocation10_spill] sm:$0xff]  ;;  %v7702_v39 = vld [vmem:[#allocation11_spill] sm:$0xff] }
 0x545   :  { %v1647_v12 = vmul.f32 %v3976_v32, %v1646_v17  ;;  %v1660_v35 = vmul.f32 %v1642_v18, %v5774_v49  ;;  %v7700_v38 = vld [vmem:[#allocation24_spill] sm:$0xff]  ;;  %v7703_v3 = vld [vmem:[#allocation15_spill] sm:$0xff]  ;;  %v7705_v18 = vld [vmem:[#allocation13_spill] sm:$0xff] }
 0x546   :  { %v7704_v37 = vld [vmem:[#allocation12_spill] sm:$0xff] }
 0x547   :  { %v5954_v19 = vadd.f32 %v1661_v29, %v1660_v35  ;;  %v1648_v30 = vadd.f32 %v3976_v32, %v1647_v12  ;;  %v7706_v35 = vld [vmem:[#allocation14_spill] sm:$0xff] }
 0x549   :  { %3979 = vtanh.f32 %v5954_v19  ;;  %v1652_v13 = vsel %vm1651_vm3, %v3976_v32, %v1648_v30  ;;  %v7693_v32 = vld [vmem:[#allocation30_spill] sm:$0xff]  ;;  %v7707_v30 = vld [vmem:[#allocation21_spill] sm:$0xff] }
 0x54a   :  { %v1657_v31 = vsel %vm1654_vm4, %v1656_v36, %v1652_v13  ;;  %v7710_v13 = vld [vmem:[#allocation20_spill] sm:$0xff]  ;;  %v7711_v36 = vld [vmem:[#allocation22_spill] sm:$0xff] }
 0x54f   :  { %v3980_v17 = vpop.eup %3979 }
 0x550   :  { %v1664_v49 = vmul.f32 %v3980_v17, %v1657_v31  ;;  %v7713_v17 = vld [vmem:[#allocation26_spill] sm:$0xff]  ;;  %v7714_v31 = vld [vmem:[#allocation27_spill] sm:$0xff] }
 0x552   :  { %v1670_v29 = vmul.f32 %v3855_v34, %v1664_v49  ;;  %1692 = vmatmul.f32.vlgmr.msra.gmra.mxu0 %v1664_v49  ;;  %1712 = vmatmul.f32.vlgmr.msra.gmra.mxu1 %v1664_v49  ;;  %v7712_v34 = vld [vmem:[#allocation25_spill] sm:$0xff] }
 0x553   :  { %1732 = vmatmul.f32.vlgmr.msra.gmra.mxu2 %v1664_v49  ;;  %1752 = vmatmul.f32.vlgmr.msra.gmra.mxu3 %v1664_v49  ;;  %v7715_v49 = vld [vmem:[#allocation37_spill] sm:$0xff] }
 0x554   :  { %1984 = vmatpush.msra.mxu0 %v5671_v60  ;;  %2004 = vmatpush.msra.mxu1 %v5674_v61  ;;  %v5963_v12 = vadd.f32 %v1670_v29, %v5781_v15  ;;  %v7692_v15 = vld [vmem:[#allocation29_spill] sm:$0xff]  ;;  %v7716_v29 = vld [vmem:[#allocation38_spill] sm:$0xff] }
 0x555   :  { %2024 = vmatpush.msra.mxu2 %v5677_v52  ;;  %2044 = vmatpush.msra.mxu3 %v5680_v11 }
 0x556   :  { %1985 = vmatpush.msra.mxu0 %v5683_v47  ;;  %2005 = vmatpush.msra.mxu1 %v5686_v41 }
 0x557   :  { %2025 = vmatpush.msra.mxu2 %v5689_v57  ;;  %2045 = vmatpush.msra.mxu3 %v5692_v63 }
 0x558   :  { %1986 = vmatpush.msra.mxu0 %v5695_v4  ;;  %2006 = vmatpush.msra.mxu1 %v5698_v25 }
 0x559   :  { %2026 = vmatpush.msra.mxu2 %v5701_v48  ;;  %2046 = vmatpush.msra.mxu3 %v5704_v7 }
 0x55a   :  { %1987 = vmatpush.msra.mxu0 %v5707_v2  ;;  %2007 = vmatpush.msra.mxu1 %v5710_v51 }
 0x55b   :  { %2027 = vmatpush.msra.mxu2 %v5713_v55  ;;  %2047 = vmatpush.msra.mxu3 %v5798_v44 }
 0x55c   :  { %1988 = vmatpush.msra.mxu0 %v5801_v28  ;;  %2008 = vmatpush.msra.mxu1 %v5804_v0 }
 0x55d   :  { %2028 = vmatpush.msra.mxu2 %v5807_v50  ;;  %2048 = vmatpush.msra.mxu3 %v5810_v8 }
 0x55e   :  { %1989 = vmatpush.msra.mxu0 %v5813_v10  ;;  %2009 = vmatpush.msra.mxu1 %v5816_v53 }
 0x55f   :  { %2029 = vmatpush.msra.mxu2 %v5819_v5  ;;  %2049 = vmatpush.msra.mxu3 %v5822_v43 }
 0x560   :  { %1990 = vmatpush.msra.mxu0 %v5825_v1  ;;  %2010 = vmatpush.msra.mxu1 %v5828_v58 }
 0x561   :  { %2030 = vmatpush.msra.mxu2 %v5831_v56  ;;  %2050 = vmatpush.msra.mxu3 %v5834_v20 }
 0x562   :  { %1991 = vmatpush.msra.mxu0 %v5837_v26  ;;  %2011 = vmatpush.msra.mxu1 %v5840_v22 }
 0x563   :  { %2031 = vmatpush.msra.mxu2 %v5843_v16  ;;  %2051 = vmatpush.msra.mxu3 %v5846_v9 }
 0x564   :  { %1992 = vmatpush.msra.mxu0 %v5849_v14  ;;  %2012 = vmatpush.msra.mxu1 %v5852_v59 }
 0x565   :  { %2032 = vmatpush.msra.mxu2 %v5855_v46  ;;  %2052 = vmatpush.msra.mxu3 %v5858_v24 }
 0x566   :  { %1993 = vmatpush.msra.mxu0 %v5861_v23  ;;  %2013 = vmatpush.msra.mxu1 %v7692_v15 }
 0x567   :  { %2033 = vmatpush.msra.mxu2 %v7693_v32  ;;  %2053 = vmatpush.msra.mxu3 %v7694_v42 }
 0x568   :  { %1994 = vmatpush.msra.mxu0 %v7695_v40  ;;  %2014 = vmatpush.msra.mxu1 %v7696_v6 }
 0x569   :  { %2034 = vmatpush.msra.mxu2 %v7697_v62  ;;  %2054 = vmatpush.msra.mxu3 %v7698_v21 }
 0x56a   :  { %1995 = vmatpush.msra.mxu0 %v7699_v27  ;;  %2015 = vmatpush.msra.mxu1 %v7700_v38  ;;  %v7724_v38 = vld [vmem:[#allocation49_spill] sm:$0xff] }
 0x56b   :  { %2035 = vmatpush.msra.mxu2 %v7701_v33  ;;  %2055 = vmatpush.msra.mxu3 %v7702_v39 }
 0x56c   :  { %1996 = vmatpush.msra.mxu0 %v7703_v3  ;;  %2016 = vmatpush.msra.mxu1 %v7704_v37  ;;  %v7722_v37 = vld [vmem:[#allocation48_spill] sm:$0xff] }
 0x56d   :  { %2036 = vmatpush.msra.mxu2 %v7705_v18  ;;  %2056 = vmatpush.msra.mxu3 %v7706_v35  ;;  %v7717_v35 = vld [vmem:[#allocation39_spill] sm:$0xff] }
 0x56e   :  { %1997 = vmatpush.msra.mxu0 %v7707_v30  ;;  %2017 = vmatpush.msra.mxu1 %v7708_v45  ;;  %v7718_v30 = vld [vmem:[#allocation40_spill] sm:$0xff]  ;;  %v7719_v45 = vld [vmem:[#allocation95_spill] sm:$0xff] }
 0x56f   :  { %2037 = vmatpush.msra.mxu2 %v7709_v54  ;;  %2057 = vmatpush.msra.mxu3 %v7710_v13  ;;  %v7720_v54 = vld [vmem:[#allocation47_spill] sm:$0xff]  ;;  %v7721_v13 = vld [vmem:[#allocation96_spill] sm:$0xff] }
 0x570   :  { %1998 = vmatpush.msra.mxu0 %v7711_v36  ;;  %2018 = vmatpush.msra.mxu1 %v7712_v34  ;;  %v182_v18 = vadd.f32 %v7720_v54, %v7719_v45  ;;  %v259_v36 = vadd.f32 %v7722_v37, %v7721_v13 }
 0x571   :  { %2038 = vmatpush.msra.mxu2 %v7713_v17  ;;  %2058 = vmatpush.msra.mxu3 %v7714_v31 }
 0x572   :  { %1999 = vmatpush.msra.mxu0 %v7715_v49  ;;  %2019 = vmatpush.msra.mxu1 %v7716_v29  ;;  %v7723_v49 = vld [vmem:[#allocation19_spill] sm:$0xff] }
 0x573   :  { %2039 = vmatpush.msra.mxu2 %v7717_v35  ;;  %2059 = vmatpush.msra.mxu3 %v7718_v30  ;;  %v336_v29 = vadd.f32 %v7724_v38, %v7723_v49 }
 0x5cf   :  { %v1693_v3 = vpop.f32.mrf.mxu0  ;;  %v1713_v34 = vpop.f32.mrf.mxu1 }
 0x5d0   :  { %v1694_v39 = vadd.f32 %v1693_v3, %v182_v18  ;;  %v1714_v17 = vadd.f32 %v1713_v34, %v259_v36  ;;  %v7725_v18 = vld [vmem:[#allocation98_spill] sm:$0xff] }
 0x5d2   :  { %v3793_v33 = vmul.f32 -1.442695, %v1694_v39  ;;  %v3794_v31 = vmul.f32 -1.442695, %v1714_v17  ;;  %v7726_v39 = vld [vmem:[#allocation50_spill] sm:$0xff] }
 0x5d3   :  { %v413_v36 = vadd.f32 %v7726_v39, %v7725_v18 }
 0x5d4   :  { %3981 = vpow2.f32 %v3793_v33 }
 0x5d5   :  { %3983 = vpow2.f32 %v3794_v31 }
 0x5d6   :  { %v1733_v35 = vpop.f32.mrf.mxu2  ;;  %v1753_v37 = vpop.f32.mrf.mxu3 }
 0x5d7   :  { %v1734_v27 = vadd.f32 %v1733_v35, %v336_v29  ;;  %v1754_v17 = vadd.f32 %v1753_v37, %v413_v36 }
 0x5d9   :  { %v3795_v30 = vmul.f32 -1.442695, %v1734_v27 }
 0x5da   :  { %v3982_v21 = vpop.eup %3981 }
 0x5db   :  { %v3984_v62 = vpop.eup %3983  ;;  %v1765_v54 = vadd.f32 1.0, %v3982_v21  ;;  %3985 = vpow2.f32 %v3795_v30 }
 0x5dc   :  { %v1766_v45 = vadd.f32 1.0, %v3984_v62 }
 0x5dd   :  { %3987 = vrcp.f32 %v1765_v54  ;;  %v1779_v49 = vand.u32 2147483648, %v1765_v54  ;;  %v1777_v30 = vand.u32 2147483647, %v1765_v54  ;;  %vm1773_vm7 = vweird.f32 %v1765_v54 }
 0x5de   :  { %3989 = vrcp.f32 %v1766_v45  ;;  %v1794_v21 = vand.u32 2147483648, %v1766_v45  ;;  %v1792_v6 = vand.u32 2147483647, %v1766_v45  ;;  %vm1788_vm8 = vweird.f32 %v1766_v45 }
 0x5df   :  { %vm1778_vm11 = vcmp.eq.f32.partialorder %v1777_v30, 8.507059e+37  ;;  %v7746_v30 = vld [vmem:[#allocation22_spill] sm:$0xff] }
 0x5e0   :  { %vm1793_vm12 = vcmp.eq.f32.partialorder %v1792_v6, 8.507059e+37 }
 0x5e1   :  { %v3986_v3 = vpop.eup %3985 }
 0x5e2   :  { %v1767_v33 = vadd.f32 1.0, %v3986_v3  ;;  %v1780_v3 = vor.u32 1.1754944e-38, %v1779_v49 }
 0x5e3   :  { %v3988_v34 = vpop.eup %3987 }
 0x5e4   :  { %v3990_v38 = vpop.eup %3989  ;;  %v1769_v31 = vmul.f32 %v3988_v34, %v1765_v54  ;;  %3991 = vrcp.f32 %v1767_v33  ;;  %vm1774_vm5 = vweird.f32 %v3988_v34  ;;  %v1809_v49 = vand.u32 2147483648, %v1767_v33 }
 0x5e5   :  { %v1784_v35 = vmul.f32 %v3990_v38, %v1766_v45  ;;  %3993 = vtanh.f32 %v1754_v17  ;;  %vm1789_vm6 = vweird.f32 %v3990_v38  ;;  %vm1775_vm9 = vmor %vm1773_vm7, %vm1774_vm5  ;;  %vm1803_vm14 = vweird.f32 %v1767_v33 }
 0x5e6   :  { %v1770_v27 = vsub.f32 1.0, %v1769_v31  ;;  %vm1790_vm10 = vmor %vm1788_vm8, %vm1789_vm6  ;;  %v1795_v31 = vor.u32 1.1754944e-38, %v1794_v21  ;;  %v1810_v21 = vor.u32 1.1754944e-38, %v1809_v49  ;;  %v7757_v49 = vld [vmem:[#allocation52_spill] sm:$0xff] }
 0x5e7   :  { %v1785_v29 = vsub.f32 1.0, %v1784_v35 }
 0x5e8   :  { %v1771_v62 = vmul.f32 %v3988_v34, %v1770_v27 }
 0x5e9   :  { %v1786_v13 = vmul.f32 %v3990_v38, %v1785_v29 }
 0x5ea   :  { %v3992_v40 = vpop.eup %3991  ;;  %v1772_v39 = vadd.f32 %v3988_v34, %v1771_v62 }
 0x5eb   :  { %v1799_v37 = vmul.f32 %v3992_v40, %v1767_v33  ;;  %v1787_v36 = vadd.f32 %v3990_v38, %v1786_v13  ;;  %v3994_v17 = vpop.eup %3993  ;;  %vm1804_vm13 = vweird.f32 %v3992_v40  ;;  %v1807_v13 = vand.u32 2147483647, %v1767_v33  ;;  %v7744_v33 = vld [vmem:[#allocation17_spill] sm:$0xff] }
 0x5ec   :  { %v1776_v35 = vsel %vm1775_vm9, %v3988_v34, %v1772_v39  ;;  %vm1805_vm15 = vmor %vm1803_vm14, %vm1804_vm13  ;;  %v7747_v39 = vld [vmem:[#allocation25_spill] sm:$0xff] }
 0x5ed   :  { %v1800_v18 = vsub.f32 1.0, %v1799_v37  ;;  %v1781_v27 = vsel %vm1778_vm11, %v1780_v3, %v1776_v35  ;;  %v1791_v42 = vsel %vm1790_vm10, %v3990_v38, %v1787_v36  ;;  %vm1808_vm0 = vcmp.eq.f32.partialorder %v1807_v13, 8.507059e+37  ;;  %v7745_v38 = vld [vmem:[#allocation20_spill] sm:$0xff]  ;;  %v7748_v37 = vld [vmem:[#allocation26_spill] sm:$0xff]  ;;  %v7749_v3 = vld [vmem:[#allocation27_spill] sm:$0xff] }
 0x5ee   :  { %v1796_v29 = vsel %vm1793_vm12, %v1795_v31, %v1791_v42  ;;  %v1815_v32 = vmul.f32 %v3994_v17, %v1781_v27  ;;  %v3856_v42 = vld [vmem:[%s7147_s4 + $0x7] ss:$0 sm:$0xff]  ;;  %v7750_v36 = vld [vmem:[#allocation37_spill] sm:$0xff]  ;;  %v7751_v31 = vld [vmem:[#allocation38_spill] sm:$0xff] }
 0x5ef   :  { %v1801_v15 = vmul.f32 %v3992_v40, %v1800_v18  ;;  %v1814_v62 = vmul.f32 %v1796_v29, %v5954_v19  ;;  %v7752_v35 = vld [vmem:[#allocation39_spill] sm:$0xff]  ;;  %v7753_v17 = vld [vmem:[#allocation40_spill] sm:$0xff] }
 0x5f0   :  { %v7754_v27 = vld [vmem:[#allocation95_spill] sm:$0xff] }
 0x5f1   :  { %v6036_v54 = vadd.f32 %v1815_v32, %v1814_v62  ;;  %v1802_v45 = vadd.f32 %v3992_v40, %v1801_v15  ;;  %v7755_v29 = vld [vmem:[#allocation51_spill] sm:$0xff] }
 0x5f2   :  { %v185_v62 = vadd.f32 %v7755_v29, %v7754_v27 }
 0x5f3   :  { %3995 = vtanh.f32 %v6036_v54  ;;  %v1806_v34 = vsel %vm1805_vm15, %v3992_v40, %v1802_v45  ;;  %v7743_v40 = vld [vmem:[#allocation16_spill] sm:$0xff] }
 0x5f4   :  { %v1811_v18 = vsel %vm1808_vm0, %v1810_v21, %v1806_v34  ;;  %v7756_v45 = vld [vmem:[#allocation96_spill] sm:$0xff] }
 0x5f5   :  { %v262_v13 = vadd.f32 %v7757_v49, %v7756_v45 }
 0x5f9   :  { %v3996_v6 = vpop.eup %3995 }
 0x5fa   :  { %v1818_v19 = vmul.f32 %v3996_v6, %v1811_v18 }
 0x5fc   :  { %v1824_v32 = vmul.f32 %v3856_v42, %v1818_v19  ;;  %1846 = vmatmul.f32.vlgmr.msrb.gmra.mxu0 %v1818_v19  ;;  %1866 = vmatmul.f32.vlgmr.msrb.gmra.mxu1 %v1818_v19 }
 0x5fd   :  { %1886 = vmatmul.f32.vlgmr.msrb.gmra.mxu2 %v1818_v19  ;;  %1906 = vmatmul.f32.vlgmr.msrb.gmra.mxu3 %v1818_v19 }
 0x5fe   :  { %2138 = vmatpush.msrb.mxu0 %v5671_v60  ;;  %2158 = vmatpush.msrb.mxu1 %v5674_v61  ;;  %v6045_v15 = vadd.f32 %v1824_v32, %v5963_v12  ;;  %v7727_v60 = vld [vmem:[#allocation29_spill] sm:$0xff]  ;;  %v7728_v61 = vld [vmem:[#allocation30_spill] sm:$0xff]  ;;  %v7758_v32 = vld [vmem:[#allocation19_spill] sm:$0xff] }
 0x5ff   :  { %2178 = vmatpush.msrb.mxu2 %v5677_v52  ;;  %2198 = vmatpush.msrb.mxu3 %v5680_v11  ;;  %v7729_v52 = vld [vmem:[#allocation31_spill] sm:$0xff]  ;;  %v7730_v11 = vld [vmem:[#allocation32_spill] sm:$0xff]  ;;  %v7742_v12 = vld [vmem:[#allocation21_spill] sm:$0xff] }
 0x600   :  { %2139 = vmatpush.msrb.mxu0 %v5683_v47  ;;  %2159 = vmatpush.msrb.mxu1 %v5686_v41  ;;  %v7731_v47 = vld [vmem:[#allocation33_spill] sm:$0xff]  ;;  %v7732_v41 = vld [vmem:[#allocation34_spill] sm:$0xff] }
 0x601   :  { %2179 = vmatpush.msrb.mxu2 %v5689_v57  ;;  %2199 = vmatpush.msrb.mxu3 %v5692_v63  ;;  %v7733_v57 = vld [vmem:[#allocation35_spill] sm:$0xff]  ;;  %v7734_v63 = vld [vmem:[#allocation36_spill] sm:$0xff] }
 0x602   :  { %2140 = vmatpush.msrb.mxu0 %v5695_v4  ;;  %2160 = vmatpush.msrb.mxu1 %v5698_v25  ;;  %v7735_v4 = vld [vmem:[#allocation24_spill] sm:$0xff]  ;;  %v7736_v25 = vld [vmem:[#allocation10_spill] sm:$0xff] }
 0x603   :  { %2180 = vmatpush.msrb.mxu2 %v5701_v48  ;;  %2200 = vmatpush.msrb.mxu3 %v5704_v7  ;;  %v7737_v48 = vld [vmem:[#allocation11_spill] sm:$0xff] }
 0x604   :  { %2141 = vmatpush.msrb.mxu0 %v5707_v2  ;;  %2161 = vmatpush.msrb.mxu1 %v5710_v51  ;;  %v7738_v7 = vld [vmem:[#allocation15_spill] sm:$0xff]  ;;  %v7739_v2 = vld [vmem:[#allocation12_spill] sm:$0xff]  ;;  %v7740_v51 = vld [vmem:[#allocation13_spill] sm:$0xff] }
 0x605   :  { %2181 = vmatpush.msrb.mxu2 %v5713_v55  ;;  %2201 = vmatpush.msrb.mxu3 %v5798_v44  ;;  %v7741_v55 = vld [vmem:[#allocation14_spill] sm:$0xff] }
 0x606   :  { %2142 = vmatpush.msrb.mxu0 %v5801_v28  ;;  %2162 = vmatpush.msrb.mxu1 %v5804_v0 }
 0x607   :  { %2182 = vmatpush.msrb.mxu2 %v5807_v50  ;;  %2202 = vmatpush.msrb.mxu3 %v5810_v8 }
 0x608   :  { %2143 = vmatpush.msrb.mxu0 %v5813_v10  ;;  %2163 = vmatpush.msrb.mxu1 %v5816_v53 }
 0x609   :  { %2183 = vmatpush.msrb.mxu2 %v5819_v5  ;;  %2203 = vmatpush.msrb.mxu3 %v5822_v43 }
 0x60a   :  { %2144 = vmatpush.msrb.mxu0 %v5825_v1  ;;  %2164 = vmatpush.msrb.mxu1 %v5828_v58 }
 0x60b   :  { %2184 = vmatpush.msrb.mxu2 %v5831_v56  ;;  %2204 = vmatpush.msrb.mxu3 %v5834_v20 }
 0x60c   :  { %2145 = vmatpush.msrb.mxu0 %v5837_v26  ;;  %2165 = vmatpush.msrb.mxu1 %v5840_v22 }
 0x60d   :  { %2185 = vmatpush.msrb.mxu2 %v5843_v16  ;;  %2205 = vmatpush.msrb.mxu3 %v5846_v9 }
 0x60e   :  { %2146 = vmatpush.msrb.mxu0 %v5849_v14  ;;  %2166 = vmatpush.msrb.mxu1 %v5852_v59 }
 0x60f   :  { %2186 = vmatpush.msrb.mxu2 %v5855_v46  ;;  %2206 = vmatpush.msrb.mxu3 %v5858_v24 }
 0x610   :  { %2147 = vmatpush.msrb.mxu0 %v5861_v23  ;;  %2167 = vmatpush.msrb.mxu1 %v7727_v60 }
 0x611   :  { %2187 = vmatpush.msrb.mxu2 %v7728_v61  ;;  %2207 = vmatpush.msrb.mxu3 %v7729_v52 }
 0x612   :  { %2148 = vmatpush.msrb.mxu0 %v7730_v11  ;;  %2168 = vmatpush.msrb.mxu1 %v7731_v47 }
 0x613   :  { %2188 = vmatpush.msrb.mxu2 %v7732_v41  ;;  %2208 = vmatpush.msrb.mxu3 %v7733_v57 }
 0x614   :  { %2149 = vmatpush.msrb.mxu0 %v7734_v63  ;;  %2169 = vmatpush.msrb.mxu1 %v7735_v4 }
 0x615   :  { %2189 = vmatpush.msrb.mxu2 %v7736_v25  ;;  %2209 = vmatpush.msrb.mxu3 %v7737_v48 }
 0x616   :  { %2150 = vmatpush.msrb.mxu0 %v7738_v7  ;;  %2170 = vmatpush.msrb.mxu1 %v7739_v2 }
 0x617   :  { %2190 = vmatpush.msrb.mxu2 %v7740_v51  ;;  %2210 = vmatpush.msrb.mxu3 %v7741_v55 }
 0x618   :  { %2151 = vmatpush.msrb.mxu0 %v7742_v12  ;;  %2171 = vmatpush.msrb.mxu1 %v7743_v40 }
 0x619   :  { %2191 = vmatpush.msrb.mxu2 %v7744_v33  ;;  %2211 = vmatpush.msrb.mxu3 %v7745_v38 }
 0x61a   :  { %2152 = vmatpush.msrb.mxu0 %v7746_v30  ;;  %2172 = vmatpush.msrb.mxu1 %v7747_v39 }
 0x61b   :  { %2192 = vmatpush.msrb.mxu2 %v7748_v37  ;;  %2212 = vmatpush.msrb.mxu3 %v7749_v3 }
 0x61c   :  { %2153 = vmatpush.msrb.mxu0 %v7750_v36  ;;  %2173 = vmatpush.msrb.mxu1 %v7751_v31  ;;  %v7759_v36 = vld [vmem:[#allocation9_spill] sm:$0xff] }
 0x61d   :  { %2193 = vmatpush.msrb.mxu2 %v7752_v35  ;;  %2213 = vmatpush.msrb.mxu3 %v7753_v17  ;;  %v339_v31 = vadd.f32 %v7759_v36, %v7758_v32 }
 0x679   :  { %v1847_v34 = vpop.f32.mrf.mxu0  ;;  %v1867_v21 = vpop.f32.mrf.mxu1 }
 0x67a   :  { %v1848_v42 = vadd.f32 %v1847_v34, %v185_v62  ;;  %v1868_v6 = vadd.f32 %v1867_v21, %v262_v13  ;;  %v7760_v13 = vld [vmem:[#allocation98_spill] sm:$0xff]  ;;  %v7761_v34 = vld [vmem:[#allocation53_spill] sm:$0xff] }
 0x67b   :  { %v416_v21 = vadd.f32 %v7761_v34, %v7760_v13 }
 0x67c   :  { %v3797_v18 = vmul.f32 -1.442695, %v1848_v42  ;;  %v3798_v19 = vmul.f32 -1.442695, %v1868_v6 }
 0x67e   :  { %3997 = vpow2.f32 %v3797_v18 }
 0x67f   :  { %3999 = vpow2.f32 %v3798_v19 }
 0x680   :  { %v1887_v35 = vpop.f32.mrf.mxu2  ;;  %v1907_v49 = vpop.f32.mrf.mxu3 }
 0x681   :  { %v1888_v3 = vadd.f32 %v1887_v35, %v339_v31  ;;  %v1908_v18 = vadd.f32 %v1907_v49, %v416_v21 }
 0x683   :  { %v3799_v17 = vmul.f32 -1.442695, %v1888_v3 }
 0x684   :  { %v3998_v37 = vpop.eup %3997 }
 0x685   :  { %v4000_v39 = vpop.eup %3999  ;;  %v1919_v29 = vadd.f32 1.0, %v3998_v37  ;;  %4001 = vpow2.f32 %v3799_v17 }
 0x686   :  { %v1920_v27 = vadd.f32 1.0, %v4000_v39 }
 0x687   :  { %4003 = vrcp.f32 %v1919_v29  ;;  %v1933_v32 = vand.u32 2147483648, %v1919_v29  ;;  %v1931_v17 = vand.u32 2147483647, %v1919_v29  ;;  %vm1927_vm3 = vweird.f32 %v1919_v29 }
 0x688   :  { %4005 = vrcp.f32 %v1920_v27  ;;  %v1948_v37 = vand.u32 2147483648, %v1920_v27  ;;  %v1946_v30 = vand.u32 2147483647, %v1920_v27  ;;  %vm1942_vm4 = vweird.f32 %v1920_v27 }
 0x689   :  { %vm1932_vm7 = vcmp.eq.f32.partialorder %v1931_v17, 8.507059e+37  ;;  %v6136_v17 = vld [vmem:[#allocation4 + $0x1f8] sm:$0xff] }
 0x68a   :  { %vm1947_vm8 = vcmp.eq.f32.partialorder %v1946_v30, 8.507059e+37 }
 0x68b   :  { %v4002_v62 = vpop.eup %4001 }
 0x68c   :  { %v1921_v42 = vadd.f32 1.0, %v4002_v62  ;;  %v1934_v62 = vor.u32 1.1754944e-38, %v1933_v32 }
 0x68d   :  { %v4004_v6 = vpop.eup %4003 }
 0x68e   :  { %v4006_v36 = vpop.eup %4005  ;;  %v1923_v19 = vmul.f32 %v4004_v6, %v1919_v29  ;;  %4007 = vrcp.f32 %v1921_v42  ;;  %vm1928_vm1 = vweird.f32 %v4004_v6  ;;  %v1963_v32 = vand.u32 2147483648, %v1921_v42 }
 0x68f   :  { %v1938_v31 = vmul.f32 %v4006_v36, %v1920_v27  ;;  %4009 = vtanh.f32 %v1908_v18  ;;  %vm1943_vm2 = vweird.f32 %v4006_v36  ;;  %vm1929_vm5 = vmor %vm1927_vm3, %vm1928_vm1  ;;  %vm1957_vm10 = vweird.f32 %v1921_v42 }
 0x690   :  { %v1924_v3 = vsub.f32 1.0, %v1923_v19  ;;  %vm1944_vm6 = vmor %vm1942_vm4, %vm1943_vm2  ;;  %v1949_v19 = vor.u32 1.1754944e-38, %v1948_v37  ;;  %v1964_v37 = vor.u32 1.1754944e-38, %v1963_v32 }
 0x691   :  { %v1939_v35 = vsub.f32 1.0, %v1938_v31 }
 0x692   :  { %v1925_v39 = vmul.f32 %v4004_v6, %v1924_v3 }
 0x693   :  { %v1940_v45 = vmul.f32 %v4006_v36, %v1939_v35 }
 0x694   :  { %v4008_v38 = vpop.eup %4007  ;;  %v1926_v34 = vadd.f32 %v4004_v6, %v1925_v39 }
 0x695   :  { %v1953_v49 = vmul.f32 %v4008_v38, %v1921_v42  ;;  %v1941_v21 = vadd.f32 %v4006_v36, %v1940_v45  ;;  %v4010_v18 = vpop.eup %4009  ;;  %vm1958_vm9 = vweird.f32 %v4008_v38  ;;  %v1961_v45 = vand.u32 2147483647, %v1921_v42  ;;  %v6127_v42 = vld [vmem:[#allocation4 + $0x1e8] sm:$0xff] }
 0x696   :  { %v1930_v31 = vsel %vm1929_vm5, %v4004_v6, %v1926_v34  ;;  %vm1959_vm11 = vmor %vm1957_vm10, %vm1958_vm9  ;;  %v6139_v34 = vld [vmem:[#allocation4 + $0x1c0] sm:$0xff] }
 0x697   :  { %v1954_v13 = vsub.f32 1.0, %v1953_v49  ;;  %v1935_v3 = vsel %vm1932_vm7, %v1934_v62, %v1930_v31  ;;  %v1945_v33 = vsel %vm1944_vm6, %v4006_v36, %v1941_v21  ;;  %vm1962_vm12 = vcmp.eq.f32.partialorder %v1961_v45, 8.507059e+37  ;;  %v6133_v36 = vld [vmem:[#allocation4 + $0x1f0] sm:$0xff]  ;;  %v6142_v49 = vld [vmem:[#allocation4 + $0x1c8] sm:$0xff]  ;;  %v6151_v21 = vld [vmem:[#allocation4 + $0x1a0] sm:$0xff] }
 0x698   :  { %v1950_v35 = vsel %vm1947_vm8, %v1949_v19, %v1945_v33  ;;  %v1969_v40 = vmul.f32 %v4010_v18, %v1935_v3  ;;  %v3857_v33 = vld [vmem:[%s7147_s4 + $0x8] ss:$0 sm:$0xff]  ;;  %v6145_v62 = vld [vmem:[#allocation4 + $0x1d0] sm:$0xff]  ;;  %v6160_v18 = vld [vmem:[#allocation4 + $0x1b8] sm:$0xff] }
 0x699   :  { %v1955_v12 = vmul.f32 %v4008_v38, %v1954_v13  ;;  %v1968_v39 = vmul.f32 %v1950_v35, %v6036_v54  ;;  %v6154_v19 = vld [vmem:[#allocation4 + $0x1a8] sm:$0xff]  ;;  %v6157_v31 = vld [vmem:[#allocation4 + $0x1b0] sm:$0xff]  ;;  %v6163_v3 = vld [vmem:[#allocation4 + $0x180] sm:$0xff] }
 0x69a   :  { %v6166_v35 = vld [vmem:[#allocation4 + $0x188] sm:$0xff] }
 0x69b   :  { %v6118_v29 = vadd.f32 %v1969_v40, %v1968_v39  ;;  %v1956_v27 = vadd.f32 %v4008_v38, %v1955_v12  ;;  %v6124_v12 = vld [vmem:[#allocation4 + $0x1e0] sm:$0xff]  ;;  %v6169_v39 = vld [vmem:[#allocation4 + $0x190] sm:$0xff] }
 0x69d   :  { %4011 = vtanh.f32 %v6118_v29  ;;  %v1960_v6 = vsel %vm1959_vm11, %v4008_v38, %v1956_v27  ;;  %v7781_v27 = vld [vmem:[#allocation57_spill] sm:$0xff] }
 0x69e   :  { %v1965_v13 = vsel %vm1962_vm12, %v1964_v37, %v1960_v6 }
 0x6a3   :  { %v4012_v30 = vpop.eup %4011 }
 0x6a4   :  { %v1972_v54 = vmul.f32 %v4012_v30, %v1965_v13 }
 0x6a6   :  { %2000 = vmatmul.f32.vlgmr.msra.gmra.mxu0 %v1972_v54  ;;  %2020 = vmatmul.f32.vlgmr.msra.gmra.mxu1 %v1972_v54  ;;  %v1978_v40 = vmul.f32 %v3857_v33, %v1972_v54 }
 0x6a7   :  { %2040 = vmatmul.f32.vlgmr.msra.gmra.mxu2 %v1972_v54  ;;  %2060 = vmatmul.f32.vlgmr.msra.gmra.mxu3 %v1972_v54 }
 0x6a8   :  { %2292 = vmatpush.msra.mxu0 %v6124_v12  ;;  %2312 = vmatpush.msra.mxu1 %v6127_v42  ;;  %v6131_v38 = vadd.f32 %v1978_v40, %v6045_v15  ;;  %v6148_v15 = vld [vmem:[#allocation4 + $0x1d8] sm:$0xff] }
 0x6a9   :  { %2332 = vmatpush.msra.mxu2 %v6133_v36  ;;  %2352 = vmatpush.msra.mxu3 %v6136_v17 }
 0x6aa   :  { %2293 = vmatpush.msra.mxu0 %v6139_v34  ;;  %2313 = vmatpush.msra.mxu1 %v6142_v49 }
 0x6ab   :  { %2333 = vmatpush.msra.mxu2 %v6145_v62  ;;  %2353 = vmatpush.msra.mxu3 %v6148_v15 }
 0x6ac   :  { %2294 = vmatpush.msra.mxu0 %v6151_v21  ;;  %2314 = vmatpush.msra.mxu1 %v6154_v19 }
 0x6ad   :  { %2334 = vmatpush.msra.mxu2 %v6157_v31  ;;  %2354 = vmatpush.msra.mxu3 %v6160_v18 }
 0x6ae   :  { %2295 = vmatpush.msra.mxu0 %v6163_v3  ;;  %2315 = vmatpush.msra.mxu1 %v6166_v35 }
 0x6af   :  { %2335 = vmatpush.msra.mxu2 %v6169_v39  ;;  %2355 = vmatpush.msra.mxu3 %v5798_v44  ;;  %v7762_v44 = vld [vmem:[#allocation21_spill] sm:$0xff] }
 0x6b0   :  { %2296 = vmatpush.msra.mxu0 %v5801_v28  ;;  %2316 = vmatpush.msra.mxu1 %v5804_v0  ;;  %v7763_v28 = vld [vmem:[#allocation16_spill] sm:$0xff]  ;;  %v7764_v0 = vld [vmem:[#allocation17_spill] sm:$0xff] }
 0x6b1   :  { %2336 = vmatpush.msra.mxu2 %v5807_v50  ;;  %2356 = vmatpush.msra.mxu3 %v5810_v8  ;;  %v7765_v50 = vld [vmem:[#allocation20_spill] sm:$0xff]  ;;  %v7766_v8 = vld [vmem:[#allocation22_spill] sm:$0xff] }
 0x6b2   :  { %2297 = vmatpush.msra.mxu0 %v5813_v10  ;;  %2317 = vmatpush.msra.mxu1 %v5816_v53  ;;  %v7767_v10 = vld [vmem:[#allocation25_spill] sm:$0xff]  ;;  %v7768_v53 = vld [vmem:[#allocation26_spill] sm:$0xff] }
 0x6b3   :  { %2337 = vmatpush.msra.mxu2 %v5819_v5  ;;  %2357 = vmatpush.msra.mxu3 %v5822_v43  ;;  %v7769_v5 = vld [vmem:[#allocation27_spill] sm:$0xff]  ;;  %v7770_v43 = vld [vmem:[#allocation37_spill] sm:$0xff] }
 0x6b4   :  { %2298 = vmatpush.msra.mxu0 %v5825_v1  ;;  %2318 = vmatpush.msra.mxu1 %v5828_v58  ;;  %v7771_v1 = vld [vmem:[#allocation38_spill] sm:$0xff]  ;;  %v7772_v58 = vld [vmem:[#allocation39_spill] sm:$0xff] }
 0x6b5   :  { %2338 = vmatpush.msra.mxu2 %v5831_v56  ;;  %2358 = vmatpush.msra.mxu3 %v5834_v20  ;;  %v7773_v56 = vld [vmem:[#allocation40_spill] sm:$0xff]  ;;  %v7774_v20 = vld [vmem:[#allocation95_spill] sm:$0xff] }
 0x6b6   :  { %2299 = vmatpush.msra.mxu0 %v5837_v26  ;;  %2319 = vmatpush.msra.mxu1 %v5840_v22  ;;  %v7775_v26 = vld [vmem:[#allocation54_spill] sm:$0xff] }
 0x6b7   :  { %2339 = vmatpush.msra.mxu2 %v5843_v16  ;;  %2359 = vmatpush.msra.mxu3 %v5846_v9  ;;  %v188_v22 = vadd.f32 %v7775_v26, %v7774_v20  ;;  %v7776_v16 = vld [vmem:[#allocation96_spill] sm:$0xff]  ;;  %v7777_v9 = vld [vmem:[#allocation55_spill] sm:$0xff] }
 0x6b8   :  { %2300 = vmatpush.msra.mxu0 %v5849_v14  ;;  %2320 = vmatpush.msra.mxu1 %v5852_v59  ;;  %v265_v14 = vadd.f32 %v7777_v9, %v7776_v16 }
 0x6b9   :  { %2340 = vmatpush.msra.mxu2 %v5855_v46  ;;  %2360 = vmatpush.msra.mxu3 %v5858_v24 }
 0x6ba   :  { %2301 = vmatpush.msra.mxu0 %v5861_v23  ;;  %2321 = vmatpush.msra.mxu1 %v7727_v60 }
 0x6bb   :  { %2341 = vmatpush.msra.mxu2 %v7728_v61  ;;  %2361 = vmatpush.msra.mxu3 %v7729_v52  ;;  %v7778_v52 = vld [vmem:[#allocation19_spill] sm:$0xff] }
 0x6bc   :  { %2302 = vmatpush.msra.mxu0 %v7730_v11  ;;  %2322 = vmatpush.msra.mxu1 %v7731_v47  ;;  %v7779_v11 = vld [vmem:[#allocation56_spill] sm:$0xff] }
 0x6bd   :  { %2342 = vmatpush.msra.mxu2 %v7732_v41  ;;  %2362 = vmatpush.msra.mxu3 %v7733_v57  ;;  %v342_v47 = vadd.f32 %v7779_v11, %v7778_v52 }
 0x6be   :  { %2303 = vmatpush.msra.mxu0 %v7734_v63  ;;  %2323 = vmatpush.msra.mxu1 %v7735_v4 }
 0x6bf   :  { %2343 = vmatpush.msra.mxu2 %v7736_v25  ;;  %2363 = vmatpush.msra.mxu3 %v7737_v48 }
 0x6c0   :  { %2304 = vmatpush.msra.mxu0 %v7738_v7  ;;  %2324 = vmatpush.msra.mxu1 %v7739_v2 }
 0x6c1   :  { %2344 = vmatpush.msra.mxu2 %v7740_v51  ;;  %2364 = vmatpush.msra.mxu3 %v7741_v55  ;;  %v7780_v55 = vld [vmem:[#allocation98_spill] sm:$0xff] }
 0x6c2   :  { %2305 = vmatpush.msra.mxu0 %v7762_v44  ;;  %2325 = vmatpush.msra.mxu1 %v7763_v28  ;;  %v419_v32 = vadd.f32 %v7781_v27, %v7780_v55  ;;  %v6260_v27 = vld [vmem:[#allocation4 + $0x168] sm:$0xff] }
 0x6c3   :  { %2345 = vmatpush.msra.mxu2 %v7764_v0  ;;  %2365 = vmatpush.msra.mxu3 %v7765_v50 }
 0x6c4   :  { %2306 = vmatpush.msra.mxu0 %v7766_v8  ;;  %2326 = vmatpush.msra.mxu1 %v7767_v10 }
 0x6c5   :  { %2346 = vmatpush.msra.mxu2 %v7768_v53  ;;  %2366 = vmatpush.msra.mxu3 %v7769_v5 }
 0x6c6   :  { %2307 = vmatpush.msra.mxu0 %v7770_v43  ;;  %2327 = vmatpush.msra.mxu1 %v7771_v1 }
 0x6c7   :  { %2347 = vmatpush.msra.mxu2 %v7772_v58  ;;  %2367 = vmatpush.msra.mxu3 %v7773_v56 }
 0x723   :  { %v2001_v59 = vpop.f32.mrf.mxu0  ;;  %v2021_v46 = vpop.f32.mrf.mxu1 }
 0x724   :  { %v2002_v24 = vadd.f32 %v2001_v59, %v188_v22  ;;  %v2022_v23 = vadd.f32 %v2021_v46, %v265_v14 }
 0x726   :  { %v3801_v60 = vmul.f32 -1.442695, %v2002_v24  ;;  %v3802_v61 = vmul.f32 -1.442695, %v2022_v23 }
 0x728   :  { %4013 = vpow2.f32 %v3801_v60 }
 0x729   :  { %4015 = vpow2.f32 %v3802_v61 }
 0x72a   :  { %v2041_v41 = vpop.f32.mrf.mxu2  ;;  %v2061_v2 = vpop.f32.mrf.mxu3 }
 0x72b   :  { %v2042_v57 = vadd.f32 %v2041_v41, %v342_v47  ;;  %v2062_v37 = vadd.f32 %v2061_v2, %v419_v32  ;;  %v6263_v32 = vld [vmem:[#allocation4 + $0x170] sm:$0xff] }
 0x72d   :  { %v3803_v63 = vmul.f32 -1.442695, %v2042_v57 }
 0x72e   :  { %v4014_v4 = vpop.eup %4013 }
 0x72f   :  { %v4016_v25 = vpop.eup %4015  ;;  %v2073_v48 = vadd.f32 1.0, %v4014_v4  ;;  %4017 = vpow2.f32 %v3803_v63  ;;  %v3858_v4 = vld [vmem:[%s7147_s4 + $0x9] ss:$0 sm:$0xff] }
 0x730   :  { %v2074_v7 = vadd.f32 1.0, %v4016_v25 }
 0x731   :  { %4019 = vrcp.f32 %v2073_v48  ;;  %v2087_v44 = vand.u32 2147483648, %v2073_v48  ;;  %v2085_v50 = vand.u32 2147483647, %v2073_v48  ;;  %vm2081_vm15 = vweird.f32 %v2073_v48 }
 0x732   :  { %4021 = vrcp.f32 %v2074_v7  ;;  %v2102_v28 = vand.u32 2147483648, %v2074_v7  ;;  %v2100_v10 = vand.u32 2147483647, %v2074_v7  ;;  %vm2096_vm0 = vweird.f32 %v2074_v7 }
 0x733   :  { %v2088_v1 = vor.u32 1.1754944e-38, %v2087_v44  ;;  %vm2086_vm3 = vcmp.eq.f32.partialorder %v2085_v50, 8.507059e+37  ;;  %v6290_v44 = vld [vmem:[#allocation4 + $0x138] sm:$0xff]  ;;  %v6299_v50 = vld [vmem:[#allocation4 + $0x110] sm:$0xff] }
 0x734   :  { %v2103_v56 = vor.u32 1.1754944e-38, %v2102_v28  ;;  %vm2101_vm4 = vcmp.eq.f32.partialorder %v2100_v10, 8.507059e+37  ;;  %v6293_v28 = vld [vmem:[#allocation4 + $0x100] sm:$0xff] }
 0x735   :  { %v4018_v51 = vpop.eup %4017  ;;  %v6305_v10 = vld [vmem:[#allocation4 + $0xe0] sm:$0xff] }
 0x736   :  { %v2075_v45 = vadd.f32 1.0, %v4018_v51  ;;  %v6257_v51 = vld [vmem:[#allocation4 + $0x160] sm:$0xff] }
 0x737   :  { %v4020_v6 = vpop.eup %4019 }
 0x738   :  { %v4022_v33 = vpop.eup %4021  ;;  %v2077_v30 = vmul.f32 %v4020_v6, %v2073_v48  ;;  %4023 = vrcp.f32 %v2075_v45  ;;  %vm2082_vm13 = vweird.f32 %v4020_v6  ;;  %v2117_v47 = vand.u32 2147483648, %v2075_v45 }
 0x739   :  { %v2092_v13 = vmul.f32 %v4022_v33, %v2074_v7  ;;  %4025 = vtanh.f32 %v2062_v37  ;;  %vm2097_vm14 = vweird.f32 %v4022_v33  ;;  %vm2083_vm1 = vmor %vm2081_vm15, %vm2082_vm13  ;;  %vm2111_vm6 = vweird.f32 %v2075_v45  ;;  %v6272_v37 = vld [vmem:[#allocation4 + $0x148] sm:$0xff] }
 0x73a   :  { %v2078_v54 = vsub.f32 1.0, %v2077_v30  ;;  %vm2098_vm2 = vmor %vm2096_vm0, %vm2097_vm14  ;;  %v2115_v41 = vand.u32 2147483647, %v2075_v45  ;;  %v2118_v63 = vor.u32 1.1754944e-38, %v2117_v47  ;;  %v6278_v30 = vld [vmem:[#allocation4 + $0x158] sm:$0xff]  ;;  %v6356_v47 = vld [vmem:[#allocation4 + $0x68] sm:$0xff] }
 0x73b   :  { %v2093_v40 = vsub.f32 1.0, %v2092_v13  ;;  %v6281_v13 = vld [vmem:[#allocation4 + $0x120] sm:$0xff]  ;;  %7794 = vst [vmem:[#allocation41_spill] sm:$0xff] %v6356_v47 }
 0x73c   :  { %v2079_v0 = vmul.f32 %v4020_v6, %v2078_v54  ;;  %vm2116_vm8 = vcmp.eq.f32.partialorder %v2115_v41, 8.507059e+37  ;;  %v6284_v54 = vld [vmem:[#allocation4 + $0x128] sm:$0xff]  ;;  %v6359_v41 = vld [vmem:[#allocation4 + $0x70] sm:$0xff] }
 0x73d   :  { %v2094_v8 = vmul.f32 %v4022_v33, %v2093_v40  ;;  %v6287_v40 = vld [vmem:[#allocation4 + $0x130] sm:$0xff]  ;;  %7795 = vst [vmem:[#allocation42_spill] sm:$0xff] %v6359_v41 }
 0x73e   :  { %v4024_v53 = vpop.eup %4023  ;;  %v2080_v5 = vadd.f32 %v4020_v6, %v2079_v0  ;;  %v6296_v0 = vld [vmem:[#allocation4 + $0x108] sm:$0xff] }
 0x73f   :  { %v2107_v43 = vmul.f32 %v4024_v53, %v2075_v45  ;;  %v2095_v58 = vadd.f32 %v4022_v33, %v2094_v8  ;;  %v4026_v22 = vpop.eup %4025  ;;  %vm2112_vm5 = vweird.f32 %v4024_v53  ;;  %v6266_v45 = vld [vmem:[#allocation4 + $0x178] sm:$0xff] }
 0x740   :  { %v2084_v26 = vsel %vm2083_vm1, %v4020_v6, %v2080_v5  ;;  %vm2113_vm7 = vmor %vm2111_vm6, %vm2112_vm5  ;;  %v6269_v6 = vld [vmem:[#allocation4 + $0x140] sm:$0xff]  ;;  %v6302_v8 = vld [vmem:[#allocation4 + $0x118] sm:$0xff] }
 0x741   :  { %v2108_v9 = vsub.f32 1.0, %v2107_v43  ;;  %v2089_v14 = vsel %vm2086_vm3, %v2088_v1, %v2084_v26  ;;  %v2099_v59 = vsel %vm2098_vm2, %v4022_v33, %v2095_v58  ;;  %v6275_v33 = vld [vmem:[#allocation4 + $0x150] sm:$0xff]  ;;  %v6314_v43 = vld [vmem:[#allocation4 + $0xf8] sm:$0xff]  ;;  %v6317_v1 = vld [vmem:[#allocation4 + $0xc0] sm:$0xff] }
 0x742   :  { %v2104_v46 = vsel %vm2101_vm4, %v2103_v56, %v2099_v59  ;;  %v2123_v24 = vmul.f32 %v4026_v22, %v2089_v14  ;;  %v6311_v5 = vld [vmem:[#allocation4 + $0xf0] sm:$0xff]  ;;  %v6320_v58 = vld [vmem:[#allocation4 + $0xc8] sm:$0xff]  ;;  %v6326_v26 = vld [vmem:[#allocation4 + $0xd8] sm:$0xff] }
 0x743   :  { %v2109_v23 = vmul.f32 %v4024_v53, %v2108_v9  ;;  %v2122_v60 = vmul.f32 %v2104_v46, %v6118_v29  ;;  %7782 = vst [vmem:[#allocation28_spill] sm:$0xff] %v6320_v58  ;;  %v6323_v56 = vld [vmem:[#allocation4 + $0xd0] sm:$0xff]  ;;  %v6329_v22 = vld [vmem:[#allocation4 + $0xa0] sm:$0xff]  ;;  %v6332_v9 = vld [vmem:[#allocation4 + $0xa8] sm:$0xff] }
 0x744   :  { %7783 = vst [vmem:[#allocation99_spill] sm:$0xff] %v6323_v56  ;;  %v6335_v14 = vld [vmem:[#allocation4 + $0xb0] sm:$0xff]  ;;  %v6338_v59 = vld [vmem:[#allocation4 + $0xb8] sm:$0xff]  ;;  %v6341_v46 = vld [vmem:[#allocation4 + $0x80] sm:$0xff] }
 0x745   :  { %v6230_v61 = vadd.f32 %v2123_v24, %v2122_v60  ;;  %v2110_v11 = vadd.f32 %v4024_v53, %v2109_v23  ;;  %7784 = vst [vmem:[#allocation100_spill] sm:$0xff] %v6326_v26  ;;  %v6344_v24 = vld [vmem:[#allocation4 + $0x88] sm:$0xff]  ;;  %v6347_v23 = vld [vmem:[#allocation4 + $0x90] sm:$0xff]  ;;  %v6350_v60 = vld [vmem:[#allocation4 + $0x98] sm:$0xff] }
 0x746   :  { %7785 = vst [vmem:[#allocation101_spill] sm:$0xff] %v6329_v22 }
 0x747   :  { %4027 = vtanh.f32 %v6230_v61  ;;  %v2114_v57 = vsel %vm2113_vm7, %v4024_v53, %v2110_v11  ;;  %v6308_v53 = vld [vmem:[#allocation4 + $0xe8] sm:$0xff]  ;;  %7786 = vst [vmem:[#allocation102_spill] sm:$0xff] %v6332_v9  ;;  %v6353_v11 = vld [vmem:[#allocation4 + $0x60] sm:$0xff] }
 0x748   :  { %v2119_v48 = vsel %vm2116_vm8, %v2118_v63, %v2114_v57  ;;  %7787 = vst [vmem:[#allocation103_spill] sm:$0xff] %v6335_v14  ;;  %v6362_v57 = vld [vmem:[#allocation4 + $0x78] sm:$0xff]  ;;  %v6365_v63 = vld [vmem:[#allocation4 + $0x40] sm:$0xff] }
 0x749   :  { %7788 = vst [vmem:[#allocation104_spill] sm:$0xff] %v6338_v59 }
 0x74a   :  { %7789 = vst [vmem:[#allocation105_spill] sm:$0xff] %v6341_v46 }
 0x74b   :  { %7790 = vst [vmem:[#allocation106_spill] sm:$0xff] %v6344_v24 }
 0x74c   :  { %7791 = vst [vmem:[#allocation107_spill] sm:$0xff] %v6347_v23 }
 0x74d   :  { %v4028_v25 = vpop.eup %4027  ;;  %7792 = vst [vmem:[#allocation108_spill] sm:$0xff] %v6350_v60 }
 0x74e   :  { %v2126_v29 = vmul.f32 %v4028_v25, %v2119_v48  ;;  %7793 = vst [vmem:[#allocation109_spill] sm:$0xff] %v6353_v11  ;;  %v6371_v25 = vld [vmem:[#allocation4 + $0x50] sm:$0xff]  ;;  %v6374_v48 = vld [vmem:[#allocation4 + $0x58] sm:$0xff] }
 0x74f   :  { %7796 = vst [vmem:[#allocation7_spill] sm:$0xff] %v6362_v57 }
 0x750   :  { %2154 = vmatmul.f32.vlgmr.msrb.gmra.mxu0 %v2126_v29  ;;  %2174 = vmatmul.f32.vlgmr.msrb.gmra.mxu1 %v2126_v29  ;;  %v2132_v7 = vmul.f32 %v3858_v4, %v2126_v29  ;;  %7797 = vst [vmem:[#allocation8_spill] sm:$0xff] %v6365_v63  ;;  %v6368_v4 = vld [vmem:[#allocation4 + $0x48] sm:$0xff] }
 0x751   :  { %2194 = vmatmul.f32.vlgmr.msrb.gmra.mxu2 %v2126_v29  ;;  %2214 = vmatmul.f32.vlgmr.msrb.gmra.mxu3 %v2126_v29  ;;  %7798 = vst [vmem:[#allocation43_spill] sm:$0xff] %v6368_v4  ;;  %v6377_v29 = vld [vmem:[#allocation4 + $0x20] sm:$0xff] }
 0x752   :  { %2446 = vmatpush.msrb.mxu0 %v6124_v12  ;;  %2466 = vmatpush.msrb.mxu1 %v6127_v42  ;;  %v6239_v2 = vadd.f32 %v2132_v7, %v6131_v38  ;;  %v6254_v38 = vld [vmem:[#allocation4 + $0x198] sm:$0xff]  ;;  %7799 = vst [vmem:[#allocation44_spill] sm:$0xff] %v6371_v25  ;;  %v6380_v7 = vld [vmem:[#allocation4 + $0x28] sm:$0xff] }
 0x753   :  { %2486 = vmatpush.msrb.mxu2 %v6133_v36  ;;  %2506 = vmatpush.msrb.mxu3 %v6136_v17  ;;  %7800 = vst [vmem:[#allocation45_spill] sm:$0xff] %v6374_v48 }
 0x754   :  { %2447 = vmatpush.msrb.mxu0 %v6139_v34  ;;  %2467 = vmatpush.msrb.mxu1 %v6142_v49  ;;  %7801 = vst [vmem:[#allocation46_spill] sm:$0xff] %v6377_v29 }
 0x755   :  { %2487 = vmatpush.msrb.mxu2 %v6145_v62  ;;  %2507 = vmatpush.msrb.mxu3 %v6148_v15  ;;  %7802 = vst [vmem:[#allocation47_spill] sm:$0xff] %v6380_v7 }
 0x756   :  { %2448 = vmatpush.msrb.mxu0 %v6151_v21  ;;  %2468 = vmatpush.msrb.mxu1 %v6154_v19 }
 0x757   :  { %2488 = vmatpush.msrb.mxu2 %v6157_v31  ;;  %2508 = vmatpush.msrb.mxu3 %v6160_v18 }
 0x758   :  { %2449 = vmatpush.msrb.mxu0 %v6163_v3  ;;  %2469 = vmatpush.msrb.mxu1 %v6166_v35 }
 0x759   :  { %2489 = vmatpush.msrb.mxu2 %v6169_v39  ;;  %2509 = vmatpush.msrb.mxu3 %v6254_v38 }
 0x75a   :  { %2450 = vmatpush.msrb.mxu0 %v6257_v51  ;;  %2470 = vmatpush.msrb.mxu1 %v6260_v27 }
 0x75b   :  { %2490 = vmatpush.msrb.mxu2 %v6263_v32  ;;  %2510 = vmatpush.msrb.mxu3 %v6266_v45 }
 0x75c   :  { %2451 = vmatpush.msrb.mxu0 %v6269_v6  ;;  %2471 = vmatpush.msrb.mxu1 %v6272_v37 }
 0x75d   :  { %2491 = vmatpush.msrb.mxu2 %v6275_v33  ;;  %2511 = vmatpush.msrb.mxu3 %v6278_v30 }
 0x75e   :  { %2452 = vmatpush.msrb.mxu0 %v6281_v13  ;;  %2472 = vmatpush.msrb.mxu1 %v6284_v54 }
 0x75f   :  { %2492 = vmatpush.msrb.mxu2 %v6287_v40  ;;  %2512 = vmatpush.msrb.mxu3 %v6290_v44 }
 0x760   :  { %2453 = vmatpush.msrb.mxu0 %v6293_v28  ;;  %2473 = vmatpush.msrb.mxu1 %v6296_v0 }
 0x761   :  { %2493 = vmatpush.msrb.mxu2 %v6299_v50  ;;  %2513 = vmatpush.msrb.mxu3 %v6302_v8 }
 0x762   :  { %2454 = vmatpush.msrb.mxu0 %v6305_v10  ;;  %2474 = vmatpush.msrb.mxu1 %v6308_v53 }
 0x763   :  { %2494 = vmatpush.msrb.mxu2 %v6311_v5  ;;  %2514 = vmatpush.msrb.mxu3 %v6314_v43 }
 0x764   :  { %2455 = vmatpush.msrb.mxu0 %v6317_v1  ;;  %2475 = vmatpush.msrb.mxu1 %v6320_v58 }
 0x765   :  { %2495 = vmatpush.msrb.mxu2 %v6323_v56  ;;  %2515 = vmatpush.msrb.mxu3 %v6326_v26 }
 0x766   :  { %2456 = vmatpush.msrb.mxu0 %v6329_v22  ;;  %2476 = vmatpush.msrb.mxu1 %v6332_v9 }
 0x767   :  { %2496 = vmatpush.msrb.mxu2 %v6335_v14  ;;  %2516 = vmatpush.msrb.mxu3 %v6338_v59 }
 0x768   :  { %2457 = vmatpush.msrb.mxu0 %v6341_v46  ;;  %2477 = vmatpush.msrb.mxu1 %v6344_v24  ;;  %v7811_v24 = vld [vmem:[#allocation60_spill] sm:$0xff] }
 0x769   :  { %2497 = vmatpush.msrb.mxu2 %v6347_v23  ;;  %2517 = vmatpush.msrb.mxu3 %v6350_v60 }
 0x76a   :  { %2458 = vmatpush.msrb.mxu0 %v6353_v11  ;;  %2478 = vmatpush.msrb.mxu1 %v6356_v47 }
 0x76b   :  { %2498 = vmatpush.msrb.mxu2 %v6359_v41  ;;  %2518 = vmatpush.msrb.mxu3 %v6362_v57 }
 0x76c   :  { %2459 = vmatpush.msrb.mxu0 %v6365_v63  ;;  %2479 = vmatpush.msrb.mxu1 %v6368_v4  ;;  %v6383_v63 = vld [vmem:[#allocation4 + $0x30] sm:$0xff]  ;;  %v6386_v4 = vld [vmem:[#allocation4 + $0x38] sm:$0xff] }
 0x76d   :  { %2499 = vmatpush.msrb.mxu2 %v6371_v25  ;;  %2519 = vmatpush.msrb.mxu3 %v6374_v48  ;;  %7803 = vst [vmem:[#allocation48_spill] sm:$0xff] %v6383_v63  ;;  %v6389_v25 = vld [vmem:[#allocation4] sm:$0xff]  ;;  %v6392_v48 = vld [vmem:[#allocation4 + $0x8] sm:$0xff] }
 0x76e   :  { %2460 = vmatpush.msrb.mxu0 %v6377_v29  ;;  %2480 = vmatpush.msrb.mxu1 %v6380_v7  ;;  %7804 = vst [vmem:[#allocation49_spill] sm:$0xff] %v6386_v4  ;;  %v6395_v29 = vld [vmem:[#allocation4 + $0x10] sm:$0xff]  ;;  %v6398_v7 = vld [vmem:[#allocation4 + $0x18] sm:$0xff] }
 0x76f   :  { %2500 = vmatpush.msrb.mxu2 %v6383_v63  ;;  %2520 = vmatpush.msrb.mxu3 %v6386_v4  ;;  %7805 = vst [vmem:[#allocation50_spill] sm:$0xff] %v6389_v25  ;;  %v7809_v63 = vld [vmem:[#allocation58_spill] sm:$0xff]  ;;  %v7810_v4 = vld [vmem:[#allocation59_spill] sm:$0xff] }
 0x770   :  { %2461 = vmatpush.msrb.mxu0 %v6389_v25  ;;  %7806 = vst [vmem:[#allocation29_spill] sm:$0xff] %v6392_v48  ;;  %2481 = vmatpush.msrb.mxu1 %v6392_v48  ;;  %v191_v57 = vadd.f32 %v7809_v63, %v7774_v20  ;;  %v268_v41 = vadd.f32 %v7810_v4, %v7776_v16 }
 0x771   :  { %7807 = vst [vmem:[#allocation30_spill] sm:$0xff] %v6395_v29  ;;  %2501 = vmatpush.msrb.mxu2 %v6395_v29  ;;  %2521 = vmatpush.msrb.mxu3 %v6398_v7  ;;  %v345_v29 = vadd.f32 %v7811_v24, %v7778_v52 }
 0x772   :  { %7808 = vst [vmem:[#allocation31_spill] sm:$0xff] %v6398_v7 }
 0x7cd   :  { %v2155_v47 = vpop.f32.mrf.mxu0  ;;  %v2175_v25 = vpop.f32.mrf.mxu1 }
 0x7ce   :  { %v2156_v11 = vadd.f32 %v2155_v47, %v191_v57  ;;  %v2176_v60 = vadd.f32 %v2175_v25, %v268_v41 }
 0x7d0   :  { %v3805_v23 = vmul.f32 -1.442695, %v2156_v11  ;;  %v3806_v48 = vmul.f32 -1.442695, %v2176_v60  ;;  %v7812_v11 = vld [vmem:[#allocation61_spill] sm:$0xff] }
 0x7d1   :  { %v422_v60 = vadd.f32 %v7812_v11, %v7780_v55 }
 0x7d2   :  { %4029 = vpow2.f32 %v3805_v23 }
 0x7d3   :  { %4031 = vpow2.f32 %v3806_v48 }
 0x7d4   :  { %v2195_v46 = vpop.f32.mrf.mxu2  ;;  %v2215_v4 = vpop.f32.mrf.mxu3 }
 0x7d5   :  { %v2196_v59 = vadd.f32 %v2195_v46, %v345_v29  ;;  %v2216_v57 = vadd.f32 %v2215_v4, %v422_v60 }
 0x7d7   :  { %v3807_v7 = vmul.f32 -1.442695, %v2196_v59 }
 0x7d8   :  { %v4030_v14 = vpop.eup %4029 }
 0x7d9   :  { %v4032_v9 = vpop.eup %4031  ;;  %v2227_v63 = vadd.f32 1.0, %v4030_v14  ;;  %4033 = vpow2.f32 %v3807_v7 }
 0x7da   :  { %v2228_v20 = vadd.f32 1.0, %v4032_v9 }
 0x7db   :  { %4035 = vrcp.f32 %v2227_v63  ;;  %v2241_v29 = vand.u32 2147483648, %v2227_v63  ;;  %v2239_v7 = vand.u32 2147483647, %v2227_v63  ;;  %vm2235_vm11 = vweird.f32 %v2227_v63 }
 0x7dc   :  { %4037 = vrcp.f32 %v2228_v20  ;;  %v2256_v14 = vand.u32 2147483648, %v2228_v20  ;;  %v2254_v16 = vand.u32 2147483647, %v2228_v20  ;;  %vm2250_vm12 = vweird.f32 %v2228_v20 }
 0x7dd   :  { %vm2240_vm15 = vcmp.eq.f32.partialorder %v2239_v7, 8.507059e+37  ;;  %v7817_v7 = vld [vmem:[#allocation102_spill] sm:$0xff] }
 0x7de   :  { %vm2255_vm0 = vcmp.eq.f32.partialorder %v2254_v16, 8.507059e+37  ;;  %v3859_v16 = vld [vmem:[%s7147_s4 + $0xa] ss:$0 sm:$0xff] }
 0x7df   :  { %v4034_v47 = vpop.eup %4033 }
 0x7e0   :  { %v2229_v23 = vadd.f32 1.0, %v4034_v47  ;;  %v2242_v47 = vor.u32 1.1754944e-38, %v2241_v29 }
 0x7e1   :  { %v4036_v41 = vpop.eup %4035 }
 0x7e2   :  { %v4038_v24 = vpop.eup %4037  ;;  %v2231_v25 = vmul.f32 %v4036_v41, %v2227_v63  ;;  %4039 = vrcp.f32 %v2229_v23  ;;  %vm2236_vm9 = vweird.f32 %v4036_v41  ;;  %v2271_v29 = vand.u32 2147483648, %v2229_v23 }
 0x7e3   :  { %v2246_v46 = vmul.f32 %v4038_v24, %v2228_v20  ;;  %4041 = vtanh.f32 %v2216_v57  ;;  %vm2251_vm10 = vweird.f32 %v4038_v24  ;;  %vm2237_vm13 = vmor %vm2235_vm11, %vm2236_vm9  ;;  %vm2265_vm2 = vweird.f32 %v2229_v23 }
 0x7e4   :  { %v2232_v59 = vsub.f32 1.0, %v2231_v25  ;;  %vm2252_vm14 = vmor %vm2250_vm12, %vm2251_vm10  ;;  %v2257_v25 = vor.u32 1.1754944e-38, %v2256_v14  ;;  %v2272_v14 = vor.u32 1.1754944e-38, %v2271_v29  ;;  %v7829_v29 = vld [vmem:[#allocation43_spill] sm:$0xff] }
 0x7e5   :  { %v2247_v48 = vsub.f32 1.0, %v2246_v46 }
 0x7e6   :  { %v2233_v9 = vmul.f32 %v4036_v41, %v2232_v59 }
 0x7e7   :  { %v2248_v52 = vmul.f32 %v4038_v24, %v2247_v48 }
 0x7e8   :  { %v4040_v22 = vpop.eup %4039  ;;  %v2234_v11 = vadd.f32 %v4036_v41, %v2233_v9 }
 0x7e9   :  { %v2261_v4 = vmul.f32 %v4040_v22, %v2229_v23  ;;  %v2249_v60 = vadd.f32 %v4038_v24, %v2248_v52  ;;  %v4042_v57 = vpop.eup %4041  ;;  %vm2266_vm1 = vweird.f32 %v4040_v22  ;;  %v2269_v52 = vand.u32 2147483647, %v2229_v23  ;;  %v7815_v23 = vld [vmem:[#allocation100_spill] sm:$0xff] }
 0x7ea   :  { %v2238_v46 = vsel %vm2237_vm13, %v4036_v41, %v2234_v11  ;;  %vm2267_vm3 = vmor %vm2265_vm2, %vm2266_vm1  ;;  %v7818_v11 = vld [vmem:[#allocation103_spill] sm:$0xff] }
 0x7eb   :  { %v2262_v55 = vsub.f32 1.0, %v2261_v4  ;;  %v2243_v59 = vsel %vm2240_vm15, %v2242_v47, %v2238_v46  ;;  %v2253_v26 = vsel %vm2252_vm14, %v4038_v24, %v2249_v60  ;;  %vm2270_vm4 = vcmp.eq.f32.partialorder %v2269_v52, 8.507059e+37  ;;  %v7816_v24 = vld [vmem:[#allocation101_spill] sm:$0xff]  ;;  %v7819_v4 = vld [vmem:[#allocation104_spill] sm:$0xff]  ;;  %v7821_v60 = vld [vmem:[#allocation106_spill] sm:$0xff] }
 0x7ec   :  { %v2258_v48 = vsel %vm2255_vm0, %v2257_v25, %v2253_v26  ;;  %v2277_v56 = vmul.f32 %v4042_v57, %v2243_v59  ;;  %v7820_v47 = vld [vmem:[#allocation105_spill] sm:$0xff]  ;;  %v7822_v25 = vld [vmem:[#allocation107_spill] sm:$0xff]  ;;  %v7823_v46 = vld [vmem:[#allocation108_spill] sm:$0xff] }
 0x7ed   :  { %v2263_v58 = vmul.f32 %v4040_v22, %v2262_v55  ;;  %v2276_v9 = vmul.f32 %v2258_v48, %v6230_v61  ;;  %v7824_v57 = vld [vmem:[#allocation109_spill] sm:$0xff]  ;;  %v7826_v48 = vld [vmem:[#allocation42_spill] sm:$0xff]  ;;  %v7830_v52 = vld [vmem:[#allocation44_spill] sm:$0xff] }
 0x7ee   :  { %v7825_v59 = vld [vmem:[#allocation41_spill] sm:$0xff] }
 0x7ef   :  { %v6410_v63 = vadd.f32 %v2277_v56, %v2276_v9  ;;  %v2264_v20 = vadd.f32 %v4040_v22, %v2263_v58  ;;  %v7827_v9 = vld [vmem:[#allocation7_spill] sm:$0xff] }
 0x7f1   :  { %4043 = vtanh.f32 %v6410_v63  ;;  %v2268_v41 = vsel %vm2267_vm3, %v4040_v22, %v2264_v20  ;;  %v7814_v22 = vld [vmem:[#allocation99_spill] sm:$0xff]  ;;  %v7828_v20 = vld [vmem:[#allocation8_spill] sm:$0xff] }
 0x7f2   :  { %v2273_v26 = vsel %vm2270_vm4, %v2272_v14, %v2268_v41  ;;  %v7831_v41 = vld [vmem:[#allocation45_spill] sm:$0xff]  ;;  %v7832_v14 = vld [vmem:[#allocation46_spill] sm:$0xff] }
 0x7f7   :  { %v4044_v55 = vpop.eup %4043 }
 0x7f8   :  { %v2280_v61 = vmul.f32 %v4044_v55, %v2273_v26  ;;  %v7834_v55 = vld [vmem:[#allocation48_spill] sm:$0xff]  ;;  %v7835_v26 = vld [vmem:[#allocation49_spill] sm:$0xff] }
 0x7fa   :  { %2308 = vmatmul.f32.vlgmr.msra.gmra.mxu0 %v2280_v61  ;;  %2328 = vmatmul.f32.vlgmr.msra.gmra.mxu1 %v2280_v61  ;;  %v2286_v56 = vmul.f32 %v3859_v16, %v2280_v61  ;;  %v7833_v16 = vld [vmem:[#allocation47_spill] sm:$0xff] }
 0x7fb   :  { %2348 = vmatmul.f32.vlgmr.msra.gmra.mxu2 %v2280_v61  ;;  %2368 = vmatmul.f32.vlgmr.msra.gmra.mxu3 %v2280_v61  ;;  %v7836_v61 = vld [vmem:[#allocation50_spill] sm:$0xff] }
 0x7fc   :  { %2600 = vmatpush.msra.mxu0 %v6124_v12  ;;  %2620 = vmatpush.msra.mxu1 %v6127_v42  ;;  %v6419_v58 = vadd.f32 %v2286_v56, %v6239_v2  ;;  %v7813_v2 = vld [vmem:[#allocation28_spill] sm:$0xff]  ;;  %v7837_v56 = vld [vmem:[#allocation29_spill] sm:$0xff] }
 0x7fd   :  { %2640 = vmatpush.msra.mxu2 %v6133_v36  ;;  %2660 = vmatpush.msra.mxu3 %v6136_v17 }
 0x7fe   :  { %2601 = vmatpush.msra.mxu0 %v6139_v34  ;;  %2621 = vmatpush.msra.mxu1 %v6142_v49 }
 0x7ff   :  { %2641 = vmatpush.msra.mxu2 %v6145_v62  ;;  %2661 = vmatpush.msra.mxu3 %v6148_v15 }
 0x800   :  { %2602 = vmatpush.msra.mxu0 %v6151_v21  ;;  %2622 = vmatpush.msra.mxu1 %v6154_v19 }
 0x801   :  { %2642 = vmatpush.msra.mxu2 %v6157_v31  ;;  %2662 = vmatpush.msra.mxu3 %v6160_v18 }
 0x802   :  { %2603 = vmatpush.msra.mxu0 %v6163_v3  ;;  %2623 = vmatpush.msra.mxu1 %v6166_v35 }
 0x803   :  { %2643 = vmatpush.msra.mxu2 %v6169_v39  ;;  %2663 = vmatpush.msra.mxu3 %v6254_v38 }
 0x804   :  { %2604 = vmatpush.msra.mxu0 %v6257_v51  ;;  %2624 = vmatpush.msra.mxu1 %v6260_v27 }
 0x805   :  { %2644 = vmatpush.msra.mxu2 %v6263_v32  ;;  %2664 = vmatpush.msra.mxu3 %v6266_v45 }
 0x806   :  { %2605 = vmatpush.msra.mxu0 %v6269_v6  ;;  %2625 = vmatpush.msra.mxu1 %v6272_v37 }
 0x807   :  { %2645 = vmatpush.msra.mxu2 %v6275_v33  ;;  %2665 = vmatpush.msra.mxu3 %v6278_v30 }
 0x808   :  { %2606 = vmatpush.msra.mxu0 %v6281_v13  ;;  %2626 = vmatpush.msra.mxu1 %v6284_v54 }
 0x809   :  { %2646 = vmatpush.msra.mxu2 %v6287_v40  ;;  %2666 = vmatpush.msra.mxu3 %v6290_v44 }
 0x80a   :  { %2607 = vmatpush.msra.mxu0 %v6293_v28  ;;  %2627 = vmatpush.msra.mxu1 %v6296_v0 }
 0x80b   :  { %2647 = vmatpush.msra.mxu2 %v6299_v50  ;;  %2667 = vmatpush.msra.mxu3 %v6302_v8 }
 0x80c   :  { %2608 = vmatpush.msra.mxu0 %v6305_v10  ;;  %2628 = vmatpush.msra.mxu1 %v6308_v53 }
 0x80d   :  { %2648 = vmatpush.msra.mxu2 %v6311_v5  ;;  %2668 = vmatpush.msra.mxu3 %v6314_v43 }
 0x80e   :  { %2609 = vmatpush.msra.mxu0 %v6317_v1  ;;  %2629 = vmatpush.msra.mxu1 %v7813_v2 }
 0x80f   :  { %2649 = vmatpush.msra.mxu2 %v7814_v22  ;;  %2669 = vmatpush.msra.mxu3 %v7815_v23 }
 0x810   :  { %2610 = vmatpush.msra.mxu0 %v7816_v24  ;;  %2630 = vmatpush.msra.mxu1 %v7817_v7 }
 0x811   :  { %2650 = vmatpush.msra.mxu2 %v7818_v11  ;;  %2670 = vmatpush.msra.mxu3 %v7819_v4 }
 0x812   :  { %2611 = vmatpush.msra.mxu0 %v7820_v47  ;;  %2631 = vmatpush.msra.mxu1 %v7821_v60  ;;  %v7845_v60 = vld [vmem:[#allocation64_spill] sm:$0xff] }
 0x813   :  { %2651 = vmatpush.msra.mxu2 %v7822_v25  ;;  %2671 = vmatpush.msra.mxu3 %v7823_v46 }
 0x814   :  { %2612 = vmatpush.msra.mxu0 %v7824_v57  ;;  %2632 = vmatpush.msra.mxu1 %v7825_v59  ;;  %v7843_v59 = vld [vmem:[#allocation63_spill] sm:$0xff] }
 0x815   :  { %2652 = vmatpush.msra.mxu2 %v7826_v48  ;;  %2672 = vmatpush.msra.mxu3 %v7827_v9  ;;  %v7838_v9 = vld [vmem:[#allocation30_spill] sm:$0xff] }
 0x816   :  { %2613 = vmatpush.msra.mxu0 %v7828_v20  ;;  %2633 = vmatpush.msra.mxu1 %v7829_v29  ;;  %v7839_v20 = vld [vmem:[#allocation31_spill] sm:$0xff] }
 0x817   :  { %2653 = vmatpush.msra.mxu2 %v7830_v52  ;;  %2673 = vmatpush.msra.mxu3 %v7831_v41  ;;  %v7840_v29 = vld [vmem:[#allocation95_spill] sm:$0xff]  ;;  %v7841_v52 = vld [vmem:[#allocation62_spill] sm:$0xff]  ;;  %v7842_v41 = vld [vmem:[#allocation96_spill] sm:$0xff] }
 0x818   :  { %2614 = vmatpush.msra.mxu0 %v7832_v14  ;;  %2634 = vmatpush.msra.mxu1 %v7833_v16  ;;  %v194_v48 = vadd.f32 %v7841_v52, %v7840_v29  ;;  %v271_v14 = vadd.f32 %v7843_v59, %v7842_v41 }
 0x819   :  { %2654 = vmatpush.msra.mxu2 %v7834_v55  ;;  %2674 = vmatpush.msra.mxu3 %v7835_v26 }
 0x81a   :  { %2615 = vmatpush.msra.mxu0 %v7836_v61  ;;  %2635 = vmatpush.msra.mxu1 %v7837_v56  ;;  %v7844_v61 = vld [vmem:[#allocation19_spill] sm:$0xff] }
 0x81b   :  { %2655 = vmatpush.msra.mxu2 %v7838_v9  ;;  %2675 = vmatpush.msra.mxu3 %v7839_v20  ;;  %v348_v56 = vadd.f32 %v7845_v60, %v7844_v61 }
 0x877   :  { %v2309_v57 = vpop.f32.mrf.mxu0  ;;  %v2329_v16 = vpop.f32.mrf.mxu1 }
 0x878   :  { %v2310_v46 = vadd.f32 %v2309_v57, %v194_v48  ;;  %v2330_v55 = vadd.f32 %v2329_v16, %v271_v14  ;;  %v7846_v48 = vld [vmem:[#allocation98_spill] sm:$0xff] }
 0x87a   :  { %v3809_v25 = vmul.f32 -1.442695, %v2310_v46  ;;  %v3810_v26 = vmul.f32 -1.442695, %v2330_v55  ;;  %v7847_v46 = vld [vmem:[#allocation65_spill] sm:$0xff] }
 0x87b   :  { %v425_v14 = vadd.f32 %v7847_v46, %v7846_v48 }
 0x87c   :  { %4045 = vpow2.f32 %v3809_v25 }
 0x87d   :  { %4047 = vpow2.f32 %v3810_v26 }
 0x87e   :  { %v2349_v9 = vpop.f32.mrf.mxu2  ;;  %v2369_v59 = vpop.f32.mrf.mxu3 }
 0x87f   :  { %v2350_v47 = vadd.f32 %v2349_v9, %v348_v56  ;;  %v2370_v55 = vadd.f32 %v2369_v59, %v425_v14 }
 0x881   :  { %v3811_v20 = vmul.f32 -1.442695, %v2350_v47 }
 0x882   :  { %v4046_v4 = vpop.eup %4045 }
 0x883   :  { %v4048_v11 = vpop.eup %4047  ;;  %v2381_v52 = vadd.f32 1.0, %v4046_v4  ;;  %4049 = vpow2.f32 %v3811_v20 }
 0x884   :  { %v2382_v29 = vadd.f32 1.0, %v4048_v11 }
 0x885   :  { %4051 = vrcp.f32 %v2381_v52  ;;  %v2395_v61 = vand.u32 2147483648, %v2381_v52  ;;  %v2393_v20 = vand.u32 2147483647, %v2381_v52  ;;  %vm2389_vm7 = vweird.f32 %v2381_v52 }
 0x886   :  { %4053 = vrcp.f32 %v2382_v29  ;;  %v2410_v4 = vand.u32 2147483648, %v2382_v29  ;;  %v2408_v7 = vand.u32 2147483647, %v2382_v29  ;;  %vm2404_vm8 = vweird.f32 %v2382_v29 }
 0x887   :  { %vm2394_vm11 = vcmp.eq.f32.partialorder %v2393_v20, 8.507059e+37  ;;  %v7867_v20 = vld [vmem:[#allocation46_spill] sm:$0xff] }
 0x888   :  { %vm2409_vm12 = vcmp.eq.f32.partialorder %v2408_v7, 8.507059e+37 }
 0x889   :  { %v4050_v57 = vpop.eup %4049 }
 0x88a   :  { %v2383_v25 = vadd.f32 1.0, %v4050_v57  ;;  %v2396_v57 = vor.u32 1.1754944e-38, %v2395_v61 }
 0x88b   :  { %v4052_v16 = vpop.eup %4051 }
 0x88c   :  { %v4054_v60 = vpop.eup %4053  ;;  %v2385_v26 = vmul.f32 %v4052_v16, %v2381_v52  ;;  %4055 = vrcp.f32 %v2383_v25  ;;  %vm2390_vm5 = vweird.f32 %v4052_v16  ;;  %v2425_v61 = vand.u32 2147483648, %v2383_v25 }
 0x88d   :  { %v2400_v9 = vmul.f32 %v4054_v60, %v2382_v29  ;;  %4057 = vtanh.f32 %v2370_v55  ;;  %vm2405_vm6 = vweird.f32 %v4054_v60  ;;  %vm2391_vm9 = vmor %vm2389_vm7, %vm2390_vm5  ;;  %vm2419_vm14 = vweird.f32 %v2383_v25 }
 0x88e   :  { %v2386_v47 = vsub.f32 1.0, %v2385_v26  ;;  %vm2406_vm10 = vmor %vm2404_vm8, %vm2405_vm6  ;;  %v2411_v26 = vor.u32 1.1754944e-38, %v2410_v4  ;;  %v2426_v4 = vor.u32 1.1754944e-38, %v2425_v61  ;;  %v7878_v61 = vld [vmem:[#allocation67_spill] sm:$0xff] }
 0x88f   :  { %v2401_v56 = vsub.f32 1.0, %v2400_v9 }
 0x890   :  { %v2387_v11 = vmul.f32 %v4052_v16, %v2386_v47 }
 0x891   :  { %v2402_v41 = vmul.f32 %v4054_v60, %v2401_v56 }
 0x892   :  { %v4056_v24 = vpop.eup %4055  ;;  %v2388_v46 = vadd.f32 %v4052_v16, %v2387_v11 }
 0x893   :  { %v2415_v59 = vmul.f32 %v4056_v24, %v2383_v25  ;;  %v2403_v14 = vadd.f32 %v4054_v60, %v2402_v41  ;;  %v4058_v55 = vpop.eup %4057  ;;  %vm2420_vm13 = vweird.f32 %v4056_v24  ;;  %v2423_v41 = vand.u32 2147483647, %v2383_v25  ;;  %v7865_v25 = vld [vmem:[#allocation44_spill] sm:$0xff] }
 0x894   :  { %v2392_v9 = vsel %vm2391_vm9, %v4052_v16, %v2388_v46  ;;  %vm2421_vm15 = vmor %vm2419_vm14, %vm2420_vm13  ;;  %v7868_v46 = vld [vmem:[#allocation47_spill] sm:$0xff] }
 0x895   :  { %v2416_v48 = vsub.f32 1.0, %v2415_v59  ;;  %v2397_v47 = vsel %vm2394_vm11, %v2396_v57, %v2392_v9  ;;  %v2407_v23 = vsel %vm2406_vm10, %v4054_v60, %v2403_v14  ;;  %vm2424_vm0 = vcmp.eq.f32.partialorder %v2423_v41, 8.507059e+37  ;;  %v7866_v60 = vld [vmem:[#allocation45_spill] sm:$0xff]  ;;  %v7869_v59 = vld [vmem:[#allocation48_spill] sm:$0xff]  ;;  %v7871_v14 = vld [vmem:[#allocation50_spill] sm:$0xff] }
 0x896   :  { %v2412_v56 = vsel %vm2409_vm12, %v2411_v26, %v2407_v23  ;;  %v2431_v22 = vmul.f32 %v4058_v55, %v2397_v47  ;;  %v3860_v23 = vld [vmem:[%s7147_s4 + $0xb] ss:$0 sm:$0xff]  ;;  %v7870_v57 = vld [vmem:[#allocation49_spill] sm:$0xff]  ;;  %v7873_v9 = vld [vmem:[#allocation30_spill] sm:$0xff] }
 0x897   :  { %v2417_v2 = vmul.f32 %v4056_v24, %v2416_v48  ;;  %v2430_v11 = vmul.f32 %v2412_v56, %v6410_v63  ;;  %v7872_v26 = vld [vmem:[#allocation29_spill] sm:$0xff]  ;;  %v7874_v55 = vld [vmem:[#allocation31_spill] sm:$0xff]  ;;  %v7876_v56 = vld [vmem:[#allocation66_spill] sm:$0xff] }
 0x898   :  { %v7875_v47 = vld [vmem:[#allocation95_spill] sm:$0xff] }
 0x899   :  { %v6492_v52 = vadd.f32 %v2431_v22, %v2430_v11  ;;  %v2418_v29 = vadd.f32 %v4056_v24, %v2417_v2  ;;  %v197_v11 = vadd.f32 %v7876_v56, %v7875_v47 }
 0x89b   :  { %4059 = vtanh.f32 %v6492_v52  ;;  %v2422_v16 = vsel %vm2421_vm15, %v4056_v24, %v2418_v29  ;;  %v7864_v24 = vld [vmem:[#allocation43_spill] sm:$0xff]  ;;  %v7877_v29 = vld [vmem:[#allocation96_spill] sm:$0xff] }
 0x89c   :  { %v2427_v48 = vsel %vm2424_vm0, %v2426_v4, %v2422_v16  ;;  %v274_v41 = vadd.f32 %v7878_v61, %v7877_v29 }
 0x8a1   :  { %v4060_v7 = vpop.eup %4059 }
 0x8a2   :  { %v2434_v63 = vmul.f32 %v4060_v7, %v2427_v48 }
 0x8a4   :  { %2462 = vmatmul.f32.vlgmr.msrb.gmra.mxu0 %v2434_v63  ;;  %2482 = vmatmul.f32.vlgmr.msrb.gmra.mxu1 %v2434_v63  ;;  %v2440_v22 = vmul.f32 %v3860_v23, %v2434_v63 }
 0x8a5   :  { %2502 = vmatmul.f32.vlgmr.msrb.gmra.mxu2 %v2434_v63  ;;  %2522 = vmatmul.f32.vlgmr.msrb.gmra.mxu3 %v2434_v63 }
 0x8a6   :  { %2754 = vmatpush.msrb.mxu0 %v6124_v12  ;;  %2774 = vmatpush.msrb.mxu1 %v6127_v42  ;;  %v6501_v2 = vadd.f32 %v2440_v22, %v6419_v58  ;;  %v7848_v12 = vld [vmem:[#allocation28_spill] sm:$0xff]  ;;  %v7849_v42 = vld [vmem:[#allocation99_spill] sm:$0xff] }
 0x8a7   :  { %2794 = vmatpush.msrb.mxu2 %v6133_v36  ;;  %2814 = vmatpush.msrb.mxu3 %v6136_v17  ;;  %v7850_v36 = vld [vmem:[#allocation100_spill] sm:$0xff]  ;;  %v7851_v17 = vld [vmem:[#allocation101_spill] sm:$0xff]  ;;  %v7879_v22 = vld [vmem:[#allocation19_spill] sm:$0xff] }
 0x8a8   :  { %2755 = vmatpush.msrb.mxu0 %v6139_v34  ;;  %2775 = vmatpush.msrb.mxu1 %v6142_v49  ;;  %v7852_v34 = vld [vmem:[#allocation102_spill] sm:$0xff]  ;;  %v7853_v49 = vld [vmem:[#allocation103_spill] sm:$0xff]  ;;  %v7863_v58 = vld [vmem:[#allocation8_spill] sm:$0xff] }
 0x8a9   :  { %2795 = vmatpush.msrb.mxu2 %v6145_v62  ;;  %2815 = vmatpush.msrb.mxu3 %v6148_v15  ;;  %v7854_v62 = vld [vmem:[#allocation104_spill] sm:$0xff]  ;;  %v7855_v15 = vld [vmem:[#allocation105_spill] sm:$0xff] }
 0x8aa   :  { %2756 = vmatpush.msrb.mxu0 %v6151_v21  ;;  %2776 = vmatpush.msrb.mxu1 %v6154_v19  ;;  %v7856_v21 = vld [vmem:[#allocation106_spill] sm:$0xff]  ;;  %v7857_v19 = vld [vmem:[#allocation107_spill] sm:$0xff] }
 0x8ab   :  { %2796 = vmatpush.msrb.mxu2 %v6157_v31  ;;  %2816 = vmatpush.msrb.mxu3 %v6160_v18  ;;  %v7858_v31 = vld [vmem:[#allocation108_spill] sm:$0xff]  ;;  %v7859_v18 = vld [vmem:[#allocation109_spill] sm:$0xff] }
 0x8ac   :  { %2757 = vmatpush.msrb.mxu0 %v6163_v3  ;;  %2777 = vmatpush.msrb.mxu1 %v6166_v35  ;;  %v7860_v3 = vld [vmem:[#allocation41_spill] sm:$0xff]  ;;  %v7861_v35 = vld [vmem:[#allocation42_spill] sm:$0xff] }
 0x8ad   :  { %2797 = vmatpush.msrb.mxu2 %v6169_v39  ;;  %2817 = vmatpush.msrb.mxu3 %v6254_v38  ;;  %v7862_v39 = vld [vmem:[#allocation7_spill] sm:$0xff] }
 0x8ae   :  { %2758 = vmatpush.msrb.mxu0 %v6257_v51  ;;  %2778 = vmatpush.msrb.mxu1 %v6260_v27 }
 0x8af   :  { %2798 = vmatpush.msrb.mxu2 %v6263_v32  ;;  %2818 = vmatpush.msrb.mxu3 %v6266_v45 }
 0x8b0   :  { %2759 = vmatpush.msrb.mxu0 %v6269_v6  ;;  %2779 = vmatpush.msrb.mxu1 %v6272_v37 }
 0x8b1   :  { %2799 = vmatpush.msrb.mxu2 %v6275_v33  ;;  %2819 = vmatpush.msrb.mxu3 %v6278_v30 }
 0x8b2   :  { %2760 = vmatpush.msrb.mxu0 %v6281_v13  ;;  %2780 = vmatpush.msrb.mxu1 %v6284_v54 }
 0x8b3   :  { %2800 = vmatpush.msrb.mxu2 %v6287_v40  ;;  %2820 = vmatpush.msrb.mxu3 %v6290_v44 }
 0x8b4   :  { %2761 = vmatpush.msrb.mxu0 %v6293_v28  ;;  %2781 = vmatpush.msrb.mxu1 %v6296_v0 }
 0x8b5   :  { %2801 = vmatpush.msrb.mxu2 %v6299_v50  ;;  %2821 = vmatpush.msrb.mxu3 %v6302_v8 }
 0x8b6   :  { %2762 = vmatpush.msrb.mxu0 %v6305_v10  ;;  %2782 = vmatpush.msrb.mxu1 %v6308_v53 }
 0x8b7   :  { %2802 = vmatpush.msrb.mxu2 %v6311_v5  ;;  %2822 = vmatpush.msrb.mxu3 %v6314_v43 }
 0x8b8   :  { %2763 = vmatpush.msrb.mxu0 %v6317_v1  ;;  %2783 = vmatpush.msrb.mxu1 %v7848_v12 }
 0x8b9   :  { %2803 = vmatpush.msrb.mxu2 %v7849_v42  ;;  %2823 = vmatpush.msrb.mxu3 %v7850_v36 }
 0x8ba   :  { %2764 = vmatpush.msrb.mxu0 %v7851_v17  ;;  %2784 = vmatpush.msrb.mxu1 %v7852_v34 }
 0x8bb   :  { %2804 = vmatpush.msrb.mxu2 %v7853_v49  ;;  %2824 = vmatpush.msrb.mxu3 %v7854_v62 }
 0x8bc   :  { %2765 = vmatpush.msrb.mxu0 %v7855_v15  ;;  %2785 = vmatpush.msrb.mxu1 %v7856_v21 }
 0x8bd   :  { %2805 = vmatpush.msrb.mxu2 %v7857_v19  ;;  %2825 = vmatpush.msrb.mxu3 %v7858_v31 }
 0x8be   :  { %2766 = vmatpush.msrb.mxu0 %v7859_v18  ;;  %2786 = vmatpush.msrb.mxu1 %v7860_v3 }
 0x8bf   :  { %2806 = vmatpush.msrb.mxu2 %v7861_v35  ;;  %2826 = vmatpush.msrb.mxu3 %v7862_v39 }
 0x8c0   :  { %2767 = vmatpush.msrb.mxu0 %v7863_v58  ;;  %2787 = vmatpush.msrb.mxu1 %v7864_v24 }
 0x8c1   :  { %2807 = vmatpush.msrb.mxu2 %v7865_v25  ;;  %2827 = vmatpush.msrb.mxu3 %v7866_v60 }
 0x8c2   :  { %2768 = vmatpush.msrb.mxu0 %v7867_v20  ;;  %2788 = vmatpush.msrb.mxu1 %v7868_v46 }
 0x8c3   :  { %2808 = vmatpush.msrb.mxu2 %v7869_v59  ;;  %2828 = vmatpush.msrb.mxu3 %v7870_v57 }
 0x8c4   :  { %2769 = vmatpush.msrb.mxu0 %v7871_v14  ;;  %2789 = vmatpush.msrb.mxu1 %v7872_v26  ;;  %v7880_v14 = vld [vmem:[#allocation68_spill] sm:$0xff] }
 0x8c5   :  { %2809 = vmatpush.msrb.mxu2 %v7873_v9  ;;  %2829 = vmatpush.msrb.mxu3 %v7874_v55  ;;  %v351_v26 = vadd.f32 %v7880_v14, %v7879_v22 }
 0x921   :  { %v2463_v16 = vpop.f32.mrf.mxu0  ;;  %v2483_v4 = vpop.f32.mrf.mxu1 }
 0x922   :  { %v2464_v23 = vadd.f32 %v2463_v16, %v197_v11  ;;  %v2484_v7 = vadd.f32 %v2483_v4, %v274_v41  ;;  %v7881_v41 = vld [vmem:[#allocation98_spill] sm:$0xff]  ;;  %v7882_v16 = vld [vmem:[#allocation69_spill] sm:$0xff] }
 0x923   :  { %v428_v4 = vadd.f32 %v7882_v16, %v7881_v41 }
 0x924   :  { %v3813_v48 = vmul.f32 -1.442695, %v2464_v23  ;;  %v3814_v63 = vmul.f32 -1.442695, %v2484_v7 }
 0x926   :  { %4061 = vpow2.f32 %v3813_v48 }
 0x927   :  { %4063 = vpow2.f32 %v3814_v63 }
 0x928   :  { %v2503_v9 = vpop.f32.mrf.mxu2  ;;  %v2523_v61 = vpop.f32.mrf.mxu3 }
 0x929   :  { %v2504_v57 = vadd.f32 %v2503_v9, %v351_v26  ;;  %v2524_v48 = vadd.f32 %v2523_v61, %v428_v4 }
 0x92b   :  { %v3815_v55 = vmul.f32 -1.442695, %v2504_v57 }
 0x92c   :  { %v4062_v59 = vpop.eup %4061 }
 0x92d   :  { %v4064_v46 = vpop.eup %4063  ;;  %v2535_v56 = vadd.f32 1.0, %v4062_v59  ;;  %4065 = vpow2.f32 %v3815_v55 }
 0x92e   :  { %v2536_v47 = vadd.f32 1.0, %v4064_v46 }
 0x92f   :  { %4067 = vrcp.f32 %v2535_v56  ;;  %v2549_v22 = vand.u32 2147483648, %v2535_v56  ;;  %v2547_v55 = vand.u32 2147483647, %v2535_v56  ;;  %vm2543_vm3 = vweird.f32 %v2535_v56 }
 0x930   :  { %4069 = vrcp.f32 %v2536_v47  ;;  %v2564_v59 = vand.u32 2147483648, %v2536_v47  ;;  %v2562_v20 = vand.u32 2147483647, %v2536_v47  ;;  %vm2558_vm4 = vweird.f32 %v2536_v47 }
 0x931   :  { %vm2548_vm7 = vcmp.eq.f32.partialorder %v2547_v55, 8.507059e+37  ;;  %v6592_v55 = vld [vmem:[#allocation4 + $0x1f8] sm:$0xff] }
 0x932   :  { %vm2563_vm8 = vcmp.eq.f32.partialorder %v2562_v20, 8.507059e+37 }
 0x933   :  { %v4066_v11 = vpop.eup %4065 }
 0x934   :  { %v2537_v23 = vadd.f32 1.0, %v4066_v11  ;;  %v2550_v11 = vor.u32 1.1754944e-38, %v2549_v22 }
 0x935   :  { %v4068_v7 = vpop.eup %4067 }
 0x936   :  { %v4070_v14 = vpop.eup %4069  ;;  %v2539_v63 = vmul.f32 %v4068_v7, %v2535_v56  ;;  %4071 = vrcp.f32 %v2537_v23  ;;  %vm2544_vm1 = vweird.f32 %v4068_v7  ;;  %v2579_v22 = vand.u32 2147483648, %v2537_v23 }
 0x937   :  { %v2554_v26 = vmul.f32 %v4070_v14, %v2536_v47  ;;  %4073 = vtanh.f32 %v2524_v48  ;;  %vm2559_vm2 = vweird.f32 %v4070_v14  ;;  %vm2545_vm5 = vmor %vm2543_vm3, %vm2544_vm1  ;;  %vm2573_vm10 = vweird.f32 %v2537_v23 }
 0x938   :  { %v2540_v57 = vsub.f32 1.0, %v2539_v63  ;;  %vm2560_vm6 = vmor %vm2558_vm4, %vm2559_vm2  ;;  %v2565_v63 = vor.u32 1.1754944e-38, %v2564_v59  ;;  %v2580_v59 = vor.u32 1.1754944e-38, %v2579_v22 }
 0x939   :  { %v2555_v9 = vsub.f32 1.0, %v2554_v26 }
 0x93a   :  { %v2541_v46 = vmul.f32 %v4068_v7, %v2540_v57 }
 0x93b   :  { %v2556_v29 = vmul.f32 %v4070_v14, %v2555_v9 }
 0x93c   :  { %v4072_v60 = vpop.eup %4071  ;;  %v2542_v16 = vadd.f32 %v4068_v7, %v2541_v46 }
 0x93d   :  { %v2569_v61 = vmul.f32 %v4072_v60, %v2537_v23  ;;  %v2557_v4 = vadd.f32 %v4070_v14, %v2556_v29  ;;  %v4074_v48 = vpop.eup %4073  ;;  %vm2574_vm9 = vweird.f32 %v4072_v60  ;;  %v2577_v29 = vand.u32 2147483647, %v2537_v23  ;;  %v6583_v23 = vld [vmem:[#allocation4 + $0x1e8] sm:$0xff] }
 0x93e   :  { %v2546_v26 = vsel %vm2545_vm5, %v4068_v7, %v2542_v16  ;;  %vm2575_vm11 = vmor %vm2573_vm10, %vm2574_vm9  ;;  %v6595_v16 = vld [vmem:[#allocation4 + $0x1c0] sm:$0xff] }
 0x93f   :  { %v2570_v41 = vsub.f32 1.0, %v2569_v61  ;;  %v2551_v57 = vsel %vm2548_vm7, %v2550_v11, %v2546_v26  ;;  %v2561_v25 = vsel %vm2560_vm6, %v4070_v14, %v2557_v4  ;;  %vm2578_vm12 = vcmp.eq.f32.partialorder %v2577_v29, 8.507059e+37  ;;  %v6589_v14 = vld [vmem:[#allocation4 + $0x1f0] sm:$0xff]  ;;  %v6598_v61 = vld [vmem:[#allocation4 + $0x1c8] sm:$0xff]  ;;  %v6607_v4 = vld [vmem:[#allocation4 + $0x1a0] sm:$0xff] }
 0x940   :  { %v2566_v9 = vsel %vm2563_vm8, %v2565_v63, %v2561_v25  ;;  %v2585_v24 = vmul.f32 %v4074_v48, %v2551_v57  ;;  %v3861_v25 = vld [vmem:[%s7147_s4 + $0xc] ss:$0 sm:$0xff]  ;;  %v6601_v11 = vld [vmem:[#allocation4 + $0x1d0] sm:$0xff]  ;;  %v6616_v48 = vld [vmem:[#allocation4 + $0x1b8] sm:$0xff] }
 0x941   :  { %v2571_v58 = vmul.f32 %v4072_v60, %v2570_v41  ;;  %v2584_v46 = vmul.f32 %v2566_v9, %v6492_v52  ;;  %v6610_v63 = vld [vmem:[#allocation4 + $0x1a8] sm:$0xff]  ;;  %v6613_v26 = vld [vmem:[#allocation4 + $0x1b0] sm:$0xff]  ;;  %v6619_v57 = vld [vmem:[#allocation4 + $0x180] sm:$0xff] }
 0x942   :  { %v6622_v9 = vld [vmem:[#allocation4 + $0x188] sm:$0xff] }
 0x943   :  { %v6574_v56 = vadd.f32 %v2585_v24, %v2584_v46  ;;  %v2572_v47 = vadd.f32 %v4072_v60, %v2571_v58  ;;  %v6580_v58 = vld [vmem:[#allocation4 + $0x1e0] sm:$0xff]  ;;  %v6625_v46 = vld [vmem:[#allocation4 + $0x190] sm:$0xff] }
 0x945   :  { %4075 = vtanh.f32 %v6574_v56  ;;  %v2576_v7 = vsel %vm2575_vm11, %v4072_v60, %v2572_v47  ;;  %v7902_v47 = vld [vmem:[#allocation73_spill] sm:$0xff] }
 0x946   :  { %v2581_v41 = vsel %vm2578_vm12, %v2580_v59, %v2576_v7 }
 0x94b   :  { %v4076_v20 = vpop.eup %4075 }
 0x94c   :  { %v2588_v52 = vmul.f32 %v4076_v20, %v2581_v41 }
 0x94e   :  { %2616 = vmatmul.f32.vlgmr.msra.gmra.mxu0 %v2588_v52  ;;  %2636 = vmatmul.f32.vlgmr.msra.gmra.mxu1 %v2588_v52  ;;  %v2594_v24 = vmul.f32 %v3861_v25, %v2588_v52 }
 0x94f   :  { %2656 = vmatmul.f32.vlgmr.msra.gmra.mxu2 %v2588_v52  ;;  %2676 = vmatmul.f32.vlgmr.msra.gmra.mxu3 %v2588_v52 }
 0x950   :  { %2908 = vmatpush.msra.mxu0 %v6580_v58  ;;  %2928 = vmatpush.msra.mxu1 %v6583_v23  ;;  %v6587_v60 = vadd.f32 %v2594_v24, %v6501_v2  ;;  %v6604_v2 = vld [vmem:[#allocation4 + $0x1d8] sm:$0xff] }
 0x951   :  { %2948 = vmatpush.msra.mxu2 %v6589_v14  ;;  %2968 = vmatpush.msra.mxu3 %v6592_v55 }
 0x952   :  { %2909 = vmatpush.msra.mxu0 %v6595_v16  ;;  %2929 = vmatpush.msra.mxu1 %v6598_v61 }
 0x953   :  { %2949 = vmatpush.msra.mxu2 %v6601_v11  ;;  %2969 = vmatpush.msra.mxu3 %v6604_v2 }
 0x954   :  { %2910 = vmatpush.msra.mxu0 %v6607_v4  ;;  %2930 = vmatpush.msra.mxu1 %v6610_v63 }
 0x955   :  { %2950 = vmatpush.msra.mxu2 %v6613_v26  ;;  %2970 = vmatpush.msra.mxu3 %v6616_v48 }
 0x956   :  { %2911 = vmatpush.msra.mxu0 %v6619_v57  ;;  %2931 = vmatpush.msra.mxu1 %v6622_v9 }
 0x957   :  { %2951 = vmatpush.msra.mxu2 %v6625_v46  ;;  %2971 = vmatpush.msra.mxu3 %v6254_v38  ;;  %v7883_v38 = vld [vmem:[#allocation8_spill] sm:$0xff] }
 0x958   :  { %2912 = vmatpush.msra.mxu0 %v6257_v51  ;;  %2932 = vmatpush.msra.mxu1 %v6260_v27  ;;  %v7884_v51 = vld [vmem:[#allocation43_spill] sm:$0xff]  ;;  %v7885_v27 = vld [vmem:[#allocation44_spill] sm:$0xff] }
 0x959   :  { %2952 = vmatpush.msra.mxu2 %v6263_v32  ;;  %2972 = vmatpush.msra.mxu3 %v6266_v45  ;;  %v7886_v32 = vld [vmem:[#allocation45_spill] sm:$0xff]  ;;  %v7887_v45 = vld [vmem:[#allocation46_spill] sm:$0xff] }
 0x95a   :  { %2913 = vmatpush.msra.mxu0 %v6269_v6  ;;  %2933 = vmatpush.msra.mxu1 %v6272_v37  ;;  %v7888_v6 = vld [vmem:[#allocation47_spill] sm:$0xff]  ;;  %v7889_v37 = vld [vmem:[#allocation48_spill] sm:$0xff] }
 0x95b   :  { %2953 = vmatpush.msra.mxu2 %v6275_v33  ;;  %2973 = vmatpush.msra.mxu3 %v6278_v30  ;;  %v7890_v33 = vld [vmem:[#allocation49_spill] sm:$0xff]  ;;  %v7891_v30 = vld [vmem:[#allocation50_spill] sm:$0xff] }
 0x95c   :  { %2914 = vmatpush.msra.mxu0 %v6281_v13  ;;  %2934 = vmatpush.msra.mxu1 %v6284_v54  ;;  %v7892_v13 = vld [vmem:[#allocation29_spill] sm:$0xff]  ;;  %v7893_v54 = vld [vmem:[#allocation30_spill] sm:$0xff] }
 0x95d   :  { %2954 = vmatpush.msra.mxu2 %v6287_v40  ;;  %2974 = vmatpush.msra.mxu3 %v6290_v44  ;;  %v7894_v40 = vld [vmem:[#allocation31_spill] sm:$0xff] }
 0x95e   :  { %2915 = vmatpush.msra.mxu0 %v6293_v28  ;;  %2935 = vmatpush.msra.mxu1 %v6296_v0  ;;  %v7895_v44 = vld [vmem:[#allocation95_spill] sm:$0xff]  ;;  %v7896_v28 = vld [vmem:[#allocation70_spill] sm:$0xff] }
 0x95f   :  { %2955 = vmatpush.msra.mxu2 %v6299_v50  ;;  %2975 = vmatpush.msra.mxu3 %v6302_v8  ;;  %v200_v0 = vadd.f32 %v7896_v28, %v7895_v44  ;;  %v7897_v50 = vld [vmem:[#allocation96_spill] sm:$0xff]  ;;  %v7898_v8 = vld [vmem:[#allocation71_spill] sm:$0xff] }
 0x960   :  { %2916 = vmatpush.msra.mxu0 %v6305_v10  ;;  %2936 = vmatpush.msra.mxu1 %v6308_v53  ;;  %v277_v10 = vadd.f32 %v7898_v8, %v7897_v50 }
 0x961   :  { %2956 = vmatpush.msra.mxu2 %v6311_v5  ;;  %2976 = vmatpush.msra.mxu3 %v6314_v43 }
 0x962   :  { %2917 = vmatpush.msra.mxu0 %v6317_v1  ;;  %2937 = vmatpush.msra.mxu1 %v7848_v12 }
 0x963   :  { %2957 = vmatpush.msra.mxu2 %v7849_v42  ;;  %2977 = vmatpush.msra.mxu3 %v7850_v36  ;;  %v7899_v36 = vld [vmem:[#allocation19_spill] sm:$0xff] }
 0x964   :  { %2918 = vmatpush.msra.mxu0 %v7851_v17  ;;  %2938 = vmatpush.msra.mxu1 %v7852_v34  ;;  %v7900_v17 = vld [vmem:[#allocation72_spill] sm:$0xff] }
 0x965   :  { %2958 = vmatpush.msra.mxu2 %v7853_v49  ;;  %2978 = vmatpush.msra.mxu3 %v7854_v62  ;;  %v354_v34 = vadd.f32 %v7900_v17, %v7899_v36 }
 0x966   :  { %2919 = vmatpush.msra.mxu0 %v7855_v15  ;;  %2939 = vmatpush.msra.mxu1 %v7856_v21 }
 0x967   :  { %2959 = vmatpush.msra.mxu2 %v7857_v19  ;;  %2979 = vmatpush.msra.mxu3 %v7858_v31 }
 0x968   :  { %2920 = vmatpush.msra.mxu0 %v7859_v18  ;;  %2940 = vmatpush.msra.mxu1 %v7860_v3 }
 0x969   :  { %2960 = vmatpush.msra.mxu2 %v7861_v35  ;;  %2980 = vmatpush.msra.mxu3 %v7862_v39  ;;  %v7901_v39 = vld [vmem:[#allocation98_spill] sm:$0xff] }
 0x96a   :  { %2921 = vmatpush.msra.mxu0 %v7883_v38  ;;  %2941 = vmatpush.msra.mxu1 %v7884_v51  ;;  %v431_v22 = vadd.f32 %v7902_v47, %v7901_v39  ;;  %v6716_v47 = vld [vmem:[#allocation4 + $0x168] sm:$0xff] }
 0x96b   :  { %2961 = vmatpush.msra.mxu2 %v7885_v27  ;;  %2981 = vmatpush.msra.mxu3 %v7886_v32 }
 0x96c   :  { %2922 = vmatpush.msra.mxu0 %v7887_v45  ;;  %2942 = vmatpush.msra.mxu1 %v7888_v6 }
 0x96d   :  { %2962 = vmatpush.msra.mxu2 %v7889_v37  ;;  %2982 = vmatpush.msra.mxu3 %v7890_v33 }
 0x96e   :  { %2923 = vmatpush.msra.mxu0 %v7891_v30  ;;  %2943 = vmatpush.msra.mxu1 %v7892_v13 }
 0x96f   :  { %2963 = vmatpush.msra.mxu2 %v7893_v54  ;;  %2983 = vmatpush.msra.mxu3 %v7894_v40 }
 0x9cb   :  { %v2617_v53 = vpop.f32.mrf.mxu0  ;;  %v2637_v5 = vpop.f32.mrf.mxu1 }
 0x9cc   :  { %v2618_v43 = vadd.f32 %v2617_v53, %v200_v0  ;;  %v2638_v1 = vadd.f32 %v2637_v5, %v277_v10 }
 0x9ce   :  { %v3817_v12 = vmul.f32 -1.442695, %v2618_v43  ;;  %v3818_v42 = vmul.f32 -1.442695, %v2638_v1 }
 0x9d0   :  { %4077 = vpow2.f32 %v3817_v12 }
 0x9d1   :  { %4079 = vpow2.f32 %v3818_v42 }
 0x9d2   :  { %v2657_v49 = vpop.f32.mrf.mxu2  ;;  %v2677_v3 = vpop.f32.mrf.mxu3 }
 0x9d3   :  { %v2658_v62 = vadd.f32 %v2657_v49, %v354_v34  ;;  %v2678_v59 = vadd.f32 %v2677_v3, %v431_v22  ;;  %v6719_v22 = vld [vmem:[#allocation4 + $0x170] sm:$0xff] }
 0x9d5   :  { %v3819_v15 = vmul.f32 -1.442695, %v2658_v62 }
 0x9d6   :  { %v4078_v21 = vpop.eup %4077 }
 0x9d7   :  { %v4080_v19 = vpop.eup %4079  ;;  %v2689_v31 = vadd.f32 1.0, %v4078_v21  ;;  %4081 = vpow2.f32 %v3819_v15  ;;  %v3862_v21 = vld [vmem:[%s7147_s4 + $0xd] ss:$0 sm:$0xff] }
 0x9d8   :  { %v2690_v18 = vadd.f32 1.0, %v4080_v19 }
 0x9d9   :  { %4083 = vrcp.f32 %v2689_v31  ;;  %v2703_v38 = vand.u32 2147483648, %v2689_v31  ;;  %v2701_v32 = vand.u32 2147483647, %v2689_v31  ;;  %vm2697_vm15 = vweird.f32 %v2689_v31 }
 0x9da   :  { %4085 = vrcp.f32 %v2690_v18  ;;  %v2718_v51 = vand.u32 2147483648, %v2690_v18  ;;  %v2716_v6 = vand.u32 2147483647, %v2690_v18  ;;  %vm2712_vm0 = vweird.f32 %v2690_v18 }
 0x9db   :  { %v2704_v13 = vor.u32 1.1754944e-38, %v2703_v38  ;;  %vm2702_vm3 = vcmp.eq.f32.partialorder %v2701_v32, 8.507059e+37  ;;  %v6746_v38 = vld [vmem:[#allocation4 + $0x138] sm:$0xff]  ;;  %v6755_v32 = vld [vmem:[#allocation4 + $0x110] sm:$0xff] }
 0x9dc   :  { %v2719_v40 = vor.u32 1.1754944e-38, %v2718_v51  ;;  %vm2717_vm4 = vcmp.eq.f32.partialorder %v2716_v6, 8.507059e+37  ;;  %v6749_v51 = vld [vmem:[#allocation4 + $0x100] sm:$0xff] }
 0x9dd   :  { %v4082_v35 = vpop.eup %4081  ;;  %v6761_v6 = vld [vmem:[#allocation4 + $0xe0] sm:$0xff] }
 0x9de   :  { %v2691_v29 = vadd.f32 1.0, %v4082_v35  ;;  %v6713_v35 = vld [vmem:[#allocation4 + $0x160] sm:$0xff] }
 0x9df   :  { %v4084_v7 = vpop.eup %4083 }
 0x9e0   :  { %v4086_v25 = vpop.eup %4085  ;;  %v2693_v20 = vmul.f32 %v4084_v7, %v2689_v31  ;;  %4087 = vrcp.f32 %v2691_v29  ;;  %vm2698_vm13 = vweird.f32 %v4084_v7  ;;  %v2733_v34 = vand.u32 2147483648, %v2691_v29 }
 0x9e1   :  { %v2708_v41 = vmul.f32 %v4086_v25, %v2690_v18  ;;  %4089 = vtanh.f32 %v2678_v59  ;;  %vm2713_vm14 = vweird.f32 %v4086_v25  ;;  %vm2699_vm1 = vmor %vm2697_vm15, %vm2698_vm13  ;;  %vm2727_vm6 = vweird.f32 %v2691_v29  ;;  %v6728_v59 = vld [vmem:[#allocation4 + $0x148] sm:$0xff] }
 0x9e2   :  { %v2694_v52 = vsub.f32 1.0, %v2693_v20  ;;  %vm2714_vm2 = vmor %vm2712_vm0, %vm2713_vm14  ;;  %v2731_v49 = vand.u32 2147483647, %v2691_v29  ;;  %v2734_v15 = vor.u32 1.1754944e-38, %v2733_v34  ;;  %v6734_v20 = vld [vmem:[#allocation4 + $0x158] sm:$0xff]  ;;  %v6812_v34 = vld [vmem:[#allocation4 + $0x68] sm:$0xff] }
 0x9e3   :  { %v2709_v24 = vsub.f32 1.0, %v2708_v41  ;;  %v6737_v41 = vld [vmem:[#allocation4 + $0x120] sm:$0xff]  ;;  %7915 = vst [vmem:[#allocation51_spill] sm:$0xff] %v6812_v34 }
 0x9e4   :  { %v2695_v27 = vmul.f32 %v4084_v7, %v2694_v52  ;;  %vm2732_vm8 = vcmp.eq.f32.partialorder %v2731_v49, 8.507059e+37  ;;  %v6740_v52 = vld [vmem:[#allocation4 + $0x128] sm:$0xff]  ;;  %v6815_v49 = vld [vmem:[#allocation4 + $0x70] sm:$0xff] }
 0x9e5   :  { %v2710_v45 = vmul.f32 %v4086_v25, %v2709_v24  ;;  %v6743_v24 = vld [vmem:[#allocation4 + $0x130] sm:$0xff]  ;;  %7916 = vst [vmem:[#allocation52_spill] sm:$0xff] %v6815_v49 }
 0x9e6   :  { %v4088_v37 = vpop.eup %4087  ;;  %v2696_v33 = vadd.f32 %v4084_v7, %v2695_v27  ;;  %v6752_v27 = vld [vmem:[#allocation4 + $0x108] sm:$0xff] }
 0x9e7   :  { %v2723_v30 = vmul.f32 %v4088_v37, %v2691_v29  ;;  %v2711_v54 = vadd.f32 %v4086_v25, %v2710_v45  ;;  %v4090_v0 = vpop.eup %4089  ;;  %vm2728_vm5 = vweird.f32 %v4088_v37  ;;  %v6722_v29 = vld [vmem:[#allocation4 + $0x178] sm:$0xff] }
 0x9e8   :  { %v2700_v28 = vsel %vm2699_vm1, %v4084_v7, %v2696_v33  ;;  %vm2729_vm7 = vmor %vm2727_vm6, %vm2728_vm5  ;;  %v6725_v7 = vld [vmem:[#allocation4 + $0x140] sm:$0xff]  ;;  %v6758_v45 = vld [vmem:[#allocation4 + $0x118] sm:$0xff] }
 0x9e9   :  { %v2724_v8 = vsub.f32 1.0, %v2723_v30  ;;  %v2705_v10 = vsel %vm2702_vm3, %v2704_v13, %v2700_v28  ;;  %v2715_v53 = vsel %vm2714_vm2, %v4086_v25, %v2711_v54  ;;  %v6731_v25 = vld [vmem:[#allocation4 + $0x150] sm:$0xff]  ;;  %v6770_v30 = vld [vmem:[#allocation4 + $0xf8] sm:$0xff]  ;;  %v6773_v13 = vld [vmem:[#allocation4 + $0xc0] sm:$0xff] }
 0x9ea   :  { %v2720_v5 = vsel %vm2717_vm4, %v2719_v40, %v2715_v53  ;;  %v2739_v43 = vmul.f32 %v4090_v0, %v2705_v10  ;;  %v6767_v33 = vld [vmem:[#allocation4 + $0xf0] sm:$0xff]  ;;  %v6776_v54 = vld [vmem:[#allocation4 + $0xc8] sm:$0xff]  ;;  %v6782_v28 = vld [vmem:[#allocation4 + $0xd8] sm:$0xff] }
 0x9eb   :  { %v2725_v1 = vmul.f32 %v4088_v37, %v2724_v8  ;;  %v2738_v12 = vmul.f32 %v2720_v5, %v6574_v56  ;;  %7903 = vst [vmem:[#allocation32_spill] sm:$0xff] %v6776_v54  ;;  %v6779_v40 = vld [vmem:[#allocation4 + $0xd0] sm:$0xff]  ;;  %v6785_v0 = vld [vmem:[#allocation4 + $0xa0] sm:$0xff]  ;;  %v6788_v8 = vld [vmem:[#allocation4 + $0xa8] sm:$0xff] }
 0x9ec   :  { %7904 = vst [vmem:[#allocation33_spill] sm:$0xff] %v6779_v40  ;;  %v6791_v10 = vld [vmem:[#allocation4 + $0xb0] sm:$0xff]  ;;  %v6794_v53 = vld [vmem:[#allocation4 + $0xb8] sm:$0xff]  ;;  %v6797_v5 = vld [vmem:[#allocation4 + $0x80] sm:$0xff] }
 0x9ed   :  { %v6686_v42 = vadd.f32 %v2739_v43, %v2738_v12  ;;  %v2726_v17 = vadd.f32 %v4088_v37, %v2725_v1  ;;  %7905 = vst [vmem:[#allocation34_spill] sm:$0xff] %v6782_v28  ;;  %v6800_v43 = vld [vmem:[#allocation4 + $0x88] sm:$0xff]  ;;  %v6803_v1 = vld [vmem:[#allocation4 + $0x90] sm:$0xff]  ;;  %v6806_v12 = vld [vmem:[#allocation4 + $0x98] sm:$0xff] }
 0x9ee   :  { %7906 = vst [vmem:[#allocation35_spill] sm:$0xff] %v6785_v0 }
 0x9ef   :  { %4091 = vtanh.f32 %v6686_v42  ;;  %v2730_v62 = vsel %vm2729_vm7, %v4088_v37, %v2726_v17  ;;  %v6764_v37 = vld [vmem:[#allocation4 + $0xe8] sm:$0xff]  ;;  %7907 = vst [vmem:[#allocation36_spill] sm:$0xff] %v6788_v8  ;;  %v6809_v17 = vld [vmem:[#allocation4 + $0x60] sm:$0xff] }
 0x9f0   :  { %v2735_v31 = vsel %vm2732_vm8, %v2734_v15, %v2730_v62  ;;  %7908 = vst [vmem:[#allocation24_spill] sm:$0xff] %v6791_v10  ;;  %v6818_v62 = vld [vmem:[#allocation4 + $0x78] sm:$0xff]  ;;  %v6821_v15 = vld [vmem:[#allocation4 + $0x40] sm:$0xff] }
 0x9f1   :  { %7909 = vst [vmem:[#allocation10_spill] sm:$0xff] %v6794_v53 }
 0x9f2   :  { %7910 = vst [vmem:[#allocation11_spill] sm:$0xff] %v6797_v5 }
 0x9f3   :  { %7911 = vst [vmem:[#allocation15_spill] sm:$0xff] %v6800_v43 }
 0x9f4   :  { %7912 = vst [vmem:[#allocation12_spill] sm:$0xff] %v6803_v1 }
 0x9f5   :  { %v4092_v19 = vpop.eup %4091  ;;  %7913 = vst [vmem:[#allocation13_spill] sm:$0xff] %v6806_v12 }
 0x9f6   :  { %v2742_v56 = vmul.f32 %v4092_v19, %v2735_v31  ;;  %7914 = vst [vmem:[#allocation14_spill] sm:$0xff] %v6809_v17  ;;  %v6827_v19 = vld [vmem:[#allocation4 + $0x50] sm:$0xff]  ;;  %v6830_v31 = vld [vmem:[#allocation4 + $0x58] sm:$0xff] }
 0x9f7   :  { %7917 = vst [vmem:[#allocation9_spill] sm:$0xff] %v6818_v62 }
 0x9f8   :  { %2770 = vmatmul.f32.vlgmr.msrb.gmra.mxu0 %v2742_v56  ;;  %2790 = vmatmul.f32.vlgmr.msrb.gmra.mxu1 %v2742_v56  ;;  %v2748_v18 = vmul.f32 %v3862_v21, %v2742_v56  ;;  %7918 = vst [vmem:[#allocation53_spill] sm:$0xff] %v6821_v15  ;;  %v6824_v21 = vld [vmem:[#allocation4 + $0x48] sm:$0xff] }
 0x9f9   :  { %2810 = vmatmul.f32.vlgmr.msrb.gmra.mxu2 %v2742_v56  ;;  %2830 = vmatmul.f32.vlgmr.msrb.gmra.mxu3 %v2742_v56  ;;  %7919 = vst [vmem:[#allocation21_spill] sm:$0xff] %v6824_v21  ;;  %v6833_v56 = vld [vmem:[#allocation4 + $0x20] sm:$0xff] }
 0x9fa   :  { %3062 = vmatpush.msrb.mxu0 %v6580_v58  ;;  %3082 = vmatpush.msrb.mxu1 %v6583_v23  ;;  %v6695_v3 = vadd.f32 %v2748_v18, %v6587_v60  ;;  %v6710_v60 = vld [vmem:[#allocation4 + $0x198] sm:$0xff]  ;;  %7920 = vst [vmem:[#allocation16_spill] sm:$0xff] %v6827_v19  ;;  %v6836_v18 = vld [vmem:[#allocation4 + $0x28] sm:$0xff] }
 0x9fb   :  { %3102 = vmatpush.msrb.mxu2 %v6589_v14  ;;  %3122 = vmatpush.msrb.mxu3 %v6592_v55  ;;  %7921 = vst [vmem:[#allocation17_spill] sm:$0xff] %v6830_v31 }
 0x9fc   :  { %3063 = vmatpush.msrb.mxu0 %v6595_v16  ;;  %3083 = vmatpush.msrb.mxu1 %v6598_v61  ;;  %7922 = vst [vmem:[#allocation20_spill] sm:$0xff] %v6833_v56 }
 0x9fd   :  { %3103 = vmatpush.msrb.mxu2 %v6601_v11  ;;  %3123 = vmatpush.msrb.mxu3 %v6604_v2  ;;  %7923 = vst [vmem:[#allocation22_spill] sm:$0xff] %v6836_v18 }
 0x9fe   :  { %3064 = vmatpush.msrb.mxu0 %v6607_v4  ;;  %3084 = vmatpush.msrb.mxu1 %v6610_v63 }
 0x9ff   :  { %3104 = vmatpush.msrb.mxu2 %v6613_v26  ;;  %3124 = vmatpush.msrb.mxu3 %v6616_v48 }
 0xa00   :  { %3065 = vmatpush.msrb.mxu0 %v6619_v57  ;;  %3085 = vmatpush.msrb.mxu1 %v6622_v9 }
 0xa01   :  { %3105 = vmatpush.msrb.mxu2 %v6625_v46  ;;  %3125 = vmatpush.msrb.mxu3 %v6710_v60 }
 0xa02   :  { %3066 = vmatpush.msrb.mxu0 %v6713_v35  ;;  %3086 = vmatpush.msrb.mxu1 %v6716_v47 }
 0xa03   :  { %3106 = vmatpush.msrb.mxu2 %v6719_v22  ;;  %3126 = vmatpush.msrb.mxu3 %v6722_v29 }
 0xa04   :  { %3067 = vmatpush.msrb.mxu0 %v6725_v7  ;;  %3087 = vmatpush.msrb.mxu1 %v6728_v59 }
 0xa05   :  { %3107 = vmatpush.msrb.mxu2 %v6731_v25  ;;  %3127 = vmatpush.msrb.mxu3 %v6734_v20 }
 0xa06   :  { %3068 = vmatpush.msrb.mxu0 %v6737_v41  ;;  %3088 = vmatpush.msrb.mxu1 %v6740_v52 }
 0xa07   :  { %3108 = vmatpush.msrb.mxu2 %v6743_v24  ;;  %3128 = vmatpush.msrb.mxu3 %v6746_v38 }
 0xa08   :  { %3069 = vmatpush.msrb.mxu0 %v6749_v51  ;;  %3089 = vmatpush.msrb.mxu1 %v6752_v27 }
 0xa09   :  { %3109 = vmatpush.msrb.mxu2 %v6755_v32  ;;  %3129 = vmatpush.msrb.mxu3 %v6758_v45 }
 0xa0a   :  { %3070 = vmatpush.msrb.mxu0 %v6761_v6  ;;  %3090 = vmatpush.msrb.mxu1 %v6764_v37 }
 0xa0b   :  { %3110 = vmatpush.msrb.mxu2 %v6767_v33  ;;  %3130 = vmatpush.msrb.mxu3 %v6770_v30 }
 0xa0c   :  { %3071 = vmatpush.msrb.mxu0 %v6773_v13  ;;  %3091 = vmatpush.msrb.mxu1 %v6776_v54 }
 0xa0d   :  { %3111 = vmatpush.msrb.mxu2 %v6779_v40  ;;  %3131 = vmatpush.msrb.mxu3 %v6782_v28 }
 0xa0e   :  { %3072 = vmatpush.msrb.mxu0 %v6785_v0  ;;  %3092 = vmatpush.msrb.mxu1 %v6788_v8 }
 0xa0f   :  { %3112 = vmatpush.msrb.mxu2 %v6791_v10  ;;  %3132 = vmatpush.msrb.mxu3 %v6794_v53 }
 0xa10   :  { %3073 = vmatpush.msrb.mxu0 %v6797_v5  ;;  %3093 = vmatpush.msrb.mxu1 %v6800_v43  ;;  %v7932_v43 = vld [vmem:[#allocation76_spill] sm:$0xff] }
 0xa11   :  { %3113 = vmatpush.msrb.mxu2 %v6803_v1  ;;  %3133 = vmatpush.msrb.mxu3 %v6806_v12 }
 0xa12   :  { %3074 = vmatpush.msrb.mxu0 %v6809_v17  ;;  %3094 = vmatpush.msrb.mxu1 %v6812_v34 }
 0xa13   :  { %3114 = vmatpush.msrb.mxu2 %v6815_v49  ;;  %3134 = vmatpush.msrb.mxu3 %v6818_v62 }
 0xa14   :  { %3075 = vmatpush.msrb.mxu0 %v6821_v15  ;;  %3095 = vmatpush.msrb.mxu1 %v6824_v21  ;;  %v6839_v15 = vld [vmem:[#allocation4 + $0x30] sm:$0xff]  ;;  %v6842_v21 = vld [vmem:[#allocation4 + $0x38] sm:$0xff] }
 0xa15   :  { %3115 = vmatpush.msrb.mxu2 %v6827_v19  ;;  %3135 = vmatpush.msrb.mxu3 %v6830_v31  ;;  %7924 = vst [vmem:[#allocation25_spill] sm:$0xff] %v6839_v15  ;;  %v6845_v19 = vld [vmem:[#allocation4] sm:$0xff]  ;;  %v6848_v31 = vld [vmem:[#allocation4 + $0x8] sm:$0xff] }
 0xa16   :  { %3076 = vmatpush.msrb.mxu0 %v6833_v56  ;;  %3096 = vmatpush.msrb.mxu1 %v6836_v18  ;;  %7925 = vst [vmem:[#allocation26_spill] sm:$0xff] %v6842_v21  ;;  %v6851_v56 = vld [vmem:[#allocation4 + $0x10] sm:$0xff]  ;;  %v6854_v18 = vld [vmem:[#allocation4 + $0x18] sm:$0xff] }
 0xa17   :  { %3116 = vmatpush.msrb.mxu2 %v6839_v15  ;;  %3136 = vmatpush.msrb.mxu3 %v6842_v21  ;;  %7926 = vst [vmem:[#allocation27_spill] sm:$0xff] %v6845_v19  ;;  %v7930_v15 = vld [vmem:[#allocation74_spill] sm:$0xff]  ;;  %v7931_v21 = vld [vmem:[#allocation75_spill] sm:$0xff] }
 0xa18   :  { %3077 = vmatpush.msrb.mxu0 %v6845_v19  ;;  %7927 = vst [vmem:[#allocation37_spill] sm:$0xff] %v6848_v31  ;;  %3097 = vmatpush.msrb.mxu1 %v6848_v31  ;;  %v203_v62 = vadd.f32 %v7930_v15, %v7895_v44  ;;  %v280_v49 = vadd.f32 %v7931_v21, %v7897_v50 }
 0xa19   :  { %7928 = vst [vmem:[#allocation38_spill] sm:$0xff] %v6851_v56  ;;  %3117 = vmatpush.msrb.mxu2 %v6851_v56  ;;  %3137 = vmatpush.msrb.mxu3 %v6854_v18  ;;  %v357_v56 = vadd.f32 %v7932_v43, %v7899_v36 }
 0xa1a   :  { %7929 = vst [vmem:[#allocation39_spill] sm:$0xff] %v6854_v18 }
 0xa75   :  { %v2771_v34 = vpop.f32.mrf.mxu0  ;;  %v2791_v19 = vpop.f32.mrf.mxu1 }
 0xa76   :  { %v2772_v17 = vadd.f32 %v2771_v34, %v203_v62  ;;  %v2792_v12 = vadd.f32 %v2791_v19, %v280_v49 }
 0xa78   :  { %v3821_v1 = vmul.f32 -1.442695, %v2772_v17  ;;  %v3822_v31 = vmul.f32 -1.442695, %v2792_v12  ;;  %v7933_v17 = vld [vmem:[#allocation77_spill] sm:$0xff] }
 0xa79   :  { %v434_v12 = vadd.f32 %v7933_v17, %v7901_v39 }
 0xa7a   :  { %4093 = vpow2.f32 %v3821_v1 }
 0xa7b   :  { %4095 = vpow2.f32 %v3822_v31 }
 0xa7c   :  { %v2811_v5 = vpop.f32.mrf.mxu2  ;;  %v2831_v21 = vpop.f32.mrf.mxu3 }
 0xa7d   :  { %v2812_v53 = vadd.f32 %v2811_v5, %v357_v56  ;;  %v2832_v62 = vadd.f32 %v2831_v21, %v434_v12 }
 0xa7f   :  { %v3823_v18 = vmul.f32 -1.442695, %v2812_v53 }
 0xa80   :  { %v4094_v10 = vpop.eup %4093 }
 0xa81   :  { %v4096_v8 = vpop.eup %4095  ;;  %v2843_v15 = vadd.f32 1.0, %v4094_v10  ;;  %4097 = vpow2.f32 %v3823_v18 }
 0xa82   :  { %v2844_v44 = vadd.f32 1.0, %v4096_v8 }
 0xa83   :  { %4099 = vrcp.f32 %v2843_v15  ;;  %v2857_v56 = vand.u32 2147483648, %v2843_v15  ;;  %v2855_v18 = vand.u32 2147483647, %v2843_v15  ;;  %vm2851_vm11 = vweird.f32 %v2843_v15 }
 0xa84   :  { %4101 = vrcp.f32 %v2844_v44  ;;  %v2872_v10 = vand.u32 2147483648, %v2844_v44  ;;  %v2870_v50 = vand.u32 2147483647, %v2844_v44  ;;  %vm2866_vm12 = vweird.f32 %v2844_v44 }
 0xa85   :  { %vm2856_vm15 = vcmp.eq.f32.partialorder %v2855_v18, 8.507059e+37  ;;  %v7938_v18 = vld [vmem:[#allocation36_spill] sm:$0xff] }
 0xa86   :  { %vm2871_vm0 = vcmp.eq.f32.partialorder %v2870_v50, 8.507059e+37  ;;  %v3863_v50 = vld [vmem:[%s7147_s4 + $0xe] ss:$0 sm:$0xff] }
 0xa87   :  { %v4098_v34 = vpop.eup %4097 }
 0xa88   :  { %v2845_v1 = vadd.f32 1.0, %v4098_v34  ;;  %v2858_v34 = vor.u32 1.1754944e-38, %v2857_v56 }
 0xa89   :  { %v4100_v49 = vpop.eup %4099 }
 0xa8a   :  { %v4102_v43 = vpop.eup %4101  ;;  %v2847_v19 = vmul.f32 %v4100_v49, %v2843_v15  ;;  %4103 = vrcp.f32 %v2845_v1  ;;  %vm2852_vm9 = vweird.f32 %v4100_v49  ;;  %v2887_v56 = vand.u32 2147483648, %v2845_v1 }
 0xa8b   :  { %v2862_v5 = vmul.f32 %v4102_v43, %v2844_v44  ;;  %4105 = vtanh.f32 %v2832_v62  ;;  %vm2867_vm10 = vweird.f32 %v4102_v43  ;;  %vm2853_vm13 = vmor %vm2851_vm11, %vm2852_vm9  ;;  %vm2881_vm2 = vweird.f32 %v2845_v1 }
 0xa8c   :  { %v2848_v53 = vsub.f32 1.0, %v2847_v19  ;;  %vm2868_vm14 = vmor %vm2866_vm12, %vm2867_vm10  ;;  %v2873_v19 = vor.u32 1.1754944e-38, %v2872_v10  ;;  %v2888_v10 = vor.u32 1.1754944e-38, %v2887_v56  ;;  %v7950_v56 = vld [vmem:[#allocation21_spill] sm:$0xff] }
 0xa8d   :  { %v2863_v31 = vsub.f32 1.0, %v2862_v5 }
 0xa8e   :  { %v2849_v8 = vmul.f32 %v4100_v49, %v2848_v53 }
 0xa8f   :  { %v2864_v36 = vmul.f32 %v4102_v43, %v2863_v31 }
 0xa90   :  { %v4104_v0 = vpop.eup %4103  ;;  %v2850_v17 = vadd.f32 %v4100_v49, %v2849_v8 }
 0xa91   :  { %v2877_v21 = vmul.f32 %v4104_v0, %v2845_v1  ;;  %v2865_v12 = vadd.f32 %v4102_v43, %v2864_v36  ;;  %v4106_v62 = vpop.eup %4105  ;;  %vm2882_vm1 = vweird.f32 %v4104_v0  ;;  %v2885_v36 = vand.u32 2147483647, %v2845_v1  ;;  %v7936_v1 = vld [vmem:[#allocation34_spill] sm:$0xff] }
 0xa92   :  { %v2854_v5 = vsel %vm2853_vm13, %v4100_v49, %v2850_v17  ;;  %vm2883_vm3 = vmor %vm2881_vm2, %vm2882_vm1  ;;  %v7939_v17 = vld [vmem:[#allocation24_spill] sm:$0xff] }
 0xa93   :  { %v2878_v39 = vsub.f32 1.0, %v2877_v21  ;;  %v2859_v53 = vsel %vm2856_vm15, %v2858_v34, %v2854_v5  ;;  %v2869_v28 = vsel %vm2868_vm14, %v4102_v43, %v2865_v12  ;;  %vm2886_vm4 = vcmp.eq.f32.partialorder %v2885_v36, 8.507059e+37  ;;  %v7937_v43 = vld [vmem:[#allocation35_spill] sm:$0xff]  ;;  %v7940_v21 = vld [vmem:[#allocation10_spill] sm:$0xff]  ;;  %v7944_v5 = vld [vmem:[#allocation13_spill] sm:$0xff] }
 0xa94   :  { %v2874_v31 = vsel %vm2871_vm0, %v2873_v19, %v2869_v28  ;;  %v2893_v40 = vmul.f32 %v4106_v62, %v2859_v53  ;;  %v7941_v34 = vld [vmem:[#allocation11_spill] sm:$0xff]  ;;  %v7943_v19 = vld [vmem:[#allocation12_spill] sm:$0xff]  ;;  %v7945_v62 = vld [vmem:[#allocation14_spill] sm:$0xff] }
 0xa95   :  { %v2879_v54 = vmul.f32 %v4104_v0, %v2878_v39  ;;  %v2892_v8 = vmul.f32 %v2874_v31, %v6686_v42  ;;  %v7942_v12 = vld [vmem:[#allocation15_spill] sm:$0xff]  ;;  %v7947_v31 = vld [vmem:[#allocation52_spill] sm:$0xff] }
 0xa96   :  { %v7946_v53 = vld [vmem:[#allocation51_spill] sm:$0xff]  ;;  %v7951_v36 = vld [vmem:[#allocation16_spill] sm:$0xff] }
 0xa97   :  { %v6866_v15 = vadd.f32 %v2893_v40, %v2892_v8  ;;  %v2880_v44 = vadd.f32 %v4104_v0, %v2879_v54  ;;  %v7948_v8 = vld [vmem:[#allocation9_spill] sm:$0xff] }
 0xa99   :  { %4107 = vtanh.f32 %v6866_v15  ;;  %v2884_v49 = vsel %vm2883_vm3, %v4104_v0, %v2880_v44  ;;  %v7935_v0 = vld [vmem:[#allocation33_spill] sm:$0xff] }
 0xa9a   :  { %v2889_v28 = vsel %vm2886_vm4, %v2888_v10, %v2884_v49  ;;  %v7949_v44 = vld [vmem:[#allocation53_spill] sm:$0xff]  ;;  %v7953_v10 = vld [vmem:[#allocation20_spill] sm:$0xff] }
 0xa9b   :  { %v7952_v49 = vld [vmem:[#allocation17_spill] sm:$0xff] }
 0xa9f   :  { %v4108_v39 = vpop.eup %4107 }
 0xaa0   :  { %v2896_v42 = vmul.f32 %v4108_v39, %v2889_v28  ;;  %v7955_v39 = vld [vmem:[#allocation25_spill] sm:$0xff]  ;;  %v7956_v28 = vld [vmem:[#allocation26_spill] sm:$0xff] }
 0xaa2   :  { %2924 = vmatmul.f32.vlgmr.msra.gmra.mxu0 %v2896_v42  ;;  %2944 = vmatmul.f32.vlgmr.msra.gmra.mxu1 %v2896_v42  ;;  %v2902_v40 = vmul.f32 %v3863_v50, %v2896_v42  ;;  %v7954_v50 = vld [vmem:[#allocation22_spill] sm:$0xff] }
 0xaa3   :  { %2964 = vmatmul.f32.vlgmr.msra.gmra.mxu2 %v2896_v42  ;;  %2984 = vmatmul.f32.vlgmr.msra.gmra.mxu3 %v2896_v42  ;;  %v7957_v42 = vld [vmem:[#allocation27_spill] sm:$0xff] }
 0xaa4   :  { %3216 = vmatpush.msra.mxu0 %v6580_v58  ;;  %3236 = vmatpush.msra.mxu1 %v6583_v23  ;;  %v6875_v54 = vadd.f32 %v2902_v40, %v6695_v3  ;;  %v7934_v3 = vld [vmem:[#allocation32_spill] sm:$0xff]  ;;  %v7958_v40 = vld [vmem:[#allocation37_spill] sm:$0xff] }
 0xaa5   :  { %3256 = vmatpush.msra.mxu2 %v6589_v14  ;;  %3276 = vmatpush.msra.mxu3 %v6592_v55 }
 0xaa6   :  { %3217 = vmatpush.msra.mxu0 %v6595_v16  ;;  %3237 = vmatpush.msra.mxu1 %v6598_v61 }
 0xaa7   :  { %3257 = vmatpush.msra.mxu2 %v6601_v11  ;;  %3277 = vmatpush.msra.mxu3 %v6604_v2 }
 0xaa8   :  { %3218 = vmatpush.msra.mxu0 %v6607_v4  ;;  %3238 = vmatpush.msra.mxu1 %v6610_v63 }
 0xaa9   :  { %3258 = vmatpush.msra.mxu2 %v6613_v26  ;;  %3278 = vmatpush.msra.mxu3 %v6616_v48 }
 0xaaa   :  { %3219 = vmatpush.msra.mxu0 %v6619_v57  ;;  %3239 = vmatpush.msra.mxu1 %v6622_v9 }
 0xaab   :  { %3259 = vmatpush.msra.mxu2 %v6625_v46  ;;  %3279 = vmatpush.msra.mxu3 %v6710_v60 }
 0xaac   :  { %3220 = vmatpush.msra.mxu0 %v6713_v35  ;;  %3240 = vmatpush.msra.mxu1 %v6716_v47 }
 0xaad   :  { %3260 = vmatpush.msra.mxu2 %v6719_v22  ;;  %3280 = vmatpush.msra.mxu3 %v6722_v29 }
 0xaae   :  { %3221 = vmatpush.msra.mxu0 %v6725_v7  ;;  %3241 = vmatpush.msra.mxu1 %v6728_v59 }
 0xaaf   :  { %3261 = vmatpush.msra.mxu2 %v6731_v25  ;;  %3281 = vmatpush.msra.mxu3 %v6734_v20 }
 0xab0   :  { %3222 = vmatpush.msra.mxu0 %v6737_v41  ;;  %3242 = vmatpush.msra.mxu1 %v6740_v52 }
 0xab1   :  { %3262 = vmatpush.msra.mxu2 %v6743_v24  ;;  %3282 = vmatpush.msra.mxu3 %v6746_v38 }
 0xab2   :  { %3223 = vmatpush.msra.mxu0 %v6749_v51  ;;  %3243 = vmatpush.msra.mxu1 %v6752_v27 }
 0xab3   :  { %3263 = vmatpush.msra.mxu2 %v6755_v32  ;;  %3283 = vmatpush.msra.mxu3 %v6758_v45 }
 0xab4   :  { %3224 = vmatpush.msra.mxu0 %v6761_v6  ;;  %3244 = vmatpush.msra.mxu1 %v6764_v37 }
 0xab5   :  { %3264 = vmatpush.msra.mxu2 %v6767_v33  ;;  %3284 = vmatpush.msra.mxu3 %v6770_v30 }
 0xab6   :  { %3225 = vmatpush.msra.mxu0 %v6773_v13  ;;  %3245 = vmatpush.msra.mxu1 %v7934_v3 }
 0xab7   :  { %3265 = vmatpush.msra.mxu2 %v7935_v0  ;;  %3285 = vmatpush.msra.mxu3 %v7936_v1 }
 0xab8   :  { %3226 = vmatpush.msra.mxu0 %v7937_v43  ;;  %3246 = vmatpush.msra.mxu1 %v7938_v18 }
 0xab9   :  { %3266 = vmatpush.msra.mxu2 %v7939_v17  ;;  %3286 = vmatpush.msra.mxu3 %v7940_v21 }
 0xaba   :  { %3227 = vmatpush.msra.mxu0 %v7941_v34  ;;  %3247 = vmatpush.msra.mxu1 %v7942_v12  ;;  %v7966_v12 = vld [vmem:[#allocation80_spill] sm:$0xff] }
 0xabb   :  { %3267 = vmatpush.msra.mxu2 %v7943_v19  ;;  %3287 = vmatpush.msra.mxu3 %v7944_v5 }
 0xabc   :  { %3228 = vmatpush.msra.mxu0 %v7945_v62  ;;  %3248 = vmatpush.msra.mxu1 %v7946_v53  ;;  %v7964_v53 = vld [vmem:[#allocation79_spill] sm:$0xff] }
 0xabd   :  { %3268 = vmatpush.msra.mxu2 %v7947_v31  ;;  %3288 = vmatpush.msra.mxu3 %v7948_v8  ;;  %v7959_v8 = vld [vmem:[#allocation38_spill] sm:$0xff] }
 0xabe   :  { %3229 = vmatpush.msra.mxu0 %v7949_v44  ;;  %3249 = vmatpush.msra.mxu1 %v7950_v56  ;;  %v7960_v44 = vld [vmem:[#allocation39_spill] sm:$0xff] }
 0xabf   :  { %3269 = vmatpush.msra.mxu2 %v7951_v36  ;;  %3289 = vmatpush.msra.mxu3 %v7952_v49  ;;  %v7961_v56 = vld [vmem:[#allocation95_spill] sm:$0xff]  ;;  %v7962_v36 = vld [vmem:[#allocation78_spill] sm:$0xff]  ;;  %v7963_v49 = vld [vmem:[#allocation96_spill] sm:$0xff] }
 0xac0   :  { %3230 = vmatpush.msra.mxu0 %v7953_v10  ;;  %3250 = vmatpush.msra.mxu1 %v7954_v50  ;;  %v206_v31 = vadd.f32 %v7962_v36, %v7961_v56  ;;  %v283_v10 = vadd.f32 %v7964_v53, %v7963_v49 }
 0xac1   :  { %3270 = vmatpush.msra.mxu2 %v7955_v39  ;;  %3290 = vmatpush.msra.mxu3 %v7956_v28 }
 0xac2   :  { %3231 = vmatpush.msra.mxu0 %v7957_v42  ;;  %3251 = vmatpush.msra.mxu1 %v7958_v40  ;;  %v7965_v42 = vld [vmem:[#allocation19_spill] sm:$0xff] }
 0xac3   :  { %3271 = vmatpush.msra.mxu2 %v7959_v8  ;;  %3291 = vmatpush.msra.mxu3 %v7960_v44  ;;  %v360_v40 = vadd.f32 %v7966_v12, %v7965_v42 }
 0xb1f   :  { %v2925_v62 = vpop.f32.mrf.mxu0  ;;  %v2945_v50 = vpop.f32.mrf.mxu1 }
 0xb20   :  { %v2926_v5 = vadd.f32 %v2925_v62, %v206_v31  ;;  %v2946_v39 = vadd.f32 %v2945_v50, %v283_v10  ;;  %v7967_v31 = vld [vmem:[#allocation98_spill] sm:$0xff] }
 0xb22   :  { %v3825_v19 = vmul.f32 -1.442695, %v2926_v5  ;;  %v3826_v28 = vmul.f32 -1.442695, %v2946_v39  ;;  %v7968_v5 = vld [vmem:[#allocation81_spill] sm:$0xff] }
 0xb23   :  { %v437_v10 = vadd.f32 %v7968_v5, %v7967_v31 }
 0xb24   :  { %4109 = vpow2.f32 %v3825_v19 }
 0xb25   :  { %4111 = vpow2.f32 %v3826_v28 }
 0xb26   :  { %v2965_v8 = vpop.f32.mrf.mxu2  ;;  %v2985_v53 = vpop.f32.mrf.mxu3 }
 0xb27   :  { %v2966_v34 = vadd.f32 %v2965_v8, %v360_v40  ;;  %v2986_v39 = vadd.f32 %v2985_v53, %v437_v10 }
 0xb29   :  { %v3827_v44 = vmul.f32 -1.442695, %v2966_v34 }
 0xb2a   :  { %v4110_v21 = vpop.eup %4109 }
 0xb2b   :  { %v4112_v17 = vpop.eup %4111  ;;  %v2997_v36 = vadd.f32 1.0, %v4110_v21  ;;  %4113 = vpow2.f32 %v3827_v44 }
 0xb2c   :  { %v2998_v56 = vadd.f32 1.0, %v4112_v17 }
 0xb2d   :  { %4115 = vrcp.f32 %v2997_v36  ;;  %v3011_v42 = vand.u32 2147483648, %v2997_v36  ;;  %v3009_v44 = vand.u32 2147483647, %v2997_v36  ;;  %vm3005_vm7 = vweird.f32 %v2997_v36 }
 0xb2e   :  { %4117 = vrcp.f32 %v2998_v56  ;;  %v3026_v21 = vand.u32 2147483648, %v2998_v56  ;;  %v3024_v18 = vand.u32 2147483647, %v2998_v56  ;;  %vm3020_vm8 = vweird.f32 %v2998_v56 }
 0xb2f   :  { %vm3010_vm11 = vcmp.eq.f32.partialorder %v3009_v44, 8.507059e+37  ;;  %v7988_v44 = vld [vmem:[#allocation20_spill] sm:$0xff] }
 0xb30   :  { %vm3025_vm12 = vcmp.eq.f32.partialorder %v3024_v18, 8.507059e+37 }
 0xb31   :  { %v4114_v62 = vpop.eup %4113 }
 0xb32   :  { %v2999_v19 = vadd.f32 1.0, %v4114_v62  ;;  %v3012_v62 = vor.u32 1.1754944e-38, %v3011_v42 }
 0xb33   :  { %v4116_v50 = vpop.eup %4115 }
 0xb34   :  { %v4118_v12 = vpop.eup %4117  ;;  %v3001_v28 = vmul.f32 %v4116_v50, %v2997_v36  ;;  %4119 = vrcp.f32 %v2999_v19  ;;  %vm3006_vm5 = vweird.f32 %v4116_v50  ;;  %v3041_v42 = vand.u32 2147483648, %v2999_v19 }
 0xb35   :  { %v3016_v8 = vmul.f32 %v4118_v12, %v2998_v56  ;;  %4121 = vtanh.f32 %v2986_v39  ;;  %vm3021_vm6 = vweird.f32 %v4118_v12  ;;  %vm3007_vm9 = vmor %vm3005_vm7, %vm3006_vm5  ;;  %vm3035_vm14 = vweird.f32 %v2999_v19 }
 0xb36   :  { %v3002_v34 = vsub.f32 1.0, %v3001_v28  ;;  %vm3022_vm10 = vmor %vm3020_vm8, %vm3021_vm6  ;;  %v3027_v28 = vor.u32 1.1754944e-38, %v3026_v21  ;;  %v3042_v21 = vor.u32 1.1754944e-38, %v3041_v42  ;;  %v7999_v42 = vld [vmem:[#allocation83_spill] sm:$0xff] }
 0xb37   :  { %v3017_v40 = vsub.f32 1.0, %v3016_v8 }
 0xb38   :  { %v3003_v17 = vmul.f32 %v4116_v50, %v3002_v34 }
 0xb39   :  { %v3018_v49 = vmul.f32 %v4118_v12, %v3017_v40 }
 0xb3a   :  { %v4120_v43 = vpop.eup %4119  ;;  %v3004_v5 = vadd.f32 %v4116_v50, %v3003_v17 }
 0xb3b   :  { %v3031_v53 = vmul.f32 %v4120_v43, %v2999_v19  ;;  %v3019_v10 = vadd.f32 %v4118_v12, %v3018_v49  ;;  %v4122_v39 = vpop.eup %4121  ;;  %vm3036_vm13 = vweird.f32 %v4120_v43  ;;  %v3039_v49 = vand.u32 2147483647, %v2999_v19  ;;  %v7986_v19 = vld [vmem:[#allocation16_spill] sm:$0xff] }
 0xb3c   :  { %v3008_v8 = vsel %vm3007_vm9, %v4116_v50, %v3004_v5  ;;  %vm3037_vm15 = vmor %vm3035_vm14, %vm3036_vm13  ;;  %v7989_v5 = vld [vmem:[#allocation22_spill] sm:$0xff] }
 0xb3d   :  { %v3032_v31 = vsub.f32 1.0, %v3031_v53  ;;  %v3013_v34 = vsel %vm3010_vm11, %v3012_v62, %v3008_v8  ;;  %v3023_v1 = vsel %vm3022_vm10, %v4118_v12, %v3019_v10  ;;  %vm3040_vm0 = vcmp.eq.f32.partialorder %v3039_v49, 8.507059e+37  ;;  %v7987_v12 = vld [vmem:[#allocation17_spill] sm:$0xff]  ;;  %v7991_v62 = vld [vmem:[#allocation26_spill] sm:$0xff]  ;;  %v7992_v10 = vld [vmem:[#allocation27_spill] sm:$0xff] }
 0xb3e   :  { %v3028_v40 = vsel %vm3025_vm12, %v3027_v28, %v3023_v1  ;;  %v3047_v0 = vmul.f32 %v4122_v39, %v3013_v34  ;;  %v3864_v1 = vld [vmem:[%s7147_s4 + $0xf] ss:$0 sm:$0xff]  ;;  %v7990_v53 = vld [vmem:[#allocation25_spill] sm:$0xff]  ;;  %v7994_v8 = vld [vmem:[#allocation38_spill] sm:$0xff] }
 0xb3f   :  { %v3033_v3 = vmul.f32 %v4120_v43, %v3032_v31  ;;  %v3046_v17 = vmul.f32 %v3028_v40, %v6866_v15  ;;  %v7993_v28 = vld [vmem:[#allocation37_spill] sm:$0xff]  ;;  %v7995_v39 = vld [vmem:[#allocation39_spill] sm:$0xff]  ;;  %v7997_v40 = vld [vmem:[#allocation82_spill] sm:$0xff] }
 0xb40   :  { %v7996_v34 = vld [vmem:[#allocation95_spill] sm:$0xff] }
 0xb41   :  { %v6948_v36 = vadd.f32 %v3047_v0, %v3046_v17  ;;  %v3034_v56 = vadd.f32 %v4120_v43, %v3033_v3  ;;  %v209_v17 = vadd.f32 %v7997_v40, %v7996_v34 }
 0xb43   :  { %4123 = vtanh.f32 %v6948_v36  ;;  %v3038_v50 = vsel %vm3037_vm15, %v4120_v43, %v3034_v56  ;;  %v7985_v43 = vld [vmem:[#allocation21_spill] sm:$0xff]  ;;  %v7998_v56 = vld [vmem:[#allocation96_spill] sm:$0xff] }
 0xb44   :  { %v3043_v31 = vsel %vm3040_vm0, %v3042_v21, %v3038_v50  ;;  %v286_v49 = vadd.f32 %v7999_v42, %v7998_v56 }
 0xb49   :  { %v4124_v18 = vpop.eup %4123 }
 0xb4a   :  { %v3050_v15 = vmul.f32 %v4124_v18, %v3043_v31 }
 0xb4c   :  { %3078 = vmatmul.f32.vlgmr.msrb.gmra.mxu0 %v3050_v15  ;;  %3098 = vmatmul.f32.vlgmr.msrb.gmra.mxu1 %v3050_v15  ;;  %v3056_v0 = vmul.f32 %v3864_v1, %v3050_v15 }
 0xb4d   :  { %3118 = vmatmul.f32.vlgmr.msrb.gmra.mxu2 %v3050_v15  ;;  %3138 = vmatmul.f32.vlgmr.msrb.gmra.mxu3 %v3050_v15 }
 0xb4e   :  { %3370 = vmatpush.msrb.mxu0 %v6580_v58  ;;  %3390 = vmatpush.msrb.mxu1 %v6583_v23  ;;  %v6957_v3 = vadd.f32 %v3056_v0, %v6875_v54  ;;  %v7969_v58 = vld [vmem:[#allocation32_spill] sm:$0xff]  ;;  %v7970_v23 = vld [vmem:[#allocation33_spill] sm:$0xff]  ;;  %v8000_v0 = vld [vmem:[#allocation19_spill] sm:$0xff] }
 0xb4f   :  { %3410 = vmatpush.msrb.mxu2 %v6589_v14  ;;  %3430 = vmatpush.msrb.mxu3 %v6592_v55  ;;  %v7971_v14 = vld [vmem:[#allocation34_spill] sm:$0xff]  ;;  %v7972_v55 = vld [vmem:[#allocation35_spill] sm:$0xff]  ;;  %v7984_v54 = vld [vmem:[#allocation53_spill] sm:$0xff] }
 0xb50   :  { %3371 = vmatpush.msrb.mxu0 %v6595_v16  ;;  %3391 = vmatpush.msrb.mxu1 %v6598_v61  ;;  %v7973_v16 = vld [vmem:[#allocation36_spill] sm:$0xff] }
 0xb51   :  { %3411 = vmatpush.msrb.mxu2 %v6601_v11  ;;  %3431 = vmatpush.msrb.mxu3 %v6604_v2  ;;  %v7974_v61 = vld [vmem:[#allocation24_spill] sm:$0xff]  ;;  %v7975_v11 = vld [vmem:[#allocation10_spill] sm:$0xff]  ;;  %v7976_v2 = vld [vmem:[#allocation11_spill] sm:$0xff] }
 0xb52   :  { %3372 = vmatpush.msrb.mxu0 %v6607_v4  ;;  %3392 = vmatpush.msrb.mxu1 %v6610_v63  ;;  %v7977_v4 = vld [vmem:[#allocation15_spill] sm:$0xff]  ;;  %v7978_v63 = vld [vmem:[#allocation12_spill] sm:$0xff] }
 0xb53   :  { %3412 = vmatpush.msrb.mxu2 %v6613_v26  ;;  %3432 = vmatpush.msrb.mxu3 %v6616_v48  ;;  %v7979_v26 = vld [vmem:[#allocation13_spill] sm:$0xff]  ;;  %v7980_v48 = vld [vmem:[#allocation14_spill] sm:$0xff] }
 0xb54   :  { %3373 = vmatpush.msrb.mxu0 %v6619_v57  ;;  %3393 = vmatpush.msrb.mxu1 %v6622_v9  ;;  %v7981_v57 = vld [vmem:[#allocation51_spill] sm:$0xff]  ;;  %v7982_v9 = vld [vmem:[#allocation52_spill] sm:$0xff] }
 0xb55   :  { %3413 = vmatpush.msrb.mxu2 %v6625_v46  ;;  %3433 = vmatpush.msrb.mxu3 %v6710_v60  ;;  %v7983_v46 = vld [vmem:[#allocation9_spill] sm:$0xff] }
 0xb56   :  { %3374 = vmatpush.msrb.mxu0 %v6713_v35  ;;  %3394 = vmatpush.msrb.mxu1 %v6716_v47 }
 0xb57   :  { %3414 = vmatpush.msrb.mxu2 %v6719_v22  ;;  %3434 = vmatpush.msrb.mxu3 %v6722_v29 }
 0xb58   :  { %3375 = vmatpush.msrb.mxu0 %v6725_v7  ;;  %3395 = vmatpush.msrb.mxu1 %v6728_v59 }
 0xb59   :  { %3415 = vmatpush.msrb.mxu2 %v6731_v25  ;;  %3435 = vmatpush.msrb.mxu3 %v6734_v20 }
 0xb5a   :  { %3376 = vmatpush.msrb.mxu0 %v6737_v41  ;;  %3396 = vmatpush.msrb.mxu1 %v6740_v52 }
 0xb5b   :  { %3416 = vmatpush.msrb.mxu2 %v6743_v24  ;;  %3436 = vmatpush.msrb.mxu3 %v6746_v38 }
 0xb5c   :  { %3377 = vmatpush.msrb.mxu0 %v6749_v51  ;;  %3397 = vmatpush.msrb.mxu1 %v6752_v27 }
 0xb5d   :  { %3417 = vmatpush.msrb.mxu2 %v6755_v32  ;;  %3437 = vmatpush.msrb.mxu3 %v6758_v45 }
 0xb5e   :  { %3378 = vmatpush.msrb.mxu0 %v6761_v6  ;;  %3398 = vmatpush.msrb.mxu1 %v6764_v37 }
 0xb5f   :  { %3418 = vmatpush.msrb.mxu2 %v6767_v33  ;;  %3438 = vmatpush.msrb.mxu3 %v6770_v30 }
 0xb60   :  { %3379 = vmatpush.msrb.mxu0 %v6773_v13  ;;  %3399 = vmatpush.msrb.mxu1 %v7969_v58 }
 0xb61   :  { %3419 = vmatpush.msrb.mxu2 %v7970_v23  ;;  %3439 = vmatpush.msrb.mxu3 %v7971_v14 }
 0xb62   :  { %3380 = vmatpush.msrb.mxu0 %v7972_v55  ;;  %3400 = vmatpush.msrb.mxu1 %v7973_v16 }
 0xb63   :  { %3420 = vmatpush.msrb.mxu2 %v7974_v61  ;;  %3440 = vmatpush.msrb.mxu3 %v7975_v11 }
 0xb64   :  { %3381 = vmatpush.msrb.mxu0 %v7976_v2  ;;  %3401 = vmatpush.msrb.mxu1 %v7977_v4 }
 0xb65   :  { %3421 = vmatpush.msrb.mxu2 %v7978_v63  ;;  %3441 = vmatpush.msrb.mxu3 %v7979_v26 }
 0xb66   :  { %3382 = vmatpush.msrb.mxu0 %v7980_v48  ;;  %3402 = vmatpush.msrb.mxu1 %v7981_v57 }
 0xb67   :  { %3422 = vmatpush.msrb.mxu2 %v7982_v9  ;;  %3442 = vmatpush.msrb.mxu3 %v7983_v46 }
 0xb68   :  { %3383 = vmatpush.msrb.mxu0 %v7984_v54  ;;  %3403 = vmatpush.msrb.mxu1 %v7985_v43 }
 0xb69   :  { %3423 = vmatpush.msrb.mxu2 %v7986_v19  ;;  %3443 = vmatpush.msrb.mxu3 %v7987_v12 }
 0xb6a   :  { %3384 = vmatpush.msrb.mxu0 %v7988_v44  ;;  %3404 = vmatpush.msrb.mxu1 %v7989_v5 }
 0xb6b   :  { %3424 = vmatpush.msrb.mxu2 %v7990_v53  ;;  %3444 = vmatpush.msrb.mxu3 %v7991_v62 }
 0xb6c   :  { %3385 = vmatpush.msrb.mxu0 %v7992_v10  ;;  %3405 = vmatpush.msrb.mxu1 %v7993_v28  ;;  %v8001_v10 = vld [vmem:[#allocation84_spill] sm:$0xff] }
 0xb6d   :  { %3425 = vmatpush.msrb.mxu2 %v7994_v8  ;;  %3445 = vmatpush.msrb.mxu3 %v7995_v39  ;;  %v363_v28 = vadd.f32 %v8001_v10, %v8000_v0 }
 0xbc9   :  { %v3079_v50 = vpop.f32.mrf.mxu0  ;;  %v3099_v21 = vpop.f32.mrf.mxu1 }
 0xbca   :  { %v3080_v1 = vadd.f32 %v3079_v50, %v209_v17  ;;  %v3100_v18 = vadd.f32 %v3099_v21, %v286_v49  ;;  %v8002_v49 = vld [vmem:[#allocation98_spill] sm:$0xff]  ;;  %v8003_v50 = vld [vmem:[#allocation87_spill] sm:$0xff] }
 0xbcb   :  { %v440_v21 = vadd.f32 %v8003_v50, %v8002_v49 }
 0xbcc   :  { %v3829_v31 = vmul.f32 -1.442695, %v3080_v1  ;;  %v3830_v15 = vmul.f32 -1.442695, %v3100_v18 }
 0xbce   :  { %4125 = vpow2.f32 %v3829_v31 }
 0xbcf   :  { %4127 = vpow2.f32 %v3830_v15 }
 0xbd0   :  { %v3119_v8 = vpop.f32.mrf.mxu2  ;;  %v3139_v42 = vpop.f32.mrf.mxu3 }
 0xbd1   :  { %v3120_v62 = vadd.f32 %v3119_v8, %v363_v28  ;;  %v3140_v31 = vadd.f32 %v3139_v42, %v440_v21 }
 0xbd3   :  { %v3831_v39 = vmul.f32 -1.442695, %v3120_v62 }
 0xbd4   :  { %v4126_v53 = vpop.eup %4125 }
 0xbd5   :  { %v4128_v5 = vpop.eup %4127  ;;  %v3151_v40 = vadd.f32 1.0, %v4126_v53  ;;  %4129 = vpow2.f32 %v3831_v39 }
 0xbd6   :  { %v3152_v34 = vadd.f32 1.0, %v4128_v5 }
 0xbd7   :  { %4131 = vrcp.f32 %v3151_v40  ;;  %v3165_v0 = vand.u32 2147483648, %v3151_v40  ;;  %v3163_v39 = vand.u32 2147483647, %v3151_v40  ;;  %vm3159_vm3 = vweird.f32 %v3151_v40 }
 0xbd8   :  { %4133 = vrcp.f32 %v3152_v34  ;;  %v3180_v53 = vand.u32 2147483648, %v3152_v34  ;;  %v3178_v44 = vand.u32 2147483647, %v3152_v34  ;;  %vm3174_vm4 = vweird.f32 %v3152_v34 }
 0xbd9   :  { %vm3164_vm7 = vcmp.eq.f32.partialorder %v3163_v39, 8.507059e+37  ;;  %v4448_v39 = vld [vmem:[#allocation4 + $0x1f8] sm:$0xff] }
 0xbda   :  { %vm3179_vm8 = vcmp.eq.f32.partialorder %v3178_v44, 8.507059e+37 }
 0xbdb   :  { %v4130_v17 = vpop.eup %4129 }
 0xbdc   :  { %v3153_v1 = vadd.f32 1.0, %v4130_v17  ;;  %v3166_v17 = vor.u32 1.1754944e-38, %v3165_v0 }
 0xbdd   :  { %v4132_v18 = vpop.eup %4131 }
 0xbde   :  { %v4134_v10 = vpop.eup %4133  ;;  %v3155_v15 = vmul.f32 %v4132_v18, %v3151_v40  ;;  %4135 = vrcp.f32 %v3153_v1  ;;  %vm3160_vm1 = vweird.f32 %v4132_v18  ;;  %v3195_v0 = vand.u32 2147483648, %v3153_v1 }
 0xbdf   :  { %v3170_v28 = vmul.f32 %v4134_v10, %v3152_v34  ;;  %4137 = vtanh.f32 %v3140_v31  ;;  %vm3175_vm2 = vweird.f32 %v4134_v10  ;;  %vm3161_vm5 = vmor %vm3159_vm3, %vm3160_vm1  ;;  %vm3189_vm10 = vweird.f32 %v3153_v1 }
 0xbe0   :  { %v3156_v62 = vsub.f32 1.0, %v3155_v15  ;;  %vm3176_vm6 = vmor %vm3174_vm4, %vm3175_vm2  ;;  %v3181_v15 = vor.u32 1.1754944e-38, %v3180_v53  ;;  %v3196_v53 = vor.u32 1.1754944e-38, %v3195_v0 }
 0xbe1   :  { %v3171_v8 = vsub.f32 1.0, %v3170_v28 }
 0xbe2   :  { %v3157_v5 = vmul.f32 %v4132_v18, %v3156_v62 }
 0xbe3   :  { %v3172_v56 = vmul.f32 %v4134_v10, %v3171_v8 }
 0xbe4   :  { %v4136_v12 = vpop.eup %4135  ;;  %v3158_v50 = vadd.f32 %v4132_v18, %v3157_v5 }
 0xbe5   :  { %v3185_v42 = vmul.f32 %v4136_v12, %v3153_v1  ;;  %v3173_v21 = vadd.f32 %v4134_v10, %v3172_v56  ;;  %v4138_v31 = vpop.eup %4137  ;;  %vm3190_vm9 = vweird.f32 %v4136_v12  ;;  %v3193_v56 = vand.u32 2147483647, %v3153_v1  ;;  %v4447_v1 = vld [vmem:[#allocation4 + $0x1f0] sm:$0xff] }
 0xbe6   :  { %v3162_v28 = vsel %vm3161_vm5, %v4132_v18, %v3158_v50  ;;  %vm3191_vm11 = vmor %vm3189_vm10, %vm3190_vm9  ;;  %v4449_v50 = vld [vmem:[#allocation4 + $0x1c0] sm:$0xff] }
 0xbe7   :  { %v3186_v49 = vsub.f32 1.0, %v3185_v42  ;;  %v3167_v62 = vsel %vm3164_vm7, %v3166_v17, %v3162_v28  ;;  %v3177_v19 = vsel %vm3176_vm6, %v4134_v10, %v3173_v21  ;;  %vm3194_vm12 = vcmp.eq.f32.partialorder %v3193_v56, 8.507059e+37  ;;  %v4446_v10 = vld [vmem:[#allocation4 + $0x1e8] sm:$0xff]  ;;  %v4451_v17 = vld [vmem:[#allocation4 + $0x1d0] sm:$0xff]  ;;  %v4452_v21 = vld [vmem:[#allocation4 + $0x1d8] sm:$0xff] }
 0xbe8   :  { %v3182_v8 = vsel %vm3179_vm8, %v3181_v15, %v3177_v19  ;;  %v3201_v43 = vmul.f32 %v4138_v31, %v3167_v62  ;;  %v3865_v19 = vld [vmem:[%s7147_s4 + $0x10] ss:$0 sm:$0xff]  ;;  %v4450_v42 = vld [vmem:[#allocation4 + $0x1c8] sm:$0xff]  ;;  %v4453_v15 = vld [vmem:[#allocation4 + $0x1a0] sm:$0xff] }
 0xbe9   :  { %v3187_v54 = vmul.f32 %v4136_v12, %v3186_v49  ;;  %v3200_v5 = vmul.f32 %v3182_v8, %v6948_v36  ;;  %v4454_v28 = vld [vmem:[#allocation4 + $0x1a8] sm:$0xff]  ;;  %v4455_v31 = vld [vmem:[#allocation4 + $0x1b0] sm:$0xff]  ;;  %v4457_v62 = vld [vmem:[#allocation4 + $0x180] sm:$0xff] }
 0xbea   :  { %v4458_v8 = vld [vmem:[#allocation4 + $0x188] sm:$0xff] }
 0xbeb   :  { %v7030_v40 = vadd.f32 %v3201_v43, %v3200_v5  ;;  %v3188_v34 = vadd.f32 %v4136_v12, %v3187_v54  ;;  %v4445_v54 = vld [vmem:[#allocation4 + $0x1e0] sm:$0xff]  ;;  %v4459_v5 = vld [vmem:[#allocation4 + $0x190] sm:$0xff] }
 0xbed   :  { %4139 = vtanh.f32 %v7030_v40  ;;  %v3192_v18 = vsel %vm3191_vm11, %v4136_v12, %v3188_v34  ;;  %v8023_v34 = vld [vmem:[#allocation91_spill] sm:$0xff] }
 0xbee   :  { %v3197_v49 = vsel %vm3194_vm12, %v3196_v53, %v3192_v18 }
 0xbf3   :  { %v4140_v44 = vpop.eup %4139 }
 0xbf4   :  { %v3204_v36 = vmul.f32 %v4140_v44, %v3197_v49 }
 0xbf6   :  { %3232 = vmatmul.f32.vlgmr.msra.gmra.mxu0 %v3204_v36  ;;  %3252 = vmatmul.f32.vlgmr.msra.gmra.mxu1 %v3204_v36  ;;  %v3210_v43 = vmul.f32 %v3865_v19, %v3204_v36 }
 0xbf7   :  { %3272 = vmatmul.f32.vlgmr.msra.gmra.mxu2 %v3204_v36  ;;  %3292 = vmatmul.f32.vlgmr.msra.gmra.mxu3 %v3204_v36 }
 0xbf8   :  { %3524 = vmatpush.msra.mxu0 %v4445_v54  ;;  %3544 = vmatpush.msra.mxu1 %v4446_v10  ;;  %v7037_v12 = vadd.f32 %v3210_v43, %v6957_v3  ;;  %v4456_v3 = vld [vmem:[#allocation4 + $0x1b8] sm:$0xff] }
 0xbf9   :  { %3564 = vmatpush.msra.mxu2 %v4447_v1  ;;  %3584 = vmatpush.msra.mxu3 %v4448_v39 }
 0xbfa   :  { %3525 = vmatpush.msra.mxu0 %v4449_v50  ;;  %3545 = vmatpush.msra.mxu1 %v4450_v42 }
 0xbfb   :  { %3565 = vmatpush.msra.mxu2 %v4451_v17  ;;  %3585 = vmatpush.msra.mxu3 %v4452_v21 }
 0xbfc   :  { %3526 = vmatpush.msra.mxu0 %v4453_v15  ;;  %3546 = vmatpush.msra.mxu1 %v4454_v28 }
 0xbfd   :  { %3566 = vmatpush.msra.mxu2 %v4455_v31  ;;  %3586 = vmatpush.msra.mxu3 %v4456_v3 }
 0xbfe   :  { %3527 = vmatpush.msra.mxu0 %v4457_v62  ;;  %3547 = vmatpush.msra.mxu1 %v4458_v8 }
 0xbff   :  { %3567 = vmatpush.msra.mxu2 %v4459_v5  ;;  %3587 = vmatpush.msra.mxu3 %v6710_v60  ;;  %v8004_v60 = vld [vmem:[#allocation53_spill] sm:$0xff] }
 0xc00   :  { %3528 = vmatpush.msra.mxu0 %v6713_v35  ;;  %3548 = vmatpush.msra.mxu1 %v6716_v47  ;;  %v8005_v35 = vld [vmem:[#allocation21_spill] sm:$0xff]  ;;  %v8006_v47 = vld [vmem:[#allocation16_spill] sm:$0xff] }
 0xc01   :  { %3568 = vmatpush.msra.mxu2 %v6719_v22  ;;  %3588 = vmatpush.msra.mxu3 %v6722_v29  ;;  %v8007_v22 = vld [vmem:[#allocation17_spill] sm:$0xff]  ;;  %v8008_v29 = vld [vmem:[#allocation20_spill] sm:$0xff] }
 0xc02   :  { %3529 = vmatpush.msra.mxu0 %v6725_v7  ;;  %3549 = vmatpush.msra.mxu1 %v6728_v59  ;;  %v8009_v7 = vld [vmem:[#allocation22_spill] sm:$0xff]  ;;  %v8010_v59 = vld [vmem:[#allocation25_spill] sm:$0xff] }
 0xc03   :  { %3569 = vmatpush.msra.mxu2 %v6731_v25  ;;  %3589 = vmatpush.msra.mxu3 %v6734_v20  ;;  %v8011_v25 = vld [vmem:[#allocation26_spill] sm:$0xff]  ;;  %v8012_v20 = vld [vmem:[#allocation27_spill] sm:$0xff] }
 0xc04   :  { %3530 = vmatpush.msra.mxu0 %v6737_v41  ;;  %3550 = vmatpush.msra.mxu1 %v6740_v52  ;;  %v8013_v41 = vld [vmem:[#allocation37_spill] sm:$0xff]  ;;  %v8014_v52 = vld [vmem:[#allocation38_spill] sm:$0xff] }
 0xc05   :  { %3570 = vmatpush.msra.mxu2 %v6743_v24  ;;  %3590 = vmatpush.msra.mxu3 %v6746_v38  ;;  %v8015_v24 = vld [vmem:[#allocation39_spill] sm:$0xff] }
 0xc06   :  { %3531 = vmatpush.msra.mxu0 %v6749_v51  ;;  %3551 = vmatpush.msra.mxu1 %v6752_v27  ;;  %v8016_v38 = vld [vmem:[#allocation95_spill] sm:$0xff]  ;;  %v8017_v51 = vld [vmem:[#allocation85_spill] sm:$0xff] }
 0xc07   :  { %3571 = vmatpush.msra.mxu2 %v6755_v32  ;;  %3591 = vmatpush.msra.mxu3 %v6758_v45  ;;  %v212_v27 = vadd.f32 %v8017_v51, %v8016_v38  ;;  %v8018_v32 = vld [vmem:[#allocation96_spill] sm:$0xff]  ;;  %v8019_v45 = vld [vmem:[#allocation86_spill] sm:$0xff]  ;;  %v3866_v51 = vld [vmem:[%s7147_s4 + $0x11] ss:$0 sm:$0xff] }
 0xc08   :  { %3532 = vmatpush.msra.mxu0 %v6761_v6  ;;  %3552 = vmatpush.msra.mxu1 %v6764_v37  ;;  %v289_v6 = vadd.f32 %v8019_v45, %v8018_v32 }
 0xc09   :  { %3572 = vmatpush.msra.mxu2 %v6767_v33  ;;  %3592 = vmatpush.msra.mxu3 %v6770_v30 }
 0xc0a   :  { %3533 = vmatpush.msra.mxu0 %v6773_v13  ;;  %3553 = vmatpush.msra.mxu1 %v7969_v58 }
 0xc0b   :  { %3573 = vmatpush.msra.mxu2 %v7970_v23  ;;  %3593 = vmatpush.msra.mxu3 %v7971_v14  ;;  %v8020_v14 = vld [vmem:[#allocation19_spill] sm:$0xff] }
 0xc0c   :  { %3534 = vmatpush.msra.mxu0 %v7972_v55  ;;  %3554 = vmatpush.msra.mxu1 %v7973_v16  ;;  %v8021_v55 = vld [vmem:[#allocation88_spill] sm:$0xff] }
 0xc0d   :  { %3574 = vmatpush.msra.mxu2 %v7974_v61  ;;  %3594 = vmatpush.msra.mxu3 %v7975_v11  ;;  %v366_v16 = vadd.f32 %v8021_v55, %v8020_v14 }
 0xc0e   :  { %3535 = vmatpush.msra.mxu0 %v7976_v2  ;;  %3555 = vmatpush.msra.mxu1 %v7977_v4 }
 0xc0f   :  { %3575 = vmatpush.msra.mxu2 %v7978_v63  ;;  %3595 = vmatpush.msra.mxu3 %v7979_v26 }
 0xc10   :  { %3536 = vmatpush.msra.mxu0 %v7980_v48  ;;  %3556 = vmatpush.msra.mxu1 %v7981_v57 }
 0xc11   :  { %3576 = vmatpush.msra.mxu2 %v7982_v9  ;;  %3596 = vmatpush.msra.mxu3 %v7983_v46  ;;  %v8022_v46 = vld [vmem:[#allocation98_spill] sm:$0xff] }
 0xc12   :  { %3537 = vmatpush.msra.mxu0 %v8004_v60  ;;  %3557 = vmatpush.msra.mxu1 %v8005_v35  ;;  %v443_v0 = vadd.f32 %v8023_v34, %v8022_v46 }
 0xc13   :  { %3577 = vmatpush.msra.mxu2 %v8006_v47  ;;  %3597 = vmatpush.msra.mxu3 %v8007_v22 }
 0xc14   :  { %3538 = vmatpush.msra.mxu0 %v8008_v29  ;;  %3558 = vmatpush.msra.mxu1 %v8009_v7 }
 0xc15   :  { %3578 = vmatpush.msra.mxu2 %v8010_v59  ;;  %3598 = vmatpush.msra.mxu3 %v8011_v25 }
 0xc16   :  { %3539 = vmatpush.msra.mxu0 %v8012_v20  ;;  %3559 = vmatpush.msra.mxu1 %v8013_v41 }
 0xc17   :  { %3579 = vmatpush.msra.mxu2 %v8014_v52  ;;  %3599 = vmatpush.msra.mxu3 %v8015_v24 }
 0xc73   :  { %v3233_v37 = vpop.f32.mrf.mxu0  ;;  %v3253_v33 = vpop.f32.mrf.mxu1 }
 0xc74   :  { %v3234_v30 = vadd.f32 %v3233_v37, %v212_v27  ;;  %v3254_v13 = vadd.f32 %v3253_v33, %v289_v6  ;;  %v8024_v33 = vld [vmem:[#allocation89_spill] sm:$0xff] }
 0xc76   :  { %v3833_v58 = vmul.f32 -1.442695, %v3234_v30  ;;  %v3834_v23 = vmul.f32 -1.442695, %v3254_v13  ;;  %v215_v30 = vadd.f32 %v8024_v33, %v8016_v38  ;;  %v8025_v13 = vld [vmem:[#allocation90_spill] sm:$0xff] }
 0xc77   :  { %v3867_v33 = vld [vmem:[%s7147_s4 + $0x12] ss:$0 sm:$0xff] }
 0xc78   :  { %4141 = vpow2.f32 %v3833_v58  ;;  %v292_v58 = vadd.f32 %v8025_v13, %v8018_v32 }
 0xc79   :  { %4143 = vpow2.f32 %v3834_v23 }
 0xc7a   :  { %v3273_v61 = vpop.f32.mrf.mxu2  ;;  %v3293_v57 = vpop.f32.mrf.mxu3 }
 0xc7b   :  { %v3274_v11 = vadd.f32 %v3273_v61, %v366_v16  ;;  %v3294_v53 = vadd.f32 %v3293_v57, %v443_v0 }
 0xc7d   :  { %v3835_v2 = vmul.f32 -1.442695, %v3274_v11 }
 0xc7e   :  { %v4142_v4 = vpop.eup %4141 }
 0xc7f   :  { %v4144_v63 = vpop.eup %4143  ;;  %v3305_v26 = vadd.f32 1.0, %v4142_v4  ;;  %4145 = vpow2.f32 %v3835_v2  ;;  %v8026_v4 = vld [vmem:[#allocation92_spill] sm:$0xff] }
 0xc80   :  { %v3306_v48 = vadd.f32 1.0, %v4144_v63  ;;  %v369_v63 = vadd.f32 %v8026_v4, %v8020_v14 }
 0xc81   :  { %4147 = vrcp.f32 %v3305_v26  ;;  %v3319_v54 = vand.u32 2147483648, %v3305_v26  ;;  %v3317_v39 = vand.u32 2147483647, %v3305_v26  ;;  %vm3313_vm15 = vweird.f32 %v3305_v26 }
 0xc82   :  { %4149 = vrcp.f32 %v3306_v48  ;;  %v3334_v10 = vand.u32 2147483648, %v3306_v48  ;;  %v3332_v42 = vand.u32 2147483647, %v3306_v48  ;;  %vm3328_vm0 = vweird.f32 %v3306_v48 }
 0xc83   :  { %v3320_v28 = vor.u32 1.1754944e-38, %v3319_v54  ;;  %vm3318_vm3 = vcmp.eq.f32.partialorder %v3317_v39, 8.507059e+37 }
 0xc84   :  { %v3335_v3 = vor.u32 1.1754944e-38, %v3334_v10  ;;  %vm3333_vm4 = vcmp.eq.f32.partialorder %v3332_v42, 8.507059e+37 }
 0xc85   :  { %v4146_v9 = vpop.eup %4145 }
 0xc86   :  { %v3307_v56 = vadd.f32 1.0, %v4146_v9 }
 0xc87   :  { %v4148_v18 = vpop.eup %4147 }
 0xc88   :  { %v4150_v19 = vpop.eup %4149  ;;  %v3309_v44 = vmul.f32 %v4148_v18, %v3305_v26  ;;  %4151 = vrcp.f32 %v3307_v56  ;;  %vm3314_vm13 = vweird.f32 %v4148_v18  ;;  %v3349_v20 = vand.u32 2147483648, %v3307_v56 }
 0xc89   :  { %v3324_v49 = vmul.f32 %v4150_v19, %v3306_v48  ;;  %4153 = vtanh.f32 %v3294_v53  ;;  %vm3329_vm14 = vweird.f32 %v4150_v19  ;;  %vm3315_vm1 = vmor %vm3313_vm15, %vm3314_vm13  ;;  %vm3343_vm6 = vweird.f32 %v3307_v56  ;;  %v8027_v53 = vld [vmem:[#allocation97_spill] sm:$0xff] }
 0xc8a   :  { %v3310_v36 = vsub.f32 1.0, %v3309_v44  ;;  %vm3330_vm2 = vmor %vm3328_vm0, %vm3329_vm14  ;;  %v3347_v41 = vand.u32 2147483647, %v3307_v56  ;;  %v3350_v24 = vor.u32 1.1754944e-38, %v3349_v20 }
 0xc8b   :  { %v3325_v43 = vsub.f32 1.0, %v3324_v49 }
 0xc8c   :  { %v3311_v1 = vmul.f32 %v4148_v18, %v3310_v36  ;;  %vm3348_vm8 = vcmp.eq.f32.partialorder %v3347_v41, 8.507059e+37 }
 0xc8d   :  { %v3326_v50 = vmul.f32 %v4150_v19, %v3325_v43 }
 0xc8e   :  { %v4152_v17 = vpop.eup %4151  ;;  %v3312_v21 = vadd.f32 %v4148_v18, %v3311_v1 }
 0xc8f   :  { %v3339_v15 = vmul.f32 %v4152_v17, %v3307_v56  ;;  %v3327_v31 = vadd.f32 %v4150_v19, %v3326_v50  ;;  %v4154_v8 = vpop.eup %4153  ;;  %vm3344_vm5 = vweird.f32 %v4152_v17 }
 0xc90   :  { %v3316_v62 = vsel %vm3315_vm1, %v4148_v18, %v3312_v21  ;;  %vm3345_vm7 = vmor %vm3343_vm6, %vm3344_vm5 }
 0xc91   :  { %v3340_v5 = vsub.f32 1.0, %v3339_v15  ;;  %v3321_v60 = vsel %vm3318_vm3, %v3320_v28, %v3316_v62  ;;  %v3331_v35 = vsel %vm3330_vm2, %v4150_v19, %v3327_v31  ;;  %v446_v19 = vadd.f32 %v8027_v53, %v8022_v46 }
 0xc92   :  { %v3336_v47 = vsel %vm3333_vm4, %v3335_v3, %v3331_v35  ;;  %v3355_v22 = vmul.f32 %v4154_v8, %v3321_v60 }
 0xc93   :  { %v3341_v29 = vmul.f32 %v4152_v17, %v3340_v5  ;;  %v3354_v7 = vmul.f32 %v3336_v47, %v7030_v40 }
 0xc95   :  { %v7097_v59 = vadd.f32 %v3355_v22, %v3354_v7  ;;  %v3342_v25 = vadd.f32 %v4152_v17, %v3341_v29 }
 0xc97   :  { %4155 = vtanh.f32 %v7097_v59  ;;  %v3346_v52 = vsel %vm3345_vm7, %v4152_v17, %v3342_v25 }
 0xc98   :  { %v3351_v45 = vsel %vm3348_vm8, %v3350_v24, %v3346_v52 }
 0xc9d   :  { %v4156_v27 = vpop.eup %4155 }
 0xc9e   :  { %v3358_v40 = vmul.f32 %v4156_v27, %v3351_v45 }
 0xca0   :  { %3386 = vmatmul.f32.vlgmr.msrb.gmra.mxu0 %v3358_v40  ;;  %3406 = vmatmul.f32.vlgmr.msrb.gmra.mxu1 %v3358_v40  ;;  %v3364_v6 = vmul.f32 %v3866_v51, %v3358_v40 }
 0xca1   :  { %3426 = vmatmul.f32.vlgmr.msrb.gmra.mxu2 %v3358_v40  ;;  %3446 = vmatmul.f32.vlgmr.msrb.gmra.mxu3 %v3358_v40 }
 0xca2   :  { %v7104_v37 = vadd.f32 %v3364_v6, %v7037_v12 }
 0xd1d   :  { %v3387_v23 = vpop.f32.mrf.mxu0  ;;  %v3407_v55 = vpop.f32.mrf.mxu1 }
 0xd1e   :  { %v3388_v16 = vadd.f32 %v3387_v23, %v215_v30  ;;  %v3408_v61 = vadd.f32 %v3407_v55, %v292_v58  ;;  %v8028_v55 = vld [vmem:[#allocation93_spill] sm:$0xff] }
 0xd20   :  { %v3837_v11 = vmul.f32 -1.442695, %v3388_v16  ;;  %v3838_v2 = vmul.f32 -1.442695, %v3408_v61  ;;  %v218_v16 = vadd.f32 %v8028_v55, %v8016_v38  ;;  %v8029_v61 = vld [vmem:[#allocation94_spill] sm:$0xff] }
 0xd22   :  { %4157 = vpow2.f32 %v3837_v11  ;;  %v295_v11 = vadd.f32 %v8029_v61, %v8018_v32 }
 0xd23   :  { %4159 = vpow2.f32 %v3838_v2 }
 0xd24   :  { %v3427_v26 = vpop.f32.mrf.mxu2  ;;  %v3447_v56 = vpop.f32.mrf.mxu3 }
 0xd25   :  { %v3428_v12 = vadd.f32 %v3427_v26, %v369_v63  ;;  %v3448_v36 = vadd.f32 %v3447_v56, %v446_v19 }
 0xd27   :  { %v3839_v48 = vmul.f32 -1.442695, %v3428_v12 }
 0xd28   :  { %v4158_v57 = vpop.eup %4157 }
 0xd29   :  { %v4160_v9 = vpop.eup %4159  ;;  %v3459_v34 = vadd.f32 1.0, %v4158_v57  ;;  %4161 = vpow2.f32 %v3839_v48  ;;  %v8030_v57 = vld [vmem:[#allocation18_spill] sm:$0xff] }
 0xd2a   :  { %v3460_v0 = vadd.f32 1.0, %v4160_v9  ;;  %v372_v9 = vadd.f32 %v8030_v57, %v8020_v14 }
 0xd2b   :  { %4163 = vrcp.f32 %v3459_v34  ;;  %v3473_v50 = vand.u32 2147483648, %v3459_v34  ;;  %v3471_v21 = vand.u32 2147483647, %v3459_v34  ;;  %vm3467_vm11 = vweird.f32 %v3459_v34 }
 0xd2c   :  { %4165 = vrcp.f32 %v3460_v0  ;;  %v3488_v42 = vand.u32 2147483648, %v3460_v0  ;;  %v3486_v28 = vand.u32 2147483647, %v3460_v0  ;;  %vm3482_vm12 = vweird.f32 %v3460_v0 }
 0xd2d   :  { %v3474_v8 = vor.u32 1.1754944e-38, %v3473_v50  ;;  %vm3472_vm15 = vcmp.eq.f32.partialorder %v3471_v21, 8.507059e+37 }
 0xd2e   :  { %v3489_v60 = vor.u32 1.1754944e-38, %v3488_v42  ;;  %vm3487_vm0 = vcmp.eq.f32.partialorder %v3486_v28, 8.507059e+37 }
 0xd2f   :  { %v4162_v18 = vpop.eup %4161 }
 0xd30   :  { %v3461_v44 = vadd.f32 1.0, %v4162_v18 }
 0xd31   :  { %v4164_v49 = vpop.eup %4163 }
 0xd32   :  { %v4166_v43 = vpop.eup %4165  ;;  %v3463_v54 = vmul.f32 %v4164_v49, %v3459_v34  ;;  %4167 = vrcp.f32 %v3461_v44  ;;  %vm3468_vm9 = vweird.f32 %v4164_v49  ;;  %v3503_v27 = vand.u32 2147483648, %v3461_v44 }
 0xd33   :  { %v3478_v10 = vmul.f32 %v4166_v43, %v3460_v0  ;;  %4169 = vtanh.f32 %v3448_v36  ;;  %vm3483_vm10 = vweird.f32 %v4166_v43  ;;  %vm3469_vm13 = vmor %vm3467_vm11, %vm3468_vm9  ;;  %vm3497_vm2 = vweird.f32 %v3461_v44 }
 0xd34   :  { %v3464_v1 = vsub.f32 1.0, %v3463_v54  ;;  %vm3484_vm14 = vmor %vm3482_vm12, %vm3483_vm10  ;;  %v3501_v45 = vand.u32 2147483647, %v3461_v44  ;;  %v3504_v6 = vor.u32 1.1754944e-38, %v3503_v27 }
 0xd35   :  { %v3479_v39 = vsub.f32 1.0, %v3478_v10 }
 0xd36   :  { %v3465_v17 = vmul.f32 %v4164_v49, %v3464_v1  ;;  %vm3502_vm4 = vcmp.eq.f32.partialorder %v3501_v45, 8.507059e+37 }
 0xd37   :  { %v3480_v15 = vmul.f32 %v4166_v43, %v3479_v39 }
 0xd38   :  { %v4168_v31 = vpop.eup %4167  ;;  %v3466_v3 = vadd.f32 %v4164_v49, %v3465_v17 }
 0xd39   :  { %v3493_v62 = vmul.f32 %v4168_v31, %v3461_v44  ;;  %v3481_v5 = vadd.f32 %v4166_v43, %v3480_v15  ;;  %v4170_v47 = vpop.eup %4169  ;;  %vm3498_vm1 = vweird.f32 %v4168_v31  ;;  %v8031_v44 = vld [vmem:[#allocation23_spill] sm:$0xff] }
 0xd3a   :  { %v3470_v35 = vsel %vm3469_vm13, %v4164_v49, %v3466_v3  ;;  %vm3499_vm3 = vmor %vm3497_vm2, %vm3498_vm1  ;;  %v449_v49 = vadd.f32 %v8031_v44, %v8022_v46  ;;  %vm3679_vm1 = vcmask 7168  }
 0xd3b   :  { %v3494_v22 = vsub.f32 1.0, %v3493_v62  ;;  %v3475_v29 = vsel %vm3472_vm15, %v3474_v8, %v3470_v35  ;;  %v3485_v7 = vsel %vm3484_vm14, %v4166_v43, %v3481_v5 }
 0xd3c   :  { %v3490_v25 = vsel %vm3487_vm0, %v3489_v60, %v3485_v7  ;;  %v3509_v20 = vmul.f32 %v4170_v47, %v3475_v29 }
 0xd3d   :  { %v3495_v41 = vmul.f32 %v4168_v31, %v3494_v22  ;;  %v3508_v52 = vmul.f32 %v3490_v25, %v7097_v59 }
 0xd3f   :  { %v7115_v24 = vadd.f32 %v3509_v20, %v3508_v52  ;;  %v3496_v51 = vadd.f32 %v4168_v31, %v3495_v41 }
 0xd41   :  { %4171 = vtanh.f32 %v7115_v24  ;;  %v3500_v40 = vsel %vm3499_vm3, %v4168_v31, %v3496_v51 }
 0xd42   :  { %v3505_v13 = vsel %vm3502_vm4, %v3504_v6, %v3500_v40 }
 0xd47   :  { %v4172_v30 = vpop.eup %4171 }
 0xd48   :  { %v3512_v59 = vmul.f32 %v4172_v30, %v3505_v13  ;;  %v3868_v30 = vld [vmem:[%s7147_s4 + $0x13] ss:$0 sm:$0xff] }
 0xd4a   :  { %3540 = vmatmul.f32.vlgmr.msra.gmra.mxu0 %v3512_v59  ;;  %3560 = vmatmul.f32.vlgmr.msra.gmra.mxu1 %v3512_v59  ;;  %v3518_v58 = vmul.f32 %v3867_v33, %v3512_v59 }
 0xd4b   :  { %3580 = vmatmul.f32.vlgmr.msra.gmra.mxu2 %v3512_v59  ;;  %3600 = vmatmul.f32.vlgmr.msra.gmra.mxu3 %v3512_v59 }
 0xd4c   :  { %v7122_v23 = vadd.f32 %v3518_v58, %v7104_v37 }
 0xdc7   :  { %v3541_v2 = vpop.f32.mrf.mxu0  ;;  %v3561_v4 = vpop.f32.mrf.mxu1 }
 0xdc8   :  { %v3542_v63 = vadd.f32 %v3541_v2, %v218_v16  ;;  %v3562_v26 = vadd.f32 %v3561_v4, %v295_v11  ;;  %v3677_v16 = vstv %s7148_s5 }
 0xdca   :  { %v3841_v12 = vmul.f32 -1.442695, %v3542_v63  ;;  %v3842_v48 = vmul.f32 -1.442695, %v3562_v26 }
 0xdcc   :  { %4173 = vpow2.f32 %v3841_v12 }
 0xdcd   :  { %4175 = vpow2.f32 %v3842_v48 }
 0xdce   :  { %v3581_v34 = vpop.f32.mrf.mxu2  ;;  %v3601_v32 = vpop.f32.mrf.mxu3 }
 0xdcf   :  { %v3582_v37 = vadd.f32 %v3581_v34, %v372_v9  ;;  %v3602_v54 = vadd.f32 %v3601_v32, %v449_v49 }
 0xdd1   :  { %v3843_v0 = vmul.f32 -1.442695, %v3582_v37 }
 0xdd2   :  { %v4174_v56 = vpop.eup %4173 }
 0xdd3   :  { %v4176_v18 = vpop.eup %4175  ;;  %v3613_v38 = vadd.f32 1.0, %v4174_v56  ;;  %4177 = vpow2.f32 %v3843_v0 }
 0xdd4   :  { %v3614_v53 = vadd.f32 1.0, %v4176_v18 }
 0xdd5   :  { %4179 = vrcp.f32 %v3613_v38  ;;  %v3627_v42 = vand.u32 2147483648, %v3613_v38  ;;  %v3625_v15 = vand.u32 2147483647, %v3613_v38  ;;  %vm3621_vm7 = vweird.f32 %v3613_v38 }
 0xdd6   :  { %4181 = vrcp.f32 %v3614_v53  ;;  %v3642_v17 = vand.u32 2147483648, %v3614_v53  ;;  %v3640_v31 = vand.u32 2147483647, %v3614_v53  ;;  %vm3636_vm8 = vweird.f32 %v3614_v53 }
 0xdd7   :  { %v3628_v8 = vor.u32 1.1754944e-38, %v3627_v42  ;;  %vm3626_vm11 = vcmp.eq.f32.partialorder %v3625_v15, 8.507059e+37 }
 0xdd8   :  { %v3643_v60 = vor.u32 1.1754944e-38, %v3642_v17  ;;  %vm3641_vm12 = vcmp.eq.f32.partialorder %v3640_v31, 8.507059e+37 }
 0xdd9   :  { %v4178_v19 = vpop.eup %4177 }
 0xdda   :  { %v3615_v36 = vadd.f32 1.0, %v4178_v19 }
 0xddb   :  { %v4180_v43 = vpop.eup %4179 }
 0xddc   :  { %v4182_v14 = vpop.eup %4181  ;;  %v3617_v10 = vmul.f32 %v4180_v43, %v3613_v38  ;;  %4183 = vrcp.f32 %v3615_v36  ;;  %vm3622_vm5 = vweird.f32 %v4180_v43  ;;  %v3657_v45 = vand.u32 2147483648, %v3615_v36 }
 0xddd   :  { %v3632_v1 = vmul.f32 %v4182_v14, %v3614_v53  ;;  %4185 = vtanh.f32 %v3602_v54  ;;  %vm3637_vm6 = vweird.f32 %v4182_v14  ;;  %vm3623_vm9 = vmor %vm3621_vm7, %vm3622_vm5  ;;  %vm3651_vm14 = vweird.f32 %v3615_v36 }
 0xdde   :  { %v3618_v39 = vsub.f32 1.0, %v3617_v10  ;;  %vm3638_vm10 = vmor %vm3636_vm8, %vm3637_vm6  ;;  %v3655_v40 = vand.u32 2147483647, %v3615_v36  ;;  %v3658_v33 = vor.u32 1.1754944e-38, %v3657_v45 }
 0xddf   :  { %v3633_v50 = vsub.f32 1.0, %v3632_v1 }
 0xde0   :  { %v3619_v21 = vmul.f32 %v4180_v43, %v3618_v39  ;;  %vm3656_vm0 = vcmp.eq.f32.partialorder %v3655_v40, 8.507059e+37 }
 0xde1   :  { %v3634_v28 = vmul.f32 %v4182_v14, %v3633_v50 }
 0xde2   :  { %v4184_v3 = vpop.eup %4183  ;;  %v3620_v46 = vadd.f32 %v4180_v43, %v3619_v21 }
 0xde3   :  { %v3647_v62 = vmul.f32 %v4184_v3, %v3615_v36  ;;  %v3635_v5 = vadd.f32 %v4182_v14, %v3634_v28  ;;  %v4186_v47 = vpop.eup %4185  ;;  %vm3652_vm13 = vweird.f32 %v4184_v3 }
 0xde4   :  { %v3624_v35 = vsel %vm3623_vm9, %v4180_v43, %v3620_v46  ;;  %vm3653_vm15 = vmor %vm3651_vm14, %vm3652_vm13 }
 0xde5   :  { %v3629_v22 = vsel %vm3626_vm11, %v3628_v8, %v3624_v35  ;;  %v3639_v29 = vsel %vm3638_vm10, %v4182_v14, %v3635_v5  ;;  %v3648_v7 = vsub.f32 1.0, %v3647_v62 }
 0xde6   :  { %v3644_v25 = vsel %vm3641_vm12, %v3643_v60, %v3639_v29  ;;  %v3663_v20 = vmul.f32 %v4186_v47, %v3629_v22 }
 0xde7   :  { %v3662_v41 = vmul.f32 %v3644_v25, %v7115_v24  ;;  %v3649_v52 = vmul.f32 %v4184_v3, %v3648_v7 }
 0xde9   :  { %v3664_v51 = vadd.f32 %v3663_v20, %v3662_v41  ;;  %v3650_v27 = vadd.f32 %v4184_v3, %v3649_v52 }
 0xdeb   :  { %4187 = vtanh.f32 %v3664_v51  ;;  %v3654_v6 = vsel %vm3653_vm15, %v4184_v3, %v3650_v27 }
 0xdec   :  { %v3659_v59 = vsel %vm3656_vm0, %v3658_v33, %v3654_v6 }
 0xdf1   :  { %v4188_v13 = vpop.eup %4187 }
 0xdf2   :  { %v3666_v58 = vmul.f32 %v4188_v13, %v3659_v59 }
 0xdf4   :  { %v3672_v24 = vmul.f32 %v3868_v30, %v3666_v58 }
 0xdf6   :  { %v3673_v55 = vadd.f32 %v3672_v24, %v7122_v23 }
 0xdf8   :  { %3674 = vadd.xlane.f32.xlu0 %v3673_v55 }
 0xe6b   :  { %v3675_v61 = vpop.xlane.xlu0 %3674 }
 0xe6c   :  { %v3678_v11 = vadd.f32 %v3677_v16, %v3675_v61 }
 0xe6e   :  { %3680 = vst.msk [vmem:[%s7149_s6] sm:$0xff] %vm3679_vm1, %v3678_v11 }
 0xe6f   :  { %3685 = vsyncpa [#allocation5], 1 }

</bundles_post_ra>
